<compile_context>
chip_gen: v7x
topology: tpu7x:2x2x1
jax: 0.10.0
libtpu: 0.0.40
codegen_flags: <defaults>
</compile_context>

<pallas_src>
import functools

import jax
import jax.numpy as jnp
from jax import lax
from jax.experimental import pallas as pl
from jax.experimental.pallas import tpu as pltpu

# ----------------------------- configuration --------------------------------
IMG = 32            # image size (scaled down from 384)
PATCH = 16          # ViT patch size
IN_CH = 3
D = 32              # hidden dim (scaled down from 768)
HEADS = 4
DH = D // HEADS
MLP = 4 * D
DEPTH = 12
HOOKS = (2, 5, 8, 11)
FEATS = (8, 16, 32, 32)     # reassemble per-stage features (scaled [256,512,768,768])
OF = 16                     # reassemble output_features / decoder features (scaled 256)
GRID = IMG // PATCH         # 2x2 token grid
N_TOK = GRID * GRID + 1     # +cls


# --------------------- fused matmul + bias + activation ----------------------
def _mm_bias_act_kernel(x_ref, w_ref, b_ref, o_ref, *, act):
    """(M,K)@(K,N) with bf16 MXU inputs, f32 accumulate, fused bias/ReLU."""
    acc = jnp.dot(x_ref[...], w_ref[...], preferred_element_type=jnp.float32)
    acc = acc + b_ref[...]
    if act == "relu":
        acc = jnp.maximum(acc, 0.0)
    o_ref[...] = acc


def matmul_bias_act(x, w, b, act=None):
    """Single-step pallas_call: every operand of this model fits in VMEM, so
    blocks are the full arrays (no 128-padding, no K grid, no output slice)."""
    M, K = x.shape
    K2, N = w.shape
    assert K == K2
    return pl.pallas_call(
        functools.partial(_mm_bias_act_kernel, act=act),
        out_shape=jax.ShapeDtypeStruct((M, N), jnp.float32),
    )(x.astype(jnp.bfloat16), w.astype(jnp.bfloat16),
      b.reshape(1, N).astype(jnp.float32))


# ------------------------------ conv helpers ---------------------------------
def conv2d(x, w, b, stride=1, pad=0, act=None):
    """NHWC conv via (small) im2col + fused Pallas matmul.
    x: (B,H,W,Cin); w: PyTorch layout (O, I, kh, kw); b: (O,)."""
    B, H, W, Cin = x.shape
    O, I, kh, kw = w.shape
    # TODO(synk): im2col patch extraction stays in XLA (tap-shifted slices);
    # at these shapes the expansion is a few hundred KB and is done in bf16.
    xp = jnp.pad(x.astype(jnp.bfloat16), ((0, 0), (pad, pad), (pad, pad), (0, 0)))
    Ho = (H + 2 * pad - kh) // stride + 1
    Wo = (W + 2 * pad - kw) // stride + 1
    if kh == 1 and kw == 1 and stride == 1:
        patches = xp
    else:
        cols = [xp[:, di:di + Ho * stride:stride, dj:dj + Wo * stride:stride, :]
                for di in range(kh) for dj in range(kw)]
        patches = jnp.concatenate(cols, axis=-1)
    patches = patches.reshape(B * Ho * Wo, kh * kw * Cin)
    wmat = jnp.transpose(w, (2, 3, 1, 0)).reshape(kh * kw * Cin, O)
    y = matmul_bias_act(patches, wmat, b, act=act)
    return y.reshape(B, Ho, Wo, O)


def conv_transpose_k_eq_s(x, w, b, k):
    """ConvTranspose2d with kernel_size == stride, padding 0.
    x: (B,h,w,Cin); w: PyTorch layout (Cin, Cout, k, k); b: (Cout,)."""
    B, h, wd, Cin = x.shape
    Cout = w.shape[1]
    wmat = w.reshape(Cin, Cout * k * k)
    bias = jnp.repeat(b, k * k)                   # bias folded into the matmul
    y = matmul_bias_act(x.reshape(B * h * wd, Cin), wmat, bias)
    y = y.reshape(B, h, wd, Cout, k, k)
    return jnp.transpose(y, (0, 1, 4, 2, 5, 3)).reshape(B, h * k, wd * k, Cout)


def pointwise(x, w, b):
    """1x1 conv: x (B,H,W,Cin) @ w (Cin,Cout) + b."""
    B, H, W, Cin = x.shape
    y = matmul_bias_act(x.reshape(B * H * W, Cin), w, b)
    return y.reshape(B, H, W, w.shape[-1])


def up2x_bilinear_ac(x):
    """F.interpolate(scale_factor=2, mode='bilinear', align_corners=True), NHWC.
    TODO(synk): gather-based resize kept in XLA (no clean Pallas equivalent)."""
    B, H, W, C = x.shape
    Ho, Wo = 2 * H, 2 * W

    def coords(n_in, n_out):
        step = (n_in - 1) / (n_out - 1) if n_out > 1 else 0.0
        src = jnp.arange(n_out, dtype=jnp.float32) * step
        i0 = jnp.clip(jnp.floor(src).astype(jnp.int32), 0, max(n_in - 2, 0))
        i1 = jnp.clip(i0 + 1, 0, n_in - 1)
        wgt = src - i0.astype(jnp.float32)
        return i0, i1, wgt

    y0, y1, wy = coords(H, Ho)
    x0, x1, wx = coords(W, Wo)

    def hblend(r):
        c0 = jnp.take(r, x0, axis=2)
        c1 = jnp.take(r, x1, axis=2)
        return c0 * (1.0 - wx)[None, None, :, None] + c1 * wx[None, None, :, None]

    top = hblend(jnp.take(x, y0, axis=1))
    bot = hblend(jnp.take(x, y1, axis=1))
    return top * (1.0 - wy)[None, :, None, None] + bot * wy[None, :, None, None]


# --------------------- fused ViT encoder (one pallas_call) -------------------
def _erf_poly(x):
    # Abramowitz & Stegun 7.1.26 polynomial erf (|err| < 1.5e-7): exact-GELU
    # equivalent at f32 precision, without relying on an erf lowering.
    p = 0.3275911
    a1, a2, a3, a4, a5 = (0.254829592, -0.284496736, 1.421413741,
                          -1.453152027, 1.061405429)
    ax = jnp.abs(x)
    t = 1.0 / (1.0 + p * ax)
    poly = t * (a1 + t * (a2 + t * (a3 + t * (a4 + t * a5))))
    y = 1.0 - poly * jnp.exp(-ax * ax)
    return jnp.where(x >= 0.0, y, -y)


def _gelu_exact(x):
    return 0.5 * x * (1.0 + _erf_poly(x * 0.7071067811865476))


def _layer_norm(x, g, b, eps=1e-6):
    mu = jnp.mean(x, axis=-1, keepdims=True)
    var = jnp.mean((x - mu) ** 2, axis=-1, keepdims=True)
    return (x - mu) * lax.rsqrt(var + eps) * g + b


def _bf(x):
    return x.astype(jnp.bfloat16)


def _encoder_block_kernel(emb_ref, bias_ref,
                          ln1g_ref, ln1b_ref,
                          wq_ref, bq_ref, wk_ref, bk_ref, wv_ref, bv_ref,
                          wp_ref, bp_ref,
                          ln2g_ref, ln2b_ref,
                          wfc1_ref, bfc1_ref, wfc2_ref, bfc2_ref,
                          out_ref, h_ref):
    """One ViT block per grid step; residual stream carried in VMEM scratch."""
    @pl.when(pl.program_id(0) == 0)
    def _():
        h_ref[...] = emb_ref[...]

    x = h_ref[...]                                        # (B*N, D) f32

    # ---- multi-head self-attention (per-head weights -> no lane slicing) ----
    hb = _bf(_layer_norm(x, ln1g_ref[0], ln1b_ref[0]))
    scale = 1.0 / (DH ** 0.5)
    nt = (((1,), (1,)), ((), ()))                         # contract last dims: A @ B^T
    attn = jnp.zeros(x.shape, jnp.float32)
    for hh in range(HEADS):
        q = jnp.dot(hb, _bf(wq_ref[0, hh]),
                    preferred_element_type=jnp.float32) + bq_ref[0, hh]
        k = jnp.dot(hb, _bf(wk_ref[0, hh]),
                    preferred_element_type=jnp.float32) + bk_ref[0, hh]
        v = jnp.dot(hb, _bf(wv_ref[0, hh]),
                    preferred_element_type=jnp.float32) + bv_ref[0, hh]
        s = lax.dot_general(_bf(q), _bf(k), nt,
                            preferred_element_type=jnp.float32) * scale
        s = s + bias_ref[...]                             # block-diag mask: no cross-batch attn
        s = s - jnp.max(s, axis=-1, keepdims=True)
        p = jnp.exp(s)
        p = p / jnp.sum(p, axis=-1, keepdims=True)
        o = jnp.dot(_bf(p), _bf(v), preferred_element_type=jnp.float32)
        attn = attn + jnp.dot(_bf(o), _bf(wp_ref[0, hh]),
                              preferred_element_type=jnp.float32)
    x = x + attn + bp_ref[0]

    # ---- MLP (exact GELU) ----
    h2 = _bf(_layer_norm(x, ln2g_ref[0], ln2b_ref[0]))
    f = jnp.dot(h2, _bf(wfc1_ref[0]),
                preferred_element_type=jnp.float32) + bfc1_ref[0]
    f = _gelu_exact(f)
    f = jnp.dot(_bf(f), _bf(wfc2_ref[0]),
                preferred_element_type=jnp.float32) + bfc2_ref[0]
    x = x + f

    h_ref[...] = x
    out_ref[0] = x


def run_encoder(emb, attn_bias, enc):
    """emb: (B*N, D) f32 -> hidden states after every block: (DEPTH, B*N, D)."""
    BN = emb.shape[0]

    def rep(arr):
        nd = arr.ndim
        return pl.BlockSpec(arr.shape, lambda *_: (0,) * nd)

    def per_layer(arr):
        n_rest = arr.ndim - 1
        return pl.BlockSpec((1,) + arr.shape[1:],
                            lambda i: (i,) + (0,) * n_rest)

    names = ('ln1_g', 'ln1_b', 'wq', 'bq', 'wk', 'bk', 'wv', 'bv',
             'wproj', 'bproj', 'ln2_g', 'ln2_b', 'wfc1', 'bfc1', 'wfc2', 'bfc2')
    weights = [enc[n] for n in names]

    return pl.pallas_call(
        _encoder_block_kernel,
        out_shape=jax.ShapeDtypeStruct((DEPTH, BN, D), jnp.float32),
        grid=(DEPTH,),
        in_specs=[rep(emb), rep(attn_bias)] + [per_layer(w) for w in weights],
        out_specs=pl.BlockSpec((1, BN, D), lambda i: (i, 0, 0)),
        scratch_shapes=[pltpu.VMEM((BN, D), jnp.float32)],
        compiler_params=pltpu.CompilerParams(dimension_semantics=("arbitrary",)),
    )(emb, attn_bias, *weights)


# ------------------------------ model blocks ---------------------------------
def reassemble(tokens, p, stage, B):
    # TODO(synk): readout mode not given in config; using DPT "ignore" readout.
    t = tokens[:, 1:, :]                                  # drop cls token
    fm = t.reshape(B, GRID, GRID, D)
    fm = pointwise(fm, p['proj_w'], p['proj_b'])          # 1x1 conv D -> F
    if stage == 0:                                        # s=4: upsample x4
        fm = conv_transpose_k_eq_s(fm, p['rs_w'], p['rs_b'], 4)
    elif stage == 1:                                      # s=8: upsample x2
        fm = conv_transpose_k_eq_s(fm, p['rs_w'], p['rs_b'], 2)
    elif stage == 3:                                      # s=32: downsample x2
        fm = conv2d(fm, p['rs_w'], p['rs_b'], stride=2, pad=1)
    # stage == 2 (s=16): identity resample
    return conv2d(fm, p['out_w'], p['out_b'], stride=1, pad=1)


def residual_conv_unit(x, w1, b1, w2, b2):
    out = conv2d(jax.nn.relu(x), w1, b1, stride=1, pad=1)
    out = conv2d(jax.nn.relu(out), w2, b2, stride=1, pad=1)
    return out + x


def fusion_block(p, x0, x1=None):
    out = x0
    if x1 is not None:
        out = out + residual_conv_unit(x1, p['rcu1_w1'], p['rcu1_b1'],
                                       p['rcu1_w2'], p['rcu1_b2'])
    out = residual_conv_unit(out, p['rcu2_w1'], p['rcu2_b1'],
                             p['rcu2_w2'], p['rcu2_b2'])
    return up2x_bilinear_ac(out)


def dpt_forward(params, x_nchw):
    """x_nchw: (B, 3, IMG, IMG) float32 -> (B, IMG, IMG)."""
    x = jnp.transpose(x_nchw, (0, 2, 3, 1)).astype(jnp.float32)   # NHWC
    B = x.shape[0]

    # ----- patch embedding (non-overlapping 16x16 stride-16 conv == matmul) -----
    patches = x.reshape(B, GRID, PATCH, GRID, PATCH, IN_CH)
    patches = patches.transpose(0, 1, 3, 2, 4, 5).reshape(
        B * GRID * GRID, PATCH * PATCH * IN_CH)
    wmat = jnp.transpose(params['patch_w'], (2, 3, 1, 0)).reshape(
        PATCH * PATCH * IN_CH, D)
    tok = matmul_bias_act(patches, wmat, params['patch_b']).reshape(B, GRID * GRID, D)
    cls = jnp.broadcast_to(params['cls'], (B, 1, D))
    emb = jnp.concatenate([cls, tok], axis=1) + params['pos']     # dropout: eval -> identity
    emb = emb.reshape(B * N_TOK, D)

    # additive block-diagonal mask so flattened (B*N) attention stays per-batch
    bid = jnp.repeat(jnp.arange(B, dtype=jnp.int32), N_TOK)
    attn_bias = jnp.where(bid[:, None] == bid[None, :], 0.0, -1e9).astype(jnp.float32)

    # ----- fused 12-block ViT encoder (single pallas_call) -----
    hs = run_encoder(emb, attn_bias, params['enc'])               # (DEPTH, B*N, D)
    hooked = [hs[i].reshape(B, N_TOK, D) for i in HOOKS]

    # ----- Reassembles -----
    feats = [reassemble(hooked[i], params['reassembles'][i], i, B) for i in range(4)]

    # ----- Decoder (feature fusion, coarse -> fine) -----
    xs = feats[::-1]
    path = fusion_block(params['decoder'][0], xs[0])
    for j in range(1, 4):
        path = fusion_block(params['decoder'][j], path, xs[j])

    # ----- Head (standard DPT depth head; `head` arg was None) -----
    hp = params['head']
    y = conv2d(path, hp['w1'], hp['b1'], stride=1, pad=1)
    y = up2x_bilinear_ac(y)
    y = conv2d(y, hp['w2'], hp['b2'], stride=1, pad=1, act="relu")
    y = conv2d(y, hp['w3'], hp['b3'], stride=1, pad=0, act="relu")  # 1x1 -> 1 ch
    return jnp.transpose(y, (0, 3, 1, 2))[:, 0]                     # squeeze(dim=1)


# ----------------------------- parameter init --------------------------------
class _Rng:
    def __init__(self, seed):
        self.key = jax.random.PRNGKey(seed)

    def next(self):
        self.key, sub = jax.random.split(self.key)
        return sub


def init_params(seed=42):
    rng = _Rng(seed)

    def W(shape, scale=0.02):
        return (scale * jax.random.normal(rng.next(), shape)).astype(jnp.float32)

    def Z(shape):
        return jnp.zeros(shape, jnp.float32)

    def ONES(shape):
        return jnp.ones(shape, jnp.float32)

    enc = {   # encoder weights stacked over DEPTH for the fused kernel
        'ln1_g': ONES((DEPTH, 1, D)), 'ln1_b': Z((DEPTH, 1, D)),
        'wq': W((DEPTH, HEADS, D, DH)), 'bq': Z((DEPTH, HEADS, 1, DH)),
        'wk': W((DEPTH, HEADS, D, DH)), 'bk': Z((DEPTH, HEADS, 1, DH)),
        'wv': W((DEPTH, HEADS, D, DH)), 'bv': Z((DEPTH, HEADS, 1, DH)),
        'wproj': W((DEPTH, HEADS, DH, D)), 'bproj': Z((DEPTH, 1, D)),
        'ln2_g': ONES((DEPTH, 1, D)), 'ln2_b': Z((DEPTH, 1, D)),
        'wfc1': W((DEPTH, D, MLP)), 'bfc1': Z((DEPTH, 1, MLP)),
        'wfc2': W((DEPTH, MLP, D)), 'bfc2': Z((DEPTH, 1, D)),
    }
    params = {
        'patch_w': W((D, IN_CH, PATCH, PATCH)), 'patch_b': Z((D,)),
        'cls': W((1, 1, D)), 'pos': W((1, N_TOK, D)),
        'enc': enc, 'reassembles': [], 'decoder': [],
    }
    for i in range(4):
        F = FEATS[i]
        p = {'proj_w': W((D, F)), 'proj_b': Z((F,)),
             'out_w': W((OF, F, 3, 3)), 'out_b': Z((OF,))}
        if i == 0:
            p['rs_w'] = W((F, F, 4, 4)); p['rs_b'] = Z((F,))
        elif i == 1:
            p['rs_w'] = W((F, F, 2, 2)); p['rs_b'] = Z((F,))
        elif i == 3:
            p['rs_w'] = W((F, F, 3, 3)); p['rs_b'] = Z((F,))
        params['reassembles'].append(p)
    for _ in range(4):
        params['decoder'].append({
            'rcu1_w1': W((OF, OF, 3, 3)), 'rcu1_b1': Z((OF,)),
            'rcu1_w2': W((OF, OF, 3, 3)), 'rcu1_b2': Z((OF,)),
            'rcu2_w1': W((OF, OF, 3, 3)), 'rcu2_b1': Z((OF,)),
            'rcu2_w2': W((OF, OF, 3, 3)), 'rcu2_b2': Z((OF,)),
        })
    params['head'] = {
        'w1': W((OF // 2, OF, 3, 3)), 'b1': Z((OF // 2,)),
        'w2': W((OF // 2, OF // 2, 3, 3)), 'b2': Z((OF // 2,)),
        'w3': W((1, OF // 2, 1, 1)), 'b3': Z((1,)),
    }
    return params


# ---------------------------------- main --------------------------------------
if __name__ == "__main__":
    params = init_params(seed=42)
    x = jax.random.normal(jax.random.PRNGKey(0), (2, IN_CH, IMG, IMG), jnp.float32)

    fwd = jax.jit(dpt_forward)
    out = jax.block_until_ready(fwd(params, x))

    assert out.shape == (2, IMG, IMG), out.shape
    assert bool(jnp.all(jnp.isfinite(out)))
    print("KERNEL_OK")
</pallas_src>

<mosaic_0001>
module attributes {stable_mosaic.version = 11 : i64} {
  func.func @_mm_bias_act_kernel(%arg0: memref<8x768xbf16, #tpu.memory_space<vmem>>, %arg1: memref<768x32xbf16, #tpu.memory_space<vmem>>, %arg2: memref<1x32xf32, #tpu.memory_space<vmem>>, %arg3: memref<8x32xf32, #tpu.memory_space<vmem>>) attributes {dimension_semantics = [], scalar_prefetch = 0 : i64, scratch_operands = 0 : i64, tpu.core_type = #tpu.core_type<tc>} {
    %c0 = arith.constant 0 : index
    %c0_0 = arith.constant 0 : index
    %0 = vector.load %arg0[%c0, %c0_0] : memref<8x768xbf16, #tpu.memory_space<vmem>>, vector<8x768xbf16>
    %c0_1 = arith.constant 0 : index
    %c0_2 = arith.constant 0 : index
    %1 = vector.load %arg1[%c0_1, %c0_2] : memref<768x32xbf16, #tpu.memory_space<vmem>>, vector<768x32xbf16>
    %cst = arith.constant dense<0.000000e+00> : vector<8x32xf32>
    %2 = tpu.matmul %0, %1, %cst {dimension_numbers = #tpu.dot_dimension_numbers<[1], [0], [0], [1], [0, 0, 1, 1], [], []>} : vector<8x768xbf16>, vector<768x32xbf16>, vector<8x32xf32> -> vector<8x32xf32>
    %c0_3 = arith.constant 0 : index
    %c0_4 = arith.constant 0 : index
    %3 = vector.load %arg2[%c0_3, %c0_4] : memref<1x32xf32, #tpu.memory_space<vmem>>, vector<1x32xf32>
    %4 = vector.broadcast %3 : vector<1x32xf32> to vector<8x32xf32>
    %5 = arith.addf %2, %4 : vector<8x32xf32>
    %c0_5 = arith.constant 0 : index
    %c0_6 = arith.constant 0 : index
    %6 = vector.load %arg3[%c0_5, %c0_6] : memref<8x32xf32, #tpu.memory_space<vmem>>, vector<8x32xf32>
    tpu.vector_store %arg3[%c0_5, %c0_6], %5 {strides = array<i32>} : memref<8x32xf32, #tpu.memory_space<vmem>>, vector<8x32xf32>,
    return
  }
}

module attributes {stable_mosaic.version = 11 : i64} {
  func.func @_encoder_block_kernel(%arg0: i32, %arg1: memref<10x32xf32, #tpu.memory_space<vmem>>, %arg2: memref<10x10xf32, #tpu.memory_space<vmem>>, %arg3: memref<1x1x32xf32, #tpu.memory_space<vmem>>, %arg4: memref<1x1x32xf32, #tpu.memory_space<vmem>>, %arg5: memref<1x4x32x8xf32, #tpu.memory_space<vmem>>, %arg6: memref<1x4x1x8xf32, #tpu.memory_space<vmem>>, %arg7: memref<1x4x32x8xf32, #tpu.memory_space<vmem>>, %arg8: memref<1x4x1x8xf32, #tpu.memory_space<vmem>>, %arg9: memref<1x4x32x8xf32, #tpu.memory_space<vmem>>, %arg10: memref<1x4x1x8xf32, #tpu.memory_space<vmem>>, %arg11: memref<1x4x8x32xf32, #tpu.memory_space<vmem>>, %arg12: memref<1x1x32xf32, #tpu.memory_space<vmem>>, %arg13: memref<1x1x32xf32, #tpu.memory_space<vmem>>, %arg14: memref<1x1x32xf32, #tpu.memory_space<vmem>>, %arg15: memref<1x32x128xf32, #tpu.memory_space<vmem>>, %arg16: memref<1x1x128xf32, #tpu.memory_space<vmem>>, %arg17: memref<1x128x32xf32, #tpu.memory_space<vmem>>, %arg18: memref<1x1x32xf32, #tpu.memory_space<vmem>>, %arg19: memref<1x10x32xf32, #tpu.memory_space<vmem>>, %arg20: memref<10x32xf32, #tpu.memory_space<vmem>>) attributes {dimension_semantics = [#tpu.dimension_semantics<arbitrary>], iteration_bounds = array<i64: 12>, scalar_prefetch = 0 : i64, scratch_operands = 1 : i64, tpu.core_type = #tpu.core_type<tc>, window_params = [{pipeline_mode = #tpu.pipeline_mode<synchronous>, transform_indices = @transform_0, window_bounds = array<i64: 10, 32>}, {pipeline_mode = #tpu.pipeline_mode<synchronous>, transform_indices = @transform_1, window_bounds = array<i64: 10, 10>}, {transform_indices = @transform_2, window_bounds = array<i64: 1, 1, 32>}, {transform_indices = @transform_3, window_bounds = array<i64: 1, 1, 32>}, {transform_indices = @transform_4, window_bounds = array<i64: 1, 4, 32, 8>}, {transform_indices = @transform_5, window_bounds = array<i64: 1, 4, 1, 8>}, {transform_indices = @transform_6, window_bounds = array<i64: 1, 4, 32, 8>}, {transform_indices = @transform_7, window_bounds = array<i64: 1, 4, 1, 8>}, {transform_indices = @transform_8, window_bounds = array<i64: 1, 4, 32, 8>}, {transform_indices = @transform_9, window_bounds = array<i64: 1, 4, 1, 8>}, {transform_indices = @transform_10, window_bounds = array<i64: 1, 4, 8, 32>}, {transform_indices = @transform_11, window_bounds = array<i64: 1, 1, 32>}, {transform_indices = @transform_12, window_bounds = array<i64: 1, 1, 32>}, {transform_indices = @transform_13, window_bounds = array<i64: 1, 1, 32>}, {transform_indices = @transform_14, window_bounds = array<i64: 1, 32, 128>}, {transform_indices = @transform_15, window_bounds = array<i64: 1, 1, 128>}, {transform_indices = @transform_16, window_bounds = array<i64: 1, 128, 32>}, {transform_indices = @transform_17, window_bounds = array<i64: 1, 1, 32>}, {transform_indices = @transform_18, window_bounds = array<i64: 1, 10, 32>}]} {
    %c0_i32 = arith.constant 0 : i32
    %0 = arith.cmpi eq, %arg0, %c0_i32 : i32
    %1 = arith.extui %0 : i1 to i32
    %c0_i32_0 = arith.constant 0 : i32
    %2 = arith.cmpi ne, %1, %c0_i32_0 : i32
    scf.if %2 {
      %c0_214 = arith.constant 0 : index
      %c0_215 = arith.constant 0 : index
      %322 = vector.load %arg1[%c0_214, %c0_215] : memref<10x32xf32, #tpu.memory_space<vmem>>, vector<10x32xf32>
      %c0_216 = arith.constant 0 : index
      %c0_217 = arith.constant 0 : index
      %323 = vector.load %arg20[%c0_216, %c0_217] : memref<10x32xf32, #tpu.memory_space<vmem>>, vector<10x32xf32>
      tpu.vector_store %arg20[%c0_216, %c0_217], %322 {strides = array<i32>} : memref<10x32xf32, #tpu.memory_space<vmem>>, vector<10x32xf32>,
    } else {
    }
    %c0 = arith.constant 0 : index
    %c0_1 = arith.constant 0 : index
    %3 = vector.load %arg20[%c0, %c0_1] : memref<10x32xf32, #tpu.memory_space<vmem>>, vector<10x32xf32>
    %c0_2 = arith.constant 0 : index
    %c0_3 = arith.constant 0 : index
    %c0_4 = arith.constant 0 : index
    %4 = vector.load %arg3[%c0_2, %c0_3, %c0_4] : memref<1x1x32xf32, #tpu.memory_space<vmem>>, vector<1x1x32xf32>
    %5 = vector.shape_cast %4 : vector<1x1x32xf32> to vector<1x32xf32>
    %c0_5 = arith.constant 0 : index
    %c0_6 = arith.constant 0 : index
    %c0_7 = arith.constant 0 : index
    %6 = vector.load %arg4[%c0_5, %c0_6, %c0_7] : memref<1x1x32xf32, #tpu.memory_space<vmem>>, vector<1x1x32xf32>
    %7 = vector.shape_cast %6 : vector<1x1x32xf32> to vector<1x32xf32>
    %cst = arith.constant dense<0.000000e+00> : vector<10xf32>
    %8 = vector.multi_reduction <add>, %3, %cst [1] : vector<10x32xf32> to vector<10xf32>
    %9 = vector.shape_cast %8 : vector<10xf32> to vector<10x1xf32>
    %cst_8 = arith.constant 3.200000e+01 : f32
    %10 = vector.broadcast %cst_8 : f32 to vector<10x1xf32>
    %11 = arith.divf %9, %10 : vector<10x1xf32>
    %12 = vector.broadcast %11 : vector<10x1xf32> to vector<10x32xf32>
    %13 = arith.subf %3, %12 : vector<10x32xf32>
    %14 = arith.mulf %13, %13 : vector<10x32xf32>
    %cst_9 = arith.constant dense<0.000000e+00> : vector<10xf32>
    %15 = vector.multi_reduction <add>, %14, %cst_9 [1] : vector<10x32xf32> to vector<10xf32>
    %16 = vector.shape_cast %15 : vector<10xf32> to vector<10x1xf32>
    %cst_10 = arith.constant 3.200000e+01 : f32
    %17 = vector.broadcast %cst_10 : f32 to vector<10x1xf32>
    %18 = arith.divf %16, %17 : vector<10x1xf32>
    %19 = vector.broadcast %11 : vector<10x1xf32> to vector<10x32xf32>
    %20 = arith.subf %3, %19 : vector<10x32xf32>
    %cst_11 = arith.constant 9.99999997E-7 : f32
    %21 = vector.broadcast %cst_11 : f32 to vector<10x1xf32>
    %22 = arith.addf %18, %21 : vector<10x1xf32>
    %23 = math.rsqrt %22 : vector<10x1xf32>
    %24 = vector.broadcast %23 : vector<10x1xf32> to vector<10x32xf32>
    %25 = arith.mulf %20, %24 : vector<10x32xf32>
    %26 = vector.broadcast %5 : vector<1x32xf32> to vector<10x32xf32>
    %27 = arith.mulf %25, %26 : vector<10x32xf32>
    %28 = vector.broadcast %7 : vector<1x32xf32> to vector<10x32xf32>
    %29 = arith.addf %27, %28 : vector<10x32xf32>
    %30 = arith.truncf %29 : vector<10x32xf32> to vector<10x32xbf16>
    %cst_12 = arith.constant 0.000000e+00 : f32
    %31 = vector.broadcast %cst_12 : f32 to vector<10x32xf32>
    %c0_13 = arith.constant 0 : index
    %c0_14 = arith.constant 0 : index
    %c0_15 = arith.constant 0 : index
    %c0_16 = arith.constant 0 : index
    %32 = vector.load %arg5[%c0_13, %c0_14, %c0_15, %c0_16] : memref<1x4x32x8xf32, #tpu.memory_space<vmem>>, vector<1x1x32x8xf32>
    %33 = vector.shape_cast %32 : vector<1x1x32x8xf32> to vector<32x8xf32>
    %34 = arith.truncf %33 : vector<32x8xf32> to vector<32x8xbf16>
    %cst_17 = arith.constant dense<0.000000e+00> : vector<10x8xf32>
    %35 = tpu.matmul %30, %34, %cst_17 {dimension_numbers = #tpu.dot_dimension_numbers<[1], [0], [0], [1], [0, 0, 1, 1], [], []>} : vector<10x32xbf16>, vector<32x8xbf16>, vector<10x8xf32> -> vector<10x8xf32>
    %c0_18 = arith.constant 0 : index
    %c0_19 = arith.constant 0 : index
    %c0_20 = arith.constant 0 : index
    %c0_21 = arith.constant 0 : index
    %36 = vector.load %arg6[%c0_18, %c0_19, %c0_20, %c0_21] : memref<1x4x1x8xf32, #tpu.memory_space<vmem>>, vector<1x1x1x8xf32>
    %37 = vector.shape_cast %36 : vector<1x1x1x8xf32> to vector<1x8xf32>
    %38 = vector.broadcast %37 : vector<1x8xf32> to vector<10x8xf32>
    %39 = arith.addf %35, %38 : vector<10x8xf32>
    %c0_22 = arith.constant 0 : index
    %c0_23 = arith.constant 0 : index
    %c0_24 = arith.constant 0 : index
    %c0_25 = arith.constant 0 : index
    %40 = vector.load %arg7[%c0_22, %c0_23, %c0_24, %c0_25] : memref<1x4x32x8xf32, #tpu.memory_space<vmem>>, vector<1x1x32x8xf32>
    %41 = vector.shape_cast %40 : vector<1x1x32x8xf32> to vector<32x8xf32>
    %42 = arith.truncf %41 : vector<32x8xf32> to vector<32x8xbf16>
    %cst_26 = arith.constant dense<0.000000e+00> : vector<10x8xf32>
    %43 = tpu.matmul %30, %42, %cst_26 {dimension_numbers = #tpu.dot_dimension_numbers<[1], [0], [0], [1], [0, 0, 1, 1], [], []>} : vector<10x32xbf16>, vector<32x8xbf16>, vector<10x8xf32> -> vector<10x8xf32>
    %c0_27 = arith.constant 0 : index
    %c0_28 = arith.constant 0 : index
    %c0_29 = arith.constant 0 : index
    %c0_30 = arith.constant 0 : index
    %44 = vector.load %arg8[%c0_27, %c0_28, %c0_29, %c0_30] : memref<1x4x1x8xf32, #tpu.memory_space<vmem>>, vector<1x1x1x8xf32>
    %45 = vector.shape_cast %44 : vector<1x1x1x8xf32> to vector<1x8xf32>
    %46 = vector.broadcast %45 : vector<1x8xf32> to vector<10x8xf32>
    %47 = arith.addf %43, %46 : vector<10x8xf32>
    %c0_31 = arith.constant 0 : index
    %c0_32 = arith.constant 0 : index
    %c0_33 = arith.constant 0 : index
    %c0_34 = arith.constant 0 : index
    %48 = vector.load %arg9[%c0_31, %c0_32, %c0_33, %c0_34] : memref<1x4x32x8xf32, #tpu.memory_space<vmem>>, vector<1x1x32x8xf32>
    %49 = vector.shape_cast %48 : vector<1x1x32x8xf32> to vector<32x8xf32>
    %50 = arith.truncf %49 : vector<32x8xf32> to vector<32x8xbf16>
    %cst_35 = arith.constant dense<0.000000e+00> : vector<10x8xf32>
    %51 = tpu.matmul %30, %50, %cst_35 {dimension_numbers = #tpu.dot_dimension_numbers<[1], [0], [0], [1], [0, 0, 1, 1], [], []>} : vector<10x32xbf16>, vector<32x8xbf16>, vector<10x8xf32> -> vector<10x8xf32>
    %c0_36 = arith.constant 0 : index
    %c0_37 = arith.constant 0 : index
    %c0_38 = arith.constant 0 : index
    %c0_39 = arith.constant 0 : index
    %52 = vector.load %arg10[%c0_36, %c0_37, %c0_38, %c0_39] : memref<1x4x1x8xf32, #tpu.memory_space<vmem>>, vector<1x1x1x8xf32>
    %53 = vector.shape_cast %52 : vector<1x1x1x8xf32> to vector<1x8xf32>
    %54 = vector.broadcast %53 : vector<1x8xf32> to vector<10x8xf32>
    %55 = arith.addf %51, %54 : vector<10x8xf32>
    %56 = arith.truncf %39 : vector<10x8xf32> to vector<10x8xbf16>
    %57 = arith.truncf %47 : vector<10x8xf32> to vector<10x8xbf16>
    %cst_40 = arith.constant dense<0.000000e+00> : vector<10x10xf32>
    %58 = tpu.matmul %56, %57, %cst_40 {dimension_numbers = #tpu.dot_dimension_numbers<[1], [1], [0], [0], [0, 0, 1, 0], [], []>} : vector<10x8xbf16>, vector<10x8xbf16>, vector<10x10xf32> -> vector<10x10xf32>
    %cst_41 = arith.constant 0.353553385 : f32
    %59 = vector.broadcast %cst_41 : f32 to vector<10x10xf32>
    %60 = arith.mulf %58, %59 : vector<10x10xf32>
    %c0_42 = arith.constant 0 : index
    %c0_43 = arith.constant 0 : index
    %61 = vector.load %arg2[%c0_42, %c0_43] : memref<10x10xf32, #tpu.memory_space<vmem>>, vector<10x10xf32>
    %62 = arith.addf %60, %61 : vector<10x10xf32>
    %cst_44 = arith.constant dense<0xFF800000> : vector<10xf32>
    %63 = vector.multi_reduction <maximumf>, %62, %cst_44 [1] : vector<10x10xf32> to vector<10xf32>
    %64 = vector.shape_cast %63 : vector<10xf32> to vector<10x1xf32>
    %65 = vector.broadcast %64 : vector<10x1xf32> to vector<10x10xf32>
    %66 = arith.subf %62, %65 : vector<10x10xf32>
    %67 = math.exp %66 : vector<10x10xf32>
    %cst_45 = arith.constant dense<0.000000e+00> : vector<10xf32>
    %68 = vector.multi_reduction <add>, %67, %cst_45 [1] : vector<10x10xf32> to vector<10xf32>
    %69 = vector.shape_cast %68 : vector<10xf32> to vector<10x1xf32>
    %70 = vector.broadcast %69 : vector<10x1xf32> to vector<10x10xf32>
    %71 = arith.divf %67, %70 : vector<10x10xf32>
    %72 = arith.truncf %71 : vector<10x10xf32> to vector<10x10xbf16>
    %73 = arith.truncf %55 : vector<10x8xf32> to vector<10x8xbf16>
    %cst_46 = arith.constant dense<0.000000e+00> : vector<10x8xf32>
    %74 = tpu.matmul %72, %73, %cst_46 {dimension_numbers = #tpu.dot_dimension_numbers<[1], [0], [0], [1], [0, 0, 1, 1], [], []>} : vector<10x10xbf16>, vector<10x8xbf16>, vector<10x8xf32> -> vector<10x8xf32>
    %75 = arith.truncf %74 : vector<10x8xf32> to vector<10x8xbf16>
    %c0_47 = arith.constant 0 : index
    %c0_48 = arith.constant 0 : index
    %c0_49 = arith.constant 0 : index
    %c0_50 = arith.constant 0 : index
    %76 = vector.load %arg11[%c0_47, %c0_48, %c0_49, %c0_50] : memref<1x4x8x32xf32, #tpu.memory_space<vmem>>, vector<1x1x8x32xf32>
    %77 = vector.shape_cast %76 : vector<1x1x8x32xf32> to vector<8x32xf32>
    %78 = arith.truncf %77 : vector<8x32xf32> to vector<8x32xbf16>
    %cst_51 = arith.constant dense<0.000000e+00> : vector<10x32xf32>
    %79 = tpu.matmul %75, %78, %cst_51 {dimension_numbers = #tpu.dot_dimension_numbers<[1], [0], [0], [1], [0, 0, 1, 1], [], []>} : vector<10x8xbf16>, vector<8x32xbf16>, vector<10x32xf32> -> vector<10x32xf32>
    %80 = arith.addf %31, %79 : vector<10x32xf32>
    %c0_52 = arith.constant 0 : index
    %c1 = arith.constant 1 : index
    %c0_53 = arith.constant 0 : index
    %c0_54 = arith.constant 0 : index
    %81 = vector.load %arg5[%c0_52, %c1, %c0_53, %c0_54] : memref<1x4x32x8xf32, #tpu.memory_space<vmem>>, vector<1x1x32x8xf32>
    %82 = vector.shape_cast %81 : vector<1x1x32x8xf32> to vector<32x8xf32>
    %83 = arith.truncf %82 : vector<32x8xf32> to vector<32x8xbf16>
    %cst_55 = arith.constant dense<0.000000e+00> : vector<10x8xf32>
    %84 = tpu.matmul %30, %83, %cst_55 {dimension_numbers = #tpu.dot_dimension_numbers<[1], [0], [0], [1], [0, 0, 1, 1], [], []>} : vector<10x32xbf16>, vector<32x8xbf16>, vector<10x8xf32> -> vector<10x8xf32>
    %c0_56 = arith.constant 0 : index
    %c1_57 = arith.constant 1 : index
    %c0_58 = arith.constant 0 : index
    %c0_59 = arith.constant 0 : index
    %85 = vector.load %arg6[%c0_56, %c1_57, %c0_58, %c0_59] : memref<1x4x1x8xf32, #tpu.memory_space<vmem>>, vector<1x1x1x8xf32>
    %86 = vector.shape_cast %85 : vector<1x1x1x8xf32> to vector<1x8xf32>
    %87 = vector.broadcast %86 : vector<1x8xf32> to vector<10x8xf32>
    %88 = arith.addf %84, %87 : vector<10x8xf32>
    %c0_60 = arith.constant 0 : index
    %c1_61 = arith.constant 1 : index
    %c0_62 = arith.constant 0 : index
    %c0_63 = arith.constant 0 : index
    %89 = vector.load %arg7[%c0_60, %c1_61, %c0_62, %c0_63] : memref<1x4x32x8xf32, #tpu.memory_space<vmem>>, vector<1x1x32x8xf32>
    %90 = vector.shape_cast %89 : vector<1x1x32x8xf32> to vector<32x8xf32>
    %91 = arith.truncf %90 : vector<32x8xf32> to vector<32x8xbf16>
    %cst_64 = arith.constant dense<0.000000e+00> : vector<10x8xf32>
    %92 = tpu.matmul %30, %91, %cst_64 {dimension_numbers = #tpu.dot_dimension_numbers<[1], [0], [0], [1], [0, 0, 1, 1], [], []>} : vector<10x32xbf16>, vector<32x8xbf16>, vector<10x8xf32> -> vector<10x8xf32>
    %c0_65 = arith.constant 0 : index
    %c1_66 = arith.constant 1 : index
    %c0_67 = arith.constant 0 : index
    %c0_68 = arith.constant 0 : index
    %93 = vector.load %arg8[%c0_65, %c1_66, %c0_67, %c0_68] : memref<1x4x1x8xf32, #tpu.memory_space<vmem>>, vector<1x1x1x8xf32>
    %94 = vector.shape_cast %93 : vector<1x1x1x8xf32> to vector<1x8xf32>
    %95 = vector.broadcast %94 : vector<1x8xf32> to vector<10x8xf32>
    %96 = arith.addf %92, %95 : vector<10x8xf32>
    %c0_69 = arith.constant 0 : index
    %c1_70 = arith.constant 1 : index
    %c0_71 = arith.constant 0 : index
    %c0_72 = arith.constant 0 : index
    %97 = vector.load %arg9[%c0_69, %c1_70, %c0_71, %c0_72] : memref<1x4x32x8xf32, #tpu.memory_space<vmem>>, vector<1x1x32x8xf32>
    %98 = vector.shape_cast %97 : vector<1x1x32x8xf32> to vector<32x8xf32>
    %99 = arith.truncf %98 : vector<32x8xf32> to vector<32x8xbf16>
    %cst_73 = arith.constant dense<0.000000e+00> : vector<10x8xf32>
    %100 = tpu.matmul %30, %99, %cst_73 {dimension_numbers = #tpu.dot_dimension_numbers<[1], [0], [0], [1], [0, 0, 1, 1], [], []>} : vector<10x32xbf16>, vector<32x8xbf16>, vector<10x8xf32> -> vector<10x8xf32>
    %c0_74 = arith.constant 0 : index
    %c1_75 = arith.constant 1 : index
    %c0_76 = arith.constant 0 : index
    %c0_77 = arith.constant 0 : index
    %101 = vector.load %arg10[%c0_74, %c1_75, %c0_76, %c0_77] : memref<1x4x1x8xf32, #tpu.memory_space<vmem>>, vector<1x1x1x8xf32>
    %102 = vector.shape_cast %101 : vector<1x1x1x8xf32> to vector<1x8xf32>
    %103 = vector.broadcast %102 : vector<1x8xf32> to vector<10x8xf32>
    %104 = arith.addf %100, %103 : vector<10x8xf32>
    %105 = arith.truncf %88 : vector<10x8xf32> to vector<10x8xbf16>
    %106 = arith.truncf %96 : vector<10x8xf32> to vector<10x8xbf16>
    %cst_78 = arith.constant dense<0.000000e+00> : vector<10x10xf32>
    %107 = tpu.matmul %105, %106, %cst_78 {dimension_numbers = #tpu.dot_dimension_numbers<[1], [1], [0], [0], [0, 0, 1, 0], [], []>} : vector<10x8xbf16>, vector<10x8xbf16>, vector<10x10xf32> -> vector<10x10xf32>
    %cst_79 = arith.constant 0.353553385 : f32
    %108 = vector.broadcast %cst_79 : f32 to vector<10x10xf32>
    %109 = arith.mulf %107, %108 : vector<10x10xf32>
    %c0_80 = arith.constant 0 : index
    %c0_81 = arith.constant 0 : index
    %110 = vector.load %arg2[%c0_80, %c0_81] : memref<10x10xf32, #tpu.memory_space<vmem>>, vector<10x10xf32>
    %111 = arith.addf %109, %110 : vector<10x10xf32>
    %cst_82 = arith.constant dense<0xFF800000> : vector<10xf32>
    %112 = vector.multi_reduction <maximumf>, %111, %cst_82 [1] : vector<10x10xf32> to vector<10xf32>
    %113 = vector.shape_cast %112 : vector<10xf32> to vector<10x1xf32>
    %114 = vector.broadcast %113 : vector<10x1xf32> to vector<10x10xf32>
    %115 = arith.subf %111, %114 : vector<10x10xf32>
    %116 = math.exp %115 : vector<10x10xf32>
    %cst_83 = arith.constant dense<0.000000e+00> : vector<10xf32>
    %117 = vector.multi_reduction <add>, %116, %cst_83 [1] : vector<10x10xf32> to vector<10xf32>
    %118 = vector.shape_cast %117 : vector<10xf32> to vector<10x1xf32>
    %119 = vector.broadcast %118 : vector<10x1xf32> to vector<10x10xf32>
    %120 = arith.divf %116, %119 : vector<10x10xf32>
    %121 = arith.truncf %120 : vector<10x10xf32> to vector<10x10xbf16>
    %122 = arith.truncf %104 : vector<10x8xf32> to vector<10x8xbf16>
    %cst_84 = arith.constant dense<0.000000e+00> : vector<10x8xf32>
    %123 = tpu.matmul %121, %122, %cst_84 {dimension_numbers = #tpu.dot_dimension_numbers<[1], [0], [0], [1], [0, 0, 1, 1], [], []>} : vector<10x10xbf16>, vector<10x8xbf16>, vector<10x8xf32> -> vector<10x8xf32>
    %124 = arith.truncf %123 : vector<10x8xf32> to vector<10x8xbf16>
    %c0_85 = arith.constant 0 : index
    %c1_86 = arith.constant 1 : index
    %c0_87 = arith.constant 0 : index
    %c0_88 = arith.constant 0 : index
    %125 = vector.load %arg11[%c0_85, %c1_86, %c0_87, %c0_88] : memref<1x4x8x32xf32, #tpu.memory_space<vmem>>, vector<1x1x8x32xf32>
    %126 = vector.shape_cast %125 : vector<1x1x8x32xf32> to vector<8x32xf32>
    %127 = arith.truncf %126 : vector<8x32xf32> to vector<8x32xbf16>
    %cst_89 = arith.constant dense<0.000000e+00> : vector<10x32xf32>
    %128 = tpu.matmul %124, %127, %cst_89 {dimension_numbers = #tpu.dot_dimension_numbers<[1], [0], [0], [1], [0, 0, 1, 1], [], []>} : vector<10x8xbf16>, vector<8x32xbf16>, vector<10x32xf32> -> vector<10x32xf32>
    %129 = arith.addf %80, %128 : vector<10x32xf32>
    %c0_90 = arith.constant 0 : index
    %c2 = arith.constant 2 : index
    %c0_91 = arith.constant 0 : index
    %c0_92 = arith.constant 0 : index
    %130 = vector.load %arg5[%c0_90, %c2, %c0_91, %c0_92] : memref<1x4x32x8xf32, #tpu.memory_space<vmem>>, vector<1x1x32x8xf32>
    %131 = vector.shape_cast %130 : vector<1x1x32x8xf32> to vector<32x8xf32>
    %132 = arith.truncf %131 : vector<32x8xf32> to vector<32x8xbf16>
    %cst_93 = arith.constant dense<0.000000e+00> : vector<10x8xf32>
    %133 = tpu.matmul %30, %132, %cst_93 {dimension_numbers = #tpu.dot_dimension_numbers<[1], [0], [0], [1], [0, 0, 1, 1], [], []>} : vector<10x32xbf16>, vector<32x8xbf16>, vector<10x8xf32> -> vector<10x8xf32>
    %c0_94 = arith.constant 0 : index
    %c2_95 = arith.constant 2 : index
    %c0_96 = arith.constant 0 : index
    %c0_97 = arith.constant 0 : index
    %134 = vector.load %arg6[%c0_94, %c2_95, %c0_96, %c0_97] : memref<1x4x1x8xf32, #tpu.memory_space<vmem>>, vector<1x1x1x8xf32>
    %135 = vector.shape_cast %134 : vector<1x1x1x8xf32> to vector<1x8xf32>
    %136 = vector.broadcast %135 : vector<1x8xf32> to vector<10x8xf32>
    %137 = arith.addf %133, %136 : vector<10x8xf32>
    %c0_98 = arith.constant 0 : index
    %c2_99 = arith.constant 2 : index
    %c0_100 = arith.constant 0 : index
    %c0_101 = arith.constant 0 : index
    %138 = vector.load %arg7[%c0_98, %c2_99, %c0_100, %c0_101] : memref<1x4x32x8xf32, #tpu.memory_space<vmem>>, vector<1x1x32x8xf32>
    %139 = vector.shape_cast %138 : vector<1x1x32x8xf32> to vector<32x8xf32>
    %140 = arith.truncf %139 : vector<32x8xf32> to vector<32x8xbf16>
    %cst_102 = arith.constant dense<0.000000e+00> : vector<10x8xf32>
    %141 = tpu.matmul %30, %140, %cst_102 {dimension_numbers = #tpu.dot_dimension_numbers<[1], [0], [0], [1], [0, 0, 1, 1], [], []>} : vector<10x32xbf16>, vector<32x8xbf16>, vector<10x8xf32> -> vector<10x8xf32>
    %c0_103 = arith.constant 0 : index
    %c2_104 = arith.constant 2 : index
    %c0_105 = arith.constant 0 : index
    %c0_106 = arith.constant 0 : index
    %142 = vector.load %arg8[%c0_103, %c2_104, %c0_105, %c0_106] : memref<1x4x1x8xf32, #tpu.memory_space<vmem>>, vector<1x1x1x8xf32>
    %143 = vector.shape_cast %142 : vector<1x1x1x8xf32> to vector<1x8xf32>
    %144 = vector.broadcast %143 : vector<1x8xf32> to vector<10x8xf32>
    %145 = arith.addf %141, %144 : vector<10x8xf32>
    %c0_107 = arith.constant 0 : index
    %c2_108 = arith.constant 2 : index
    %c0_109 = arith.constant 0 : index
    %c0_110 = arith.constant 0 : index
    %146 = vector.load %arg9[%c0_107, %c2_108, %c0_109, %c0_110] : memref<1x4x32x8xf32, #tpu.memory_space<vmem>>, vector<1x1x32x8xf32>
    %147 = vector.shape_cast %146 : vector<1x1x32x8xf32> to vector<32x8xf32>
    %148 = arith.truncf %147 : vector<32x8xf32> to vector<32x8xbf16>
    %cst_111 = arith.constant dense<0.000000e+00> : vector<10x8xf32>
    %149 = tpu.matmul %30, %148, %cst_111 {dimension_numbers = #tpu.dot_dimension_numbers<[1], [0], [0], [1], [0, 0, 1, 1], [], []>} : vector<10x32xbf16>, vector<32x8xbf16>, vector<10x8xf32> -> vector<10x8xf32>
    %c0_112 = arith.constant 0 : index
    %c2_113 = arith.constant 2 : index
    %c0_114 = arith.constant 0 : index
    %c0_115 = arith.constant 0 : index
    %150 = vector.load %arg10[%c0_112, %c2_113, %c0_114, %c0_115] : memref<1x4x1x8xf32, #tpu.memory_space<vmem>>, vector<1x1x1x8xf32>
    %151 = vector.shape_cast %150 : vector<1x1x1x8xf32> to vector<1x8xf32>
    %152 = vector.broadcast %151 : vector<1x8xf32> to vector<10x8xf32>
    %153 = arith.addf %149, %152 : vector<10x8xf32>
    %154 = arith.truncf %137 : vector<10x8xf32> to vector<10x8xbf16>
    %155 = arith.truncf %145 : vector<10x8xf32> to vector<10x8xbf16>
    %cst_116 = arith.constant dense<0.000000e+00> : vector<10x10xf32>
    %156 = tpu.matmul %154, %155, %cst_116 {dimension_numbers = #tpu.dot_dimension_numbers<[1], [1], [0], [0], [0, 0, 1, 0], [], []>} : vector<10x8xbf16>, vector<10x8xbf16>, vector<10x10xf32> -> vector<10x10xf32>
    %cst_117 = arith.constant 0.353553385 : f32
    %157 = vector.broadcast %cst_117 : f32 to vector<10x10xf32>
    %158 = arith.mulf %156, %157 : vector<10x10xf32>
    %c0_118 = arith.constant 0 : index
    %c0_119 = arith.constant 0 : index
    %159 = vector.load %arg2[%c0_118, %c0_119] : memref<10x10xf32, #tpu.memory_space<vmem>>, vector<10x10xf32>
    %160 = arith.addf %158, %159 : vector<10x10xf32>
    %cst_120 = arith.constant dense<0xFF800000> : vector<10xf32>
    %161 = vector.multi_reduction <maximumf>, %160, %cst_120 [1] : vector<10x10xf32> to vector<10xf32>
    %162 = vector.shape_cast %161 : vector<10xf32> to vector<10x1xf32>
    %163 = vector.broadcast %162 : vector<10x1xf32> to vector<10x10xf32>
    %164 = arith.subf %160, %163 : vector<10x10xf32>
    %165 = math.exp %164 : vector<10x10xf32>
    %cst_121 = arith.constant dense<0.000000e+00> : vector<10xf32>
    %166 = vector.multi_reduction <add>, %165, %cst_121 [1] : vector<10x10xf32> to vector<10xf32>
    %167 = vector.shape_cast %166 : vector<10xf32> to vector<10x1xf32>
    %168 = vector.broadcast %167 : vector<10x1xf32> to vector<10x10xf32>
    %169 = arith.divf %165, %168 : vector<10x10xf32>
    %170 = arith.truncf %169 : vector<10x10xf32> to vector<10x10xbf16>
    %171 = arith.truncf %153 : vector<10x8xf32> to vector<10x8xbf16>
    %cst_122 = arith.constant dense<0.000000e+00> : vector<10x8xf32>
    %172 = tpu.matmul %170, %171, %cst_122 {dimension_numbers = #tpu.dot_dimension_numbers<[1], [0], [0], [1], [0, 0, 1, 1], [], []>} : vector<10x10xbf16>, vector<10x8xbf16>, vector<10x8xf32> -> vector<10x8xf32>
    %173 = arith.truncf %172 : vector<10x8xf32> to vector<10x8xbf16>
    %c0_123 = arith.constant 0 : index
    %c2_124 = arith.constant 2 : index
    %c0_125 = arith.constant 0 : index
    %c0_126 = arith.constant 0 : index
    %174 = vector.load %arg11[%c0_123, %c2_124, %c0_125, %c0_126] : memref<1x4x8x32xf32, #tpu.memory_space<vmem>>, vector<1x1x8x32xf32>
    %175 = vector.shape_cast %174 : vector<1x1x8x32xf32> to vector<8x32xf32>
    %176 = arith.truncf %175 : vector<8x32xf32> to vector<8x32xbf16>
    %cst_127 = arith.constant dense<0.000000e+00> : vector<10x32xf32>
    %177 = tpu.matmul %173, %176, %cst_127 {dimension_numbers = #tpu.dot_dimension_numbers<[1], [0], [0], [1], [0, 0, 1, 1], [], []>} : vector<10x8xbf16>, vector<8x32xbf16>, vector<10x32xf32> -> vector<10x32xf32>
    %178 = arith.addf %129, %177 : vector<10x32xf32>
    %c0_128 = arith.constant 0 : index
    %c3 = arith.constant 3 : index
    %c0_129 = arith.constant 0 : index
    %c0_130 = arith.constant 0 : index
    %179 = vector.load %arg5[%c0_128, %c3, %c0_129, %c0_130] : memref<1x4x32x8xf32, #tpu.memory_space<vmem>>, vector<1x1x32x8xf32>
    %180 = vector.shape_cast %179 : vector<1x1x32x8xf32> to vector<32x8xf32>
    %181 = arith.truncf %180 : vector<32x8xf32> to vector<32x8xbf16>
    %cst_131 = arith.constant dense<0.000000e+00> : vector<10x8xf32>
    %182 = tpu.matmul %30, %181, %cst_131 {dimension_numbers = #tpu.dot_dimension_numbers<[1], [0], [0], [1], [0, 0, 1, 1], [], []>} : vector<10x32xbf16>, vector<32x8xbf16>, vector<10x8xf32> -> vector<10x8xf32>
    %c0_132 = arith.constant 0 : index
    %c3_133 = arith.constant 3 : index
    %c0_134 = arith.constant 0 : index
    %c0_135 = arith.constant 0 : index
    %183 = vector.load %arg6[%c0_132, %c3_133, %c0_134, %c0_135] : memref<1x4x1x8xf32, #tpu.memory_space<vmem>>, vector<1x1x1x8xf32>
    %184 = vector.shape_cast %183 : vector<1x1x1x8xf32> to vector<1x8xf32>
    %185 = vector.broadcast %184 : vector<1x8xf32> to vector<10x8xf32>
    %186 = arith.addf %182, %185 : vector<10x8xf32>
    %c0_136 = arith.constant 0 : index
    %c3_137 = arith.constant 3 : index
    %c0_138 = arith.constant 0 : index
    %c0_139 = arith.constant 0 : index
    %187 = vector.load %arg7[%c0_136, %c3_137, %c0_138, %c0_139] : memref<1x4x32x8xf32, #tpu.memory_space<vmem>>, vector<1x1x32x8xf32>
    %188 = vector.shape_cast %187 : vector<1x1x32x8xf32> to vector<32x8xf32>
    %189 = arith.truncf %188 : vector<32x8xf32> to vector<32x8xbf16>
    %cst_140 = arith.constant dense<0.000000e+00> : vector<10x8xf32>
    %190 = tpu.matmul %30, %189, %cst_140 {dimension_numbers = #tpu.dot_dimension_numbers<[1], [0], [0], [1], [0, 0, 1, 1], [], []>} : vector<10x32xbf16>, vector<32x8xbf16>, vector<10x8xf32> -> vector<10x8xf32>
    %c0_141 = arith.constant 0 : index
    %c3_142 = arith.constant 3 : index
    %c0_143 = arith.constant 0 : index
    %c0_144 = arith.constant 0 : index
    %191 = vector.load %arg8[%c0_141, %c3_142, %c0_143, %c0_144] : memref<1x4x1x8xf32, #tpu.memory_space<vmem>>, vector<1x1x1x8xf32>
    %192 = vector.shape_cast %191 : vector<1x1x1x8xf32> to vector<1x8xf32>
    %193 = vector.broadcast %192 : vector<1x8xf32> to vector<10x8xf32>
    %194 = arith.addf %190, %193 : vector<10x8xf32>
    %c0_145 = arith.constant 0 : index
    %c3_146 = arith.constant 3 : index
    %c0_147 = arith.constant 0 : index
    %c0_148 = arith.constant 0 : index
    %195 = vector.load %arg9[%c0_145, %c3_146, %c0_147, %c0_148] : memref<1x4x32x8xf32, #tpu.memory_space<vmem>>, vector<1x1x32x8xf32>
    %196 = vector.shape_cast %195 : vector<1x1x32x8xf32> to vector<32x8xf32>
    %197 = arith.truncf %196 : vector<32x8xf32> to vector<32x8xbf16>
    %cst_149 = arith.constant dense<0.000000e+00> : vector<10x8xf32>
    %198 = tpu.matmul %30, %197, %cst_149 {dimension_numbers = #tpu.dot_dimension_numbers<[1], [0], [0], [1], [0, 0, 1, 1], [], []>} : vector<10x32xbf16>, vector<32x8xbf16>, vector<10x8xf32> -> vector<10x8xf32>
    %c0_150 = arith.constant 0 : index
    %c3_151 = arith.constant 3 : index
    %c0_152 = arith.constant 0 : index
    %c0_153 = arith.constant 0 : index
    %199 = vector.load %arg10[%c0_150, %c3_151, %c0_152, %c0_153] : memref<1x4x1x8xf32, #tpu.memory_space<vmem>>, vector<1x1x1x8xf32>
    %200 = vector.shape_cast %199 : vector<1x1x1x8xf32> to vector<1x8xf32>
    %201 = vector.broadcast %200 : vector<1x8xf32> to vector<10x8xf32>
    %202 = arith.addf %198, %201 : vector<10x8xf32>
    %203 = arith.truncf %186 : vector<10x8xf32> to vector<10x8xbf16>
    %204 = arith.truncf %194 : vector<10x8xf32> to vector<10x8xbf16>
    %cst_154 = arith.constant dense<0.000000e+00> : vector<10x10xf32>
    %205 = tpu.matmul %203, %204, %cst_154 {dimension_numbers = #tpu.dot_dimension_numbers<[1], [1], [0], [0], [0, 0, 1, 0], [], []>} : vector<10x8xbf16>, vector<10x8xbf16>, vector<10x10xf32> -> vector<10x10xf32>
    %cst_155 = arith.constant 0.353553385 : f32
    %206 = vector.broadcast %cst_155 : f32 to vector<10x10xf32>
    %207 = arith.mulf %205, %206 : vector<10x10xf32>
    %c0_156 = arith.constant 0 : index
    %c0_157 = arith.constant 0 : index
    %208 = vector.load %arg2[%c0_156, %c0_157] : memref<10x10xf32, #tpu.memory_space<vmem>>, vector<10x10xf32>
    %209 = arith.addf %207, %208 : vector<10x10xf32>
    %cst_158 = arith.constant dense<0xFF800000> : vector<10xf32>
    %210 = vector.multi_reduction <maximumf>, %209, %cst_158 [1] : vector<10x10xf32> to vector<10xf32>
    %211 = vector.shape_cast %210 : vector<10xf32> to vector<10x1xf32>
    %212 = vector.broadcast %211 : vector<10x1xf32> to vector<10x10xf32>
    %213 = arith.subf %209, %212 : vector<10x10xf32>
    %214 = math.exp %213 : vector<10x10xf32>
    %cst_159 = arith.constant dense<0.000000e+00> : vector<10xf32>
    %215 = vector.multi_reduction <add>, %214, %cst_159 [1] : vector<10x10xf32> to vector<10xf32>
    %216 = vector.shape_cast %215 : vector<10xf32> to vector<10x1xf32>
    %217 = vector.broadcast %216 : vector<10x1xf32> to vector<10x10xf32>
    %218 = arith.divf %214, %217 : vector<10x10xf32>
    %219 = arith.truncf %218 : vector<10x10xf32> to vector<10x10xbf16>
    %220 = arith.truncf %202 : vector<10x8xf32> to vector<10x8xbf16>
    %cst_160 = arith.constant dense<0.000000e+00> : vector<10x8xf32>
    %221 = tpu.matmul %219, %220, %cst_160 {dimension_numbers = #tpu.dot_dimension_numbers<[1], [0], [0], [1], [0, 0, 1, 1], [], []>} : vector<10x10xbf16>, vector<10x8xbf16>, vector<10x8xf32> -> vector<10x8xf32>
    %222 = arith.truncf %221 : vector<10x8xf32> to vector<10x8xbf16>
    %c0_161 = arith.constant 0 : index
    %c3_162 = arith.constant 3 : index
    %c0_163 = arith.constant 0 : index
    %c0_164 = arith.constant 0 : index
    %223 = vector.load %arg11[%c0_161, %c3_162, %c0_163, %c0_164] : memref<1x4x8x32xf32, #tpu.memory_space<vmem>>, vector<1x1x8x32xf32>
    %224 = vector.shape_cast %223 : vector<1x1x8x32xf32> to vector<8x32xf32>
    %225 = arith.truncf %224 : vector<8x32xf32> to vector<8x32xbf16>
    %cst_165 = arith.constant dense<0.000000e+00> : vector<10x32xf32>
    %226 = tpu.matmul %222, %225, %cst_165 {dimension_numbers = #tpu.dot_dimension_numbers<[1], [0], [0], [1], [0, 0, 1, 1], [], []>} : vector<10x8xbf16>, vector<8x32xbf16>, vector<10x32xf32> -> vector<10x32xf32>
    %227 = arith.addf %178, %226 : vector<10x32xf32>
    %228 = arith.addf %3, %227 : vector<10x32xf32>
    %c0_166 = arith.constant 0 : index
    %c0_167 = arith.constant 0 : index
    %c0_168 = arith.constant 0 : index
    %229 = vector.load %arg12[%c0_166, %c0_167, %c0_168] : memref<1x1x32xf32, #tpu.memory_space<vmem>>, vector<1x1x32xf32>
    %230 = vector.shape_cast %229 : vector<1x1x32xf32> to vector<1x32xf32>
    %231 = vector.broadcast %230 : vector<1x32xf32> to vector<10x32xf32>
    %232 = arith.addf %228, %231 : vector<10x32xf32>
    %c0_169 = arith.constant 0 : index
    %c0_170 = arith.constant 0 : index
    %c0_171 = arith.constant 0 : index
    %233 = vector.load %arg13[%c0_169, %c0_170, %c0_171] : memref<1x1x32xf32, #tpu.memory_space<vmem>>, vector<1x1x32xf32>
    %234 = vector.shape_cast %233 : vector<1x1x32xf32> to vector<1x32xf32>
    %c0_172 = arith.constant 0 : index
    %c0_173 = arith.constant 0 : index
    %c0_174 = arith.constant 0 : index
    %235 = vector.load %arg14[%c0_172, %c0_173, %c0_174] : memref<1x1x32xf32, #tpu.memory_space<vmem>>, vector<1x1x32xf32>
    %236 = vector.shape_cast %235 : vector<1x1x32xf32> to vector<1x32xf32>
    %cst_175 = arith.constant dense<0.000000e+00> : vector<10xf32>
    %237 = vector.multi_reduction <add>, %232, %cst_175 [1] : vector<10x32xf32> to vector<10xf32>
    %238 = vector.shape_cast %237 : vector<10xf32> to vector<10x1xf32>
    %cst_176 = arith.constant 3.200000e+01 : f32
    %239 = vector.broadcast %cst_176 : f32 to vector<10x1xf32>
    %240 = arith.divf %238, %239 : vector<10x1xf32>
    %241 = vector.broadcast %240 : vector<10x1xf32> to vector<10x32xf32>
    %242 = arith.subf %232, %241 : vector<10x32xf32>
    %243 = arith.mulf %242, %242 : vector<10x32xf32>
    %cst_177 = arith.constant dense<0.000000e+00> : vector<10xf32>
    %244 = vector.multi_reduction <add>, %243, %cst_177 [1] : vector<10x32xf32> to vector<10xf32>
    %245 = vector.shape_cast %244 : vector<10xf32> to vector<10x1xf32>
    %cst_178 = arith.constant 3.200000e+01 : f32
    %246 = vector.broadcast %cst_178 : f32 to vector<10x1xf32>
    %247 = arith.divf %245, %246 : vector<10x1xf32>
    %248 = vector.broadcast %240 : vector<10x1xf32> to vector<10x32xf32>
    %249 = arith.subf %232, %248 : vector<10x32xf32>
    %cst_179 = arith.constant 9.99999997E-7 : f32
    %250 = vector.broadcast %cst_179 : f32 to vector<10x1xf32>
    %251 = arith.addf %247, %250 : vector<10x1xf32>
    %252 = math.rsqrt %251 : vector<10x1xf32>
    %253 = vector.broadcast %252 : vector<10x1xf32> to vector<10x32xf32>
    %254 = arith.mulf %249, %253 : vector<10x32xf32>
    %255 = vector.broadcast %234 : vector<1x32xf32> to vector<10x32xf32>
    %256 = arith.mulf %254, %255 : vector<10x32xf32>
    %257 = vector.broadcast %236 : vector<1x32xf32> to vector<10x32xf32>
    %258 = arith.addf %256, %257 : vector<10x32xf32>
    %259 = arith.truncf %258 : vector<10x32xf32> to vector<10x32xbf16>
    %c0_180 = arith.constant 0 : index
    %c0_181 = arith.constant 0 : index
    %c0_182 = arith.constant 0 : index
    %260 = vector.load %arg15[%c0_180, %c0_181, %c0_182] : memref<1x32x128xf32, #tpu.memory_space<vmem>>, vector<1x32x128xf32>
    %261 = vector.shape_cast %260 : vector<1x32x128xf32> to vector<32x128xf32>
    %262 = arith.truncf %261 : vector<32x128xf32> to vector<32x128xbf16>
    %cst_183 = arith.constant dense<0.000000e+00> : vector<10x128xf32>
    %263 = tpu.matmul %259, %262, %cst_183 {dimension_numbers = #tpu.dot_dimension_numbers<[1], [0], [0], [1], [0, 0, 1, 1], [], []>} : vector<10x32xbf16>, vector<32x128xbf16>, vector<10x128xf32> -> vector<10x128xf32>
    %c0_184 = arith.constant 0 : index
    %c0_185 = arith.constant 0 : index
    %c0_186 = arith.constant 0 : index
    %264 = vector.load %arg16[%c0_184, %c0_185, %c0_186] : memref<1x1x128xf32, #tpu.memory_space<vmem>>, vector<1x1x128xf32>
    %265 = vector.shape_cast %264 : vector<1x1x128xf32> to vector<1x128xf32>
    %266 = vector.broadcast %265 : vector<1x128xf32> to vector<10x128xf32>
    %267 = arith.addf %263, %266 : vector<10x128xf32>
    %cst_187 = arith.constant 5.000000e-01 : f32
    %268 = vector.broadcast %cst_187 : f32 to vector<10x128xf32>
    %269 = arith.mulf %268, %267 : vector<10x128xf32>
    %cst_188 = arith.constant 0.707106769 : f32
    %270 = vector.broadcast %cst_188 : f32 to vector<10x128xf32>
    %271 = arith.mulf %267, %270 : vector<10x128xf32>
    %272 = math.absf %271 : vector<10x128xf32>
    %cst_189 = arith.constant 0.327591091 : f32
    %273 = vector.broadcast %cst_189 : f32 to vector<10x128xf32>
    %274 = arith.mulf %273, %272 : vector<10x128xf32>
    %cst_190 = arith.constant 1.000000e+00 : f32
    %275 = vector.broadcast %cst_190 : f32 to vector<10x128xf32>
    %276 = arith.addf %275, %274 : vector<10x128xf32>
    %cst_191 = arith.constant 1.000000e+00 : f32
    %277 = vector.broadcast %cst_191 : f32 to vector<10x128xf32>
    %278 = arith.divf %277, %276 : vector<10x128xf32>
    %cst_192 = arith.constant 1.06140542 : f32
    %279 = vector.broadcast %cst_192 : f32 to vector<10x128xf32>
    %280 = arith.mulf %278, %279 : vector<10x128xf32>
    %cst_193 = arith.constant -1.45315206 : f32
    %281 = vector.broadcast %cst_193 : f32 to vector<10x128xf32>
    %282 = arith.addf %281, %280 : vector<10x128xf32>
    %283 = arith.mulf %278, %282 : vector<10x128xf32>
    %cst_194 = arith.constant 1.42141378 : f32
    %284 = vector.broadcast %cst_194 : f32 to vector<10x128xf32>
    %285 = arith.addf %284, %283 : vector<10x128xf32>
    %286 = arith.mulf %278, %285 : vector<10x128xf32>
    %cst_195 = arith.constant -0.284496725 : f32
    %287 = vector.broadcast %cst_195 : f32 to vector<10x128xf32>
    %288 = arith.addf %287, %286 : vector<10x128xf32>
    %289 = arith.mulf %278, %288 : vector<10x128xf32>
    %cst_196 = arith.constant 0.254829586 : f32
    %290 = vector.broadcast %cst_196 : f32 to vector<10x128xf32>
    %291 = arith.addf %290, %289 : vector<10x128xf32>
    %292 = arith.mulf %278, %291 : vector<10x128xf32>
    %cst_197 = arith.constant 0.000000e+00 : f32
    %293 = vector.broadcast %cst_197 : f32 to vector<10x128xf32>
    %294 = arith.subf %293, %272 : vector<10x128xf32>
    %295 = arith.mulf %294, %272 : vector<10x128xf32>
    %296 = math.exp %295 : vector<10x128xf32>
    %297 = arith.mulf %292, %296 : vector<10x128xf32>
    %cst_198 = arith.constant 1.000000e+00 : f32
    %298 = vector.broadcast %cst_198 : f32 to vector<10x128xf32>
    %299 = arith.subf %298, %297 : vector<10x128xf32>
    %cst_199 = arith.constant 0.000000e+00 : f32
    %300 = vector.broadcast %cst_199 : f32 to vector<10x128xf32>
    %301 = arith.cmpf oge, %271, %300 : vector<10x128xf32>
    %cst_200 = arith.constant 0.000000e+00 : f32
    %302 = vector.broadcast %cst_200 : f32 to vector<10x128xf32>
    %303 = arith.subf %302, %299 : vector<10x128xf32>
    %304 = arith.select %301, %299, %303 : vector<10x128xi1>, vector<10x128xf32>
    %cst_201 = arith.constant 1.000000e+00 : f32
    %305 = vector.broadcast %cst_201 : f32 to vector<10x128xf32>
    %306 = arith.addf %305, %304 : vector<10x128xf32>
    %307 = arith.mulf %269, %306 : vector<10x128xf32>
    %308 = arith.truncf %307 : vector<10x128xf32> to vector<10x128xbf16>
    %c0_202 = arith.constant 0 : index
    %c0_203 = arith.constant 0 : index
    %c0_204 = arith.constant 0 : index
    %309 = vector.load %arg17[%c0_202, %c0_203, %c0_204] : memref<1x128x32xf32, #tpu.memory_space<vmem>>, vector<1x128x32xf32>
    %310 = vector.shape_cast %309 : vector<1x128x32xf32> to vector<128x32xf32>
    %311 = arith.truncf %310 : vector<128x32xf32> to vector<128x32xbf16>
    %cst_205 = arith.constant dense<0.000000e+00> : vector<10x32xf32>
    %312 = tpu.matmul %308, %311, %cst_205 {dimension_numbers = #tpu.dot_dimension_numbers<[1], [0], [0], [1], [0, 0, 1, 1], [], []>} : vector<10x128xbf16>, vector<128x32xbf16>, vector<10x32xf32> -> vector<10x32xf32>
    %c0_206 = arith.constant 0 : index
    %c0_207 = arith.constant 0 : index
    %c0_208 = arith.constant 0 : index
    %313 = vector.load %arg18[%c0_206, %c0_207, %c0_208] : memref<1x1x32xf32, #tpu.memory_space<vmem>>, vector<1x1x32xf32>
    %314 = vector.shape_cast %313 : vector<1x1x32xf32> to vector<1x32xf32>
    %315 = vector.broadcast %314 : vector<1x32xf32> to vector<10x32xf32>
    %316 = arith.addf %312, %315 : vector<10x32xf32>
    %317 = arith.addf %232, %316 : vector<10x32xf32>
    %c0_209 = arith.constant 0 : index
    %c0_210 = arith.constant 0 : index
    %318 = vector.load %arg20[%c0_209, %c0_210] : memref<10x32xf32, #tpu.memory_space<vmem>>, vector<10x32xf32>
    tpu.vector_store %arg20[%c0_209, %c0_210], %317 {strides = array<i32>} : memref<10x32xf32, #tpu.memory_space<vmem>>, vector<10x32xf32>,
    %c0_211 = arith.constant 0 : index
    %c0_212 = arith.constant 0 : index
    %c0_213 = arith.constant 0 : index
    %319 = vector.load %arg19[%c0_211, %c0_212, %c0_213] : memref<1x10x32xf32, #tpu.memory_space<vmem>>, vector<1x10x32xf32>
    %320 = vector.shape_cast %319 : vector<1x10x32xf32> to vector<10x32xf32>
    %321 = vector.shape_cast %317 : vector<10x32xf32> to vector<1x10x32xf32>
    tpu.vector_store %arg19[%c0_211, %c0_212, %c0_213], %321 {strides = array<i32>} : memref<1x10x32xf32, #tpu.memory_space<vmem>>, vector<1x10x32xf32>,
    return
  }
  func.func @transform_0(%arg0: i32) -> (i32, i32) {
    %c0_i32 = arith.constant 0 : i32
    %c0_i32_0 = arith.constant 0 : i32
    %c0_i32_1 = arith.constant 0 : i32
    return %c0_i32, %c0_i32_0 : i32, i32
  }
  func.func @transform_1(%arg0: i32) -> (i32, i32) {
    %c0_i32 = arith.constant 0 : i32
    %c0_i32_0 = arith.constant 0 : i32
    %c0_i32_1 = arith.constant 0 : i32
    return %c0_i32, %c0_i32_0 : i32, i32
  }
  func.func @transform_2(%arg0: i32) -> (i32, i32, i32) {
    %c0_i32 = arith.constant 0 : i32
    %c0_i32_0 = arith.constant 0 : i32
    %c0_i32_1 = arith.constant 0 : i32
    return %arg0, %c0_i32, %c0_i32_0 : i32, i32, i32
  }
  func.func @transform_3(%arg0: i32) -> (i32, i32, i32) {
    %c0_i32 = arith.constant 0 : i32
    %c0_i32_0 = arith.constant 0 : i32
    %c0_i32_1 = arith.constant 0 : i32
    return %arg0, %c0_i32, %c0_i32_0 : i32, i32, i32
  }
  func.func @transform_4(%arg0: i32) -> (i32, i32, i32, i32) {
    %c0_i32 = arith.constant 0 : i32
    %c0_i32_0 = arith.constant 0 : i32
    %c0_i32_1 = arith.constant 0 : i32
    %c0_i32_2 = arith.constant 0 : i32
    return %arg0, %c0_i32, %c0_i32_0, %c0_i32_1 : i32, i32, i32, i32
  }
  func.func @transform_5(%arg0: i32) -> (i32, i32, i32, i32) {
    %c0_i32 = arith.constant 0 : i32
    %c0_i32_0 = arith.constant 0 : i32
    %c0_i32_1 = arith.constant 0 : i32
    %c0_i32_2 = arith.constant 0 : i32
    return %arg0, %c0_i32, %c0_i32_0, %c0_i32_1 : i32, i32, i32, i32
  }
  func.func @transform_6(%arg0: i32) -> (i32, i32, i32, i32) {
    %c0_i32 = arith.constant 0 : i32
    %c0_i32_0 = arith.constant 0 : i32
    %c0_i32_1 = arith.constant 0 : i32
    %c0_i32_2 = arith.constant 0 : i32
    return %arg0, %c0_i32, %c0_i32_0, %c0_i32_1 : i32, i32, i32, i32
  }
  func.func @transform_7(%arg0: i32) -> (i32, i32, i32, i32) {
    %c0_i32 = arith.constant 0 : i32
    %c0_i32_0 = arith.constant 0 : i32
    %c0_i32_1 = arith.constant 0 : i32
    %c0_i32_2 = arith.constant 0 : i32
    return %arg0, %c0_i32, %c0_i32_0, %c0_i32_1 : i32, i32, i32, i32
  }
  func.func @transform_8(%arg0: i32) -> (i32, i32, i32, i32) {
    %c0_i32 = arith.constant 0 : i32
    %c0_i32_0 = arith.constant 0 : i32
    %c0_i32_1 = arith.constant 0 : i32
    %c0_i32_2 = arith.constant 0 : i32
    return %arg0, %c0_i32, %c0_i32_0, %c0_i32_1 : i32, i32, i32, i32
  }
  func.func @transform_9(%arg0: i32) -> (i32, i32, i32, i32) {
    %c0_i32 = arith.constant 0 : i32
    %c0_i32_0 = arith.constant 0 : i32
    %c0_i32_1 = arith.constant 0 : i32
    %c0_i32_2 = arith.constant 0 : i32
    return %arg0, %c0_i32, %c0_i32_0, %c0_i32_1 : i32, i32, i32, i32
  }
  func.func @transform_10(%arg0: i32) -> (i32, i32, i32, i32) {
    %c0_i32 = arith.constant 0 : i32
    %c0_i32_0 = arith.constant 0 : i32
    %c0_i32_1 = arith.constant 0 : i32
    %c0_i32_2 = arith.constant 0 : i32
    return %arg0, %c0_i32, %c0_i32_0, %c0_i32_1 : i32, i32, i32, i32
  }
  func.func @transform_11(%arg0: i32) -> (i32, i32, i32) {
    %c0_i32 = arith.constant 0 : i32
    %c0_i32_0 = arith.constant 0 : i32
    %c0_i32_1 = arith.constant 0 : i32
    return %arg0, %c0_i32, %c0_i32_0 : i32, i32, i32
  }
  func.func @transform_12(%arg0: i32) -> (i32, i32, i32) {
    %c0_i32 = arith.constant 0 : i32
    %c0_i32_0 = arith.constant 0 : i32
    %c0_i32_1 = arith.constant 0 : i32
    return %arg0, %c0_i32, %c0_i32_0 : i32, i32, i32
  }
  func.func @transform_13(%arg0: i32) -> (i32, i32, i32) {
    %c0_i32 = arith.constant 0 : i32
    %c0_i32_0 = arith.constant 0 : i32
    %c0_i32_1 = arith.constant 0 : i32
    return %arg0, %c0_i32, %c0_i32_0 : i32, i32, i32
  }
  func.func @transform_14(%arg0: i32) -> (i32, i32, i32) {
    %c0_i32 = arith.constant 0 : i32
    %c0_i32_0 = arith.constant 0 : i32
    %c0_i32_1 = arith.constant 0 : i32
    return %arg0, %c0_i32, %c0_i32_0 : i32, i32, i32
  }
  func.func @transform_15(%arg0: i32) -> (i32, i32, i32) {
    %c0_i32 = arith.constant 0 : i32
    %c0_i32_0 = arith.constant 0 : i32
    %c0_i32_1 = arith.constant 0 : i32
    return %arg0, %c0_i32, %c0_i32_0 : i32, i32, i32
  }
  func.func @transform_16(%arg0: i32) -> (i32, i32, i32) {
    %c0_i32 = arith.constant 0 : i32
    %c0_i32_0 = arith.constant 0 : i32
    %c0_i32_1 = arith.constant 0 : i32
    return %arg0, %c0_i32, %c0_i32_0 : i32, i32, i32
  }
  func.func @transform_17(%arg0: i32) -> (i32, i32, i32) {
    %c0_i32 = arith.constant 0 : i32
    %c0_i32_0 = arith.constant 0 : i32
    %c0_i32_1 = arith.constant 0 : i32
    return %arg0, %c0_i32, %c0_i32_0 : i32, i32, i32
  }
  func.func @transform_18(%arg0: i32) -> (i32, i32, i32) {
    %c0_i32 = arith.constant 0 : i32
    %c0_i32_0 = arith.constant 0 : i32
    %c0_i32_1 = arith.constant 0 : i32
    return %arg0, %c0_i32, %c0_i32_0 : i32, i32, i32
  }
}

module attributes {stable_mosaic.version = 11 : i64} {
  func.func @_mm_bias_act_kernel(%arg0: memref<8x32xbf16, #tpu.memory_space<vmem>>, %arg1: memref<32x32xbf16, #tpu.memory_space<vmem>>, %arg2: memref<1x32xf32, #tpu.memory_space<vmem>>, %arg3: memref<8x32xf32, #tpu.memory_space<vmem>>) attributes {dimension_semantics = [], scalar_prefetch = 0 : i64, scratch_operands = 0 : i64, tpu.core_type = #tpu.core_type<tc>} {
    %c0 = arith.constant 0 : index
    %c0_0 = arith.constant 0 : index
    %0 = vector.load %arg0[%c0, %c0_0] : memref<8x32xbf16, #tpu.memory_space<vmem>>, vector<8x32xbf16>
    %c0_1 = arith.constant 0 : index
    %c0_2 = arith.constant 0 : index
    %1 = vector.load %arg1[%c0_1, %c0_2] : memref<32x32xbf16, #tpu.memory_space<vmem>>, vector<32x32xbf16>
    %cst = arith.constant dense<0.000000e+00> : vector<8x32xf32>
    %2 = tpu.matmul %0, %1, %cst {dimension_numbers = #tpu.dot_dimension_numbers<[1], [0], [0], [1], [0, 0, 1, 1], [], []>} : vector<8x32xbf16>, vector<32x32xbf16>, vector<8x32xf32> -> vector<8x32xf32>
    %c0_3 = arith.constant 0 : index
    %c0_4 = arith.constant 0 : index
    %3 = vector.load %arg2[%c0_3, %c0_4] : memref<1x32xf32, #tpu.memory_space<vmem>>, vector<1x32xf32>
    %4 = vector.broadcast %3 : vector<1x32xf32> to vector<8x32xf32>
    %5 = arith.addf %2, %4 : vector<8x32xf32>
    %c0_5 = arith.constant 0 : index
    %c0_6 = arith.constant 0 : index
    %6 = vector.load %arg3[%c0_5, %c0_6] : memref<8x32xf32, #tpu.memory_space<vmem>>, vector<8x32xf32>
    tpu.vector_store %arg3[%c0_5, %c0_6], %5 {strides = array<i32>} : memref<8x32xf32, #tpu.memory_space<vmem>>, vector<8x32xf32>,
    return
  }
}

module attributes {stable_mosaic.version = 11 : i64} {
  func.func @_mm_bias_act_kernel(%arg0: memref<8x288xbf16, #tpu.memory_space<vmem>>, %arg1: memref<288x16xbf16, #tpu.memory_space<vmem>>, %arg2: memref<1x16xf32, #tpu.memory_space<vmem>>, %arg3: memref<8x16xf32, #tpu.memory_space<vmem>>) attributes {dimension_semantics = [], scalar_prefetch = 0 : i64, scratch_operands = 0 : i64, tpu.core_type = #tpu.core_type<tc>} {
    %c0 = arith.constant 0 : index
    %c0_0 = arith.constant 0 : index
    %0 = vector.load %arg0[%c0, %c0_0] : memref<8x288xbf16, #tpu.memory_space<vmem>>, vector<8x288xbf16>
    %c0_1 = arith.constant 0 : index
    %c0_2 = arith.constant 0 : index
    %1 = vector.load %arg1[%c0_1, %c0_2] : memref<288x16xbf16, #tpu.memory_space<vmem>>, vector<288x16xbf16>
    %cst = arith.constant dense<0.000000e+00> : vector<8x16xf32>
    %2 = tpu.matmul %0, %1, %cst {dimension_numbers = #tpu.dot_dimension_numbers<[1], [0], [0], [1], [0, 0, 1, 1], [], []>} : vector<8x288xbf16>, vector<288x16xbf16>, vector<8x16xf32> -> vector<8x16xf32>
    %c0_3 = arith.constant 0 : index
    %c0_4 = arith.constant 0 : index
    %3 = vector.load %arg2[%c0_3, %c0_4] : memref<1x16xf32, #tpu.memory_space<vmem>>, vector<1x16xf32>
    %4 = vector.broadcast %3 : vector<1x16xf32> to vector<8x16xf32>
    %5 = arith.addf %2, %4 : vector<8x16xf32>
    %c0_5 = arith.constant 0 : index
    %c0_6 = arith.constant 0 : index
    %6 = vector.load %arg3[%c0_5, %c0_6] : memref<8x16xf32, #tpu.memory_space<vmem>>, vector<8x16xf32>
    tpu.vector_store %arg3[%c0_5, %c0_6], %5 {strides = array<i32>} : memref<8x16xf32, #tpu.memory_space<vmem>>, vector<8x16xf32>,
    return
  }
}

module attributes {stable_mosaic.version = 11 : i64} {
  func.func @_mm_bias_act_kernel(%arg0: memref<8x144xbf16, #tpu.memory_space<vmem>>, %arg1: memref<144x16xbf16, #tpu.memory_space<vmem>>, %arg2: memref<1x16xf32, #tpu.memory_space<vmem>>, %arg3: memref<8x16xf32, #tpu.memory_space<vmem>>) attributes {dimension_semantics = [], scalar_prefetch = 0 : i64, scratch_operands = 0 : i64, tpu.core_type = #tpu.core_type<tc>} {
    %c0 = arith.constant 0 : index
    %c0_0 = arith.constant 0 : index
    %0 = vector.load %arg0[%c0, %c0_0] : memref<8x144xbf16, #tpu.memory_space<vmem>>, vector<8x144xbf16>
    %c0_1 = arith.constant 0 : index
    %c0_2 = arith.constant 0 : index
    %1 = vector.load %arg1[%c0_1, %c0_2] : memref<144x16xbf16, #tpu.memory_space<vmem>>, vector<144x16xbf16>
    %cst = arith.constant dense<0.000000e+00> : vector<8x16xf32>
    %2 = tpu.matmul %0, %1, %cst {dimension_numbers = #tpu.dot_dimension_numbers<[1], [0], [0], [1], [0, 0, 1, 1], [], []>} : vector<8x144xbf16>, vector<144x16xbf16>, vector<8x16xf32> -> vector<8x16xf32>
    %c0_3 = arith.constant 0 : index
    %c0_4 = arith.constant 0 : index
    %3 = vector.load %arg2[%c0_3, %c0_4] : memref<1x16xf32, #tpu.memory_space<vmem>>, vector<1x16xf32>
    %4 = vector.broadcast %3 : vector<1x16xf32> to vector<8x16xf32>
    %5 = arith.addf %2, %4 : vector<8x16xf32>
    %c0_5 = arith.constant 0 : index
    %c0_6 = arith.constant 0 : index
    %6 = vector.load %arg3[%c0_5, %c0_6] : memref<8x16xf32, #tpu.memory_space<vmem>>, vector<8x16xf32>
    tpu.vector_store %arg3[%c0_5, %c0_6], %5 {strides = array<i32>} : memref<8x16xf32, #tpu.memory_space<vmem>>, vector<8x16xf32>,
    return
  }
}

module attributes {stable_mosaic.version = 11 : i64} {
  func.func @_mm_bias_act_kernel(%arg0: memref<2x288xbf16, #tpu.memory_space<vmem>>, %arg1: memref<288x32xbf16, #tpu.memory_space<vmem>>, %arg2: memref<1x32xf32, #tpu.memory_space<vmem>>, %arg3: memref<2x32xf32, #tpu.memory_space<vmem>>) attributes {dimension_semantics = [], scalar_prefetch = 0 : i64, scratch_operands = 0 : i64, tpu.core_type = #tpu.core_type<tc>} {
    %c0 = arith.constant 0 : index
    %c0_0 = arith.constant 0 : index
    %0 = vector.load %arg0[%c0, %c0_0] : memref<2x288xbf16, #tpu.memory_space<vmem>>, vector<2x288xbf16>
    %c0_1 = arith.constant 0 : index
    %c0_2 = arith.constant 0 : index
    %1 = vector.load %arg1[%c0_1, %c0_2] : memref<288x32xbf16, #tpu.memory_space<vmem>>, vector<288x32xbf16>
    %cst = arith.constant dense<0.000000e+00> : vector<2x32xf32>
    %2 = tpu.matmul %0, %1, %cst {dimension_numbers = #tpu.dot_dimension_numbers<[1], [0], [0], [1], [0, 0, 1, 1], [], []>} : vector<2x288xbf16>, vector<288x32xbf16>, vector<2x32xf32> -> vector<2x32xf32>
    %c0_3 = arith.constant 0 : index
    %c0_4 = arith.constant 0 : index
    %3 = vector.load %arg2[%c0_3, %c0_4] : memref<1x32xf32, #tpu.memory_space<vmem>>, vector<1x32xf32>
    %4 = vector.broadcast %3 : vector<1x32xf32> to vector<2x32xf32>
    %5 = arith.addf %2, %4 : vector<2x32xf32>
    %c0_5 = arith.constant 0 : index
    %c0_6 = arith.constant 0 : index
    %6 = vector.load %arg3[%c0_5, %c0_6] : memref<2x32xf32, #tpu.memory_space<vmem>>, vector<2x32xf32>
    tpu.vector_store %arg3[%c0_5, %c0_6], %5 {strides = array<i32>} : memref<2x32xf32, #tpu.memory_space<vmem>>, vector<2x32xf32>,
    return
  }
}

module attributes {stable_mosaic.version = 11 : i64} {
  func.func @_mm_bias_act_kernel(%arg0: memref<2x288xbf16, #tpu.memory_space<vmem>>, %arg1: memref<288x16xbf16, #tpu.memory_space<vmem>>, %arg2: memref<1x16xf32, #tpu.memory_space<vmem>>, %arg3: memref<2x16xf32, #tpu.memory_space<vmem>>) attributes {dimension_semantics = [], scalar_prefetch = 0 : i64, scratch_operands = 0 : i64, tpu.core_type = #tpu.core_type<tc>} {
    %c0 = arith.constant 0 : index
    %c0_0 = arith.constant 0 : index
    %0 = vector.load %arg0[%c0, %c0_0] : memref<2x288xbf16, #tpu.memory_space<vmem>>, vector<2x288xbf16>
    %c0_1 = arith.constant 0 : index
    %c0_2 = arith.constant 0 : index
    %1 = vector.load %arg1[%c0_1, %c0_2] : memref<288x16xbf16, #tpu.memory_space<vmem>>, vector<288x16xbf16>
    %cst = arith.constant dense<0.000000e+00> : vector<2x16xf32>
    %2 = tpu.matmul %0, %1, %cst {dimension_numbers = #tpu.dot_dimension_numbers<[1], [0], [0], [1], [0, 0, 1, 1], [], []>} : vector<2x288xbf16>, vector<288x16xbf16>, vector<2x16xf32> -> vector<2x16xf32>
    %c0_3 = arith.constant 0 : index
    %c0_4 = arith.constant 0 : index
    %3 = vector.load %arg2[%c0_3, %c0_4] : memref<1x16xf32, #tpu.memory_space<vmem>>, vector<1x16xf32>
    %4 = vector.broadcast %3 : vector<1x16xf32> to vector<2x16xf32>
    %5 = arith.addf %2, %4 : vector<2x16xf32>
    %c0_5 = arith.constant 0 : index
    %c0_6 = arith.constant 0 : index
    %6 = vector.load %arg3[%c0_5, %c0_6] : memref<2x16xf32, #tpu.memory_space<vmem>>, vector<2x16xf32>
    tpu.vector_store %arg3[%c0_5, %c0_6], %5 {strides = array<i32>} : memref<2x16xf32, #tpu.memory_space<vmem>>, vector<2x16xf32>,
    return
  }
}

module attributes {stable_mosaic.version = 11 : i64} {
  func.func @_mm_bias_act_kernel(%arg0: memref<2x144xbf16, #tpu.memory_space<vmem>>, %arg1: memref<144x16xbf16, #tpu.memory_space<vmem>>, %arg2: memref<1x16xf32, #tpu.memory_space<vmem>>, %arg3: memref<2x16xf32, #tpu.memory_space<vmem>>) attributes {dimension_semantics = [], scalar_prefetch = 0 : i64, scratch_operands = 0 : i64, tpu.core_type = #tpu.core_type<tc>} {
    %c0 = arith.constant 0 : index
    %c0_0 = arith.constant 0 : index
    %0 = vector.load %arg0[%c0, %c0_0] : memref<2x144xbf16, #tpu.memory_space<vmem>>, vector<2x144xbf16>
    %c0_1 = arith.constant 0 : index
    %c0_2 = arith.constant 0 : index
    %1 = vector.load %arg1[%c0_1, %c0_2] : memref<144x16xbf16, #tpu.memory_space<vmem>>, vector<144x16xbf16>
    %cst = arith.constant dense<0.000000e+00> : vector<2x16xf32>
    %2 = tpu.matmul %0, %1, %cst {dimension_numbers = #tpu.dot_dimension_numbers<[1], [0], [0], [1], [0, 0, 1, 1], [], []>} : vector<2x144xbf16>, vector<144x16xbf16>, vector<2x16xf32> -> vector<2x16xf32>
    %c0_3 = arith.constant 0 : index
    %c0_4 = arith.constant 0 : index
    %3 = vector.load %arg2[%c0_3, %c0_4] : memref<1x16xf32, #tpu.memory_space<vmem>>, vector<1x16xf32>
    %4 = vector.broadcast %3 : vector<1x16xf32> to vector<2x16xf32>
    %5 = arith.addf %2, %4 : vector<2x16xf32>
    %c0_5 = arith.constant 0 : index
    %c0_6 = arith.constant 0 : index
    %6 = vector.load %arg3[%c0_5, %c0_6] : memref<2x16xf32, #tpu.memory_space<vmem>>, vector<2x16xf32>
    tpu.vector_store %arg3[%c0_5, %c0_6], %5 {strides = array<i32>} : memref<2x16xf32, #tpu.memory_space<vmem>>, vector<2x16xf32>,
    return
  }
}

module attributes {stable_mosaic.version = 11 : i64} {
  func.func @_mm_bias_act_kernel(%arg0: memref<8x32xbf16, #tpu.memory_space<vmem>>, %arg1: memref<32x16xbf16, #tpu.memory_space<vmem>>, %arg2: memref<1x16xf32, #tpu.memory_space<vmem>>, %arg3: memref<8x16xf32, #tpu.memory_space<vmem>>) attributes {dimension_semantics = [], scalar_prefetch = 0 : i64, scratch_operands = 0 : i64, tpu.core_type = #tpu.core_type<tc>} {
    %c0 = arith.constant 0 : index
    %c0_0 = arith.constant 0 : index
    %0 = vector.load %arg0[%c0, %c0_0] : memref<8x32xbf16, #tpu.memory_space<vmem>>, vector<8x32xbf16>
    %c0_1 = arith.constant 0 : index
    %c0_2 = arith.constant 0 : index
    %1 = vector.load %arg1[%c0_1, %c0_2] : memref<32x16xbf16, #tpu.memory_space<vmem>>, vector<32x16xbf16>
    %cst = arith.constant dense<0.000000e+00> : vector<8x16xf32>
    %2 = tpu.matmul %0, %1, %cst {dimension_numbers = #tpu.dot_dimension_numbers<[1], [0], [0], [1], [0, 0, 1, 1], [], []>} : vector<8x32xbf16>, vector<32x16xbf16>, vector<8x16xf32> -> vector<8x16xf32>
    %c0_3 = arith.constant 0 : index
    %c0_4 = arith.constant 0 : index
    %3 = vector.load %arg2[%c0_3, %c0_4] : memref<1x16xf32, #tpu.memory_space<vmem>>, vector<1x16xf32>
    %4 = vector.broadcast %3 : vector<1x16xf32> to vector<8x16xf32>
    %5 = arith.addf %2, %4 : vector<8x16xf32>
    %c0_5 = arith.constant 0 : index
    %c0_6 = arith.constant 0 : index
    %6 = vector.load %arg3[%c0_5, %c0_6] : memref<8x16xf32, #tpu.memory_space<vmem>>, vector<8x16xf32>
    tpu.vector_store %arg3[%c0_5, %c0_6], %5 {strides = array<i32>} : memref<8x16xf32, #tpu.memory_space<vmem>>, vector<8x16xf32>,
    return
  }
}

module attributes {stable_mosaic.version = 11 : i64} {
  func.func @_mm_bias_act_kernel(%arg0: memref<8x16xbf16, #tpu.memory_space<vmem>>, %arg1: memref<16x64xbf16, #tpu.memory_space<vmem>>, %arg2: memref<1x64xf32, #tpu.memory_space<vmem>>, %arg3: memref<8x64xf32, #tpu.memory_space<vmem>>) attributes {dimension_semantics = [], scalar_prefetch = 0 : i64, scratch_operands = 0 : i64, tpu.core_type = #tpu.core_type<tc>} {
    %c0 = arith.constant 0 : index
    %c0_0 = arith.constant 0 : index
    %0 = vector.load %arg0[%c0, %c0_0] : memref<8x16xbf16, #tpu.memory_space<vmem>>, vector<8x16xbf16>
    %c0_1 = arith.constant 0 : index
    %c0_2 = arith.constant 0 : index
    %1 = vector.load %arg1[%c0_1, %c0_2] : memref<16x64xbf16, #tpu.memory_space<vmem>>, vector<16x64xbf16>
    %cst = arith.constant dense<0.000000e+00> : vector<8x64xf32>
    %2 = tpu.matmul %0, %1, %cst {dimension_numbers = #tpu.dot_dimension_numbers<[1], [0], [0], [1], [0, 0, 1, 1], [], []>} : vector<8x16xbf16>, vector<16x64xbf16>, vector<8x64xf32> -> vector<8x64xf32>
    %c0_3 = arith.constant 0 : index
    %c0_4 = arith.constant 0 : index
    %3 = vector.load %arg2[%c0_3, %c0_4] : memref<1x64xf32, #tpu.memory_space<vmem>>, vector<1x64xf32>
    %4 = vector.broadcast %3 : vector<1x64xf32> to vector<8x64xf32>
    %5 = arith.addf %2, %4 : vector<8x64xf32>
    %c0_5 = arith.constant 0 : index
    %c0_6 = arith.constant 0 : index
    %6 = vector.load %arg3[%c0_5, %c0_6] : memref<8x64xf32, #tpu.memory_space<vmem>>, vector<8x64xf32>
    tpu.vector_store %arg3[%c0_5, %c0_6], %5 {strides = array<i32>} : memref<8x64xf32, #tpu.memory_space<vmem>>, vector<8x64xf32>,
    return
  }
}

module attributes {stable_mosaic.version = 11 : i64} {
  func.func @_mm_bias_act_kernel(%arg0: memref<32x144xbf16, #tpu.memory_space<vmem>>, %arg1: memref<144x16xbf16, #tpu.memory_space<vmem>>, %arg2: memref<1x16xf32, #tpu.memory_space<vmem>>, %arg3: memref<32x16xf32, #tpu.memory_space<vmem>>) attributes {dimension_semantics = [], scalar_prefetch = 0 : i64, scratch_operands = 0 : i64, tpu.core_type = #tpu.core_type<tc>} {
    %c0 = arith.constant 0 : index
    %c0_0 = arith.constant 0 : index
    %0 = vector.load %arg0[%c0, %c0_0] : memref<32x144xbf16, #tpu.memory_space<vmem>>, vector<32x144xbf16>
    %c0_1 = arith.constant 0 : index
    %c0_2 = arith.constant 0 : index
    %1 = vector.load %arg1[%c0_1, %c0_2] : memref<144x16xbf16, #tpu.memory_space<vmem>>, vector<144x16xbf16>
    %cst = arith.constant dense<0.000000e+00> : vector<32x16xf32>
    %2 = tpu.matmul %0, %1, %cst {dimension_numbers = #tpu.dot_dimension_numbers<[1], [0], [0], [1], [0, 0, 1, 1], [], []>} : vector<32x144xbf16>, vector<144x16xbf16>, vector<32x16xf32> -> vector<32x16xf32>
    %c0_3 = arith.constant 0 : index
    %c0_4 = arith.constant 0 : index
    %3 = vector.load %arg2[%c0_3, %c0_4] : memref<1x16xf32, #tpu.memory_space<vmem>>, vector<1x16xf32>
    %4 = vector.broadcast %3 : vector<1x16xf32> to vector<32x16xf32>
    %5 = arith.addf %2, %4 : vector<32x16xf32>
    %c0_5 = arith.constant 0 : index
    %c0_6 = arith.constant 0 : index
    %6 = vector.load %arg3[%c0_5, %c0_6] : memref<32x16xf32, #tpu.memory_space<vmem>>, vector<32x16xf32>
    tpu.vector_store %arg3[%c0_5, %c0_6], %5 {strides = array<i32>} : memref<32x16xf32, #tpu.memory_space<vmem>>, vector<32x16xf32>,
    return
  }
}

module attributes {stable_mosaic.version = 11 : i64} {
  func.func @_mm_bias_act_kernel(%arg0: memref<8x32xbf16, #tpu.memory_space<vmem>>, %arg1: memref<32x8xbf16, #tpu.memory_space<vmem>>, %arg2: memref<1x8xf32, #tpu.memory_space<vmem>>, %arg3: memref<8x8xf32, #tpu.memory_space<vmem>>) attributes {dimension_semantics = [], scalar_prefetch = 0 : i64, scratch_operands = 0 : i64, tpu.core_type = #tpu.core_type<tc>} {
    %c0 = arith.constant 0 : index
    %c0_0 = arith.constant 0 : index
    %0 = vector.load %arg0[%c0, %c0_0] : memref<8x32xbf16, #tpu.memory_space<vmem>>, vector<8x32xbf16>
    %c0_1 = arith.constant 0 : index
    %c0_2 = arith.constant 0 : index
    %1 = vector.load %arg1[%c0_1, %c0_2] : memref<32x8xbf16, #tpu.memory_space<vmem>>, vector<32x8xbf16>
    %cst = arith.constant dense<0.000000e+00> : vector<8x8xf32>
    %2 = tpu.matmul %0, %1, %cst {dimension_numbers = #tpu.dot_dimension_numbers<[1], [0], [0], [1], [0, 0, 1, 1], [], []>} : vector<8x32xbf16>, vector<32x8xbf16>, vector<8x8xf32> -> vector<8x8xf32>
    %c0_3 = arith.constant 0 : index
    %c0_4 = arith.constant 0 : index
    %3 = vector.load %arg2[%c0_3, %c0_4] : memref<1x8xf32, #tpu.memory_space<vmem>>, vector<1x8xf32>
    %4 = vector.broadcast %3 : vector<1x8xf32> to vector<8x8xf32>
    %5 = arith.addf %2, %4 : vector<8x8xf32>
    %c0_5 = arith.constant 0 : index
    %c0_6 = arith.constant 0 : index
    %6 = vector.load %arg3[%c0_5, %c0_6] : memref<8x8xf32, #tpu.memory_space<vmem>>, vector<8x8xf32>
    tpu.vector_store %arg3[%c0_5, %c0_6], %5 {strides = array<i32>} : memref<8x8xf32, #tpu.memory_space<vmem>>, vector<8x8xf32>,
    return
  }
}

module attributes {stable_mosaic.version = 11 : i64} {
  func.func @_mm_bias_act_kernel(%arg0: memref<8x8xbf16, #tpu.memory_space<vmem>>, %arg1: memref<8x128xbf16, #tpu.memory_space<vmem>>, %arg2: memref<1x128xf32, #tpu.memory_space<vmem>>, %arg3: memref<8x128xf32, #tpu.memory_space<vmem>>) attributes {dimension_semantics = [], scalar_prefetch = 0 : i64, scratch_operands = 0 : i64, tpu.core_type = #tpu.core_type<tc>} {
    %c0 = arith.constant 0 : index
    %c0_0 = arith.constant 0 : index
    %0 = vector.load %arg0[%c0, %c0_0] : memref<8x8xbf16, #tpu.memory_space<vmem>>, vector<8x8xbf16>
    %c0_1 = arith.constant 0 : index
    %c0_2 = arith.constant 0 : index
    %1 = vector.load %arg1[%c0_1, %c0_2] : memref<8x128xbf16, #tpu.memory_space<vmem>>, vector<8x128xbf16>
    %cst = arith.constant dense<0.000000e+00> : vector<8x128xf32>
    %2 = tpu.matmul %0, %1, %cst {dimension_numbers = #tpu.dot_dimension_numbers<[1], [0], [0], [1], [0, 0, 1, 1], [], []>} : vector<8x8xbf16>, vector<8x128xbf16>, vector<8x128xf32> -> vector<8x128xf32>
    %c0_3 = arith.constant 0 : index
    %c0_4 = arith.constant 0 : index
    %3 = vector.load %arg2[%c0_3, %c0_4] : memref<1x128xf32, #tpu.memory_space<vmem>>, vector<1x128xf32>
    %4 = vector.broadcast %3 : vector<1x128xf32> to vector<8x128xf32>
    %5 = arith.addf %2, %4 : vector<8x128xf32>
    %c0_5 = arith.constant 0 : index
    %c0_6 = arith.constant 0 : index
    %6 = vector.load %arg3[%c0_5, %c0_6] : memref<8x128xf32, #tpu.memory_space<vmem>>, vector<8x128xf32>
    tpu.vector_store %arg3[%c0_5, %c0_6], %5 {strides = array<i32>} : memref<8x128xf32, #tpu.memory_space<vmem>>, vector<8x128xf32>,
    return
  }
}

module attributes {stable_mosaic.version = 11 : i64} {
  func.func @_mm_bias_act_kernel(%arg0: memref<128x72xbf16, #tpu.memory_space<vmem>>, %arg1: memref<72x16xbf16, #tpu.memory_space<vmem>>, %arg2: memref<1x16xf32, #tpu.memory_space<vmem>>, %arg3: memref<128x16xf32, #tpu.memory_space<vmem>>) attributes {dimension_semantics = [], scalar_prefetch = 0 : i64, scratch_operands = 0 : i64, tpu.core_type = #tpu.core_type<tc>} {
    %c0 = arith.constant 0 : index
    %c0_0 = arith.constant 0 : index
    %0 = vector.load %arg0[%c0, %c0_0] : memref<128x72xbf16, #tpu.memory_space<vmem>>, vector<128x72xbf16>
    %c0_1 = arith.constant 0 : index
    %c0_2 = arith.constant 0 : index
    %1 = vector.load %arg1[%c0_1, %c0_2] : memref<72x16xbf16, #tpu.memory_space<vmem>>, vector<72x16xbf16>
    %cst = arith.constant dense<0.000000e+00> : vector<128x16xf32>
    %2 = tpu.matmul %0, %1, %cst {dimension_numbers = #tpu.dot_dimension_numbers<[1], [0], [0], [1], [0, 0, 1, 1], [], []>} : vector<128x72xbf16>, vector<72x16xbf16>, vector<128x16xf32> -> vector<128x16xf32>
    %c0_3 = arith.constant 0 : index
    %c0_4 = arith.constant 0 : index
    %3 = vector.load %arg2[%c0_3, %c0_4] : memref<1x16xf32, #tpu.memory_space<vmem>>, vector<1x16xf32>
    %4 = vector.broadcast %3 : vector<1x16xf32> to vector<128x16xf32>
    %5 = arith.addf %2, %4 : vector<128x16xf32>
    %c0_5 = arith.constant 0 : index
    %c0_6 = arith.constant 0 : index
    %6 = vector.load %arg3[%c0_5, %c0_6] : memref<128x16xf32, #tpu.memory_space<vmem>>, vector<128x16xf32>
    tpu.vector_store %arg3[%c0_5, %c0_6], %5 {strides = array<i32>} : memref<128x16xf32, #tpu.memory_space<vmem>>, vector<128x16xf32>,
    return
  }
}

module attributes {stable_mosaic.version = 11 : i64} {
  func.func @_mm_bias_act_kernel(%arg0: memref<128x144xbf16, #tpu.memory_space<vmem>>, %arg1: memref<144x16xbf16, #tpu.memory_space<vmem>>, %arg2: memref<1x16xf32, #tpu.memory_space<vmem>>, %arg3: memref<128x16xf32, #tpu.memory_space<vmem>>) attributes {dimension_semantics = [], scalar_prefetch = 0 : i64, scratch_operands = 0 : i64, tpu.core_type = #tpu.core_type<tc>} {
    %c0 = arith.constant 0 : index
    %c0_0 = arith.constant 0 : index
    %0 = vector.load %arg0[%c0, %c0_0] : memref<128x144xbf16, #tpu.memory_space<vmem>>, vector<128x144xbf16>
    %c0_1 = arith.constant 0 : index
    %c0_2 = arith.constant 0 : index
    %1 = vector.load %arg1[%c0_1, %c0_2] : memref<144x16xbf16, #tpu.memory_space<vmem>>, vector<144x16xbf16>
    %cst = arith.constant dense<0.000000e+00> : vector<128x16xf32>
    %2 = tpu.matmul %0, %1, %cst {dimension_numbers = #tpu.dot_dimension_numbers<[1], [0], [0], [1], [0, 0, 1, 1], [], []>} : vector<128x144xbf16>, vector<144x16xbf16>, vector<128x16xf32> -> vector<128x16xf32>
    %c0_3 = arith.constant 0 : index
    %c0_4 = arith.constant 0 : index
    %3 = vector.load %arg2[%c0_3, %c0_4] : memref<1x16xf32, #tpu.memory_space<vmem>>, vector<1x16xf32>
    %4 = vector.broadcast %3 : vector<1x16xf32> to vector<128x16xf32>
    %5 = arith.addf %2, %4 : vector<128x16xf32>
    %c0_5 = arith.constant 0 : index
    %c0_6 = arith.constant 0 : index
    %6 = vector.load %arg3[%c0_5, %c0_6] : memref<128x16xf32, #tpu.memory_space<vmem>>, vector<128x16xf32>
    tpu.vector_store %arg3[%c0_5, %c0_6], %5 {strides = array<i32>} : memref<128x16xf32, #tpu.memory_space<vmem>>, vector<128x16xf32>,
    return
  }
}

module attributes {stable_mosaic.version = 11 : i64} {
  func.func @_mm_bias_act_kernel(%arg0: memref<512x144xbf16, #tpu.memory_space<vmem>>, %arg1: memref<144x8xbf16, #tpu.memory_space<vmem>>, %arg2: memref<1x8xf32, #tpu.memory_space<vmem>>, %arg3: memref<512x8xf32, #tpu.memory_space<vmem>>) attributes {dimension_semantics = [], scalar_prefetch = 0 : i64, scratch_operands = 0 : i64, tpu.core_type = #tpu.core_type<tc>} {
    %c0 = arith.constant 0 : index
    %c0_0 = arith.constant 0 : index
    %0 = vector.load %arg0[%c0, %c0_0] : memref<512x144xbf16, #tpu.memory_space<vmem>>, vector<512x144xbf16>
    %c0_1 = arith.constant 0 : index
    %c0_2 = arith.constant 0 : index
    %1 = vector.load %arg1[%c0_1, %c0_2] : memref<144x8xbf16, #tpu.memory_space<vmem>>, vector<144x8xbf16>
    %cst = arith.constant dense<0.000000e+00> : vector<512x8xf32>
    %2 = tpu.matmul %0, %1, %cst {dimension_numbers = #tpu.dot_dimension_numbers<[1], [0], [0], [1], [0, 0, 1, 1], [], []>} : vector<512x144xbf16>, vector<144x8xbf16>, vector<512x8xf32> -> vector<512x8xf32>
    %c0_3 = arith.constant 0 : index
    %c0_4 = arith.constant 0 : index
    %3 = vector.load %arg2[%c0_3, %c0_4] : memref<1x8xf32, #tpu.memory_space<vmem>>, vector<1x8xf32>
    %4 = vector.broadcast %3 : vector<1x8xf32> to vector<512x8xf32>
    %5 = arith.addf %2, %4 : vector<512x8xf32>
    %c0_5 = arith.constant 0 : index
    %c0_6 = arith.constant 0 : index
    %6 = vector.load %arg3[%c0_5, %c0_6] : memref<512x8xf32, #tpu.memory_space<vmem>>, vector<512x8xf32>
    tpu.vector_store %arg3[%c0_5, %c0_6], %5 {strides = array<i32>} : memref<512x8xf32, #tpu.memory_space<vmem>>, vector<512x8xf32>,
    return
  }
}

module attributes {stable_mosaic.version = 11 : i64} {
  func.func @_mm_bias_act_kernel(%arg0: memref<2048x72xbf16, #tpu.memory_space<vmem>>, %arg1: memref<72x8xbf16, #tpu.memory_space<vmem>>, %arg2: memref<1x8xf32, #tpu.memory_space<vmem>>, %arg3: memref<2048x8xf32, #tpu.memory_space<vmem>>) attributes {dimension_semantics = [], scalar_prefetch = 0 : i64, scratch_operands = 0 : i64, tpu.core_type = #tpu.core_type<tc>} {
    %c0 = arith.constant 0 : index
    %c0_0 = arith.constant 0 : index
    %0 = vector.load %arg0[%c0, %c0_0] : memref<2048x72xbf16, #tpu.memory_space<vmem>>, vector<2048x72xbf16>
    %c0_1 = arith.constant 0 : index
    %c0_2 = arith.constant 0 : index
    %1 = vector.load %arg1[%c0_1, %c0_2] : memref<72x8xbf16, #tpu.memory_space<vmem>>, vector<72x8xbf16>
    %cst = arith.constant dense<0.000000e+00> : vector<2048x8xf32>
    %2 = tpu.matmul %0, %1, %cst {dimension_numbers = #tpu.dot_dimension_numbers<[1], [0], [0], [1], [0, 0, 1, 1], [], []>} : vector<2048x72xbf16>, vector<72x8xbf16>, vector<2048x8xf32> -> vector<2048x8xf32>
    %c0_3 = arith.constant 0 : index
    %c0_4 = arith.constant 0 : index
    %3 = vector.load %arg2[%c0_3, %c0_4] : memref<1x8xf32, #tpu.memory_space<vmem>>, vector<1x8xf32>
    %4 = vector.broadcast %3 : vector<1x8xf32> to vector<2048x8xf32>
    %5 = arith.addf %2, %4 : vector<2048x8xf32>
    %cst_5 = arith.constant 0.000000e+00 : f32
    %6 = vector.broadcast %cst_5 : f32 to vector<2048x8xf32>
    %7 = arith.maximumf %5, %6 : vector<2048x8xf32>
    %c0_6 = arith.constant 0 : index
    %c0_7 = arith.constant 0 : index
    %8 = vector.load %arg3[%c0_6, %c0_7] : memref<2048x8xf32, #tpu.memory_space<vmem>>, vector<2048x8xf32>
    tpu.vector_store %arg3[%c0_6, %c0_7], %7 {strides = array<i32>} : memref<2048x8xf32, #tpu.memory_space<vmem>>, vector<2048x8xf32>,
    return
  }
}

module attributes {stable_mosaic.version = 11 : i64} {
  func.func @_mm_bias_act_kernel(%arg0: memref<2048x8xbf16, #tpu.memory_space<vmem>>, %arg1: memref<8x1xbf16, #tpu.memory_space<vmem>>, %arg2: memref<1x1xf32, #tpu.memory_space<vmem>>, %arg3: memref<2048x1xf32, #tpu.memory_space<vmem>>) attributes {dimension_semantics = [], scalar_prefetch = 0 : i64, scratch_operands = 0 : i64, tpu.core_type = #tpu.core_type<tc>} {
    %c0 = arith.constant 0 : index
    %c0_0 = arith.constant 0 : index
    %0 = vector.load %arg0[%c0, %c0_0] : memref<2048x8xbf16, #tpu.memory_space<vmem>>, vector<2048x8xbf16>
    %c0_1 = arith.constant 0 : index
    %c0_2 = arith.constant 0 : index
    %1 = vector.load %arg1[%c0_1, %c0_2] : memref<8x1xbf16, #tpu.memory_space<vmem>>, vector<8x1xbf16>
    %cst = arith.constant dense<0.000000e+00> : vector<2048x1xf32>
    %2 = tpu.matmul %0, %1, %cst {dimension_numbers = #tpu.dot_dimension_numbers<[1], [0], [0], [1], [0, 0, 1, 1], [], []>} : vector<2048x8xbf16>, vector<8x1xbf16>, vector<2048x1xf32> -> vector<2048x1xf32>
    %c0_3 = arith.constant 0 : index
    %c0_4 = arith.constant 0 : index
    %3 = vector.load %arg2[%c0_3, %c0_4] : memref<1x1xf32, #tpu.memory_space<vmem>>, vector<1x1xf32>
    %4 = vector.broadcast %3 : vector<1x1xf32> to vector<2048x1xf32>
    %5 = arith.addf %2, %4 : vector<2048x1xf32>
    %cst_5 = arith.constant 0.000000e+00 : f32
    %6 = vector.broadcast %cst_5 : f32 to vector<2048x1xf32>
    %7 = arith.maximumf %5, %6 : vector<2048x1xf32>
    %c0_6 = arith.constant 0 : index
    %c0_7 = arith.constant 0 : index
    %8 = vector.load %arg3[%c0_6, %c0_7] : memref<2048x1xf32, #tpu.memory_space<vmem>>, vector<2048x1xf32>
    tpu.vector_store %arg3[%c0_6, %c0_7], %7 {strides = array<i32>} : memref<2048x1xf32, #tpu.memory_space<vmem>>, vector<2048x1xf32>,
    return
  }
}

</mosaic_0001>

<bundles_post_ra>
// kernel: eq.8
= control target key start
LH: loop header
LB: loop body
LE: loop exit
PB: predicated region body
PF: predicated region fallthrough
CT: control target
= control target key end

     0   :  { %vm7_vm0 = vcmask 39936   ;;  %vm13_vm1 = vcmask 80936   ;;  %s39_s0 = inlined_call_operand.vmem [shape: s32[2,5], index: 0, kind: input, shape index: {}]   ;;  %s40_s1 = inlined_call_operand.vmem [shape: s32[10], index: 1, kind: output, shape index: {}]  }
   0x1   :  { %v4_v0 = vld [vmem:[%s39_s0] sm:$0x3]  ;;  %s22_s0 = smov 5  }
   0x2   :  { %5 = vst [vmem:[#allocation1] sm:$0x3] %v4_v0 }
   0x9   :  { %v10_v1 = vld [vmem:[#allocation1 + $0x1] sm:$0x1]   ;;  %v6_v2 = vld [vmem:[#allocation1] sm:$0x1]  }
   0xa   :  { %11 = vrot.lane.b32.xlu0 %v10_v1, %s22_s0  ;;  %8 = vst.msk [vmem:[#allocation0] sm:$0x1] %vm7_vm0, %v6_v2  }
  0x7c   :  { %v12_v3 = vpop.permute.xlu0 %11  }
  0x7d   :  { %14 = vst.msk [vmem:[#allocation0] sm:$0x1] %vm13_vm1, %v12_v3  }
  0x84   :  { %v18_v4 = vld [vmem:[#allocation0] sm:$0x1] }
  0x85   :  { %20 = vst [vmem:[%s40_s1] sm:$0x1] %v18_v4 }

// kernel: dpt_forward.30
= control target key start
LH: loop header
LB: loop body
LE: loop exit
PB: predicated region body
PF: predicated region fallthrough
CT: control target
= control target key end

     0   :  { %vm550_vm0 = vcmask 261120   ;;  %s910_s1 = inlined_call_operand.vmem [shape: bf16[768,32], index: 1, kind: input, shape index: {}]   ;;  %s911_s0 = inlined_call_operand.vmem [shape: bf16[8,768], index: 0, kind: input, shape index: {}]   ;;  %s912_s2 = inlined_call_operand.vmem [shape: f32[1,32], index: 2, kind: input, shape index: {}]   ;;  %s913_s3 = inlined_call_operand.vmem [shape: f32[8,32], index: 3, kind: output, shape index: {}]  }
   0x1   :  { %v677_v0 = vld [vmem:[%s910_s1 + $0x40] sm:$0xff]   ;;  %v681_v4 = vld [vmem:[%s910_s1 + $0x48] sm:$0xff]   ;;  %v685_v8 = vld [vmem:[%s910_s1 + $0x50] sm:$0xff]  }
   0x2   :  { %v678_v1 = vld [vmem:[%s910_s1] sm:$0xff]   ;;  %611 = vmatprep.subr.bf16.mxu0 %v677_v0  ;;  %v682_v5 = vld [vmem:[%s910_s1 + $0x8] sm:$0xff]   ;;  %v686_v9 = vld [vmem:[%s910_s1 + $0x10] sm:$0xff]  }
   0x3   :  { %v679_v2 = vld [vmem:[%s910_s1 + $0xc0] sm:$0xff]   ;;  %612 = vmatpush3.bf16.msra.mxu0 %v678_v1  ;;  %v683_v6 = vld [vmem:[%s910_s1 + $0xc8] sm:$0xff]   ;;  %v687_v10 = vld [vmem:[%s910_s1 + $0xd0] sm:$0xff]  }
   0x4   :  { %v680_v3 = vld [vmem:[%s910_s1 + $0x80] sm:$0xff]   ;;  %633 = vmatprep.subr.bf16.mxu1 %v679_v2  ;;  %613 = vmatprep.subr.bf16.mxu0 %v681_v4  ;;  %v684_v7 = vld [vmem:[%s910_s1 + $0x88] sm:$0xff]   ;;  %v688_v11 = vld [vmem:[%s910_s1 + $0x90] sm:$0xff]  }
   0x5   :  { %634 = vmatpush3.bf16.msra.mxu1 %v680_v3  ;;  %v689_v12 = vld [vmem:[%s910_s1 + $0x58] sm:$0xff]   ;;  %v693_v16 = vld [vmem:[%s910_s1 + $0x60] sm:$0xff]   ;;  %v697_v20 = vld [vmem:[%s910_s1 + $0x68] sm:$0xff]  }
   0x6   :  { %635 = vmatprep.subr.bf16.mxu1 %v683_v6  ;;  %v690_v13 = vld [vmem:[%s910_s1 + $0x18] sm:$0xff]   ;;  %v694_v17 = vld [vmem:[%s910_s1 + $0x20] sm:$0xff]   ;;  %v698_v21 = vld [vmem:[%s910_s1 + $0x28] sm:$0xff]  }
   0x7   :  { %614 = vmatpush3.bf16.msra.mxu0 %v682_v5  ;;  %v691_v14 = vld [vmem:[%s910_s1 + $0xd8] sm:$0xff]   ;;  %v695_v18 = vld [vmem:[%s910_s1 + $0xe0] sm:$0xff]   ;;  %v699_v22 = vld [vmem:[%s910_s1 + $0xe8] sm:$0xff]  }
   0x8   :  { %615 = vmatprep.subr.bf16.mxu0 %v685_v8  ;;  %v692_v15 = vld [vmem:[%s910_s1 + $0x98] sm:$0xff]   ;;  %v696_v19 = vld [vmem:[%s910_s1 + $0xa0] sm:$0xff]   ;;  %v700_v23 = vld [vmem:[%s910_s1 + $0xa8] sm:$0xff]  }
   0x9   :  { %636 = vmatpush3.bf16.msra.mxu1 %v684_v7  ;;  %v701_v24 = vld [vmem:[%s910_s1 + $0x70] sm:$0xff]   ;;  %v705_v28 = vld [vmem:[%s910_s1 + $0x78] sm:$0xff]   ;;  %v15_v31 = vld [vmem:[%s911_s0] sm:$0xff] }
   0xa   :  { %637 = vmatprep.subr.bf16.mxu1 %v687_v10  ;;  %v702_v25 = vld [vmem:[%s910_s1 + $0x30] sm:$0xff]   ;;  %v706_v29 = vld [vmem:[%s910_s1 + $0x38] sm:$0xff]   ;;  %v557_v32 = vcombine.low %v15_v31, %v15_v31  ;;  %v558_v33 = vcombine.high %v15_v31, %v15_v31  ;;  %v711_v35 = vld [vmem:[%s910_s1 + $0x140] sm:$0xff]  }
   0xb   :  { %616 = vmatpush3.bf16.msra.mxu0 %v686_v9  ;;  %v703_v26 = vld [vmem:[%s910_s1 + $0xf0] sm:$0xff]   ;;  %v707_v30 = vld [vmem:[%s910_s1 + $0xf8] sm:$0xff]   ;;  %v16_v36 = vld [vmem:[%s911_s0 + $0x8] sm:$0xff] }
   0xc   :  { %617 = vmatprep.subr.bf16.mxu0 %v689_v12  ;;  %v704_v27 = vld [vmem:[%s910_s1 + $0xb0] sm:$0xff]   ;;  %v710_v34 = vld [vmem:[%s910_s1 + $0xb8] sm:$0xff]   ;;  %462 = vmatprep.mubr.bf16.mxu0 %v558_v33  ;;  %v559_v37 = vcombine.low %v16_v36, %v16_v36  ;;  %v560_v38 = vcombine.high %v16_v36, %v16_v36  ;;  %v714_v39 = vld [vmem:[%s910_s1 + $0x100] sm:$0xff]  }
   0xd   :  { %638 = vmatpush3.bf16.msra.mxu1 %v688_v11  ;;  %v715_v40 = vld [vmem:[%s910_s1 + $0x148] sm:$0xff]   ;;  %v717_v42 = vld [vmem:[%s910_s1 + $0x150] sm:$0xff]   ;;  %v719_v44 = vld [vmem:[%s910_s1 + $0x158] sm:$0xff]  }
   0xe   :  { %639 = vmatprep.subr.bf16.mxu1 %v691_v14  ;;  %502 = vmatprep.mubr.bf16.mxu1 %v560_v38  ;;  %v716_v41 = vld [vmem:[%s910_s1 + $0x108] sm:$0xff]   ;;  %v718_v43 = vld [vmem:[%s910_s1 + $0x110] sm:$0xff]   ;;  %v720_v45 = vld [vmem:[%s910_s1 + $0x118] sm:$0xff]  }
   0xf   :  { %618 = vmatpush3.bf16.msra.mxu0 %v690_v13  ;;  %v721_v46 = vld [vmem:[%s910_s1 + $0x160] sm:$0xff]   ;;  %v17_v48 = vld [vmem:[%s911_s0 + $0x10] sm:$0xff]  ;;  %v723_v49 = vld [vmem:[%s910_s1 + $0x168] sm:$0xff]  }
  0x10   :  { %619 = vmatprep.subr.bf16.mxu0 %v693_v16  ;;  %v722_v47 = vld [vmem:[%s910_s1 + $0x120] sm:$0xff]   ;;  %v562_v50 = vcombine.high %v17_v48, %v17_v48  ;;  %v724_v51 = vld [vmem:[%s910_s1 + $0x128] sm:$0xff]   ;;  %v725_v52 = vld [vmem:[%s910_s1 + $0x170] sm:$0xff]   ;;  %v561_v56 = vcombine.low %v17_v48, %v17_v48 }
  0x11   :  { %640 = vmatpush3.bf16.msra.mxu1 %v692_v15  ;;  %v726_v53 = vld [vmem:[%s910_s1 + $0x130] sm:$0xff]   ;;  %v727_v54 = vld [vmem:[%s910_s1 + $0x178] sm:$0xff]   ;;  %v556_v58 = vld [vmem:[%s912_s2] ss:$0 sm:$0xff] }
  0x12   :  { %641 = vmatprep.subr.bf16.mxu1 %v695_v18  ;;  %v728_v55 = vld [vmem:[%s910_s1 + $0x138] sm:$0xff]  }
  0x13   :  { %620 = vmatpush3.bf16.msra.mxu0 %v694_v17 }
  0x14   :  { %621 = vmatprep.subr.bf16.mxu0 %v697_v20 }
  0x15   :  { %642 = vmatpush3.bf16.msra.mxu1 %v696_v19 }
  0x16   :  { %643 = vmatprep.subr.bf16.mxu1 %v699_v22 }
  0x17   :  { %622 = vmatpush3.bf16.msra.mxu0 %v698_v21 }
  0x18   :  { %623 = vmatprep.subr.bf16.mxu0 %v701_v24 }
  0x19   :  { %644 = vmatpush3.bf16.msra.mxu1 %v700_v23 }
  0x1a   :  { %645 = vmatprep.subr.bf16.mxu1 %v703_v26 }
  0x1b   :  { %624 = vmatpush3.bf16.msra.mxu0 %v702_v25 }
  0x1c   :  { %625 = vmatprep.subr.bf16.mxu0 %v705_v28 }
  0x1d   :  { %646 = vmatpush3.bf16.msra.mxu1 %v704_v27 }
  0x1e   :  { %647 = vmatprep.subr.bf16.mxu1 %v707_v30 }
  0x1f   :  { %626 = vmatpush3.bf16.msra.mxu0 %v706_v29 }
  0x20   :  { %655 = vmatprep.subr.bf16.mxu0 %v711_v35 }
  0x21   :  { %648 = vmatpush3.bf16.msra.mxu1 %v710_v34 }
  0x22   :  { %463 = vmatmul.mubr.bf16.vlgmr.msra.gmra.mrb[0].mxu0 %v557_v32 }
  0x23   :  { %656 = vmatpush3.bf16.msra.mxu0 %v714_v39  ;;  %542 = vmatprep.mubr.bf16.mxu0 %v562_v50 }
  0x24   :  { %503 = vmatmul.mubr.bf16.vlgmr.msra.gmra.mrb[0].mxu1 %v559_v37  ;;  %657 = vmatprep.subr.bf16.mxu0 %v715_v40 }
  0x27   :  { %658 = vmatpush3.bf16.msra.mxu0 %v716_v41 }
  0x28   :  { %659 = vmatprep.subr.bf16.mxu0 %v717_v42 }
  0x2b   :  { %660 = vmatpush3.bf16.msra.mxu0 %v718_v43 }
  0x2c   :  { %661 = vmatprep.subr.bf16.mxu0 %v719_v44 }
  0x2f   :  { %662 = vmatpush3.bf16.msra.mxu0 %v720_v45 }
  0x30   :  { %663 = vmatprep.subr.bf16.mxu0 %v721_v46 }
  0x33   :  { %664 = vmatpush3.bf16.msra.mxu0 %v722_v47 }
  0x34   :  { %665 = vmatprep.subr.bf16.mxu0 %v723_v49 }
  0x37   :  { %666 = vmatpush3.bf16.msra.mxu0 %v724_v51 }
  0x38   :  { %667 = vmatprep.subr.bf16.mxu0 %v725_v52 }
  0x3b   :  { %668 = vmatpush3.bf16.msra.mxu0 %v726_v53 }
  0x3c   :  { %669 = vmatprep.subr.bf16.mxu0 %v727_v54 }
  0x3f   :  { %670 = vmatpush3.bf16.msra.mxu0 %v728_v55 }
  0x42   :  { %543 = vmatmul.mubr.bf16.vlgmr.msra.gmra.mrb[4].mxu0 %v561_v56 }
  0xf5   :  { %v627_v57 = vpop.f32.mrb[0].mxu0 }
  0xf6   :  { %v628_v59 = vpop.f32.mrb[1].mxu0 }
  0xf7   :  { %v629_v60 = vadd.f32 %v628_v59, %v627_v57  ;;  %v630_v61 = vpop.f32.mrb[2].mxu0  ;;  %v649_v62 = vpop.f32.mrb[0].mxu1 }
  0xf8   :  { %v631_v63 = vpop.f32.mrb[3].mxu0  ;;  %v650_v0 = vpop.f32.mrb[1].mxu1 }
  0xf9   :  { %v465_v1 = vadd.f32 %v629_v60, %v556_v58  ;;  %v651_v2 = vadd.f32 %v650_v0, %v649_v62  ;;  %v652_v3 = vpop.f32.mrb[2].mxu1 }
  0xfa   :  { %v653_v4 = vpop.f32.mrb[3].mxu1 }
  0xfb   :  { %v505_v5 = vadd.f32 %v651_v2, %v465_v1 }
 0x115   :  { %v671_v6 = vpop.f32.mrb[4].mxu0 }
 0x116   :  { %v672_v7 = vpop.f32.mrb[5].mxu0 }
 0x117   :  { %v673_v8 = vadd.f32 %v672_v7, %v671_v6  ;;  %v674_v9 = vpop.f32.mrb[6].mxu0 }
 0x118   :  { %v675_v10 = vpop.f32.mrb[7].mxu0 }
 0x119   :  { %v545_v11 = vadd.f32 %v673_v8, %v505_v5 }
 0x11b   :  { %551 = vst.msk [vmem:[%s913_s3] sm:$0xff] %vm550_vm0, %v545_v11 }

// kernel: squeeze.2
= control target key start
LH: loop header
LB: loop body
LE: loop exit
PB: predicated region body
PF: predicated region fallthrough
CT: control target
= control target key end

     0   :  { %vm34_vm0 = vcmask 261120   ;;  %s84_s0 = inlined_call_operand.vmem [shape: bf16[1,10,32], index: 0, kind: input, shape index: {}]   ;;  %s85_s1 = inlined_call_operand.vmem [shape: bf16[2,5,32], index: 1, kind: output, shape index: {}]  }
   0x1   :  { %v60_v0 = vld [vmem:[%s84_s0] sm:$0xff]  }
   0x2   :  { %v61_v1 = vunpack.c.l.bf16 %v60_v0  ;;  %v62_v2 = vunpack.c.h.bf16 %v60_v0 }
   0x4   :  { %19 = vst [vmem:[#allocation1 + $0x8] sm:$0xff] %v62_v2  ;;  %35 = vst.msk [vmem:[#allocation0] sm:$0x1f] %vm34_vm0, %v61_v1  }
   0x5   :  { %37 = vst.msk [vmem:[#allocation0 + $0x3] sm:$0xe0] %vm34_vm0, %v61_v1  }
   0xb   :  { %v39_v3 = vld [vmem:[#allocation1 + $0x8] sm:$0x3]   ;;  %v47_v4 = vld [vmem:[#allocation0] sm:$0xff] }
   0xc   :  { %42 = vst.msk [vmem:[#allocation0 + $0xb] sm:$0x3] %vm34_vm0, %v39_v3  }
  0x13   :  { %v52_v5 = vld [vmem:[#allocation0 + $0x8] sm:$0xff] }
  0x14   :  { %v66_v6 = vpack.c.bf16 %v52_v5, %v47_v4 }
  0x16   :  { %67 = vst [vmem:[%s85_s1] sm:$0xff] %v66_v6  }

// kernel: dpt_forward.38
= control target key start
LH: loop header
LB: loop body
LE: loop exit
PB: predicated region body
PF: predicated region fallthrough
CT: control target
= control target key end

     0   :  { %v107_v0 = vmov 0.0   ;;  %vm108_vm0 = vmmov 0   ;;  %vm39_vm1 = vcmask 261120   ;;  %s144_s1 = inlined_call_operand.vmem [shape: bf16[32,32], index: 1, kind: input, shape index: {}]   ;;  %s145_s0 = inlined_call_operand.vmem [shape: bf16[8,32], index: 0, kind: input, shape index: {}]   ;;  %s146_s2 = inlined_call_operand.vmem [shape: f32[1,32], index: 2, kind: input, shape index: {}]   ;;  %s147_s3 = inlined_call_operand.vmem [shape: f32[8,32], index: 3, kind: output, shape index: {}]  }
   0x1   :  { %95 = vmatprep.subr.bf16.mxu0 %v107_v0  ;;  %v105_v1 = vld [vmem:[%s144_s1] sm:$0xff]   ;;  %99 = vmatprep.mubr.msk.bf16.mxu0 %vm108_vm0, %v107_v0  ;;  %v106_v2 = vld [vmem:[%s144_s1 + $0x8] sm:$0xff]  }
   0x2   :  { %96 = vmatpush3.bf16.msra.mxu0 %v105_v1  ;;  %v15_v3 = vld [vmem:[%s145_s0] sm:$0xf] }
   0x3   :  { %97 = vmatprep.subr.bf16.mxu0 %v107_v0  ;;  %v88_v4 = vld [vmem:[%s146_s2] ss:$0 sm:$0xff] }
   0x6   :  { %98 = vmatpush3.bf16.msra.mxu0 %v106_v2 }
   0x9   :  { %100 = vmatmul.mubr.msk.bf16.vlgmr.msra.gmra.mrb[0].mxu0 %vm39_vm1, %v15_v3 }
  0xdc   :  { %v77_v5 = vpop.f32.mrb[0].mxu0 }
  0xdd   :  { %v78_v6 = vadd.f32 %v88_v4, %v77_v5  ;;  %v101_v7 = vpop.f32.mrb[1].mxu0 }
  0xde   :  { %v80_v8 = vpop.f32.mrb[2].mxu0 }
  0xdf   :  { %83 = vst.msk [vmem:[%s147_s3] sm:$0xff] %vm39_vm1, %v78_v6  ;;  %v102_v9 = vpop.f32.mrb[3].mxu0 }

// kernel: dpt_forward.39
= control target key start
LH: loop header
LB: loop body
LE: loop exit
PB: predicated region body
PF: predicated region fallthrough
CT: control target
= control target key end

     0   :  { %v347_v1 = vmov 0.0   ;;  %vm348_vm0 = vmmov 0   ;;  %vm178_vm1 = vcmask 261120   ;;  %vm262_vm2 = vcmask 130048   ;;  %s435_s1 = inlined_call_operand.vmem [shape: bf16[288,16], index: 1, kind: input, shape index: {}]   ;;  %s436_s0 = inlined_call_operand.vmem [shape: bf16[8,288], index: 0, kind: input, shape index: {}]   ;;  %s437_s2 = inlined_call_operand.vmem [shape: f32[1,16], index: 2, kind: input, shape index: {}]   ;;  %s438_s3 = inlined_call_operand.vmem [shape: f32[8,16], index: 3, kind: output, shape index: {}]  }
   0x1   :  { %v326_v0 = vld [vmem:[%s435_s1 + $0x40] sm:$0xff]   ;;  %316 = vmatprep.subr.bf16.mxu1 %v347_v1  ;;  %320 = vmatprep.mubr.msk.bf16.mxu1 %vm348_vm0, %v347_v1  ;;  %v328_v3 = vld [vmem:[%s435_s1 + $0x48] sm:$0xff]   ;;  %v330_v5 = vld [vmem:[%s435_s1 + $0x50] sm:$0xff]  }
   0x2   :  { %v327_v2 = vld [vmem:[%s435_s1] sm:$0xff]   ;;  %291 = vmatprep.subr.bf16.mxu0 %v326_v0  ;;  %v329_v4 = vld [vmem:[%s435_s1 + $0x8] sm:$0xff]   ;;  %v331_v6 = vld [vmem:[%s435_s1 + $0x10] sm:$0xff]  }
   0x3   :  { %292 = vmatpush3.bf16.msra.mxu0 %v327_v2  ;;  %v332_v7 = vld [vmem:[%s435_s1 + $0x58] sm:$0xff]   ;;  %v334_v9 = vld [vmem:[%s435_s1 + $0x60] sm:$0xff]   ;;  %v336_v12 = vld [vmem:[%s435_s1 + $0x68] sm:$0xff]  }
   0x4   :  { %293 = vmatprep.subr.bf16.mxu0 %v328_v3  ;;  %v333_v8 = vld [vmem:[%s435_s1 + $0x18] sm:$0xff]   ;;  %v340_v10 = vld [vmem:[%s435_s1 + $0x80] sm:$0xff]   ;;  %v346_v15 = vld [vmem:[%s435_s1 + $0x88] sm:$0xff]  }
   0x5   :  { %v335_v11 = vld [vmem:[%s435_s1 + $0x20] sm:$0xff]   ;;  %317 = vmatpush3.bf16.msra.mxu1 %v340_v10  ;;  %v337_v16 = vld [vmem:[%s435_s1 + $0x28] sm:$0xff]   ;;  %v338_v17 = vld [vmem:[%s435_s1 + $0x70] sm:$0xff]  }
   0x6   :  { %318 = vmatprep.subr.bf16.mxu1 %v347_v1  ;;  %v15_v13 = vld [vmem:[%s436_s0] sm:$0xff]  ;;  %v345_v18 = vld [vmem:[%s436_s0 + $0x8] ss:$0 sps:$4 sm:$0xff]   ;;  %v339_v19 = vld [vmem:[%s435_s1 + $0x30] sm:$0xff]  }
   0x7   :  { %294 = vmatpush3.bf16.msra.mxu0 %v329_v4  ;;  %v270_v14 = vcombine.high %v15_v13, %v15_v13  ;;  %v341_v20 = vld [vmem:[%s435_s1 + $0x78] sm:$0xff]   ;;  %v269_v22 = vcombine.low %v15_v13, %v15_v13  ;;  %v268_v29 = vld [vmem:[%s437_s2] ss:$0 sm:$0xff] }
   0x8   :  { %295 = vmatprep.subr.bf16.mxu0 %v330_v5  ;;  %v342_v21 = vld [vmem:[%s435_s1 + $0x38] sm:$0xff]  }
   0x9   :  { %214 = vmatprep.mubr.bf16.mxu0 %v270_v14  ;;  %319 = vmatpush3.bf16.msra.mxu1 %v346_v15 }
   0xb   :  { %296 = vmatpush3.bf16.msra.mxu0 %v331_v6 }
   0xc   :  { %297 = vmatprep.subr.bf16.mxu0 %v332_v7  ;;  %321 = vmatmul.mubr.msk.bf16.vlgmr.msra.gmra.mrb[0].mxu1 %vm178_vm1, %v345_v18 }
   0xf   :  { %298 = vmatpush3.bf16.msra.mxu0 %v333_v8 }
  0x10   :  { %299 = vmatprep.subr.bf16.mxu0 %v334_v9 }
  0x13   :  { %300 = vmatpush3.bf16.msra.mxu0 %v335_v11 }
  0x14   :  { %301 = vmatprep.subr.bf16.mxu0 %v336_v12 }
  0x17   :  { %302 = vmatpush3.bf16.msra.mxu0 %v337_v16 }
  0x18   :  { %303 = vmatprep.subr.bf16.mxu0 %v338_v17 }
  0x1b   :  { %304 = vmatpush3.bf16.msra.mxu0 %v339_v19 }
  0x1c   :  { %305 = vmatprep.subr.bf16.mxu0 %v341_v20 }
  0x1f   :  { %306 = vmatpush3.bf16.msra.mxu0 %v342_v21 }
  0x22   :  { %215 = vmatmul.mubr.bf16.vlgmr.msra.gmra.mrb[0].mxu0 %v269_v22 }
  0xdf   :  { %v256_v23 = vpop.f32.mrb[0].mxu1 }
  0xe0   :  { %v322_v24 = vpop.f32.mrb[1].mxu1 }
  0xe1   :  { %v259_v25 = vpop.f32.mrb[2].mxu1 }
  0xe2   :  { %v323_v26 = vpop.f32.mrb[3].mxu1 }
  0xf5   :  { %v307_v27 = vpop.f32.mrb[0].mxu0 }
  0xf6   :  { %v308_v28 = vpop.f32.mrb[1].mxu0 }
  0xf7   :  { %v309_v30 = vadd.f32 %v308_v28, %v307_v27  ;;  %v310_v31 = vpop.f32.mrb[2].mxu0 }
  0xf8   :  { %v311_v32 = vpop.f32.mrb[3].mxu0 }
  0xf9   :  { %v217_v33 = vadd.f32 %v309_v30, %v268_v29 }
  0xfb   :  { %v257_v34 = vadd.f32 %v256_v23, %v217_v33 }
  0xfd   :  { %263 = vst.msk [vmem:[%s438_s3] sm:$0xff] %vm262_vm2, %v257_v34 }

// kernel: dpt_forward.31
= control target key start
LH: loop header
LB: loop body
LE: loop exit
PB: predicated region body
PF: predicated region fallthrough
CT: control target
= control target key end

     0   :  { %s3282_s27 = smov 0   ;;  %s3739_s0 = inlined_call_operand.vmem [shape: f32[10,32], index: 0, kind: input, shape index: {}]   ;;  %s3740_s1 = inlined_call_operand.vmem [shape: f32[10,10], index: 1, kind: input, shape index: {}]   ;;  %s3741_s2 = inlined_call_operand.vmem [shape: f32[12,1,32], index: 2, kind: input, shape index: {}]   ;;  %s3742_s3 = inlined_call_operand.vmem [shape: f32[12,1,32], index: 3, kind: input, shape index: {}]   ;;  %s3743_s4 = inlined_call_operand.vmem [shape: f32[12,4,32,8], index: 4, kind: input, shape index: {}]   ;;  %s3744_s5 = inlined_call_operand.vmem [shape: f32[12,4,1,8], index: 5, kind: input, shape index: {}]   ;;  %s3745_s6 = inlined_call_operand.vmem [shape: f32[12,4,32,8], index: 6, kind: input, shape index: {}]   ;;  %s3746_s7 = inlined_call_operand.vmem [shape: f32[12,4,1,8], index: 7, kind: input, shape index: {}]   ;;  %s3747_s8 = inlined_call_operand.vmem [shape: f32[12,4,32,8], index: 8, kind: input, shape index: {}]   ;;  %s3748_s9 = inlined_call_operand.vmem [shape: f32[12,4,1,8], index: 9, kind: input, shape index: {}]   ;;  %s3749_s10 = inlined_call_operand.vmem [shape: f32[12,4,8,32], index: 10, kind: input, shape index: {}]   ;;  %s3750_s11 = inlined_call_operand.vmem [shape: f32[12,1,32], index: 11, kind: input, shape index: {}]   ;;  %s3751_s12 = inlined_call_operand.vmem [shape: f32[12,1,32], index: 12, kind: input, shape index: {}]   ;;  %s3752_s13 = inlined_call_operand.vmem [shape: f32[12,1,32], index: 13, kind: input, shape index: {}]   ;;  %s3753_s14 = inlined_call_operand.vmem [shape: f32[12,32,128], index: 14, kind: input, shape index: {}]   ;;  %s3754_s15 = inlined_call_operand.vmem [shape: f32[12,1,128], index: 15, kind: input, shape index: {}]   ;;  %s3755_s16 = inlined_call_operand.vmem [shape: f32[12,128,32], index: 16, kind: input, shape index: {}]   ;;  %s3756_s17 = inlined_call_operand.vmem [shape: f32[12,1,32], index: 17, kind: input, shape index: {}]   ;;  %s3757_s18 = inlined_call_operand.vmem [shape: f32[12,10,32], index: 18, kind: output, shape index: {}]  }
   0x1   :  { %3763 = sst [smem:[#allocation6_spill]] %s3739_s0 }
   0x2   :  { %3764 = sst [smem:[#allocation7_spill]] %s3740_s1 }
   0x3   :  { %3765 = sst [smem:[#allocation8_spill]] %s3741_s2 }
   0x4   :  { %3766 = sst [smem:[#allocation9_spill]] %s3742_s3 }
   0x5   :  { %3767 = sst [smem:[#allocation10_spill]] %s3743_s4 }
   0x6   :  { %3768 = sst [smem:[#allocation11_spill]] %s3744_s5 }
   0x7   :  { %3769 = sst [smem:[#allocation12_spill]] %s3745_s6 }
   0x8   :  { %3770 = sst [smem:[#allocation13_spill]] %s3746_s7 }
   0x9   :  { %3771 = sst [smem:[#allocation14_spill]] %s3747_s8 }
   0xa   :  { %3772 = sst [smem:[#allocation15_spill]] %s3748_s9 }
   0xb   :  { %3773 = sst [smem:[#allocation16_spill]] %s3749_s10 }
   0xc   :  { %3774 = sst [smem:[#allocation17_spill]] %s3752_s13 }
   0xd   :  { %3775 = sst [smem:[#allocation18_spill]] %s3757_s18 }
   0xe LB: > { %3776 = sst [smem:[#allocation3_spill]] %s3183_s27  ;;  %s2725_s28 = sadd.s32 4294967295, %s3183_s27   ;;  %s3183_s27 = sphi %s3282_s27, %s28_s27  }
   0xf   : > { %p2729_p0 = scmp.ge.s32.totalorder %s3183_s27, 1  ;;  %p645_p1 = scmp.lt.s32.totalorder %s3183_s27, 13 }
  0x11   : > { %p646_p2 = pnand %p2729_p0, %p645_p1 }
  0x13   : > { %649 = sbr.rel (%p646_p2) target bundleno = 5108 (0x13f4), region = 92 }
  0x1a   : > { %p757_p3 = scmp.lt.s32.totalorder %s2725_s28, 11  ;;  %s3779_s4 = sld [smem:[#allocation10_spill]] }
  0x1b   : > { %s3781_s5 = sld [smem:[#allocation11_spill]]  ;;  %s3783_s6 = sld [smem:[#allocation12_spill]] }
  0x1c   : > { %s3290_s29 = scalar_select %p757_p3, %s2725_s28, 11 }
  0x1d   : > { %s3784_s7 = sld [smem:[#allocation13_spill]]  ;;  %s3785_s8 = sld [smem:[#allocation14_spill]] }
  0x1e   : > { %s2842_s2 = sshll.u32 %s3290_s29, 7  ;;  %s2732_s23 = sshll.u32 %s3290_s29, 2 }
  0x1f   : > { %s3786_s9 = sld [smem:[#allocation15_spill]]  ;;  %s2845_s0 = sshll.u32 %s3290_s29, 5 }
  0x20   : > { %s3305_s26 = scalar_lea.vmem %s3779_s4, %s2842_s2  ;;  %s3787_s10 = sld [smem:[#allocation16_spill]] }
  0x21   : > { %3780 = sst [smem:[#allocation4_spill]] %s3305_s26  ;;  %s3310_s27 = scalar_lea.vmem %s3781_s5, %s2732_s23 }
  0x22   : > { %3782 = sst [smem:[#allocation5_spill]] %s3310_s27  ;;  %s3315_s20 = scalar_lea.vmem %s3783_s6, %s2842_s2 }
  0x23   : > { %s3320_s3 = scalar_lea.vmem %s3784_s7, %s2732_s23  ;;  %s3325_s25 = scalar_lea.vmem %s3785_s8, %s2842_s2 }
  0x24   : > { %s811_s19 = scalar_lea.vmem %s3754_s15, %s3290_s29  ;;  %s819_s18 = scalar_lea.vmem %s3756_s17, %s3290_s29 }
  0x25   : > { %s3330_s30 = scalar_lea.vmem %s3786_s9, %s2732_s23  ;;  %s3353_s9 = scalar_lea.vmem %s3753_s14, %s2845_s0 }
  0x26   : > { %s3340_s22 = scalar_lea.vmem %s3787_s10, %s2845_s0  ;;  %s3362_s10 = scalar_lea.vmem %s3755_s16, %s2842_s2 }
  0x27   : > { %s2848_s8 = sshll.u32 %s3290_s29, 4  ;;  %s3789_s13 = sld [smem:[#allocation18_spill]] }
  0x28   : > { %p2747_p4 = scmp.ne.s32.totalorder %s2725_s28, 0 }
  0x29   : > { %s3790_s5 = sld [smem:[#allocation6_spill]] (!%p2747_p4)  ;;  %vm832_vm0 = vcmask (!%p2747_p4), 261120   ;;  %vm834_vm1 = vcmask (!%p2747_p4), 254976  }
  0x2a   : > { %829 = sbr.rel (%p2747_p4) target bundleno = 50 (0x32), region = 96 }
  0x2d   : > { %s3372_s23 = scalar_lea.vmem %s3789_s13, %s2848_s8 }
  0x2f   : > { %v830_v0 = vld [vmem:[%s3790_s5] sm:$0xff] (!%p2747_p4)  ;;  %v831_v1 = vld [vmem:[%s3790_s5 + $0x8] sm:$0x3] (!%p2747_p4) }
  0x30   : > { %833 = vst.msk [vmem:[#allocation2] sm:$0xff] (!%p2747_p4), %vm832_vm0, %v830_v0 }
  0x31   : > { %835 = vst.msk [vmem:[#allocation2 + $0x8] sm:$0x3] %vm834_vm1, %v831_v1 }
  0x32 PF: > { %vm840_vm2 = vcmask 261120   ;;  %vm844_vm3 = vcmask 254976   ;;  %s3791_s13 = sld [smem:[#allocation4_spill]]  ;;  %v3185_v19 = vmov 0.0   ;;  %vm3186_vm4 = vmmov 0   ;;  %s3792_s6 = sld [smem:[#allocation8_spill]] }
  0x33   : > { %2921 = vmatprep.subr.bf16.mxu0 %v3185_v19  ;;  %2945 = vmatprep.subr.bf16.mxu1 %v3185_v19  ;;  %s3794_s8 = sld [smem:[#allocation9_spill]]  ;;  %v943_v37 = vld [vmem:[%s3315_s20] sm:$0xff]  ;;  %v944_v38 = vld [vmem:[%s3315_s20 + $0x8] sm:$0xff]  ;;  %v945_v43 = vld [vmem:[%s3315_s20 + $0x10] sm:$0xff]  ;;  %s3796_s0 = sld [smem:[#allocation5_spill]]  ;;  %vm1053_vm5 = vcmask 64512  }
  0x34   : > { %2925 = vmatprep.mubr.msk.bf16.mxu0 %vm3186_vm4, %v3185_v19  ;;  %2947 = vmatprep.mubr.msk.bf16.mxu1 %vm3186_vm4, %v3185_v19  ;;  %v947_v41 = vpack.c.bf16 %v944_v38, %v943_v37  ;;  %v946_v44 = vld [vmem:[%s3315_s20 + $0x18] sm:$0xff]  ;;  %v997_v46 = vld [vmem:[%s3325_s25] sm:$0xff]  ;;  %v998_v47 = vld [vmem:[%s3325_s25 + $0x8] sm:$0xff]  ;;  %vm1136_vm6 = vcmask 1044480   ;;  %s3797_s2 = sld [smem:[#allocation7_spill]]  ;;  %vm1107_vm7 = vcmask 80896  }
  0x35   : > { %v948_v45 = vpack.c.bf16 %v946_v44, %v945_v43  ;;  %v1001_v48 = vpack.c.bf16 %v998_v47, %v997_v46  ;;  %v999_v49 = vld [vmem:[%s3325_s25 + $0x10] sm:$0xff]  ;;  %v1000_v50 = vld [vmem:[%s3325_s25 + $0x18] sm:$0xff]  ;;  %v2752_v60 = vld [vmem:[%s3320_s3] ss:$0 sm:$0xff]  ;;  %vm1111_vm8 = vcmask 74752   ;;  %vm1483_vm9 = vcmask 1043456  }
  0x36   : > { %v1002_v51 = vpack.c.bf16 %v1000_v50, %v999_v49 }
  0x38   : > { %v836_v2 = vld [vmem:[#allocation2] sm:$0xff]  ;;  %v837_v3 = vld [vmem:[#allocation2 + $0x8] sm:$0x3]  ;;  %v888_v20 = vld [vmem:[%s3791_s13 + $0x10] sm:$0xff]  ;;  %s3793_s27 = scalar_lea.vmem %s3792_s6, %s3290_s29 }
  0x39   : > { %v841_v4 = vsel %vm840_vm2, %v836_v2, 0.0  ;;  %v845_v5 = vsel %vm844_vm3, %v837_v3, 0.0  ;;  %v886_v16 = vld [vmem:[%s3791_s13] sm:$0xff]  ;;  %v887_v17 = vld [vmem:[%s3791_s13 + $0x8] sm:$0xff]  ;;  %v889_v21 = vld [vmem:[%s3791_s13 + $0x18] sm:$0xff]  ;;  %s3795_s24 = scalar_lea.vmem %s3794_s8, %s3290_s29 }
  0x3a   : > { %842 = vadd.xlane.f32.xlu0 %v841_v4  ;;  %v890_v18 = vpack.c.bf16 %v887_v17, %v886_v16  ;;  %v891_v22 = vpack.c.bf16 %v889_v21, %v888_v20  ;;  %v2748_v31 = vld [vmem:[%s3793_s27] ss:$0 sm:$0xff]  ;;  %v2760_v16 = vld [vmem:[%s3791_s13 + $0x30] sm:$0xff]  ;;  %v2761_v17 = vld [vmem:[%s3791_s13 + $0x38] sm:$0xff]  ;;  %s3800_s27 = sld [smem:[#allocation17_spill]] }
  0x3b   : > { %v2749_v35 = vld [vmem:[%s3795_s24] ss:$0 sm:$0xff]  ;;  %v1190_v20 = vpack.c.bf16 %v2761_v17, %v2760_v16 }
  0x3c   : > { %2922 = vmatpush3.bf16.msra.mxu0 %v890_v18  ;;  %v2750_v52 = vld [vmem:[%s3796_s0] ss:$0 sm:$0xff] }
  0x3d   : > { %2923 = vmatprep.subr.bf16.mxu0 %v3185_v19  ;;  %v2772_v21 = vld [vmem:[%s3325_s25 + $0x20] sm:$0xff] }
  0x3e   : > { %846 = vadd.xlane.f32.xlu0 %v845_v5  ;;  %v2754_v5 = vld [vmem:[%s3330_s30] ss:$0 sm:$0xff] }
  0x40   : > { %2924 = vmatpush3.bf16.msra.mxu0 %v891_v22  ;;  %v2773_v22 = vld [vmem:[%s3325_s25 + $0x28] sm:$0xff]  ;;  %s3801_s7 = scalar_lea.vmem %s3800_s27, %s3290_s29 }
  0x41   : > { %2929 = vmatprep.subr.bf16.mxu0 %v3185_v19 }
  0xc7   : > { %v843_v6 = vpop.xlane.xlu0 %842 }
  0xc8   : > { %v849_v7 = vmul.f32 0.03125, %v843_v6 }
  0xca   : > { %v851_v8 = vsub.f32 %v836_v2, %v849_v7 }
  0xcb   : > { %v847_v9 = vpop.xlane.xlu0 %846 }
  0xcc   : > { %v850_v10 = vmul.f32 0.03125, %v847_v9  ;;  %v853_v11 = vmul.f32 %v851_v8, %v851_v8  ;;  %v2759_v9 = vld [vmem:[%s3791_s13 + $0x28] sm:$0xff] }
  0xce   : > { %v852_v12 = vsub.f32 %v837_v3, %v850_v10  ;;  %v855_v13 = vsel %vm840_vm2, %v853_v11, 0.0 }
  0xcf   : > { %856 = vadd.xlane.f32.xlu1 %v855_v13 }
  0xd0   : > { %v854_v14 = vmul.f32 %v852_v12, %v852_v12 }
  0xd2   : > { %v858_v15 = vsel %vm844_vm3, %v854_v14, 0.0 }
  0xd3   : > { %859 = vadd.xlane.f32.xlu1 %v858_v15 }
 0x15c   : > { %v857_v23 = vpop.xlane.xlu1 %856 }
 0x15d   : > { %v861_v24 = vmul.f32 0.03125, %v857_v23  ;;  %v1301_v23 = vpack.c.bf16 %v2773_v22, %v2772_v21  ;;  %v2770_v22 = vld [vmem:[%s3320_s3 + $0x1] ss:$0 sm:$0xff] }
 0x15f   : > { %v863_v25 = vadd.f32 1e-06, %v861_v24  ;;  %v2774_v24 = vld [vmem:[%s3325_s25 + $0x30] sm:$0xff] }
 0x160   : > { %v860_v26 = vpop.xlane.xlu1 %859 }
 0x161   : > { %3127 = vrsqrt.f32 %v863_v25  ;;  %v862_v27 = vmul.f32 0.03125, %v860_v26  ;;  %v2775_v25 = vld [vmem:[%s3325_s25 + $0x38] sm:$0xff] }
 0x162   : > { %v1302_v26 = vpack.c.bf16 %v2775_v25, %v2774_v24 }
 0x163   : > { %v864_v28 = vadd.f32 1e-06, %v862_v27 }
 0x165   : > { %3129 = vrsqrt.f32 %v864_v28  ;;  %v3465_v28 = vld [vmem:[%s3797_s2] sm:$0xff] }
 0x16b   : > { %v3128_v29 = vpop.eup %3127 }
 0x16c   : > { %v867_v30 = vmul.f32 %v3128_v29, %v851_v8  ;;  %v2758_v8 = vld [vmem:[%s3791_s13 + $0x20] sm:$0xff] }
 0x16d   : > { %v1189_v14 = vpack.c.bf16 %v2759_v9, %v2758_v8 }
 0x16e   : > { %v875_v33 = vmul.f32 %v2748_v31, %v867_v30 }
 0x16f   : > { %v3130_v32 = vpop.eup %3129 }
 0x170   : > { %v868_v34 = vmul.f32 %v3130_v32, %v852_v12  ;;  %v883_v39 = vadd.f32 %v2749_v35, %v875_v33  ;;  %v3470_v32 = vld [vmem:[%s3797_s2 + $0x8] sm:$0x3] }
 0x172   : > { %v876_v36 = vmul.f32 %v2748_v31, %v868_v34 }
 0x174   : > { %v884_v40 = vadd.f32 %v2749_v35, %v876_v36 }
 0x176   : > { %v3408_v42 = vpack.c.bf16 %v884_v40, %v883_v39  ;;  %v2763_v39 = vld [vmem:[%s3796_s0 + $0x1] ss:$0 sm:$0xff] }
 0x178   : > { %2926 = vmatmul.mubr.msk.bf16.vlgmr.msra.gmra.mrb[0].mxu0 %vm840_vm2, %v3408_v42 }
 0x179   : > { %2930 = vmatpush3.bf16.msra.mxu0 %v947_v41  ;;  %2933 = vmatprep.mubr.msk.bf16.mxu0 %vm3186_vm4, %v3185_v19 }
 0x17a   : > { %2931 = vmatprep.subr.bf16.mxu0 %v3185_v19 }
 0x17d   : > { %2932 = vmatpush3.bf16.msra.mxu0 %v948_v45 }
 0x17e   : > { %2937 = vmatprep.subr.bf16.mxu0 %v3185_v19 }
 0x180   : > { %2934 = vmatmul.mubr.msk.bf16.vlgmr.msra.gmra.mrb[4].mxu0 %vm840_vm2, %v3408_v42 }
 0x181   : > { %2938 = vmatpush3.bf16.msra.mxu0 %v1001_v48  ;;  %2941 = vmatprep.mubr.msk.bf16.mxu0 %vm3186_vm4, %v3185_v19  ;;  %v2777_v48 = vld [vmem:[%s3330_s30 + $0x1] ss:$0 sm:$0xff] }
 0x182   : > { %2939 = vmatprep.subr.bf16.mxu0 %v3185_v19 }
 0x185   : > { %2940 = vmatpush3.bf16.msra.mxu0 %v1002_v51 }
 0x186   : > { %2951 = vmatprep.subr.bf16.mxu0 %v3185_v19 }
 0x188   : > { %2942 = vmatmul.mubr.msk.bf16.vlgmr.msra.gmra.mrb[8].mxu0 %vm840_vm2, %v3408_v42 }
 0x189   : > { %2953 = vmatprep.mubr.msk.bf16.mxu0 %vm3186_vm4, %v3185_v19 }
 0x24b   : > { %v936_v53 = vpop.f32.mrb[0].mxu0 }
 0x24c   : > { %v2927_v54 = vpop.f32.mrb[1].mxu0  ;;  %v937_v56 = vadd.f32 %v2750_v52, %v936_v53 }
 0x24d   : > { %v939_v55 = vpop.f32.mrb[2].mxu0 }
 0x24e   : > { %v940_v57 = vadd.f32 %v2750_v52, %v939_v55  ;;  %v2928_v58 = vpop.f32.mrb[3].mxu0 }
 0x250   : > { %v1051_v59 = vpack.c.bf16 %v940_v57, %v937_v56 }
 0x253   : > { %v990_v61 = vpop.f32.mrb[4].mxu0 }
 0x254   : > { %v2935_v62 = vpop.f32.mrb[5].mxu0  ;;  %v991_v0 = vadd.f32 %v2752_v60, %v990_v61 }
 0x255   : > { %v993_v63 = vpop.f32.mrb[6].mxu0 }
 0x256   : > { %v994_v1 = vadd.f32 %v2752_v60, %v993_v63  ;;  %v2936_v2 = vpop.f32.mrb[7].mxu0 }
 0x258   : > { %v1052_v3 = vpack.c.bf16 %v994_v1, %v991_v0 }
 0x25a   : > { %v1058_v4 = vsel %vm1053_vm5, %v1052_v3, 0 }
 0x25b   : > { %v1044_v6 = vpop.f32.mrb[8].mxu0  ;;  %2946 = vmatpush3.bf16.xpose.msra.mxu1 %v1058_v4 }
 0x25c   : > { %v2943_v7 = vpop.f32.mrb[9].mxu0  ;;  %2957 = vmatprep.subr.bf16.mxu1 %v3185_v19  ;;  %v1045_v11 = vadd.f32 %v2754_v5, %v1044_v6  ;;  %v2765_v6 = vld [vmem:[%s3315_s20 + $0x20] sm:$0xff] }
 0x25d   : > { %v1047_v10 = vpop.f32.mrb[10].mxu0  ;;  %v2766_v7 = vld [vmem:[%s3315_s20 + $0x28] sm:$0xff] }
 0x25e   : > { %v1048_v12 = vadd.f32 %v2754_v5, %v1047_v10  ;;  %v2944_v13 = vpop.f32.mrb[11].mxu0 }
 0x25f   : > { %v2767_v13 = vld [vmem:[%s3315_s20 + $0x30] sm:$0xff] }
 0x260   : > { %v1132_v15 = vpack.c.bf16 %v1048_v12, %v1045_v11  ;;  %v1245_v11 = vpack.c.bf16 %v2766_v7, %v2765_v6  ;;  %v2793_v6 = vld [vmem:[%s3315_s20 + $0x50] sm:$0xff]  ;;  %v2794_v7 = vld [vmem:[%s3315_s20 + $0x58] sm:$0xff] }
 0x262   : > { %2948 = vmatmul.mubr.msk.bf16.vlgmr.msra.gmra.mrb[0].mxu1 %vm1053_vm5, %v1051_v59  ;;  %v1138_v18 = vsel %vm1136_vm6, %v1132_v15, 0 }
 0x263   : > { %2952 = vmatpush3.bf16.msra.mxu0 %v1138_v18  ;;  %2958 = vmatpush3.bf16.msra.mxu1 %v1189_v14  ;;  %v2768_v14 = vld [vmem:[%s3315_s20 + $0x38] sm:$0xff] }
 0x264   : > { %2959 = vmatprep.subr.bf16.mxu1 %v3185_v19  ;;  %2961 = vmatprep.mubr.msk.bf16.mxu1 %vm3186_vm4, %v3185_v19  ;;  %v1246_v15 = vpack.c.bf16 %v2768_v14, %v2767_v13 }
 0x265   : > { %2965 = vmatprep.subr.bf16.mxu0 %v3185_v19 }
 0x267   : > { %2960 = vmatpush3.bf16.msra.mxu1 %v1190_v20 }
 0x268   : > { %2973 = vmatprep.subr.bf16.mxu1 %v3185_v19 }
 0x26a   : > { %2962 = vmatmul.mubr.msk.bf16.vlgmr.msra.gmra.mrb[4].mxu1 %vm840_vm2, %v3408_v42 }
 0x26b   : > { %2974 = vmatpush3.bf16.msra.mxu1 %v1301_v23  ;;  %2977 = vmatprep.mubr.msk.bf16.mxu1 %vm3186_vm4, %v3185_v19 }
 0x26c   : > { %2975 = vmatprep.subr.bf16.mxu1 %v3185_v19 }
 0x26f   : > { %2976 = vmatpush3.bf16.msra.mxu1 %v1302_v26 }
 0x270   : > { %2987 = vmatprep.subr.bf16.mxu1 %v3185_v19 }
 0x272   : > { %2978 = vmatmul.mubr.msk.bf16.vlgmr.msra.gmra.mrb[8].mxu1 %vm840_vm2, %v3408_v42 }
 0x273   : > { %2989 = vmatprep.mubr.msk.bf16.mxu1 %vm3186_vm4, %v3185_v19 }
 0x335   : > { %v1094_v27 = vpop.f32.mrb[0].mxu1 }
 0x336   : > { %v1101_v29 = vmul.f32 0.35355338, %v1094_v27  ;;  %v2949_v30 = vpop.f32.mrb[1].mxu1 }
 0x337   : > { %v1097_v31 = vpop.f32.mrb[2].mxu1 }
 0x338   : > { %v1102_v33 = vmul.f32 0.35355338, %v1097_v31  ;;  %v2950_v34 = vpop.f32.mrb[3].mxu1  ;;  %v1105_v35 = vadd.f32 %v3465_v28, %v1101_v29 }
 0x33a   : > { %v1108_v36 = vsel %vm1107_vm7, %v1105_v35, -inf  ;;  %v1106_v37 = vadd.f32 %v3470_v32, %v1102_v33 }
 0x33b   : > { %1109 = vmax.xlane.f32.xlu0 %v1108_v36 }
 0x33c   : > { %v1112_v38 = vsel %vm1111_vm8, %v1106_v37, -inf }
 0x33d   : > { %1113 = vmax.xlane.f32.xlu1 %v1112_v38  ;;  %v1233_v40 = vpop.f32.mrb[4].mxu1 }
 0x33e   : > { %v2963_v41 = vpop.f32.mrb[5].mxu1  ;;  %v3477_v44 = vadd.f32 %v2763_v39, %v1233_v40 }
 0x33f   : > { %v1236_v43 = vpop.f32.mrb[6].mxu1 }
 0x340   : > { %v3479_v45 = vadd.f32 %v2763_v39, %v1236_v43  ;;  %v2964_v46 = vpop.f32.mrb[7].mxu1 }
 0x342   : > { %v1352_v47 = vpack.c.bf16 %v3479_v45, %v3477_v44 }
 0x345   : > { %v1345_v49 = vpop.f32.mrb[8].mxu1 }
 0x346   : > { %v2979_v50 = vpop.f32.mrb[9].mxu1  ;;  %v1346_v52 = vadd.f32 %v2777_v48, %v1345_v49 }
 0x347   : > { %v1348_v51 = vpop.f32.mrb[10].mxu1 }
 0x348   : > { %v1349_v53 = vadd.f32 %v2777_v48, %v1348_v51  ;;  %v2980_v54 = vpop.f32.mrb[11].mxu1 }
 0x349   : > { %v2781_v54 = vld [vmem:[%s3340_s22 + $0x8] sm:$0xff] }
 0x34a   : > { %v1428_v55 = vpack.c.bf16 %v1349_v53, %v1346_v52 }
 0x34c   : > { %v1433_v56 = vsel %vm1136_vm6, %v1428_v55, 0  ;;  %v1479_v55 = vpack.c.bf16 %v2781_v54, %v2781_v54 }
 0x34d   : > { %2988 = vmatpush3.bf16.msra.mxu1 %v1433_v56 }
 0x34e   : > { %2999 = vmatprep.subr.bf16.mxu1 %v3185_v19  ;;  %v1485_v56 = vsel %vm1483_vm9, %v1479_v55, 0 }
 0x3c8   : > { %v1110_v57 = vpop.xlane.xlu0 %1109 }
 0x3c9   : > { %v1115_v58 = vsub.f32 %v1105_v35, %v1110_v57 }
 0x3ca   : > { %v1114_v59 = vpop.xlane.xlu1 %1113 }
 0x3cb   : > { %v1117_v60 = vmul.f32 1.442695, %v1115_v58  ;;  %v1116_v61 = vsub.f32 %v1106_v37, %v1114_v59  ;;  %v1182_v59 = vld [vmem:[%s3340_s22] sm:$0xff] }
 0x3cd   : > { %3131 = vpow2.f32 %v1117_v60  ;;  %v1119_v62 = vmul.f32 1.442695, %v1116_v61  ;;  %v1183_v61 = vpack.c.bf16 %v1182_v59, %v1182_v59 }
 0x3cf   : > { %3133 = vpow2.f32 %v1119_v62 }
 0x3d7   : > { %v3132_v63 = vpop.eup %3131 }
 0x3d8   : > { %v1121_v0 = vsel %vm1107_vm7, %v3132_v63, 0.0 }
 0x3d9   : > { %v3134_v1 = vpop.eup %3133  ;;  %1122 = vadd.xlane.f32.xlu0 %v1121_v0 }
 0x3da   : > { %v1124_v2 = vsel %vm1111_vm8, %v3134_v1, 0.0 }
 0x3db   : > { %1125 = vadd.xlane.f32.xlu1 %v1124_v2  ;;  %v1532_v2 = vsel %vm1483_vm9, %v1183_v61, 0 }
 0x466   : > { %v1123_v3 = vpop.xlane.xlu0 %1122 }
 0x467   : > { %3135 = vrcp.f32 %v1123_v3  ;;  %v2791_v3 = vld [vmem:[%s3315_s20 + $0x40] sm:$0xff] }
 0x468   : > { %v1126_v4 = vpop.xlane.xlu1 %1125 }
 0x469   : > { %3137 = vrcp.f32 %v1126_v4  ;;  %v2792_v4 = vld [vmem:[%s3315_s20 + $0x48] sm:$0xff] }
 0x471   : > { %v3136_v5 = vpop.eup %3135 }
 0x472   : > { %v1128_v9 = vmul.f32 %v3136_v5, %v3132_v63  ;;  %v1636_v5 = vpack.c.bf16 %v2792_v4, %v2791_v3 }
 0x473   : > { %v3138_v8 = vpop.eup %3137 }
 0x474   : > { %v1130_v10 = vmul.f32 %v3138_v8, %v3134_v1  ;;  %v1637_v8 = vpack.c.bf16 %v2794_v7, %v2793_v6 }
 0x476   : > { %v1131_v12 = vpack.c.bf16 %v1130_v10, %v1128_v9  ;;  %v2784_v9 = vld [vmem:[%s3791_s13 + $0x40] sm:$0xff]  ;;  %v2785_v10 = vld [vmem:[%s3791_s13 + $0x48] sm:$0xff] }
 0x477   : > { %v1580_v14 = vpack.c.bf16 %v2785_v10, %v2784_v9 }
 0x478   : > { %2954 = vmatmul.mubr.msk.bf16.vlgmr.msra.gmra.mrb[12].mxu0 %vm1107_vm7, %v1131_v12 }
 0x479   : > { %2966 = vmatpush3.bf16.msra.mxu0 %v1245_v11  ;;  %2969 = vmatprep.mubr.msk.bf16.mxu0 %vm3186_vm4, %v3185_v19 }
 0x47a   : > { %2967 = vmatprep.subr.bf16.mxu0 %v3185_v19 }
 0x47d   : > { %2968 = vmatpush3.bf16.msra.mxu0 %v1246_v15 }
 0x47e   : > { %2981 = vmatprep.subr.bf16.mxu0 %v3185_v19 }
 0x480   : > { %2970 = vmatmul.mubr.msk.bf16.vlgmr.msra.gmra.mrb[16].mxu0 %vm840_vm2, %v3408_v42 }
 0x481   : > { %2983 = vmatprep.mubr.msk.bf16.mxu0 %vm3186_vm4, %v3185_v19 }
 0x54b   : > { %v3501_v16 = vpop.f32.mrb[12].mxu0 }
 0x54c   : > { %v2955_v17 = vpop.f32.mrb[13].mxu0 }
 0x54d   : > { %v3503_v18 = vpop.f32.mrb[14].mxu0  ;;  %v2786_v17 = vld [vmem:[%s3791_s13 + $0x50] sm:$0xff] }
 0x54e   : > { %v1181_v20 = vpack.c.bf16 %v3503_v18, %v3501_v16  ;;  %v2956_v21 = vpop.f32.mrb[15].mxu0  ;;  %v2787_v18 = vld [vmem:[%s3791_s13 + $0x58] sm:$0xff] }
 0x54f   : > { %v2798_v21 = vld [vmem:[%s3325_s25 + $0x40] sm:$0xff] }
 0x553   : > { %v1289_v23 = vpop.f32.mrb[16].mxu0 }
 0x554   : > { %v2971_v24 = vpop.f32.mrb[17].mxu0  ;;  %v1290_v26 = vadd.f32 %v2770_v22, %v1289_v23 }
 0x555   : > { %v1292_v25 = vpop.f32.mrb[18].mxu0 }
 0x556   : > { %v1293_v27 = vadd.f32 %v2770_v22, %v1292_v25  ;;  %v2972_v29 = vpop.f32.mrb[19].mxu0  ;;  %v2799_v22 = vld [vmem:[%s3325_s25 + $0x48] sm:$0xff] }
 0x557   : > { %v2800_v29 = vld [vmem:[%s3325_s25 + $0x50] sm:$0xff] }
 0x558   : > { %v1353_v30 = vpack.c.bf16 %v1293_v27, %v1290_v26  ;;  %v1692_v26 = vpack.c.bf16 %v2799_v22, %v2798_v21 }
 0x55a   : > { %v1358_v31 = vsel %vm1053_vm5, %v1353_v30, 0  ;;  %v2801_v30 = vld [vmem:[%s3325_s25 + $0x58] sm:$0xff] }
 0x55b   : > { %2982 = vmatpush3.bf16.xpose.msra.mxu0 %v1358_v31  ;;  %v1693_v31 = vpack.c.bf16 %v2801_v30, %v2800_v29  ;;  %v2809_v30 = vld [vmem:[%s3791_s13 + $0x60] sm:$0xff] }
 0x55c   : > { %2993 = vmatprep.subr.bf16.mxu0 %v3185_v19 }
 0x562   : > { %2984 = vmatmul.mubr.msk.bf16.vlgmr.msra.gmra.mrb[20].mxu0 %vm1053_vm5, %v1352_v47 }
 0x563   : > { %2995 = vmatprep.mubr.msk.bf16.mxu0 %vm3186_vm4, %v3185_v19  ;;  %2994 = vmatpush3.bf16.msra.mxu0 %v1485_v56 }
 0x564   : > { %3005 = vmatprep.subr.bf16.mxu0 %v3185_v19 }
 0x635   : > { %v1394_v33 = vpop.f32.mrb[20].mxu0 }
 0x636   : > { %v1401_v34 = vmul.f32 0.35355338, %v1394_v33  ;;  %v2985_v35 = vpop.f32.mrb[21].mxu0  ;;  %v2796_v33 = vld [vmem:[%s3320_s3 + $0x2] ss:$0 sm:$0xff] }
 0x637   : > { %v1397_v36 = vpop.f32.mrb[22].mxu0 }
 0x638   : > { %v1402_v37 = vmul.f32 0.35355338, %v1397_v36  ;;  %v2986_v38 = vpop.f32.mrb[23].mxu0  ;;  %v1403_v39 = vadd.f32 %v1401_v34, %v3465_v28 }
 0x63a   : > { %v1405_v40 = vsel %vm1107_vm7, %v1403_v39, -inf  ;;  %v1404_v41 = vadd.f32 %v1402_v37, %v3470_v32 }
 0x63b   : > { %1406 = vmax.xlane.f32.xlu0 %v1405_v40 }
 0x63c   : > { %v1408_v43 = vsel %vm1111_vm8, %v1404_v41, -inf }
 0x63d   : > { %1409 = vmax.xlane.f32.xlu1 %v1408_v43 }
 0x6c8   : > { %v1407_v44 = vpop.xlane.xlu0 %1406 }
 0x6c9   : > { %v1411_v45 = vsub.f32 %v1403_v39, %v1407_v44 }
 0x6ca   : > { %v1410_v46 = vpop.xlane.xlu1 %1409 }
 0x6cb   : > { %v1413_v47 = vmul.f32 1.442695, %v1411_v45  ;;  %v1412_v48 = vsub.f32 %v1404_v41, %v1410_v46 }
 0x6cd   : > { %3139 = vpow2.f32 %v1413_v47  ;;  %v1415_v49 = vmul.f32 1.442695, %v1412_v48 }
 0x6cf   : > { %3141 = vpow2.f32 %v1415_v49  ;;  %v2789_v49 = vld [vmem:[%s3796_s0 + $0x2] ss:$0 sm:$0xff] }
 0x6d7   : > { %v3140_v50 = vpop.eup %3139 }
 0x6d8   : > { %v1417_v51 = vsel %vm1107_vm7, %v3140_v50, 0.0 }
 0x6d9   : > { %v3142_v52 = vpop.eup %3141  ;;  %1418 = vadd.xlane.f32.xlu0 %v1417_v51 }
 0x6da   : > { %v1420_v53 = vsel %vm1111_vm8, %v3142_v52, 0.0 }
 0x6db   : > { %1421 = vadd.xlane.f32.xlu1 %v1420_v53 }
 0x766   : > { %v1419_v57 = vpop.xlane.xlu0 %1418 }
 0x767   : > { %3143 = vrcp.f32 %v1419_v57  ;;  %v2803_v57 = vld [vmem:[%s3330_s30 + $0x2] ss:$0 sm:$0xff] }
 0x768   : > { %v1422_v58 = vpop.xlane.xlu1 %1421 }
 0x769   : > { %3145 = vrcp.f32 %v1422_v58 }
 0x771   : > { %v3144_v60 = vpop.eup %3143 }
 0x772   : > { %v1424_v63 = vmul.f32 %v3144_v60, %v3140_v50 }
 0x773   : > { %v3146_v62 = vpop.eup %3145 }
 0x774   : > { %v1426_v0 = vmul.f32 %v3146_v62, %v3142_v52 }
 0x776   : > { %v1427_v1 = vpack.c.bf16 %v1426_v0, %v1424_v63 }
 0x778   : > { %2990 = vmatmul.mubr.msk.bf16.vlgmr.msra.gmra.mrb[12].mxu1 %vm1107_vm7, %v1427_v1 }
 0x779   : > { %3000 = vmatpush3.bf16.msra.mxu1 %v1532_v2  ;;  %3001 = vmatprep.mubr.msk.bf16.mxu1 %vm3186_vm4, %v3185_v19 }
 0x77a   : > { %3013 = vmatprep.subr.bf16.mxu1 %v3185_v19 }
 0x780   : > { %3002 = vmatmul.mubr.msk.bf16.vlgmr.msra.gmra.mrb[16].mxu1 %vm1053_vm5, %v1181_v20  ;;  %v1581_v20 = vpack.c.bf16 %v2787_v18, %v2786_v17 }
 0x781   : > { %3014 = vmatpush3.bf16.msra.mxu1 %v1636_v5  ;;  %3017 = vmatprep.mubr.msk.bf16.mxu1 %vm3186_vm4, %v3185_v19 }
 0x782   : > { %3015 = vmatprep.subr.bf16.mxu1 %v3185_v19 }
 0x785   : > { %3016 = vmatpush3.bf16.msra.mxu1 %v1637_v8 }
 0x786   : > { %3029 = vmatprep.subr.bf16.mxu1 %v3185_v19 }
 0x788   : > { %3018 = vmatmul.mubr.msk.bf16.vlgmr.msra.gmra.mrb[20].mxu1 %vm840_vm2, %v3408_v42 }
 0x789   : > { %3031 = vmatprep.mubr.msk.bf16.mxu1 %vm3186_vm4, %v3185_v19 }
 0x84b   : > { %v1469_v11 = vpop.f32.mrb[12].mxu1 }
 0x84c   : > { %v2991_v12 = vpop.f32.mrb[13].mxu1 }
 0x84d   : > { %v1472_v13 = vpop.f32.mrb[14].mxu1 }
 0x84e   : > { %v1476_v15 = vpack.c.bf16 %v1472_v13, %v1469_v11  ;;  %v2992_v16 = vpop.f32.mrb[15].mxu1 }
 0x850   : > { %2996 = vmatmul.mubr.msk.bf16.vlgmr.msra.gmra.mrb[24].mxu0 %vm1053_vm5, %v1476_v15 }
 0x851   : > { %3006 = vmatpush3.bf16.msra.mxu0 %v1580_v14  ;;  %3009 = vmatprep.mubr.msk.bf16.mxu0 %vm3186_vm4, %v3185_v19 }
 0x852   : > { %3007 = vmatprep.subr.bf16.mxu0 %v3185_v19 }
 0x853   : > { %v1568_v23 = vpop.f32.mrb[16].mxu1 }
 0x854   : > { %v3003_v24 = vpop.f32.mrb[17].mxu1 }
 0x855   : > { %v1571_v25 = vpop.f32.mrb[18].mxu1  ;;  %3008 = vmatpush3.bf16.msra.mxu0 %v1581_v20 }
 0x856   : > { %v3004_v27 = vpop.f32.mrb[19].mxu1  ;;  %3021 = vmatprep.subr.bf16.mxu0 %v3185_v19 }
 0x858   : > { %3010 = vmatmul.mubr.msk.bf16.vlgmr.msra.gmra.mrb[28].mxu0 %vm840_vm2, %v3408_v42 }
 0x859   : > { %3022 = vmatpush3.bf16.msra.mxu0 %v1692_v26  ;;  %3025 = vmatprep.mubr.msk.bf16.mxu0 %vm3186_vm4, %v3185_v19 }
 0x85a   : > { %3023 = vmatprep.subr.bf16.mxu0 %v3185_v19 }
 0x85b   : > { %v1680_v34 = vpop.f32.mrb[20].mxu1 }
 0x85c   : > { %v3019_v35 = vpop.f32.mrb[21].mxu1  ;;  %v1681_v37 = vadd.f32 %v2796_v33, %v1680_v34 }
 0x85d   : > { %v1683_v36 = vpop.f32.mrb[22].mxu1  ;;  %3024 = vmatpush3.bf16.msra.mxu0 %v1693_v31  ;;  %v2810_v31 = vld [vmem:[%s3791_s13 + $0x68] sm:$0xff] }
 0x85e   : > { %v1684_v38 = vadd.f32 %v2796_v33, %v1683_v36  ;;  %v3020_v39 = vpop.f32.mrb[23].mxu1  ;;  %3035 = vmatprep.subr.bf16.mxu0 %v3185_v19  ;;  %v1925_v36 = vpack.c.bf16 %v2810_v31, %v2809_v30 }
 0x85f   : > { %v2812_v39 = vld [vmem:[%s3791_s13 + $0x78] sm:$0xff] }
 0x860   : > { %v1744_v40 = vpack.c.bf16 %v1684_v38, %v1681_v37  ;;  %3026 = vmatmul.mubr.msk.bf16.vlgmr.msra.gmra.mrb[32].mxu0 %vm840_vm2, %v3408_v42  ;;  %v2811_v38 = vld [vmem:[%s3791_s13 + $0x70] sm:$0xff]  ;;  %s3799_s13 = scalar_lea.vmem %s3751_s12, %s3290_s29 }
 0x861   : > { %3037 = vmatprep.mubr.msk.bf16.mxu0 %vm3186_vm4, %v3185_v19 }
 0x862   : > { %v1749_v41 = vsel %vm1053_vm5, %v1744_v40, 0  ;;  %v1926_v40 = vpack.c.bf16 %v2812_v39, %v2811_v38 }
 0x863   : > { %3030 = vmatpush3.bf16.xpose.msra.mxu1 %v1749_v41  ;;  %v2823_v41 = vld [vmem:[%s3325_s25 + $0x60] sm:$0xff] }
 0x864   : > { %3041 = vmatprep.subr.bf16.mxu1 %v3185_v19 }
 0x923   : > { %v1521_v43 = vpop.f32.mrb[24].mxu0 }
 0x924   : > { %v3573_v44 = vadd.f32 %v1568_v23, %v1521_v43  ;;  %v2997_v45 = vpop.f32.mrb[25].mxu0  ;;  %v2807_v23 = vld [vmem:[%s3340_s22 + $0x10] sm:$0xff]  ;;  %v2824_v43 = vld [vmem:[%s3325_s25 + $0x68] sm:$0xff] }
 0x925   : > { %v1524_v46 = vpop.f32.mrb[26].mxu0  ;;  %v1870_v24 = vpack.c.bf16 %v2807_v23, %v2807_v23  ;;  %v2037_v45 = vpack.c.bf16 %v2824_v43, %v2823_v41 }
 0x926   : > { %v3575_v47 = vadd.f32 %v1571_v25, %v1524_v46  ;;  %v2998_v48 = vpop.f32.mrb[27].mxu0  ;;  %v2825_v46 = vld [vmem:[%s3325_s25 + $0x70] sm:$0xff] }
 0x927   : > { %v1875_v25 = vsel %vm1483_vm9, %v1870_v24, 0  ;;  %v2826_v48 = vld [vmem:[%s3325_s25 + $0x78] sm:$0xff]  ;;  %s3798_s25 = scalar_lea.vmem %s3750_s11, %s3290_s29 }
 0x92b   : > { %v1624_v50 = vpop.f32.mrb[28].mxu0 }
 0x92c   : > { %v3011_v51 = vpop.f32.mrb[29].mxu0  ;;  %v1625_v53 = vadd.f32 %v2789_v49, %v1624_v50  ;;  %v2816_v50 = vld [vmem:[%s3315_s20 + $0x60] sm:$0xff] }
 0x92d   : > { %v1627_v52 = vpop.f32.mrb[30].mxu0  ;;  %v2817_v51 = vld [vmem:[%s3315_s20 + $0x68] sm:$0xff] }
 0x92e   : > { %v1628_v54 = vadd.f32 %v2789_v49, %v1627_v52  ;;  %v3012_v55 = vpop.f32.mrb[31].mxu0  ;;  %v2038_v49 = vpack.c.bf16 %v2826_v48, %v2825_v46 }
 0x92f   : > { %v1981_v55 = vpack.c.bf16 %v2817_v51, %v2816_v50  ;;  %v2832_v50 = vld [vmem:[%s3340_s22 + $0x18] sm:$0xff] }
 0x930   : > { %v1743_v56 = vpack.c.bf16 %v1628_v54, %v1625_v53  ;;  %v2215_v51 = vpack.c.bf16 %v2832_v50, %v2832_v50  ;;  %v2433_v50 = vld [vmem:[%s3362_s10] sm:$0xff] }
 0x932   : > { %3032 = vmatmul.mubr.msk.bf16.vlgmr.msra.gmra.mrb[24].mxu1 %vm1053_vm5, %v1743_v56 }
 0x933   : > { %v1736_v58 = vpop.f32.mrb[32].mxu0  ;;  %3043 = vmatprep.mubr.msk.bf16.mxu1 %vm3186_vm4, %v3185_v19  ;;  %3042 = vmatpush3.bf16.msra.mxu1 %v1875_v25 }
 0x934   : > { %v3027_v59 = vpop.f32.mrb[33].mxu0  ;;  %v1737_v61 = vadd.f32 %v2803_v57, %v1736_v58  ;;  %3055 = vmatprep.subr.bf16.mxu1 %v3185_v19  ;;  %v2818_v58 = vld [vmem:[%s3315_s20 + $0x70] sm:$0xff] }
 0x935   : > { %v1739_v60 = vpop.f32.mrb[34].mxu0  ;;  %v2819_v59 = vld [vmem:[%s3315_s20 + $0x78] sm:$0xff] }
 0x936   : > { %v1740_v62 = vadd.f32 %v2803_v57, %v1739_v60  ;;  %v3028_v63 = vpop.f32.mrb[35].mxu0  ;;  %v1982_v60 = vpack.c.bf16 %v2819_v59, %v2818_v58 }
 0x938   : > { %v1819_v0 = vpack.c.bf16 %v1740_v62, %v1737_v61  ;;  %v2814_v61 = vld [vmem:[%s3796_s0 + $0x3] ss:$0 sm:$0xff] }
 0x93a   : > { %v1824_v1 = vsel %vm1136_vm6, %v1819_v0, 0 }
 0x93b   : > { %3036 = vmatpush3.bf16.msra.mxu0 %v1824_v1 }
 0x93c   : > { %3047 = vmatprep.subr.bf16.mxu0 %v3185_v19 }
 0xa05   : > { %v1785_v2 = vpop.f32.mrb[24].mxu1 }
 0xa06   : > { %v1792_v3 = vmul.f32 0.35355338, %v1785_v2  ;;  %v3033_v4 = vpop.f32.mrb[25].mxu1 }
 0xa07   : > { %v1788_v5 = vpop.f32.mrb[26].mxu1 }
 0xa08   : > { %v1793_v6 = vmul.f32 0.35355338, %v1788_v5  ;;  %v3034_v7 = vpop.f32.mrb[27].mxu1  ;;  %v1794_v8 = vadd.f32 %v1792_v3, %v3465_v28  ;;  %v2828_v5 = vld [vmem:[%s3330_s30 + $0x3] ss:$0 sm:$0xff] }
 0xa0a   : > { %v1796_v9 = vsel %vm1107_vm7, %v1794_v8, -inf  ;;  %v1795_v10 = vadd.f32 %v1793_v6, %v3470_v32 }
 0xa0b   : > { %1797 = vmax.xlane.f32.xlu0 %v1796_v9 }
 0xa0c   : > { %v1799_v11 = vsel %vm1111_vm8, %v1795_v10, -inf }
 0xa0d   : > { %1800 = vmax.xlane.f32.xlu1 %v1799_v11 }
 0xa98   : > { %v1798_v12 = vpop.xlane.xlu0 %1797 }
 0xa99   : > { %v1802_v13 = vsub.f32 %v1794_v8, %v1798_v12 }
 0xa9a   : > { %v1801_v14 = vpop.xlane.xlu1 %1800 }
 0xa9b   : > { %v1804_v15 = vmul.f32 1.442695, %v1802_v13  ;;  %v1803_v16 = vsub.f32 %v1795_v10, %v1801_v14 }
 0xa9d   : > { %3147 = vpow2.f32 %v1804_v15  ;;  %v1806_v17 = vmul.f32 1.442695, %v1803_v16 }
 0xa9f   : > { %3149 = vpow2.f32 %v1806_v17 }
 0xaa7   : > { %v3148_v18 = vpop.eup %3147 }
 0xaa8   : > { %v1808_v20 = vsel %vm1107_vm7, %v3148_v18, 0.0 }
 0xaa9   : > { %v3150_v21 = vpop.eup %3149  ;;  %1809 = vadd.xlane.f32.xlu0 %v1808_v20  ;;  %v2821_v20 = vld [vmem:[%s3320_s3 + $0x3] ss:$0 sm:$0xff] }
 0xaaa   : > { %v1811_v22 = vsel %vm1111_vm8, %v3150_v21, 0.0 }
 0xaab   : > { %1812 = vadd.xlane.f32.xlu1 %v1811_v22 }
 0xb36   : > { %v1810_v26 = vpop.xlane.xlu0 %1809 }
 0xb37   : > { %3151 = vrcp.f32 %v1810_v26 }
 0xb38   : > { %v1813_v27 = vpop.xlane.xlu1 %1812 }
 0xb39   : > { %3153 = vrcp.f32 %v1813_v27 }
 0xb41   : > { %v3152_v29 = vpop.eup %3151 }
 0xb42   : > { %v1815_v34 = vmul.f32 %v3152_v29, %v3148_v18 }
 0xb43   : > { %v3154_v33 = vpop.eup %3153 }
 0xb44   : > { %v1817_v35 = vmul.f32 %v3154_v33, %v3150_v21 }
 0xb46   : > { %v1818_v37 = vpack.c.bf16 %v1817_v35, %v1815_v34 }
 0xb48   : > { %3038 = vmatmul.mubr.msk.bf16.vlgmr.msra.gmra.mrb[36].mxu0 %vm1107_vm7, %v1818_v37 }
 0xb49   : > { %3048 = vmatpush3.bf16.msra.mxu0 %v1925_v36  ;;  %3051 = vmatprep.mubr.msk.bf16.mxu0 %vm3186_vm4, %v3185_v19 }
 0xb4a   : > { %3049 = vmatprep.subr.bf16.mxu0 %v3185_v19 }
 0xb4d   : > { %3050 = vmatpush3.bf16.msra.mxu0 %v1926_v40 }
 0xb4e   : > { %3063 = vmatprep.subr.bf16.mxu0 %v3185_v19 }
 0xb50   : > { %3052 = vmatmul.mubr.msk.bf16.vlgmr.msra.gmra.mrb[40].mxu0 %vm840_vm2, %v3408_v42 }
 0xb51   : > { %3064 = vmatpush3.bf16.msra.mxu0 %v2037_v45  ;;  %3067 = vmatprep.mubr.msk.bf16.mxu0 %vm3186_vm4, %v3185_v19 }
 0xb52   : > { %3065 = vmatprep.subr.bf16.mxu0 %v3185_v19 }
 0xb55   : > { %3066 = vmatpush3.bf16.msra.mxu0 %v2038_v49 }
 0xb56   : > { %3077 = vmatprep.subr.bf16.mxu0 %v3185_v19 }
 0xb58   : > { %3068 = vmatmul.mubr.msk.bf16.vlgmr.msra.gmra.mrb[44].mxu0 %vm840_vm2, %v3408_v42 }
 0xb59   : > { %3079 = vmatprep.mubr.msk.bf16.mxu0 %vm3186_vm4, %v3185_v19 }
 0xc1b   : > { %v1860_v52 = vpop.f32.mrb[36].mxu0 }
 0xc1c   : > { %v3039_v53 = vpop.f32.mrb[37].mxu0 }
 0xc1d   : > { %v1863_v54 = vpop.f32.mrb[38].mxu0 }
 0xc1e   : > { %v1867_v56 = vpack.c.bf16 %v1863_v54, %v1860_v52  ;;  %v3040_v57 = vpop.f32.mrb[39].mxu0  ;;  %v2220_v52 = vsel %vm1483_vm9, %v2215_v51, 0  ;;  %v2434_v51 = vld [vmem:[%s3362_s10 + $0x8] sm:$0xff] }
 0xc20   : > { %3044 = vmatmul.mubr.msk.bf16.vlgmr.msra.gmra.mrb[28].mxu1 %vm1053_vm5, %v1867_v56 }
 0xc21   : > { %3056 = vmatpush3.bf16.msra.mxu1 %v1981_v55  ;;  %3059 = vmatprep.mubr.msk.bf16.mxu1 %vm3186_vm4, %v3185_v19 }
 0xc22   : > { %3057 = vmatprep.subr.bf16.mxu1 %v3185_v19 }
 0xc23   : > { %v1969_v62 = vpop.f32.mrb[40].mxu0 }
 0xc24   : > { %v3053_v63 = vpop.f32.mrb[41].mxu0  ;;  %v1970_v1 = vadd.f32 %v2814_v61, %v1969_v62 }
 0xc25   : > { %v1972_v0 = vpop.f32.mrb[42].mxu0  ;;  %3058 = vmatpush3.bf16.msra.mxu1 %v1982_v60 }
 0xc26   : > { %v1973_v2 = vadd.f32 %v2814_v61, %v1972_v0  ;;  %v3054_v3 = vpop.f32.mrb[43].mxu0  ;;  %3071 = vmatprep.subr.bf16.mxu1 %v3185_v19 }
 0xc28   : > { %v2088_v4 = vpack.c.bf16 %v1973_v2, %v1970_v1  ;;  %3060 = vmatmul.mubr.msk.bf16.vlgmr.msra.gmra.mrb[32].mxu1 %vm840_vm2, %v3408_v42 }
 0xc29   : > { %3073 = vmatprep.mubr.msk.bf16.mxu1 %vm3186_vm4, %v3185_v19 }
 0xc2b   : > { %v2081_v6 = vpop.f32.mrb[44].mxu0 }
 0xc2c   : > { %v3069_v7 = vpop.f32.mrb[45].mxu0  ;;  %v2082_v9 = vadd.f32 %v2828_v5, %v2081_v6  ;;  %v3175_v6 = vld [vmem:[#allocation2] sm:$0xff] }
 0xc2d   : > { %v2084_v8 = vpop.f32.mrb[46].mxu0 }
 0xc2e   : > { %v2085_v10 = vadd.f32 %v2828_v5, %v2084_v8  ;;  %v3070_v11 = vpop.f32.mrb[47].mxu0 }
 0xc2f   : > { %v3176_v11 = vld [vmem:[#allocation2 + $0x8] sm:$0x3] }
 0xc30   : > { %v2164_v12 = vpack.c.bf16 %v2085_v10, %v2082_v9 }
 0xc32   : > { %v2169_v13 = vsel %vm1136_vm6, %v2164_v12, 0 }
 0xc33   : > { %3078 = vmatpush3.bf16.msra.mxu0 %v2169_v13 }
 0xc34   : > { %3089 = vmatprep.subr.bf16.mxu0 %v3185_v19 }
 0xcf3   : > { %v1911_v14 = vpop.f32.mrb[28].mxu1 }
 0xcf4   : > { %v3634_v42 = vadd.f32 %v1911_v14, %v3573_v44  ;;  %v3045_v15 = vpop.f32.mrb[29].mxu1 }
 0xcf5   : > { %v1914_v16 = vpop.f32.mrb[30].mxu1 }
 0xcf6   : > { %v3637_v17 = vadd.f32 %v1914_v16, %v3575_v47  ;;  %v3046_v18 = vpop.f32.mrb[31].mxu1 }
 0xcfb   : > { %v2025_v21 = vpop.f32.mrb[32].mxu1 }
 0xcfc   : > { %v3061_v22 = vpop.f32.mrb[33].mxu1  ;;  %v2026_v24 = vadd.f32 %v2821_v20, %v2025_v21 }
 0xcfd   : > { %v2028_v23 = vpop.f32.mrb[34].mxu1 }
 0xcfe   : > { %v2029_v25 = vadd.f32 %v2821_v20, %v2028_v23  ;;  %v3062_v26 = vpop.f32.mrb[35].mxu1 }
 0xcff   : > { %v2321_v26 = vld [vmem:[%s3353_s9] sm:$0xff] }
 0xd00   : > { %v2089_v27 = vpack.c.bf16 %v2029_v25, %v2026_v24 }
 0xd02   : > { %v2094_v29 = vsel %vm1053_vm5, %v2089_v27, 0  ;;  %v2322_v27 = vld [vmem:[%s3353_s9 + $0x8] sm:$0xff] }
 0xd03   : > { %3072 = vmatpush3.bf16.xpose.msra.mxu1 %v2094_v29  ;;  %v2325_v29 = vpack.c.bf16 %v2322_v27, %v2321_v26 }
 0xd04   : > { %3083 = vmatprep.subr.bf16.mxu1 %v3185_v19 }
 0xd0a   : > { %3074 = vmatmul.mubr.msk.bf16.vlgmr.msra.gmra.mrb[36].mxu1 %vm1053_vm5, %v2088_v4  ;;  %v2834_v4 = vld [vmem:[%s3798_s25] ss:$0 sm:$0xff] }
 0xd0b   : > { %3085 = vmatprep.mubr.msk.bf16.mxu1 %vm3186_vm4, %v3185_v19  ;;  %3084 = vmatpush3.bf16.msra.mxu1 %v2220_v52  ;;  %v2449_v52 = vpack.c.bf16 %v2434_v51, %v2433_v50 }
 0xd0c   : > { %3097 = vmatprep.subr.bf16.mxu1 %v3185_v19 }
 0xddd   : > { %v2130_v44 = vpop.f32.mrb[36].mxu1 }
 0xdde   : > { %v2137_v47 = vmul.f32 0.35355338, %v2130_v44  ;;  %v3075_v30 = vpop.f32.mrb[37].mxu1  ;;  %v2323_v44 = vld [vmem:[%s3353_s9 + $0x10] sm:$0xff] }
 0xddf   : > { %v2133_v31 = vpop.f32.mrb[38].mxu1 }
 0xde0   : > { %v2138_v33 = vmul.f32 0.35355338, %v2133_v31  ;;  %v3076_v34 = vpop.f32.mrb[39].mxu1  ;;  %v2139_v35 = vadd.f32 %v2137_v47, %v3465_v28  ;;  %v2324_v47 = vld [vmem:[%s3353_s9 + $0x18] sm:$0xff] }
 0xde1   : > { %v2326_v30 = vpack.c.bf16 %v2324_v47, %v2323_v44 }
 0xde2   : > { %v2141_v36 = vsel %vm1107_vm7, %v2139_v35, -inf  ;;  %v2140_v37 = vadd.f32 %v2138_v33, %v3470_v32 }
 0xde3   : > { %2142 = vmax.xlane.f32.xlu0 %v2141_v36 }
 0xde4   : > { %v2144_v38 = vsel %vm1111_vm8, %v2140_v37, -inf }
 0xde5   : > { %2145 = vmax.xlane.f32.xlu1 %v2144_v38 }
 0xe70   : > { %v2143_v39 = vpop.xlane.xlu0 %2142 }
 0xe71   : > { %v2147_v40 = vsub.f32 %v2139_v35, %v2143_v39  ;;  %v2835_v39 = vld [vmem:[%s3799_s13] ss:$0 sm:$0xff] }
 0xe72   : > { %v2146_v41 = vpop.xlane.xlu1 %2145 }
 0xe73   : > { %v2149_v43 = vmul.f32 1.442695, %v2147_v40  ;;  %v2148_v45 = vsub.f32 %v2140_v37, %v2146_v41 }
 0xe75   : > { %3155 = vpow2.f32 %v2149_v43  ;;  %v2151_v46 = vmul.f32 1.442695, %v2148_v45 }
 0xe77   : > { %3157 = vpow2.f32 %v2151_v46  ;;  %v2836_v46 = vld [vmem:[%s3801_s7] ss:$0 sm:$0xff] }
 0xe7f   : > { %v3156_v48 = vpop.eup %3155 }
 0xe80   : > { %v2153_v28 = vsel %vm1107_vm7, %v3156_v48, 0.0 }
 0xe81   : > { %v3158_v49 = vpop.eup %3157  ;;  %2154 = vadd.xlane.f32.xlu0 %v2153_v28 }
 0xe82   : > { %v2156_v32 = vsel %vm1111_vm8, %v3158_v49, 0.0 }
 0xe83   : > { %2157 = vadd.xlane.f32.xlu1 %v2156_v32 }
 0xf0e   : > { %v2155_v53 = vpop.xlane.xlu0 %2154 }
 0xf0f   : > { %3159 = vrcp.f32 %v2155_v53  ;;  %v2435_v53 = vld [vmem:[%s3362_s10 + $0x10] sm:$0xff] }
 0xf10   : > { %v2158_v54 = vpop.xlane.xlu1 %2157 }
 0xf11   : > { %3161 = vrcp.f32 %v2158_v54  ;;  %v2436_v54 = vld [vmem:[%s3362_s10 + $0x18] sm:$0xff] }
 0xf19   : > { %v3160_v55 = vpop.eup %3159 }
 0xf1a   : > { %v2160_v57 = vmul.f32 %v3160_v55, %v3156_v48  ;;  %v2450_v55 = vpack.c.bf16 %v2436_v54, %v2435_v53 }
 0xf1b   : > { %v3162_v56 = vpop.eup %3161 }
 0xf1c   : > { %v2162_v58 = vmul.f32 %v3162_v56, %v3158_v49  ;;  %v2437_v56 = vld [vmem:[%s3362_s10 + $0x20] sm:$0xff] }
 0xf1e   : > { %v2163_v59 = vpack.c.bf16 %v2162_v58, %v2160_v57  ;;  %v2438_v57 = vld [vmem:[%s3362_s10 + $0x28] sm:$0xff] }
 0xf1f   : > { %v2451_v58 = vpack.c.bf16 %v2438_v57, %v2437_v56 }
 0xf20   : > { %3080 = vmatmul.mubr.msk.bf16.vlgmr.msra.gmra.mrb[48].mxu0 %vm1107_vm7, %v2163_v59  ;;  %v2439_v59 = vld [vmem:[%s3362_s10 + $0x30] sm:$0xff] }
 0xf21   : > { %3093 = vmatprep.mubr.msk.bf16.mxu0 %vm3186_vm4, %v3185_v19  ;;  %3090 = vmatpush3.bf16.msra.mxu0 %v2325_v29 }
 0xf22   : > { %3091 = vmatprep.subr.bf16.mxu0 %v3185_v19 }
 0xf25   : > { %3092 = vmatpush3.bf16.msra.mxu0 %v2326_v30 }
 0xff3   : > { %v2205_v60 = vpop.f32.mrb[48].mxu0 }
 0xff4   : > { %v3081_v61 = vpop.f32.mrb[49].mxu0 }
 0xff5   : > { %v2208_v62 = vpop.f32.mrb[50].mxu0 }
 0xff6   : > { %v2212_v63 = vpack.c.bf16 %v2208_v62, %v2205_v60  ;;  %v3082_v0 = vpop.f32.mrb[51].mxu0  ;;  %v2440_v60 = vld [vmem:[%s3362_s10 + $0x38] sm:$0xff]  ;;  %v2441_v62 = vld [vmem:[%s3362_s10 + $0x40] sm:$0xff] }
 0xff7   : > { %v2452_v61 = vpack.c.bf16 %v2440_v60, %v2439_v59 }
 0xff8   : > { %3086 = vmatmul.mubr.msk.bf16.vlgmr.msra.gmra.mrb[40].mxu1 %vm1053_vm5, %v2212_v63  ;;  %v2442_v63 = vld [vmem:[%s3362_s10 + $0x48] sm:$0xff] }
 0xff9   : > { %3113 = vmatprep.mubr.msk.bf16.mxu1 %vm3186_vm4, %v3185_v19  ;;  %3098 = vmatpush3.bf16.msra.mxu1 %v2449_v52  ;;  %v2453_v0 = vpack.c.bf16 %v2442_v63, %v2441_v62 }
 0xffa   : > { %3099 = vmatprep.subr.bf16.mxu1 %v3185_v19 }
 0xffd   : > { %3100 = vmatpush3.bf16.msra.mxu1 %v2450_v55 }
 0xffe   : > { %3101 = vmatprep.subr.bf16.mxu1 %v3185_v19 }
0x1001   : > { %3102 = vmatpush3.bf16.msra.mxu1 %v2451_v58 }
0x1002   : > { %3103 = vmatprep.subr.bf16.mxu1 %v3185_v19 }
0x1005   : > { %3104 = vmatpush3.bf16.msra.mxu1 %v2452_v61 }
0x1006   : > { %3105 = vmatprep.subr.bf16.mxu1 %v3185_v19 }
0x1009   : > { %3106 = vmatpush3.bf16.msra.mxu1 %v2453_v0 }
0x100a   : > { %3107 = vmatprep.subr.bf16.mxu1 %v3185_v19 }
0x10cb   : > { %v2256_v1 = vpop.f32.mrb[40].mxu1 }
0x10cc   : > { %v2263_v2 = vadd.f32 %v2256_v1, %v3634_v42  ;;  %v3087_v3 = vpop.f32.mrb[41].mxu1  ;;  %v2443_v1 = vld [vmem:[%s3362_s10 + $0x50] sm:$0xff] }
0x10cd   : > { %v2259_v5 = vpop.f32.mrb[42].mxu1 }
0x10ce   : > { %v2265_v7 = vadd.f32 %v3175_v6, %v2263_v2  ;;  %v2264_v8 = vadd.f32 %v2259_v5, %v3637_v17  ;;  %v3088_v9 = vpop.f32.mrb[43].mxu1  ;;  %v2444_v2 = vld [vmem:[%s3362_s10 + $0x58] sm:$0xff]  ;;  %v2446_v5 = vld [vmem:[%s3362_s10 + $0x68] sm:$0xff] }
0x10cf   : > { %v2454_v3 = vpack.c.bf16 %v2444_v2, %v2443_v1 }
0x10d0   : > { %v3667_v10 = vadd.f32 %v2834_v4, %v2265_v7  ;;  %v2266_v12 = vadd.f32 %v3176_v11, %v2264_v8  ;;  %v2447_v7 = vld [vmem:[%s3362_s10 + $0x70] sm:$0xff]  ;;  %v2448_v8 = vld [vmem:[%s3362_s10 + $0x78] sm:$0xff]  ;;  %v2837_v11 = vld [vmem:[%s811_s19] ss:$0 sm:$0xff] }
0x10d1   : > { %3108 = vmatpush3.bf16.msra.mxu1 %v2454_v3  ;;  %v2456_v9 = vpack.c.bf16 %v2448_v8, %v2447_v7 }
0x10d2   : > { %v3669_v13 = vadd.f32 %v2834_v4, %v2266_v12  ;;  %v2278_v14 = vsel %vm840_vm2, %v3667_v10, 0.0  ;;  %3109 = vmatprep.subr.bf16.mxu1 %v3185_v19  ;;  %v2445_v4 = vld [vmem:[%s3362_s10 + $0x60] sm:$0xff] }
0x10d3   : > { %2279 = vadd.xlane.f32.xlu0 %v2278_v14  ;;  %v2455_v6 = vpack.c.bf16 %v2446_v5, %v2445_v4 }
0x10d4   : > { %v2281_v42 = vsel %vm844_vm3, %v3669_v13, 0.0 }
0x10d5   : > { %2282 = vadd.xlane.f32.xlu1 %v2281_v42  ;;  %3110 = vmatpush3.bf16.msra.mxu1 %v2455_v6  ;;  %v2839_v6 = vld [vmem:[%s819_s18] ss:$0 sm:$0xff] }
0x10d6   : > { %3111 = vmatprep.subr.bf16.mxu1 %v3185_v19 }
0x10d9   : > { %3112 = vmatpush3.bf16.msra.mxu1 %v2456_v9 }
0x1160   : > { %v2280_v15 = vpop.xlane.xlu0 %2279 }
0x1161   : > { %v2284_v16 = vmul.f32 0.03125, %v2280_v15 }
0x1162   : > { %v2283_v17 = vpop.xlane.xlu1 %2282 }
0x1163   : > { %v2286_v18 = vsub.f32 %v3667_v10, %v2284_v16  ;;  %v2285_v20 = vmul.f32 0.03125, %v2283_v17 }
0x1165   : > { %v2287_v21 = vsub.f32 %v3669_v13, %v2285_v20  ;;  %v2288_v22 = vmul.f32 %v2286_v18, %v2286_v18 }
0x1167   : > { %v2290_v23 = vsel %vm840_vm2, %v2288_v22, 0.0  ;;  %v2289_v24 = vmul.f32 %v2287_v21, %v2287_v21 }
0x1168   : > { %2291 = vadd.xlane.f32.xlu0 %v2290_v23 }
0x1169   : > { %v2293_v25 = vsel %vm844_vm3, %v2289_v24, 0.0 }
0x116a   : > { %2294 = vadd.xlane.f32.xlu1 %v2293_v25 }
0x11f5   : > { %v2292_v31 = vpop.xlane.xlu0 %2291 }
0x11f6   : > { %v2296_v33 = vmul.f32 0.03125, %v2292_v31 }
0x11f7   : > { %v2295_v34 = vpop.xlane.xlu1 %2294 }
0x11f8   : > { %v2298_v35 = vadd.f32 1e-06, %v2296_v33  ;;  %v2297_v36 = vmul.f32 0.03125, %v2295_v34 }
0x11fa   : > { %3163 = vrsqrt.f32 %v2298_v35  ;;  %v2299_v37 = vadd.f32 1e-06, %v2297_v36 }
0x11fc   : > { %3165 = vrsqrt.f32 %v2299_v37 }
0x1204   : > { %v3164_v38 = vpop.eup %3163 }
0x1205   : > { %v2302_v40 = vmul.f32 %v3164_v38, %v2286_v18 }
0x1206   : > { %v3166_v41 = vpop.eup %3165 }
0x1207   : > { %v2310_v43 = vmul.f32 %v2835_v39, %v2302_v40  ;;  %v2303_v45 = vmul.f32 %v3166_v41, %v2287_v21 }
0x1209   : > { %v2311_v48 = vmul.f32 %v2835_v39, %v2303_v45  ;;  %v2318_v28 = vadd.f32 %v2836_v46, %v2310_v43 }
0x120b   : > { %v2319_v49 = vadd.f32 %v2836_v46, %v2311_v48 }
0x120d   : > { %v2320_v32 = vpack.c.bf16 %v2319_v49, %v2318_v28 }
0x120f   : > { %3094 = vmatmul.mubr.msk.bf16.vlgmr.msra.gmra.mrb[52].mxu0 %vm840_vm2, %v2320_v32 }
0x12e2   : > { %v2371_v12 = vpop.f32.mrb[52].mxu0 }
0x12e3   : > { %v2372_v14 = vadd.f32 %v2837_v11, %v2371_v12  ;;  %v3095_v42 = vpop.f32.mrb[53].mxu0 }
0x12e4   : > { %v2374_v15 = vpop.f32.mrb[54].mxu0 }
0x12e5   : > { %v2380_v16 = vmul.f32 0.70710677, %v2372_v14  ;;  %v2375_v17 = vadd.f32 %v2837_v11, %v2374_v15  ;;  %v3096_v18 = vpop.f32.mrb[55].mxu0  ;;  %v2378_v0 = vmul.f32 0.5, %v2372_v14 }
0x12e7   : > { %v2382_v20 = vand.u32 2147483647, %v2380_v16  ;;  %v2381_v21 = vmul.f32 0.70710677, %v2375_v17  ;;  %vm2422_vm10 = vcmp.ge.f32.partialorder %v2380_v16, 0.0  ;;  %v2379_v1 = vmul.f32 0.5, %v2375_v17 }
0x12e9   : > { %v2384_v22 = vmul.f32 0.3275911, %v2382_v20  ;;  %v2383_v19 = vand.u32 2147483647, %v2381_v21  ;;  %v2410_v26 = vsub.f32 0.0, %v2382_v20  ;;  %vm2423_vm11 = vcmp.ge.f32.partialorder %v2381_v21, 0.0 }
0x12eb   : > { %v2386_v23 = vadd.f32 1.0, %v2384_v22  ;;  %v2385_v24 = vmul.f32 0.3275911, %v2383_v19  ;;  %v2411_v27 = vsub.f32 0.0, %v2383_v19  ;;  %v2412_v44 = vmul.f32 %v2410_v26, %v2382_v20 }
0x12ed   : > { %3167 = vrcp.f32 %v2386_v23  ;;  %v2387_v25 = vadd.f32 1.0, %v2385_v24  ;;  %v2413_v33 = vmul.f32 %v2411_v27, %v2383_v19  ;;  %v2414_v34 = vmul.f32 1.442695, %v2412_v44 }
0x12ef   : > { %3169 = vrcp.f32 %v2387_v25  ;;  %v2416_v39 = vmul.f32 1.442695, %v2413_v33 }
0x12f0   : > { %3171 = vpow2.f32 %v2414_v34 }
0x12f1   : > { %3173 = vpow2.f32 %v2416_v39 }
0x12f7   : > { %v3168_v29 = vpop.eup %3167 }
0x12f8   : > { %v2392_v47 = vmul.f32 1.0614054, %v3168_v29 }
0x12f9   : > { %v3170_v30 = vpop.eup %3169 }
0x12fa   : > { %v2394_v31 = vadd.f32 -1.4531521, %v2392_v47  ;;  %v2393_v35 = vmul.f32 1.0614054, %v3170_v30  ;;  %v3172_v51 = vpop.eup %3171 }
0x12fb   : > { %v3174_v55 = vpop.eup %3173 }
0x12fc   : > { %v2396_v36 = vmul.f32 %v3168_v29, %v2394_v31  ;;  %v2395_v37 = vadd.f32 -1.4531521, %v2393_v35 }
0x12fe   : > { %v2398_v38 = vadd.f32 1.4214138, %v2396_v36  ;;  %v2397_v40 = vmul.f32 %v3170_v30, %v2395_v37 }
0x1300   : > { %v2400_v41 = vmul.f32 %v3168_v29, %v2398_v38  ;;  %v2399_v43 = vadd.f32 1.4214138, %v2397_v40 }
0x1302   : > { %v2402_v45 = vadd.f32 -0.28449672, %v2400_v41  ;;  %v2401_v46 = vmul.f32 %v3170_v30, %v2399_v43 }
0x1304   : > { %v2404_v48 = vmul.f32 %v3168_v29, %v2402_v45  ;;  %v2403_v28 = vadd.f32 -0.28449672, %v2401_v46 }
0x1306   : > { %v2406_v49 = vadd.f32 0.2548296, %v2404_v48  ;;  %v2405_v32 = vmul.f32 %v3170_v30, %v2403_v28 }
0x1308   : > { %v2408_v50 = vmul.f32 %v3168_v29, %v2406_v49  ;;  %v2407_v52 = vadd.f32 0.2548296, %v2405_v32 }
0x130a   : > { %v2418_v53 = vmul.f32 %v3172_v51, %v2408_v50  ;;  %v2409_v54 = vmul.f32 %v3170_v30, %v2407_v52 }
0x130c   : > { %v2420_v56 = vsub.f32 1.0, %v2418_v53  ;;  %v2419_v57 = vmul.f32 %v3174_v55, %v2409_v54 }
0x130e   : > { %v2424_v58 = vsub.f32 0.0, %v2420_v56  ;;  %v2421_v59 = vsub.f32 1.0, %v2419_v57 }
0x1310   : > { %v2426_v60 = vsel %vm2422_vm10, %v2420_v56, %v2424_v58  ;;  %v2425_v61 = vsub.f32 0.0, %v2421_v59 }
0x1311   : > { %v2428_v62 = vadd.f32 1.0, %v2426_v60 }
0x1312   : > { %v2427_v63 = vsel %vm2423_vm11, %v2421_v59, %v2425_v61 }
0x1313   : > { %v2429_v2 = vadd.f32 1.0, %v2427_v63  ;;  %v2430_v3 = vmul.f32 %v2428_v62, %v2378_v0 }
0x1315   : > { %v2431_v4 = vmul.f32 %v2429_v2, %v2379_v1 }
0x1317   : > { %v2432_v5 = vpack.c.bf16 %v2431_v4, %v2430_v3 }
0x1319   : > { %3114 = vmatmul.mubr.bf16.vlgmr.msra.gmra.mrb[44].mxu1 %v2432_v5 }
0x13ec   : > { %v2498_v7 = vpop.f32.mrb[44].mxu1 }
0x13ed   : > { %v2499_v8 = vadd.f32 %v2839_v6, %v2498_v7  ;;  %v3115_v9 = vpop.f32.mrb[45].mxu1 }
0x13ee   : > { %v2501_v11 = vpop.f32.mrb[46].mxu1 }
0x13ef   : > { %v2505_v12 = vadd.f32 %v2499_v8, %v3667_v10  ;;  %v2502_v14 = vadd.f32 %v2839_v6, %v2501_v11  ;;  %v3116_v42 = vpop.f32.mrb[47].mxu1 }
0x13f1   : > { %2507 = vst.msk [vmem:[#allocation2] sm:$0xff] %vm840_vm2, %v2505_v12  ;;  %2509 = vst.msk [vmem:[%s3372_s23] sm:$0xff] %vm840_vm2, %v2505_v12  ;;  %v2506_v15 = vadd.f32 %v2502_v14, %v3669_v13 }
0x13f3   : > { %2508 = vst.msk [vmem:[#allocation2 + $0x8] sm:$0x3] %vm844_vm3, %v2506_v15  ;;  %2510 = vst.msk [vmem:[%s3372_s23 + $0x8] sm:$0x3] %vm844_vm3, %v2506_v15 }
0x13f4 PF: > { %s3802_s29 = sld [smem:[#allocation3_spill]] }
0x13fa   : > { %s28_s27 = sadd.s32 1, %s3802_s29  }
0x13fb   : > { %p25_p5 = scmp.ge.s32.totalorder %s28_s27, 14  }
0x13fd   :  { %27 = sbr.rel (!%p25_p5) target bundleno = 14 (0xe), region = 192 }

// kernel: dpt_forward.45
= control target key start
LH: loop header
LB: loop body
LE: loop exit
PB: predicated region body
PF: predicated region fallthrough
CT: control target
= control target key end

     0   :  { %v175_v0 = vmov 0   ;;  %vm101_vm0 = vcmask 130048   ;;  %s234_s1 = inlined_call_operand.vmem [shape: bf16[144,16], index: 1, kind: input, shape index: {}]   ;;  %s235_s0 = inlined_call_operand.vmem [shape: bf16[8,144], index: 0, kind: input, shape index: {}]   ;;  %s236_s2 = inlined_call_operand.vmem [shape: f32[1,16], index: 2, kind: input, shape index: {}]   ;;  %s237_s3 = inlined_call_operand.vmem [shape: f32[8,16], index: 3, kind: output, shape index: {}]  }
   0x1   :  { %105 = vmatprep.subr.bf16.mxu0 %v175_v0  ;;  %v164_v1 = vld [vmem:[%s234_s1] sm:$0xff]   ;;  %v165_v2 = vld [vmem:[%s234_s1 + $0x8] sm:$0xff]   ;;  %v166_v3 = vld [vmem:[%s234_s1 + $0x10] sm:$0xff]  }
   0x2   :  { %106 = vmatpush1.bf16.msra.mxu0 %v164_v1  ;;  %v15_v4 = vld [vmem:[%s235_s0] sm:$0xff]  ;;  %v167_v5 = vld [vmem:[%s234_s1 + $0x18] sm:$0xff]   ;;  %v169_v8 = vld [vmem:[%s234_s1 + $0x28] sm:$0xff]  }
   0x3   :  { %107 = vmatprep.subr.bf16.mxu0 %v175_v0  ;;  %v152_v6 = vcombine.high %v15_v4, %v15_v4  ;;  %v168_v7 = vld [vmem:[%s234_s1 + $0x20] sm:$0xff]   ;;  %v170_v9 = vld [vmem:[%s234_s1 + $0x30] sm:$0xff]   ;;  %v171_v10 = vld [vmem:[%s234_s1 + $0x38] sm:$0xff]   ;;  %v151_v12 = vcombine.low %v15_v4, %v15_v4 }
   0x4   :  { %v172_v11 = vld [vmem:[%s234_s1 + $0x40] sm:$0xff]  }
   0x5   :  { %162 = vmatprep.mubr.msk.bf16.mxu0 %vm101_vm0, %v152_v6  ;;  %v150_v13 = vld [vmem:[%s236_s2] ss:$0 sm:$0xff] }
   0x6   :  { %108 = vmatpush1.bf16.msra.mxu0 %v165_v2 }
   0x7   :  { %109 = vmatprep.subr.bf16.mxu0 %v175_v0 }
   0xa   :  { %110 = vmatpush1.bf16.msra.mxu0 %v166_v3 }
   0xb   :  { %111 = vmatprep.subr.bf16.mxu0 %v175_v0 }
   0xe   :  { %112 = vmatpush1.bf16.msra.mxu0 %v167_v5 }
   0xf   :  { %113 = vmatprep.subr.bf16.mxu0 %v175_v0 }
  0x12   :  { %114 = vmatpush1.bf16.msra.mxu0 %v168_v7 }
  0x13   :  { %115 = vmatprep.subr.bf16.mxu0 %v175_v0 }
  0x16   :  { %116 = vmatpush1.bf16.msra.mxu0 %v169_v8 }
  0x17   :  { %117 = vmatprep.subr.bf16.mxu0 %v175_v0 }
  0x1a   :  { %118 = vmatpush1.bf16.msra.mxu0 %v170_v9 }
  0x1b   :  { %119 = vmatprep.subr.bf16.mxu0 %v175_v0 }
  0x1e   :  { %120 = vmatpush1.bf16.msra.mxu0 %v171_v10 }
  0x1f   :  { %121 = vmatprep.subr.bf16.mxu0 %v175_v0 }
  0x22   :  { %122 = vmatpush1.bf16.msra.mxu0 %v172_v11 }
  0x25   :  { %138 = vmatmul.mubr.bf16.vlgmr.msra.gmra.mrb[0].mxu0 %v151_v12 }
  0xf8   :  { %v139_v14 = vpop.f32.mrb[0].mxu0 }
  0xf9   :  { %v140_v15 = vadd.f32 %v150_v13, %v139_v14  ;;  %v141_v16 = vpop.f32.mrb[1].mxu0 }
  0xfa   :  { %v142_v17 = vpop.f32.mrb[2].mxu0 }
  0xfb   :  { %145 = vst.msk [vmem:[%s237_s3] sm:$0xff] %vm101_vm0, %v140_v15  ;;  %v143_v18 = vpop.f32.mrb[3].mxu0 }

// kernel: dpt_forward.41
= control target key start
LH: loop header
LB: loop body
LE: loop exit
PB: predicated region body
PF: predicated region fallthrough
CT: control target
= control target key end

     0   :  { %v358_v1 = vmov 0.0   ;;  %vm359_vm0 = vmmov 0   ;;  %v360_v6 = vmov 1966171168   ;;  %v71_v8 = vlaneseq  ;;  %s444_s1 = inlined_call_operand.vmem [shape: bf16[288,32], index: 1, kind: input, shape index: {}]   ;;  %s445_s0 = inlined_call_operand.vmem [shape: bf16[2,288], index: 0, kind: input, shape index: {}]   ;;  %s446_s2 = inlined_call_operand.vmem [shape: f32[1,32], index: 2, kind: input, shape index: {}]   ;;  %s447_s3 = inlined_call_operand.vmem [shape: f32[2,32], index: 3, kind: output, shape index: {}]  }
   0x1   :  { %v340_v0 = vld [vmem:[%s444_s1 + $0x40] sm:$0xff]   ;;  %329 = vmatprep.subr.bf16.mxu1 %v358_v1  ;;  %333 = vmatprep.mubr.msk.bf16.mxu1 %vm359_vm0, %v358_v1  ;;  %v342_v3 = vld [vmem:[%s444_s1 + $0x48] sm:$0xff]   ;;  %v344_v5 = vld [vmem:[%s444_s1 + $0x50] sm:$0xff]   ;;  %v69_v7 = vunpack.c.l.s4 %v360_v6  ;;  %vm193_vm1 = vcmask 261120   ;;  %vm277_vm2 = vcmask 254976  }
   0x2   :  { %v341_v2 = vld [vmem:[%s444_s1] sm:$0xff]   ;;  %304 = vmatprep.subr.bf16.mxu0 %v340_v0  ;;  %v343_v4 = vld [vmem:[%s444_s1 + $0x8] sm:$0xff]   ;;  %v345_v9 = vld [vmem:[%s444_s1 + $0x10] sm:$0xff]   ;;  %v72_v12 = vshrl.u32 %v71_v8, 7 }
   0x3   :  { %305 = vmatpush3.bf16.msra.mxu0 %v341_v2  ;;  %v346_v10 = vld [vmem:[%s444_s1 + $0x58] sm:$0xff]   ;;  %v70_v11 = vunpack.c.0.s8 %v69_v7  ;;  %v348_v14 = vld [vmem:[%s444_s1 + $0x60] sm:$0xff]   ;;  %v350_v18 = vld [vmem:[%s444_s1 + $0x68] sm:$0xff]  }
   0x4   :  { %306 = vmatprep.subr.bf16.mxu0 %v342_v3  ;;  %v347_v13 = vld [vmem:[%s444_s1 + $0x18] sm:$0xff]   ;;  %v354_v15 = vld [vmem:[%s444_s1 + $0x80] sm:$0xff]   ;;  %v357_v21 = vld [vmem:[%s444_s1 + $0x88] sm:$0xff]  }
   0x5   :  { %v73_v16 = vsub.s32 %v70_v11, %v72_v12  ;;  %v349_v17 = vld [vmem:[%s444_s1 + $0x20] sm:$0xff]   ;;  %330 = vmatpush3.bf16.msra.mxu1 %v354_v15  ;;  %v351_v23 = vld [vmem:[%s444_s1 + $0x28] sm:$0xff]   ;;  %v352_v24 = vld [vmem:[%s444_s1 + $0x70] sm:$0xff]  }
   0x6   :  { %331 = vmatprep.subr.bf16.mxu1 %v358_v1  ;;  %v284_v19 = vld.sshfl [vmem:[%s445_s0] sm:$0x13 pattern:$0x75316420]  ;;  %v353_v27 = vld [vmem:[%s444_s1 + $0x30] sm:$0xff]   ;;  %v355_v28 = vld [vmem:[%s444_s1 + $0x78] sm:$0xff]  }
   0x7   :  { %307 = vmatpush3.bf16.msra.mxu0 %v343_v4  ;;  %v67_v20 = vcombine.high %v284_v19, %v284_v19  ;;  %v74_v22 = vrot.slane %v284_v19, %v73_v16  ;;  %v356_v29 = vld [vmem:[%s444_s1 + $0x38] sm:$0xff]   ;;  %v283_v36 = vld [vmem:[%s446_s2] ss:$0 sm:$0xff] }
   0x8   :  { %308 = vmatprep.subr.bf16.mxu0 %v344_v5 }
   0x9   :  { %v81_v25 = vrot.slane %v67_v20, %v73_v16  ;;  %332 = vmatpush3.bf16.msra.mxu1 %v357_v21  ;;  %v82_v26 = vcombine.high %v74_v22, %v74_v22 }
   0xb   :  { %309 = vmatpush3.bf16.msra.mxu0 %v345_v9  ;;  %229 = vmatprep.mubr.bf16.mxu0 %v81_v25 }
   0xc   :  { %310 = vmatprep.subr.bf16.mxu0 %v346_v10  ;;  %334 = vmatmul.mubr.msk.bf16.vlgmr.msra.gmra.mrb[0].mxu1 %vm193_vm1, %v82_v26 }
   0xf   :  { %311 = vmatpush3.bf16.msra.mxu0 %v347_v13 }
  0x10   :  { %312 = vmatprep.subr.bf16.mxu0 %v348_v14 }
  0x13   :  { %313 = vmatpush3.bf16.msra.mxu0 %v349_v17 }
  0x14   :  { %314 = vmatprep.subr.bf16.mxu0 %v350_v18 }
  0x17   :  { %315 = vmatpush3.bf16.msra.mxu0 %v351_v23 }
  0x18   :  { %316 = vmatprep.subr.bf16.mxu0 %v352_v24 }
  0x1b   :  { %317 = vmatpush3.bf16.msra.mxu0 %v353_v27 }
  0x1c   :  { %318 = vmatprep.subr.bf16.mxu0 %v355_v28 }
  0x1f   :  { %319 = vmatpush3.bf16.msra.mxu0 %v356_v29 }
  0x22   :  { %230 = vmatmul.mubr.bf16.vlgmr.msra.gmra.mrb[0].mxu0 %v74_v22 }
  0xdf   :  { %v271_v30 = vpop.f32.mrb[0].mxu1 }
  0xe0   :  { %v335_v31 = vpop.f32.mrb[1].mxu1 }
  0xe1   :  { %v274_v32 = vpop.f32.mrb[2].mxu1 }
  0xe2   :  { %v336_v33 = vpop.f32.mrb[3].mxu1 }
  0xf5   :  { %v320_v34 = vpop.f32.mrb[0].mxu0 }
  0xf6   :  { %v321_v35 = vpop.f32.mrb[1].mxu0 }
  0xf7   :  { %v322_v37 = vadd.f32 %v321_v35, %v320_v34  ;;  %v323_v38 = vpop.f32.mrb[2].mxu0 }
  0xf8   :  { %v324_v39 = vpop.f32.mrb[3].mxu0 }
  0xf9   :  { %v232_v40 = vadd.f32 %v322_v37, %v283_v36 }
  0xfb   :  { %v272_v41 = vadd.f32 %v271_v30, %v232_v40 }
  0xfd   :  { %278 = vst.msk [vmem:[%s447_s3] sm:$0x3] %vm277_vm2, %v272_v41 }

// kernel: dpt_forward.42
= control target key start
LH: loop header
LB: loop body
LE: loop exit
PB: predicated region body
PF: predicated region fallthrough
CT: control target
= control target key end

     0   :  { %v358_v1 = vmov 0.0   ;;  %vm359_vm0 = vmmov 0   ;;  %v360_v6 = vmov 1966171168   ;;  %v71_v8 = vlaneseq  ;;  %s444_s1 = inlined_call_operand.vmem [shape: bf16[288,16], index: 1, kind: input, shape index: {}]   ;;  %s445_s0 = inlined_call_operand.vmem [shape: bf16[2,288], index: 0, kind: input, shape index: {}]   ;;  %s446_s2 = inlined_call_operand.vmem [shape: f32[1,16], index: 2, kind: input, shape index: {}]   ;;  %s447_s3 = inlined_call_operand.vmem [shape: f32[2,16], index: 3, kind: output, shape index: {}]  }
   0x1   :  { %v340_v0 = vld [vmem:[%s444_s1 + $0x40] sm:$0xff]   ;;  %329 = vmatprep.subr.bf16.mxu1 %v358_v1  ;;  %333 = vmatprep.mubr.msk.bf16.mxu1 %vm359_vm0, %v358_v1  ;;  %v342_v3 = vld [vmem:[%s444_s1 + $0x48] sm:$0xff]   ;;  %v344_v5 = vld [vmem:[%s444_s1 + $0x50] sm:$0xff]   ;;  %v69_v7 = vunpack.c.l.s4 %v360_v6  ;;  %vm193_vm1 = vcmask 261120   ;;  %vm277_vm2 = vcmask 123904  }
   0x2   :  { %v341_v2 = vld [vmem:[%s444_s1] sm:$0xff]   ;;  %304 = vmatprep.subr.bf16.mxu0 %v340_v0  ;;  %v343_v4 = vld [vmem:[%s444_s1 + $0x8] sm:$0xff]   ;;  %v345_v9 = vld [vmem:[%s444_s1 + $0x10] sm:$0xff]   ;;  %v72_v12 = vshrl.u32 %v71_v8, 7 }
   0x3   :  { %305 = vmatpush3.bf16.msra.mxu0 %v341_v2  ;;  %v346_v10 = vld [vmem:[%s444_s1 + $0x58] sm:$0xff]   ;;  %v70_v11 = vunpack.c.0.s8 %v69_v7  ;;  %v348_v14 = vld [vmem:[%s444_s1 + $0x60] sm:$0xff]   ;;  %v350_v18 = vld [vmem:[%s444_s1 + $0x68] sm:$0xff]  }
   0x4   :  { %306 = vmatprep.subr.bf16.mxu0 %v342_v3  ;;  %v347_v13 = vld [vmem:[%s444_s1 + $0x18] sm:$0xff]   ;;  %v354_v15 = vld [vmem:[%s444_s1 + $0x80] sm:$0xff]   ;;  %v357_v21 = vld [vmem:[%s444_s1 + $0x88] sm:$0xff]  }
   0x5   :  { %v73_v16 = vsub.s32 %v70_v11, %v72_v12  ;;  %v349_v17 = vld [vmem:[%s444_s1 + $0x20] sm:$0xff]   ;;  %330 = vmatpush3.bf16.msra.mxu1 %v354_v15  ;;  %v351_v23 = vld [vmem:[%s444_s1 + $0x28] sm:$0xff]   ;;  %v352_v24 = vld [vmem:[%s444_s1 + $0x70] sm:$0xff]  }
   0x6   :  { %331 = vmatprep.subr.bf16.mxu1 %v358_v1  ;;  %v284_v19 = vld.sshfl [vmem:[%s445_s0] sm:$0x13 pattern:$0x75316420]  ;;  %v353_v27 = vld [vmem:[%s444_s1 + $0x30] sm:$0xff]   ;;  %v355_v28 = vld [vmem:[%s444_s1 + $0x78] sm:$0xff]  }
   0x7   :  { %307 = vmatpush3.bf16.msra.mxu0 %v343_v4  ;;  %v67_v20 = vcombine.high %v284_v19, %v284_v19  ;;  %v74_v22 = vrot.slane %v284_v19, %v73_v16  ;;  %v356_v29 = vld [vmem:[%s444_s1 + $0x38] sm:$0xff]   ;;  %v283_v36 = vld [vmem:[%s446_s2] ss:$0 sm:$0xff] }
   0x8   :  { %308 = vmatprep.subr.bf16.mxu0 %v344_v5 }
   0x9   :  { %v81_v25 = vrot.slane %v67_v20, %v73_v16  ;;  %332 = vmatpush3.bf16.msra.mxu1 %v357_v21  ;;  %v82_v26 = vcombine.high %v74_v22, %v74_v22 }
   0xb   :  { %309 = vmatpush3.bf16.msra.mxu0 %v345_v9  ;;  %229 = vmatprep.mubr.bf16.mxu0 %v81_v25 }
   0xc   :  { %310 = vmatprep.subr.bf16.mxu0 %v346_v10  ;;  %334 = vmatmul.mubr.msk.bf16.vlgmr.msra.gmra.mrb[0].mxu1 %vm193_vm1, %v82_v26 }
   0xf   :  { %311 = vmatpush3.bf16.msra.mxu0 %v347_v13 }
  0x10   :  { %312 = vmatprep.subr.bf16.mxu0 %v348_v14 }
  0x13   :  { %313 = vmatpush3.bf16.msra.mxu0 %v349_v17 }
  0x14   :  { %314 = vmatprep.subr.bf16.mxu0 %v350_v18 }
  0x17   :  { %315 = vmatpush3.bf16.msra.mxu0 %v351_v23 }
  0x18   :  { %316 = vmatprep.subr.bf16.mxu0 %v352_v24 }
  0x1b   :  { %317 = vmatpush3.bf16.msra.mxu0 %v353_v27 }
  0x1c   :  { %318 = vmatprep.subr.bf16.mxu0 %v355_v28 }
  0x1f   :  { %319 = vmatpush3.bf16.msra.mxu0 %v356_v29 }
  0x22   :  { %230 = vmatmul.mubr.bf16.vlgmr.msra.gmra.mrb[0].mxu0 %v74_v22 }
  0xdf   :  { %v271_v30 = vpop.f32.mrb[0].mxu1 }
  0xe0   :  { %v335_v31 = vpop.f32.mrb[1].mxu1 }
  0xe1   :  { %v274_v32 = vpop.f32.mrb[2].mxu1 }
  0xe2   :  { %v336_v33 = vpop.f32.mrb[3].mxu1 }
  0xf5   :  { %v320_v34 = vpop.f32.mrb[0].mxu0 }
  0xf6   :  { %v321_v35 = vpop.f32.mrb[1].mxu0 }
  0xf7   :  { %v322_v37 = vadd.f32 %v321_v35, %v320_v34  ;;  %v323_v38 = vpop.f32.mrb[2].mxu0 }
  0xf8   :  { %v324_v39 = vpop.f32.mrb[3].mxu0 }
  0xf9   :  { %v232_v40 = vadd.f32 %v322_v37, %v283_v36 }
  0xfb   :  { %v272_v41 = vadd.f32 %v271_v30, %v232_v40 }
  0xfd   :  { %278 = vst.msk [vmem:[%s447_s3] sm:$0x3] %vm277_vm2, %v272_v41 }

// kernel: dpt_forward.43
= control target key start
LH: loop header
LB: loop body
LE: loop exit
PB: predicated region body
PF: predicated region fallthrough
CT: control target
= control target key end

     0   :  { %v192_v0 = vmov 0   ;;  %v193_v2 = vmov 1966171168   ;;  %v53_v4 = vlaneseq  ;;  %vm119_vm0 = vcmask 130048   ;;  %s250_s1 = inlined_call_operand.vmem [shape: bf16[144,16], index: 1, kind: input, shape index: {}]   ;;  %s251_s0 = inlined_call_operand.vmem [shape: bf16[2,144], index: 0, kind: input, shape index: {}]   ;;  %s252_s2 = inlined_call_operand.vmem [shape: f32[1,16], index: 2, kind: input, shape index: {}]   ;;  %s253_s3 = inlined_call_operand.vmem [shape: f32[2,16], index: 3, kind: output, shape index: {}]  }
   0x1   :  { %123 = vmatprep.subr.bf16.mxu0 %v192_v0  ;;  %v183_v1 = vld [vmem:[%s250_s1] sm:$0xff]   ;;  %v51_v3 = vunpack.c.l.s4 %v193_v2  ;;  %v184_v5 = vld [vmem:[%s250_s1 + $0x8] sm:$0xff]   ;;  %v185_v8 = vld [vmem:[%s250_s1 + $0x10] sm:$0xff]   ;;  %vm163_vm1 = vcmask 123904  }
   0x2   :  { %124 = vmatpush1.bf16.msra.mxu0 %v183_v1  ;;  %v54_v7 = vshrl.u32 %v53_v4, 7  ;;  %v170_v10 = vld.sshfl [vmem:[%s251_s0] sm:$0x11 pattern:$0x75316420]  ;;  %v186_v11 = vld [vmem:[%s250_s1 + $0x18] sm:$0xff]  }
   0x3   :  { %125 = vmatprep.subr.bf16.mxu0 %v192_v0  ;;  %v52_v6 = vunpack.c.0.s8 %v51_v3  ;;  %v49_v12 = vcombine.high %v170_v10, %v170_v10  ;;  %v187_v14 = vld [vmem:[%s250_s1 + $0x20] sm:$0xff]   ;;  %v188_v15 = vld [vmem:[%s250_s1 + $0x28] sm:$0xff]   ;;  %v189_v16 = vld [vmem:[%s250_s1 + $0x30] sm:$0xff]  }
   0x4   :  { %v190_v17 = vld [vmem:[%s250_s1 + $0x38] sm:$0xff]   ;;  %v191_v18 = vld [vmem:[%s250_s1 + $0x40] sm:$0xff]  }
   0x5   :  { %v55_v9 = vsub.s32 %v52_v6, %v54_v7  ;;  %v169_v20 = vld [vmem:[%s252_s2] ss:$0 sm:$0xff] }
   0x6   :  { %126 = vmatpush1.bf16.msra.mxu0 %v184_v5 }
   0x7   :  { %127 = vmatprep.subr.bf16.mxu0 %v192_v0  ;;  %v63_v13 = vrot.slane %v49_v12, %v55_v9  ;;  %v56_v19 = vrot.slane %v170_v10, %v55_v9 }
   0x9   :  { %180 = vmatprep.mubr.msk.bf16.mxu0 %vm119_vm0, %v63_v13 }
   0xa   :  { %128 = vmatpush1.bf16.msra.mxu0 %v185_v8 }
   0xb   :  { %129 = vmatprep.subr.bf16.mxu0 %v192_v0 }
   0xe   :  { %130 = vmatpush1.bf16.msra.mxu0 %v186_v11 }
   0xf   :  { %131 = vmatprep.subr.bf16.mxu0 %v192_v0 }
  0x12   :  { %132 = vmatpush1.bf16.msra.mxu0 %v187_v14 }
  0x13   :  { %133 = vmatprep.subr.bf16.mxu0 %v192_v0 }
  0x16   :  { %134 = vmatpush1.bf16.msra.mxu0 %v188_v15 }
  0x17   :  { %135 = vmatprep.subr.bf16.mxu0 %v192_v0 }
  0x1a   :  { %136 = vmatpush1.bf16.msra.mxu0 %v189_v16 }
  0x1b   :  { %137 = vmatprep.subr.bf16.mxu0 %v192_v0 }
  0x1e   :  { %138 = vmatpush1.bf16.msra.mxu0 %v190_v17 }
  0x1f   :  { %139 = vmatprep.subr.bf16.mxu0 %v192_v0 }
  0x22   :  { %140 = vmatpush1.bf16.msra.mxu0 %v191_v18 }
  0x25   :  { %156 = vmatmul.mubr.bf16.vlgmr.msra.gmra.mrb[0].mxu0 %v56_v19 }
  0xf8   :  { %v157_v21 = vpop.f32.mrb[0].mxu0 }
  0xf9   :  { %v158_v22 = vadd.f32 %v169_v20, %v157_v21  ;;  %v159_v23 = vpop.f32.mrb[1].mxu0 }
  0xfa   :  { %v160_v24 = vpop.f32.mrb[2].mxu0 }
  0xfb   :  { %164 = vst.msk [vmem:[%s253_s3] sm:$0x3] %vm163_vm1, %v158_v22  ;;  %v161_v25 = vpop.f32.mrb[3].mxu0 }

// kernel: dpt_forward.35
= control target key start
LH: loop header
LB: loop body
LE: loop exit
PB: predicated region body
PF: predicated region fallthrough
CT: control target
= control target key end

     0   :  { %v108_v0 = vmov 0.0   ;;  %vm109_vm0 = vmmov 0   ;;  %vm39_vm1 = vcmask 261120   ;;  %vm83_vm2 = vcmask 130048   ;;  %s145_s1 = inlined_call_operand.vmem [shape: bf16[32,16], index: 1, kind: input, shape index: {}]   ;;  %s146_s0 = inlined_call_operand.vmem [shape: bf16[8,32], index: 0, kind: input, shape index: {}]   ;;  %s147_s2 = inlined_call_operand.vmem [shape: f32[1,16], index: 2, kind: input, shape index: {}]   ;;  %s148_s3 = inlined_call_operand.vmem [shape: f32[8,16], index: 3, kind: output, shape index: {}]  }
   0x1   :  { %96 = vmatprep.subr.bf16.mxu0 %v108_v0  ;;  %v106_v1 = vld [vmem:[%s145_s1] sm:$0xff]   ;;  %100 = vmatprep.mubr.msk.bf16.mxu0 %vm109_vm0, %v108_v0  ;;  %v107_v2 = vld [vmem:[%s145_s1 + $0x8] sm:$0xff]  }
   0x2   :  { %97 = vmatpush3.bf16.msra.mxu0 %v106_v1  ;;  %v15_v3 = vld [vmem:[%s146_s0] sm:$0xf] }
   0x3   :  { %98 = vmatprep.subr.bf16.mxu0 %v108_v0  ;;  %v89_v4 = vld [vmem:[%s147_s2] ss:$0 sm:$0xff] }
   0x6   :  { %99 = vmatpush3.bf16.msra.mxu0 %v107_v2 }
   0x9   :  { %101 = vmatmul.mubr.msk.bf16.vlgmr.msra.gmra.mrb[0].mxu0 %vm39_vm1, %v15_v3 }
  0xdc   :  { %v77_v5 = vpop.f32.mrb[0].mxu0 }
  0xdd   :  { %v78_v6 = vadd.f32 %v89_v4, %v77_v5  ;;  %v102_v7 = vpop.f32.mrb[1].mxu0 }
  0xde   :  { %v80_v8 = vpop.f32.mrb[2].mxu0 }
  0xdf   :  { %84 = vst.msk [vmem:[%s148_s3] sm:$0xff] %vm83_vm2, %v78_v6  ;;  %v103_v9 = vpop.f32.mrb[3].mxu0 }

// kernel: dpt_forward.36
= control target key start
LH: loop header
LB: loop body
LE: loop exit
PB: predicated region body
PF: predicated region fallthrough
CT: control target
= control target key end

     0   :  { %v95_v0 = vmov 0.0   ;;  %vm96_vm0 = vmmov 0   ;;  %vm31_vm1 = vcmask 130048   ;;  %vm75_vm2 = vcmask 523264   ;;  %s129_s1 = inlined_call_operand.vmem [shape: bf16[16,64], index: 1, kind: input, shape index: {}]   ;;  %s130_s0 = inlined_call_operand.vmem [shape: bf16[8,16], index: 0, kind: input, shape index: {}]   ;;  %s131_s2 = inlined_call_operand.vmem [shape: f32[1,64], index: 2, kind: input, shape index: {}]   ;;  %s132_s3 = inlined_call_operand.vmem [shape: f32[8,64], index: 3, kind: output, shape index: {}]  }
   0x1   :  { %86 = vmatprep.subr.bf16.mxu0 %v95_v0  ;;  %v94_v1 = vld [vmem:[%s129_s1] sm:$0xff]   ;;  %88 = vmatprep.mubr.msk.bf16.mxu0 %vm96_vm0, %v95_v0 }
   0x2   :  { %87 = vmatpush3.bf16.msra.mxu0 %v94_v1  ;;  %v15_v2 = vld [vmem:[%s130_s0] sm:$0xf] }
   0x3   :  { %v81_v3 = vld [vmem:[%s131_s2] ss:$0 sm:$0xff] }
   0x5   :  { %89 = vmatmul.mubr.msk.bf16.vlgmr.msra.gmra.mrb[0].mxu0 %vm31_vm1, %v15_v2 }
  0xd8   :  { %v69_v4 = vpop.f32.mrb[0].mxu0 }
  0xd9   :  { %v70_v5 = vadd.f32 %v81_v3, %v69_v4  ;;  %v90_v6 = vpop.f32.mrb[1].mxu0 }
  0xda   :  { %v72_v7 = vpop.f32.mrb[2].mxu0 }
  0xdb   :  { %76 = vst.msk [vmem:[%s132_s3] sm:$0xff] %vm75_vm2, %v70_v5  ;;  %v91_v8 = vpop.f32.mrb[3].mxu0 }

// kernel: dpt_forward.37
= control target key start
LH: loop header
LB: loop body
LE: loop exit
PB: predicated region body
PF: predicated region fallthrough
CT: control target
= control target key end

     0   :  { %v230_v0 = vmov 0   ;;  %vm116_vm0 = vcmask 130048   ;;  %s311_s1 = inlined_call_operand.vmem [shape: bf16[144,16], index: 1, kind: input, shape index: {}]   ;;  %s312_s0 = inlined_call_operand.vmem [shape: bf16[32,144], index: 0, kind: input, shape index: {}]   ;;  %s313_s2 = inlined_call_operand.vmem [shape: f32[1,16], index: 2, kind: input, shape index: {}]   ;;  %s314_s3 = inlined_call_operand.vmem [shape: f32[32,16], index: 3, kind: output, shape index: {}]  }
   0x1   :  { %123 = vmatprep.subr.bf16.mxu0 %v230_v0  ;;  %196 = vmatprep.subr.bf16.mxu1 %v230_v0  ;;  %v215_v1 = vld [vmem:[%s311_s1] sm:$0xff]   ;;  %v216_v2 = vld [vmem:[%s311_s1 + $0x8] sm:$0xff]   ;;  %v217_v3 = vld [vmem:[%s311_s1 + $0x10] sm:$0xff]  }
   0x2   :  { %124 = vmatpush1.bf16.msra.mxu0 %v215_v1  ;;  %205 = vmatpush1.bf16.msra.mxu1 %v215_v1  ;;  %v218_v4 = vld [vmem:[%s311_s1 + $0x18] sm:$0xff]   ;;  %v226_v5 = vld [vmem:[%s312_s0 + $0x4] ss:$8 sps:$4 sm:$0xff]   ;;  %v221_v9 = vld [vmem:[%s311_s1 + $0x30] sm:$0xff]  }
   0x3   :  { %125 = vmatprep.subr.bf16.mxu0 %v230_v0  ;;  %197 = vmatprep.subr.bf16.mxu1 %v230_v0  ;;  %v229_v6 = vld [vmem:[%s312_s0 + $0x14] ss:$8 sps:$4 sm:$0xff]   ;;  %v219_v7 = vld [vmem:[%s311_s1 + $0x20] sm:$0xff]   ;;  %v220_v8 = vld [vmem:[%s311_s1 + $0x28] sm:$0xff]  }
   0x4   :  { %194 = vmatprep.mubr.msk.bf16.mxu0 %vm116_vm0, %v226_v5  ;;  %195 = vmatprep.mubr.msk.bf16.mxu1 %vm116_vm0, %v229_v6  ;;  %v222_v10 = vld [vmem:[%s311_s1 + $0x38] sm:$0xff]   ;;  %v223_v11 = vld [vmem:[%s311_s1 + $0x40] sm:$0xff]  }
   0x5   :  { %v224_v12 = vld [vmem:[%s312_s0] ss:$8 sps:$4 sm:$0xff]   ;;  %v227_v13 = vld [vmem:[%s312_s0 + $0x10] ss:$8 sps:$4 sm:$0xff]  }
   0x6   :  { %126 = vmatpush1.bf16.msra.mxu0 %v216_v2  ;;  %206 = vmatpush1.bf16.msra.mxu1 %v216_v2  ;;  %v180_v14 = vld [vmem:[%s313_s2] ss:$0 sm:$0xff] }
   0x7   :  { %127 = vmatprep.subr.bf16.mxu0 %v230_v0  ;;  %198 = vmatprep.subr.bf16.mxu1 %v230_v0 }
   0xa   :  { %128 = vmatpush1.bf16.msra.mxu0 %v217_v3  ;;  %207 = vmatpush1.bf16.msra.mxu1 %v217_v3 }
   0xb   :  { %129 = vmatprep.subr.bf16.mxu0 %v230_v0  ;;  %199 = vmatprep.subr.bf16.mxu1 %v230_v0 }
   0xe   :  { %130 = vmatpush1.bf16.msra.mxu0 %v218_v4  ;;  %208 = vmatpush1.bf16.msra.mxu1 %v218_v4 }
   0xf   :  { %131 = vmatprep.subr.bf16.mxu0 %v230_v0  ;;  %200 = vmatprep.subr.bf16.mxu1 %v230_v0 }
  0x12   :  { %132 = vmatpush1.bf16.msra.mxu0 %v219_v7  ;;  %209 = vmatpush1.bf16.msra.mxu1 %v219_v7 }
  0x13   :  { %133 = vmatprep.subr.bf16.mxu0 %v230_v0  ;;  %201 = vmatprep.subr.bf16.mxu1 %v230_v0 }
  0x16   :  { %134 = vmatpush1.bf16.msra.mxu0 %v220_v8  ;;  %210 = vmatpush1.bf16.msra.mxu1 %v220_v8 }
  0x17   :  { %135 = vmatprep.subr.bf16.mxu0 %v230_v0  ;;  %202 = vmatprep.subr.bf16.mxu1 %v230_v0 }
  0x1a   :  { %136 = vmatpush1.bf16.msra.mxu0 %v221_v9  ;;  %211 = vmatpush1.bf16.msra.mxu1 %v221_v9 }
  0x1b   :  { %137 = vmatprep.subr.bf16.mxu0 %v230_v0  ;;  %203 = vmatprep.subr.bf16.mxu1 %v230_v0 }
  0x1e   :  { %138 = vmatpush1.bf16.msra.mxu0 %v222_v10  ;;  %212 = vmatpush1.bf16.msra.mxu1 %v222_v10 }
  0x1f   :  { %139 = vmatprep.subr.bf16.mxu0 %v230_v0  ;;  %204 = vmatprep.subr.bf16.mxu1 %v230_v0 }
  0x22   :  { %140 = vmatpush1.bf16.msra.mxu0 %v223_v11  ;;  %213 = vmatpush1.bf16.msra.mxu1 %v223_v11 }
  0x25   :  { %156 = vmatmul.mubr.bf16.vlgmr.msra.gmra.mrb[0].mxu0 %v224_v12  ;;  %164 = vmatmul.mubr.bf16.vlgmr.msra.gmra.mrb[0].mxu1 %v227_v13 }
  0xf8   :  { %v157_v15 = vpop.f32.mrb[0].mxu0  ;;  %v165_v16 = vpop.f32.mrb[0].mxu1 }
  0xf9   :  { %v158_v17 = vadd.f32 %v180_v14, %v157_v15  ;;  %v166_v18 = vadd.f32 %v180_v14, %v165_v16  ;;  %v159_v19 = vpop.f32.mrb[1].mxu0  ;;  %v167_v20 = vpop.f32.mrb[1].mxu1 }
  0xfa   :  { %v160_v21 = vpop.f32.mrb[2].mxu0  ;;  %v168_v22 = vpop.f32.mrb[2].mxu1 }
  0xfb   :  { %172 = vst.msk [vmem:[%s314_s3] sm:$0xff] %vm116_vm0, %v158_v17  ;;  %174 = vst.msk [vmem:[%s314_s3 + $0x10] sm:$0xff] %vm116_vm0, %v166_v18  ;;  %v161_v23 = vadd.f32 %v180_v14, %v160_v21  ;;  %v169_v24 = vadd.f32 %v180_v14, %v168_v22  ;;  %v162_v25 = vpop.f32.mrb[3].mxu0  ;;  %v170_v26 = vpop.f32.mrb[3].mxu1 }
  0xfd   :  { %173 = vst.msk [vmem:[%s314_s3 + $0x8] sm:$0xff] %vm116_vm0, %v161_v23  ;;  %175 = vst.msk [vmem:[%s314_s3 + $0x18] sm:$0xff] %vm116_vm0, %v169_v24 }

// kernel: dpt_forward.32
= control target key start
LH: loop header
LB: loop body
LE: loop exit
PB: predicated region body
PF: predicated region fallthrough
CT: control target
= control target key end

     0   :  { %v108_v0 = vmov 0.0   ;;  %vm109_vm0 = vmmov 0   ;;  %vm39_vm1 = vcmask 261120   ;;  %vm83_vm2 = vcmask 64512   ;;  %s145_s1 = inlined_call_operand.vmem [shape: bf16[32,8], index: 1, kind: input, shape index: {}]   ;;  %s146_s0 = inlined_call_operand.vmem [shape: bf16[8,32], index: 0, kind: input, shape index: {}]   ;;  %s147_s2 = inlined_call_operand.vmem [shape: f32[1,8], index: 2, kind: input, shape index: {}]   ;;  %s148_s3 = inlined_call_operand.vmem [shape: f32[8,8], index: 3, kind: output, shape index: {}]  }
   0x1   :  { %96 = vmatprep.subr.bf16.mxu0 %v108_v0  ;;  %v106_v1 = vld [vmem:[%s145_s1] sm:$0xff]   ;;  %100 = vmatprep.mubr.msk.bf16.mxu0 %vm109_vm0, %v108_v0  ;;  %v107_v2 = vld [vmem:[%s145_s1 + $0x8] sm:$0xff]  }
   0x2   :  { %97 = vmatpush3.bf16.msra.mxu0 %v106_v1  ;;  %v15_v3 = vld [vmem:[%s146_s0] sm:$0xf] }
   0x3   :  { %98 = vmatprep.subr.bf16.mxu0 %v108_v0  ;;  %v89_v4 = vld [vmem:[%s147_s2] ss:$0 sm:$0xff] }
   0x6   :  { %99 = vmatpush3.bf16.msra.mxu0 %v107_v2 }
   0x9   :  { %101 = vmatmul.mubr.msk.bf16.vlgmr.msra.gmra.mrb[0].mxu0 %vm39_vm1, %v15_v3 }
  0xdc   :  { %v77_v5 = vpop.f32.mrb[0].mxu0 }
  0xdd   :  { %v78_v6 = vadd.f32 %v89_v4, %v77_v5  ;;  %v102_v7 = vpop.f32.mrb[1].mxu0 }
  0xde   :  { %v80_v8 = vpop.f32.mrb[2].mxu0 }
  0xdf   :  { %84 = vst.msk [vmem:[%s148_s3] sm:$0xff] %vm83_vm2, %v78_v6  ;;  %v103_v9 = vpop.f32.mrb[3].mxu0 }

// kernel: dpt_forward.33
= control target key start
LH: loop header
LB: loop body
LE: loop exit
PB: predicated region body
PF: predicated region fallthrough
CT: control target
= control target key end

     0   :  { %vm28_vm0 = vcmask 1043456   ;;  %v89_v0 = vmov 0.0   ;;  %vm90_vm1 = vmmov 0   ;;  %vm24_vm2 = vcmask 64512   ;;  %s123_s1 = inlined_call_operand.vmem [shape: bf16[8,128], index: 1, kind: input, shape index: {}]   ;;  %s124_s0 = inlined_call_operand.vmem [shape: bf16[8,8], index: 0, kind: input, shape index: {}]   ;;  %s125_s2 = inlined_call_operand.vmem [shape: f32[1,128], index: 2, kind: input, shape index: {}]   ;;  %s126_s3 = inlined_call_operand.vmem [shape: f32[8,128], index: 3, kind: output, shape index: {}]  }
   0x1   :  { %81 = vmatprep.subr.bf16.mxu0 %v89_v0  ;;  %v16_v1 = vld [vmem:[%s123_s1] sm:$0xf]  ;;  %83 = vmatprep.mubr.msk.bf16.mxu0 %vm90_vm1, %v89_v0 }
   0x2   :  { %v30_v2 = vsel %vm28_vm0, %v16_v1, 0  ;;  %v15_v3 = vld [vmem:[%s124_s0] sm:$0xf] }
   0x3   :  { %82 = vmatpush3.bf16.msra.mxu0 %v30_v2  ;;  %v77_v4 = vld [vmem:[%s125_s2] ss:$0 sm:$0xff] }
   0x6   :  { %84 = vmatmul.mubr.msk.bf16.vlgmr.msra.gmra.mrb[0].mxu0 %vm24_vm2, %v15_v3 }
  0xd9   :  { %v66_v5 = vpop.f32.mrb[0].mxu0 }
  0xda   :  { %v67_v6 = vadd.f32 %v77_v4, %v66_v5  ;;  %v85_v7 = vpop.f32.mrb[1].mxu0 }
  0xdb   :  { %v69_v8 = vpop.f32.mrb[2].mxu0 }
  0xdc   :  { %72 = vst [vmem:[%s126_s3] sm:$0xff] %v67_v6  ;;  %v86_v9 = vpop.f32.mrb[3].mxu0 }

// kernel: dpt_forward.34
= control target key start
LH: loop header
LB: loop body
LE: loop exit
PB: predicated region body
PF: predicated region fallthrough
CT: control target
= control target key end

     0   :  { %vm114_vm0 = vcmask 588800   ;;  %vm139_vm1 = vcmask 1043456   ;;  %vm240_vm2 = vcmask 130048   ;;  %s481_s1 = inlined_call_operand.vmem [shape: bf16[72,16], index: 1, kind: input, shape index: {}]   ;;  %s482_s0 = inlined_call_operand.vmem [shape: bf16[128,72], index: 0, kind: input, shape index: {}]   ;;  %s483_s2 = inlined_call_operand.vmem [shape: f32[1,16], index: 2, kind: input, shape index: {}]   ;;  %s484_s3 = inlined_call_operand.vmem [shape: f32[128,16], index: 3, kind: output, shape index: {}]  }
   0x1   :  { %v334_v0 = vld [vmem:[%s481_s1] sm:$0xff]   ;;  %v335_v1 = vld [vmem:[%s481_s1 + $0x8] sm:$0xff]   ;;  %v336_v2 = vld [vmem:[%s481_s1 + $0x10] sm:$0xff]  }
   0x2   :  { %296 = vmatprep.subr.bf16.mxu0 %v334_v0  ;;  %322 = vmatprep.subr.bf16.mxu1 %v334_v0  ;;  %v339_v3 = vld [vmem:[%s482_s0] sm:$0xff]   ;;  %v337_v5 = vld [vmem:[%s481_s1 + $0x18] sm:$0xff]   ;;  %v341_v8 = vld [vmem:[%s482_s0 + $0x8] sm:$0xff]  }
   0x3   :  { %297 = vmatpush3.bf16.msra.mxu0 %v334_v0  ;;  %327 = vmatpush3.bf16.msra.mxu1 %v334_v0  ;;  %v340_v4 = vld [vmem:[%s482_s0 + $0x20] sm:$0xff]   ;;  %v342_v9 = vld [vmem:[%s482_s0 + $0x28] sm:$0xff]   ;;  %v343_v10 = vld [vmem:[%s482_s0 + $0x10] sm:$0xff]  }
   0x4   :  { %298 = vmatprep.subr.bf16.mxu0 %v335_v1  ;;  %323 = vmatprep.subr.bf16.mxu1 %v335_v1  ;;  %v338_v6 = vld [vmem:[%s481_s1 + $0x20] ss:$0 sps:$4 sm:$0xff]   ;;  %v344_v11 = vld [vmem:[%s482_s0 + $0x30] sm:$0xff]   ;;  %v345_v12 = vld [vmem:[%s482_s0 + $0x18] sm:$0xff]  }
   0x5   :  { %306 = vmatprep.mubr.msk.bf16.mxu0 %vm114_vm0, %v339_v3  ;;  %314 = vmatprep.mubr.msk.bf16.mxu1 %vm114_vm0, %v340_v4  ;;  %v141_v7 = vsel %vm139_vm1, %v338_v6, 0  ;;  %v346_v13 = vld [vmem:[%s482_s0 + $0x38] sm:$0xff]   ;;  %v261_v14 = vld [vmem:[%s483_s2] ss:$0 sm:$0xff] }
   0x7   :  { %299 = vmatpush3.bf16.msra.mxu0 %v335_v1  ;;  %328 = vmatpush3.bf16.msra.mxu1 %v335_v1 }
   0x8   :  { %300 = vmatprep.subr.bf16.mxu0 %v336_v2  ;;  %324 = vmatprep.subr.bf16.mxu1 %v336_v2 }
   0xb   :  { %301 = vmatpush3.bf16.msra.mxu0 %v336_v2  ;;  %329 = vmatpush3.bf16.msra.mxu1 %v336_v2 }
   0xc   :  { %302 = vmatprep.subr.bf16.mxu0 %v337_v5  ;;  %325 = vmatprep.subr.bf16.mxu1 %v337_v5 }
   0xf   :  { %303 = vmatpush3.bf16.msra.mxu0 %v337_v5  ;;  %330 = vmatpush3.bf16.msra.mxu1 %v337_v5 }
  0x10   :  { %332 = vmatprep.subr.msk.bf16.mxu0 %vm139_vm1, %v338_v6  ;;  %333 = vmatprep.subr.msk.bf16.mxu1 %vm139_vm1, %v338_v6 }
  0x13   :  { %305 = vmatpush3.bf16.msra.mxu0 %v141_v7  ;;  %331 = vmatpush3.bf16.msra.mxu1 %v141_v7 }
  0x16   :  { %307 = vmatmul.mubr.msk.bf16.vlgmr.msra.gmra.mrb[0].mxu0 %vm114_vm0, %v341_v8  ;;  %315 = vmatmul.mubr.msk.bf16.vlgmr.msra.gmra.mrb[0].mxu1 %vm114_vm0, %v342_v9 }
  0x17   :  { %310 = vmatprep.mubr.msk.bf16.mxu0 %vm114_vm0, %v343_v10  ;;  %318 = vmatprep.mubr.msk.bf16.mxu1 %vm114_vm0, %v344_v11 }
  0x1e   :  { %311 = vmatmul.mubr.msk.bf16.gmra.mrb[4].mxu0 %vm114_vm0, %v345_v12  ;;  %319 = vmatmul.mubr.msk.bf16.gmra.mrb[4].mxu1 %vm114_vm0, %v346_v13 }
  0xe9   :  { %v308_v15 = vpop.f32.mrb[0].mxu0  ;;  %v316_v16 = vpop.f32.mrb[0].mxu1 }
  0xea   :  { %v186_v17 = vadd.f32 %v308_v15, %v261_v14  ;;  %v218_v18 = vadd.f32 %v316_v16, %v261_v14  ;;  %v177_v19 = vpop.f32.mrb[1].mxu0  ;;  %v209_v20 = vpop.f32.mrb[1].mxu1 }
  0xeb   :  { %v178_v21 = vadd.f32 %v261_v14, %v177_v19  ;;  %v210_v22 = vadd.f32 %v261_v14, %v209_v20  ;;  %v309_v23 = vpop.f32.mrb[2].mxu0  ;;  %v317_v24 = vpop.f32.mrb[2].mxu1 }
  0xec   :  { %243 = vst.msk [vmem:[%s484_s3 + $0x10] sm:$0xff] %vm240_vm2, %v186_v17  ;;  %251 = vst.msk [vmem:[%s484_s3 + $0x50] sm:$0xff] %vm240_vm2, %v218_v18  ;;  %v189_v25 = vadd.f32 %v309_v23, %v261_v14  ;;  %v221_v26 = vadd.f32 %v317_v24, %v261_v14  ;;  %v180_v27 = vpop.f32.mrb[3].mxu0  ;;  %v212_v28 = vpop.f32.mrb[3].mxu1 }
  0xed   :  { %241 = vst.msk [vmem:[%s484_s3] sm:$0xff] %vm240_vm2, %v178_v21  ;;  %249 = vst.msk [vmem:[%s484_s3 + $0x40] sm:$0xff] %vm240_vm2, %v210_v22  ;;  %v181_v29 = vadd.f32 %v261_v14, %v180_v27  ;;  %v213_v30 = vadd.f32 %v261_v14, %v212_v28 }
  0xee   :  { %244 = vst.msk [vmem:[%s484_s3 + $0x18] sm:$0xff] %vm240_vm2, %v189_v25  ;;  %252 = vst.msk [vmem:[%s484_s3 + $0x58] sm:$0xff] %vm240_vm2, %v221_v26 }
  0xef   :  { %242 = vst.msk [vmem:[%s484_s3 + $0x8] sm:$0xff] %vm240_vm2, %v181_v29  ;;  %250 = vst.msk [vmem:[%s484_s3 + $0x48] sm:$0xff] %vm240_vm2, %v213_v30 }
  0xf1   :  { %v312_v31 = vpop.f32.mrb[4].mxu0  ;;  %v320_v32 = vpop.f32.mrb[4].mxu1 }
  0xf2   :  { %v202_v33 = vadd.f32 %v312_v31, %v261_v14  ;;  %v234_v34 = vadd.f32 %v320_v32, %v261_v14  ;;  %v193_v35 = vpop.f32.mrb[5].mxu0  ;;  %v225_v36 = vpop.f32.mrb[5].mxu1 }
  0xf3   :  { %v194_v37 = vadd.f32 %v261_v14, %v193_v35  ;;  %v226_v38 = vadd.f32 %v261_v14, %v225_v36  ;;  %v313_v39 = vpop.f32.mrb[6].mxu0  ;;  %v321_v40 = vpop.f32.mrb[6].mxu1 }
  0xf4   :  { %247 = vst.msk [vmem:[%s484_s3 + $0x30] sm:$0xff] %vm240_vm2, %v202_v33  ;;  %255 = vst.msk [vmem:[%s484_s3 + $0x70] sm:$0xff] %vm240_vm2, %v234_v34  ;;  %v205_v41 = vadd.f32 %v313_v39, %v261_v14  ;;  %v237_v42 = vadd.f32 %v321_v40, %v261_v14  ;;  %v196_v43 = vpop.f32.mrb[7].mxu0  ;;  %v228_v44 = vpop.f32.mrb[7].mxu1 }
  0xf5   :  { %245 = vst.msk [vmem:[%s484_s3 + $0x20] sm:$0xff] %vm240_vm2, %v194_v37  ;;  %253 = vst.msk [vmem:[%s484_s3 + $0x60] sm:$0xff] %vm240_vm2, %v226_v38  ;;  %v197_v45 = vadd.f32 %v261_v14, %v196_v43  ;;  %v229_v46 = vadd.f32 %v261_v14, %v228_v44 }
  0xf6   :  { %248 = vst.msk [vmem:[%s484_s3 + $0x38] sm:$0xff] %vm240_vm2, %v205_v41  ;;  %256 = vst.msk [vmem:[%s484_s3 + $0x78] sm:$0xff] %vm240_vm2, %v237_v42 }
  0xf7   :  { %246 = vst.msk [vmem:[%s484_s3 + $0x28] sm:$0xff] %vm240_vm2, %v197_v45  ;;  %254 = vst.msk [vmem:[%s484_s3 + $0x68] sm:$0xff] %vm240_vm2, %v229_v46 }

// kernel: dpt_forward.53
= control target key start
LH: loop header
LB: loop body
LE: loop exit
PB: predicated region body
PF: predicated region fallthrough
CT: control target
= control target key end

     0   :  { %v410_v0 = vmov 0   ;;  %vm182_vm0 = vcmask 130048   ;;  %s581_s1 = inlined_call_operand.vmem [shape: bf16[144,16], index: 1, kind: input, shape index: {}]   ;;  %s582_s0 = inlined_call_operand.vmem [shape: bf16[128,144], index: 0, kind: input, shape index: {}]   ;;  %s583_s2 = inlined_call_operand.vmem [shape: f32[1,16], index: 2, kind: input, shape index: {}]   ;;  %s584_s3 = inlined_call_operand.vmem [shape: f32[128,16], index: 3, kind: output, shape index: {}]  }
   0x1   :  { %207 = vmatprep.subr.bf16.mxu0 %v410_v0  ;;  %358 = vmatprep.subr.bf16.mxu1 %v410_v0  ;;  %v377_v1 = vld [vmem:[%s581_s1] sm:$0xff]   ;;  %v378_v2 = vld [vmem:[%s581_s1 + $0x8] sm:$0xff]   ;;  %v379_v3 = vld [vmem:[%s581_s1 + $0x10] sm:$0xff]  }
   0x2   :  { %208 = vmatpush1.bf16.msra.mxu0 %v377_v1  ;;  %367 = vmatpush1.bf16.msra.mxu1 %v377_v1  ;;  %v380_v4 = vld [vmem:[%s581_s1 + $0x18] sm:$0xff]   ;;  %v388_v5 = vld [vmem:[%s582_s0 + $0x4] ss:$8 sps:$4 sm:$0xff]   ;;  %v383_v9 = vld [vmem:[%s581_s1 + $0x30] sm:$0xff]  }
   0x3   :  { %209 = vmatprep.subr.bf16.mxu0 %v410_v0  ;;  %359 = vmatprep.subr.bf16.mxu1 %v410_v0  ;;  %v391_v6 = vld [vmem:[%s582_s0 + $0x44] ss:$8 sps:$4 sm:$0xff]   ;;  %v384_v10 = vld [vmem:[%s581_s1 + $0x38] sm:$0xff]   ;;  %v386_v12 = vld [vmem:[%s582_s0] ss:$8 sps:$4 sm:$0xff]  }
   0x4   :  { %350 = vmatprep.mubr.msk.bf16.mxu0 %vm182_vm0, %v388_v5  ;;  %354 = vmatprep.mubr.msk.bf16.mxu1 %vm182_vm0, %v391_v6  ;;  %v381_v7 = vld [vmem:[%s581_s1 + $0x20] sm:$0xff]   ;;  %v382_v8 = vld [vmem:[%s581_s1 + $0x28] sm:$0xff]   ;;  %v392_v14 = vld [vmem:[%s582_s0 + $0x14] ss:$8 sps:$4 sm:$0xff]  }
   0x5   :  { %v385_v11 = vld [vmem:[%s581_s1 + $0x40] sm:$0xff]   ;;  %v394_v15 = vld [vmem:[%s582_s0 + $0x54] ss:$8 sps:$4 sm:$0xff]   ;;  %v396_v16 = vld [vmem:[%s582_s0 + $0x10] ss:$8 sps:$4 sm:$0xff]  }
   0x6   :  { %210 = vmatpush1.bf16.msra.mxu0 %v378_v2  ;;  %368 = vmatpush1.bf16.msra.mxu1 %v378_v2  ;;  %v389_v13 = vld [vmem:[%s582_s0 + $0x40] ss:$8 sps:$4 sm:$0xff]   ;;  %v397_v17 = vld [vmem:[%s582_s0 + $0x50] ss:$8 sps:$4 sm:$0xff]   ;;  %v398_v18 = vld [vmem:[%s582_s0 + $0x24] ss:$8 sps:$4 sm:$0xff]  }
   0x7   :  { %211 = vmatprep.subr.bf16.mxu0 %v410_v0  ;;  %360 = vmatprep.subr.bf16.mxu1 %v410_v0  ;;  %v400_v19 = vld [vmem:[%s582_s0 + $0x64] ss:$8 sps:$4 sm:$0xff]   ;;  %v402_v20 = vld [vmem:[%s582_s0 + $0x20] ss:$8 sps:$4 sm:$0xff]   ;;  %v404_v22 = vld [vmem:[%s582_s0 + $0x34] ss:$8 sps:$4 sm:$0xff]  }
   0x8   :  { %v403_v21 = vld [vmem:[%s582_s0 + $0x60] ss:$8 sps:$4 sm:$0xff]   ;;  %v406_v23 = vld [vmem:[%s582_s0 + $0x74] ss:$8 sps:$4 sm:$0xff]   ;;  %v408_v24 = vld [vmem:[%s582_s0 + $0x30] ss:$8 sps:$4 sm:$0xff]  }
   0x9   :  { %v409_v25 = vld [vmem:[%s582_s0 + $0x70] ss:$8 sps:$4 sm:$0xff]   ;;  %v324_v26 = vld [vmem:[%s583_s2] ss:$0 sm:$0xff] }
   0xa   :  { %212 = vmatpush1.bf16.msra.mxu0 %v379_v3  ;;  %369 = vmatpush1.bf16.msra.mxu1 %v379_v3 }
   0xb   :  { %213 = vmatprep.subr.bf16.mxu0 %v410_v0  ;;  %361 = vmatprep.subr.bf16.mxu1 %v410_v0 }
   0xe   :  { %214 = vmatpush1.bf16.msra.mxu0 %v380_v4  ;;  %370 = vmatpush1.bf16.msra.mxu1 %v380_v4 }
   0xf   :  { %215 = vmatprep.subr.bf16.mxu0 %v410_v0  ;;  %362 = vmatprep.subr.bf16.mxu1 %v410_v0 }
  0x12   :  { %216 = vmatpush1.bf16.msra.mxu0 %v381_v7  ;;  %371 = vmatpush1.bf16.msra.mxu1 %v381_v7 }
  0x13   :  { %217 = vmatprep.subr.bf16.mxu0 %v410_v0  ;;  %363 = vmatprep.subr.bf16.mxu1 %v410_v0 }
  0x16   :  { %218 = vmatpush1.bf16.msra.mxu0 %v382_v8  ;;  %372 = vmatpush1.bf16.msra.mxu1 %v382_v8 }
  0x17   :  { %219 = vmatprep.subr.bf16.mxu0 %v410_v0  ;;  %364 = vmatprep.subr.bf16.mxu1 %v410_v0 }
  0x1a   :  { %220 = vmatpush1.bf16.msra.mxu0 %v383_v9  ;;  %373 = vmatpush1.bf16.msra.mxu1 %v383_v9 }
  0x1b   :  { %221 = vmatprep.subr.bf16.mxu0 %v410_v0  ;;  %365 = vmatprep.subr.bf16.mxu1 %v410_v0 }
  0x1e   :  { %222 = vmatpush1.bf16.msra.mxu0 %v384_v10  ;;  %374 = vmatpush1.bf16.msra.mxu1 %v384_v10 }
  0x1f   :  { %223 = vmatprep.subr.bf16.mxu0 %v410_v0  ;;  %366 = vmatprep.subr.bf16.mxu1 %v410_v0 }
  0x22   :  { %224 = vmatpush1.bf16.msra.mxu0 %v385_v11  ;;  %375 = vmatpush1.bf16.msra.mxu1 %v385_v11 }
  0x25   :  { %240 = vmatmul.mubr.bf16.vlgmr.msra.gmra.mrb[0].mxu0 %v386_v12  ;;  %272 = vmatmul.mubr.bf16.vlgmr.msra.gmra.mrb[0].mxu1 %v389_v13 }
  0x26   :  { %351 = vmatprep.mubr.msk.bf16.mxu0 %vm182_vm0, %v392_v14  ;;  %355 = vmatprep.mubr.msk.bf16.mxu1 %vm182_vm0, %v394_v15 }
  0x2d   :  { %248 = vmatmul.mubr.bf16.gmra.mrb[4].mxu0 %v396_v16  ;;  %280 = vmatmul.mubr.bf16.gmra.mrb[4].mxu1 %v397_v17 }
  0x2e   :  { %352 = vmatprep.mubr.msk.bf16.mxu0 %vm182_vm0, %v398_v18  ;;  %356 = vmatprep.mubr.msk.bf16.mxu1 %vm182_vm0, %v400_v19 }
  0x35   :  { %256 = vmatmul.mubr.bf16.gmra.mrb[8].mxu0 %v402_v20  ;;  %288 = vmatmul.mubr.bf16.gmra.mrb[8].mxu1 %v403_v21 }
  0x36   :  { %353 = vmatprep.mubr.msk.bf16.mxu0 %vm182_vm0, %v404_v22  ;;  %357 = vmatprep.mubr.msk.bf16.mxu1 %vm182_vm0, %v406_v23 }
  0x3d   :  { %264 = vmatmul.mubr.bf16.gmra.mrb[12].mxu0 %v408_v24  ;;  %296 = vmatmul.mubr.bf16.gmra.mrb[12].mxu1 %v409_v25 }
  0xf8   :  { %v241_v27 = vpop.f32.mrb[0].mxu0  ;;  %v273_v28 = vpop.f32.mrb[0].mxu1 }
  0xf9   :  { %v242_v29 = vadd.f32 %v324_v26, %v241_v27  ;;  %v274_v30 = vadd.f32 %v324_v26, %v273_v28  ;;  %v243_v31 = vpop.f32.mrb[1].mxu0  ;;  %v275_v32 = vpop.f32.mrb[1].mxu1 }
  0xfa   :  { %v244_v33 = vpop.f32.mrb[2].mxu0  ;;  %v276_v34 = vpop.f32.mrb[2].mxu1 }
  0xfb   :  { %304 = vst.msk [vmem:[%s584_s3] sm:$0xff] %vm182_vm0, %v242_v29  ;;  %312 = vst.msk [vmem:[%s584_s3 + $0x40] sm:$0xff] %vm182_vm0, %v274_v30  ;;  %v245_v35 = vadd.f32 %v324_v26, %v244_v33  ;;  %v277_v36 = vadd.f32 %v324_v26, %v276_v34  ;;  %v246_v37 = vpop.f32.mrb[3].mxu0  ;;  %v278_v38 = vpop.f32.mrb[3].mxu1 }
  0xfd   :  { %305 = vst.msk [vmem:[%s584_s3 + $0x8] sm:$0xff] %vm182_vm0, %v245_v35  ;;  %313 = vst.msk [vmem:[%s584_s3 + $0x48] sm:$0xff] %vm182_vm0, %v277_v36 }
 0x100   :  { %v249_v39 = vpop.f32.mrb[4].mxu0  ;;  %v281_v40 = vpop.f32.mrb[4].mxu1 }
 0x101   :  { %v250_v41 = vadd.f32 %v324_v26, %v249_v39  ;;  %v282_v42 = vadd.f32 %v324_v26, %v281_v40  ;;  %v251_v43 = vpop.f32.mrb[5].mxu0  ;;  %v283_v44 = vpop.f32.mrb[5].mxu1 }
 0x102   :  { %v252_v45 = vpop.f32.mrb[6].mxu0  ;;  %v284_v46 = vpop.f32.mrb[6].mxu1 }
 0x103   :  { %306 = vst.msk [vmem:[%s584_s3 + $0x10] sm:$0xff] %vm182_vm0, %v250_v41  ;;  %314 = vst.msk [vmem:[%s584_s3 + $0x50] sm:$0xff] %vm182_vm0, %v282_v42  ;;  %v253_v47 = vadd.f32 %v324_v26, %v252_v45  ;;  %v285_v48 = vadd.f32 %v324_v26, %v284_v46  ;;  %v254_v49 = vpop.f32.mrb[7].mxu0  ;;  %v286_v50 = vpop.f32.mrb[7].mxu1 }
 0x105   :  { %307 = vst.msk [vmem:[%s584_s3 + $0x18] sm:$0xff] %vm182_vm0, %v253_v47  ;;  %315 = vst.msk [vmem:[%s584_s3 + $0x58] sm:$0xff] %vm182_vm0, %v285_v48 }
 0x108   :  { %v257_v51 = vpop.f32.mrb[8].mxu0  ;;  %v289_v52 = vpop.f32.mrb[8].mxu1 }
 0x109   :  { %v258_v53 = vadd.f32 %v324_v26, %v257_v51  ;;  %v290_v54 = vadd.f32 %v324_v26, %v289_v52  ;;  %v259_v55 = vpop.f32.mrb[9].mxu0  ;;  %v291_v56 = vpop.f32.mrb[9].mxu1 }
 0x10a   :  { %v260_v57 = vpop.f32.mrb[10].mxu0  ;;  %v292_v58 = vpop.f32.mrb[10].mxu1 }
 0x10b   :  { %308 = vst.msk [vmem:[%s584_s3 + $0x20] sm:$0xff] %vm182_vm0, %v258_v53  ;;  %316 = vst.msk [vmem:[%s584_s3 + $0x60] sm:$0xff] %vm182_vm0, %v290_v54  ;;  %v261_v59 = vadd.f32 %v324_v26, %v260_v57  ;;  %v293_v60 = vadd.f32 %v324_v26, %v292_v58  ;;  %v262_v61 = vpop.f32.mrb[11].mxu0  ;;  %v294_v62 = vpop.f32.mrb[11].mxu1 }
 0x10d   :  { %309 = vst.msk [vmem:[%s584_s3 + $0x28] sm:$0xff] %vm182_vm0, %v261_v59  ;;  %317 = vst.msk [vmem:[%s584_s3 + $0x68] sm:$0xff] %vm182_vm0, %v293_v60 }
 0x110   :  { %v265_v63 = vpop.f32.mrb[12].mxu0  ;;  %v297_v0 = vpop.f32.mrb[12].mxu1 }
 0x111   :  { %v266_v1 = vadd.f32 %v324_v26, %v265_v63  ;;  %v298_v2 = vadd.f32 %v324_v26, %v297_v0  ;;  %v267_v3 = vpop.f32.mrb[13].mxu0  ;;  %v299_v4 = vpop.f32.mrb[13].mxu1 }
 0x112   :  { %v268_v5 = vpop.f32.mrb[14].mxu0  ;;  %v300_v6 = vpop.f32.mrb[14].mxu1 }
 0x113   :  { %310 = vst.msk [vmem:[%s584_s3 + $0x30] sm:$0xff] %vm182_vm0, %v266_v1  ;;  %318 = vst.msk [vmem:[%s584_s3 + $0x70] sm:$0xff] %vm182_vm0, %v298_v2  ;;  %v269_v7 = vadd.f32 %v324_v26, %v268_v5  ;;  %v301_v8 = vadd.f32 %v324_v26, %v300_v6  ;;  %v270_v9 = vpop.f32.mrb[15].mxu0  ;;  %v302_v10 = vpop.f32.mrb[15].mxu1 }
 0x115   :  { %311 = vst.msk [vmem:[%s584_s3 + $0x38] sm:$0xff] %vm182_vm0, %v269_v7  ;;  %319 = vst.msk [vmem:[%s584_s3 + $0x78] sm:$0xff] %vm182_vm0, %v301_v8 }

// kernel: dpt_forward.57
= control target key start
LH: loop header
LB: loop body
LE: loop exit
PB: predicated region body
PF: predicated region fallthrough
CT: control target
= control target key end

     0   :  { %v1131_v0 = vmov 0   ;;  %vm446_vm0 = vcmask 130048   ;;  %vm832_vm1 = vcmask 64512   ;;  %s1728_s1 = inlined_call_operand.vmem [shape: bf16[144,8], index: 1, kind: input, shape index: {}]   ;;  %s1729_s0 = inlined_call_operand.vmem [shape: bf16[512,144], index: 0, kind: input, shape index: {}]   ;;  %s1730_s2 = inlined_call_operand.vmem [shape: f32[1,8], index: 2, kind: input, shape index: {}]   ;;  %s1731_s3 = inlined_call_operand.vmem [shape: f32[512,8], index: 3, kind: output, shape index: {}]  }
   0x1   :  { %543 = vmatprep.subr.bf16.mxu0 %v1131_v0  ;;  %1007 = vmatprep.subr.bf16.mxu1 %v1131_v0  ;;  %v1026_v1 = vld [vmem:[%s1728_s1] sm:$0xff]   ;;  %v1027_v2 = vld [vmem:[%s1728_s1 + $0x8] sm:$0xff]   ;;  %v1028_v3 = vld [vmem:[%s1728_s1 + $0x10] sm:$0xff]  }
   0x2   :  { %544 = vmatpush1.bf16.msra.mxu0 %v1026_v1  ;;  %1016 = vmatpush1.bf16.msra.mxu1 %v1026_v1  ;;  %v1029_v4 = vld [vmem:[%s1728_s1 + $0x18] sm:$0xff]   ;;  %v1037_v5 = vld [vmem:[%s1729_s0 + $0x4] ss:$8 sps:$4 sm:$0xff]   ;;  %v1032_v9 = vld [vmem:[%s1728_s1 + $0x30] sm:$0xff]  }
   0x3   :  { %545 = vmatprep.subr.bf16.mxu0 %v1131_v0  ;;  %1008 = vmatprep.subr.bf16.mxu1 %v1131_v0  ;;  %v1040_v6 = vld [vmem:[%s1729_s0 + $0x104] ss:$8 sps:$4 sm:$0xff]   ;;  %v1033_v10 = vld [vmem:[%s1728_s1 + $0x38] sm:$0xff]   ;;  %v1035_v12 = vld [vmem:[%s1729_s0] ss:$8 sps:$4 sm:$0xff]  }
   0x4   :  { %975 = vmatprep.mubr.msk.bf16.mxu0 %vm446_vm0, %v1037_v5  ;;  %991 = vmatprep.mubr.msk.bf16.mxu1 %vm446_vm0, %v1040_v6  ;;  %v1030_v7 = vld [vmem:[%s1728_s1 + $0x20] sm:$0xff]   ;;  %v1031_v8 = vld [vmem:[%s1728_s1 + $0x28] sm:$0xff]   ;;  %v1041_v14 = vld [vmem:[%s1729_s0 + $0x14] ss:$8 sps:$4 sm:$0xff]  }
   0x5   :  { %v1034_v11 = vld [vmem:[%s1728_s1 + $0x40] sm:$0xff]   ;;  %v1043_v15 = vld [vmem:[%s1729_s0 + $0x114] ss:$8 sps:$4 sm:$0xff]   ;;  %v1045_v16 = vld [vmem:[%s1729_s0 + $0x10] ss:$8 sps:$4 sm:$0xff]  }
   0x6   :  { %546 = vmatpush1.bf16.msra.mxu0 %v1027_v2  ;;  %1017 = vmatpush1.bf16.msra.mxu1 %v1027_v2  ;;  %v1038_v13 = vld [vmem:[%s1729_s0 + $0x100] ss:$8 sps:$4 sm:$0xff]   ;;  %v1046_v17 = vld [vmem:[%s1729_s0 + $0x110] ss:$8 sps:$4 sm:$0xff]   ;;  %v1047_v18 = vld [vmem:[%s1729_s0 + $0x24] ss:$8 sps:$4 sm:$0xff]  }
   0x7   :  { %547 = vmatprep.subr.bf16.mxu0 %v1131_v0  ;;  %1009 = vmatprep.subr.bf16.mxu1 %v1131_v0  ;;  %v1049_v19 = vld [vmem:[%s1729_s0 + $0x124] ss:$8 sps:$4 sm:$0xff]   ;;  %v1051_v20 = vld [vmem:[%s1729_s0 + $0x20] ss:$8 sps:$4 sm:$0xff]   ;;  %v1053_v22 = vld [vmem:[%s1729_s0 + $0x34] ss:$8 sps:$4 sm:$0xff]  }
   0x8   :  { %v1052_v21 = vld [vmem:[%s1729_s0 + $0x120] ss:$8 sps:$4 sm:$0xff]   ;;  %v1055_v23 = vld [vmem:[%s1729_s0 + $0x134] ss:$8 sps:$4 sm:$0xff]   ;;  %v1057_v24 = vld [vmem:[%s1729_s0 + $0x30] ss:$8 sps:$4 sm:$0xff]  }
   0x9   :  { %v1058_v25 = vld [vmem:[%s1729_s0 + $0x130] ss:$8 sps:$4 sm:$0xff]   ;;  %v1059_v26 = vld [vmem:[%s1729_s0 + $0x44] ss:$8 sps:$4 sm:$0xff]   ;;  %v1063_v28 = vld [vmem:[%s1729_s0 + $0x40] ss:$8 sps:$4 sm:$0xff]  }
   0xa   :  { %548 = vmatpush1.bf16.msra.mxu0 %v1028_v3  ;;  %1018 = vmatpush1.bf16.msra.mxu1 %v1028_v3  ;;  %v1061_v27 = vld [vmem:[%s1729_s0 + $0x144] ss:$8 sps:$4 sm:$0xff]   ;;  %v1064_v29 = vld [vmem:[%s1729_s0 + $0x140] ss:$8 sps:$4 sm:$0xff]   ;;  %v1065_v30 = vld [vmem:[%s1729_s0 + $0x54] ss:$8 sps:$4 sm:$0xff]  }
   0xb   :  { %549 = vmatprep.subr.bf16.mxu0 %v1131_v0  ;;  %1010 = vmatprep.subr.bf16.mxu1 %v1131_v0  ;;  %v1067_v31 = vld [vmem:[%s1729_s0 + $0x154] ss:$8 sps:$4 sm:$0xff]   ;;  %v1069_v32 = vld [vmem:[%s1729_s0 + $0x50] ss:$8 sps:$4 sm:$0xff]   ;;  %v1071_v34 = vld [vmem:[%s1729_s0 + $0x64] ss:$8 sps:$4 sm:$0xff]  }
   0xc   :  { %v1070_v33 = vld [vmem:[%s1729_s0 + $0x150] ss:$8 sps:$4 sm:$0xff]   ;;  %v1073_v35 = vld [vmem:[%s1729_s0 + $0x164] ss:$8 sps:$4 sm:$0xff]   ;;  %v1075_v36 = vld [vmem:[%s1729_s0 + $0x60] ss:$8 sps:$4 sm:$0xff]  }
   0xd   :  { %v1076_v37 = vld [vmem:[%s1729_s0 + $0x160] ss:$8 sps:$4 sm:$0xff]   ;;  %v1077_v38 = vld [vmem:[%s1729_s0 + $0x74] ss:$8 sps:$4 sm:$0xff]   ;;  %v1081_v40 = vld [vmem:[%s1729_s0 + $0x70] ss:$8 sps:$4 sm:$0xff]  }
   0xe   :  { %550 = vmatpush1.bf16.msra.mxu0 %v1029_v4  ;;  %1019 = vmatpush1.bf16.msra.mxu1 %v1029_v4  ;;  %v1079_v39 = vld [vmem:[%s1729_s0 + $0x174] ss:$8 sps:$4 sm:$0xff]   ;;  %v1082_v41 = vld [vmem:[%s1729_s0 + $0x170] ss:$8 sps:$4 sm:$0xff]   ;;  %v1083_v42 = vld [vmem:[%s1729_s0 + $0x84] ss:$8 sps:$4 sm:$0xff]  }
   0xf   :  { %551 = vmatprep.subr.bf16.mxu0 %v1131_v0  ;;  %1011 = vmatprep.subr.bf16.mxu1 %v1131_v0  ;;  %v1085_v43 = vld [vmem:[%s1729_s0 + $0x184] ss:$8 sps:$4 sm:$0xff]   ;;  %v1087_v44 = vld [vmem:[%s1729_s0 + $0x80] ss:$8 sps:$4 sm:$0xff]   ;;  %v1089_v46 = vld [vmem:[%s1729_s0 + $0x94] ss:$8 sps:$4 sm:$0xff]  }
  0x10   :  { %v1088_v45 = vld [vmem:[%s1729_s0 + $0x180] ss:$8 sps:$4 sm:$0xff]   ;;  %v1091_v47 = vld [vmem:[%s1729_s0 + $0x194] ss:$8 sps:$4 sm:$0xff]   ;;  %v1093_v48 = vld [vmem:[%s1729_s0 + $0x90] ss:$8 sps:$4 sm:$0xff]  }
  0x11   :  { %v1094_v49 = vld [vmem:[%s1729_s0 + $0x190] ss:$8 sps:$4 sm:$0xff]   ;;  %v1095_v50 = vld [vmem:[%s1729_s0 + $0xa4] ss:$8 sps:$4 sm:$0xff]   ;;  %v1099_v52 = vld [vmem:[%s1729_s0 + $0xa0] ss:$8 sps:$4 sm:$0xff]  }
  0x12   :  { %552 = vmatpush1.bf16.msra.mxu0 %v1030_v7  ;;  %1020 = vmatpush1.bf16.msra.mxu1 %v1030_v7  ;;  %v1097_v51 = vld [vmem:[%s1729_s0 + $0x1a4] ss:$8 sps:$4 sm:$0xff]   ;;  %v1100_v53 = vld [vmem:[%s1729_s0 + $0x1a0] ss:$8 sps:$4 sm:$0xff]   ;;  %v1101_v54 = vld [vmem:[%s1729_s0 + $0xb4] ss:$8 sps:$4 sm:$0xff]  }
  0x13   :  { %553 = vmatprep.subr.bf16.mxu0 %v1131_v0  ;;  %1012 = vmatprep.subr.bf16.mxu1 %v1131_v0  ;;  %v1103_v55 = vld [vmem:[%s1729_s0 + $0x1b4] ss:$8 sps:$4 sm:$0xff]   ;;  %v1105_v56 = vld [vmem:[%s1729_s0 + $0xb0] ss:$8 sps:$4 sm:$0xff]   ;;  %v1107_v58 = vld [vmem:[%s1729_s0 + $0xc4] ss:$8 sps:$4 sm:$0xff]  }
  0x14   :  { %v1106_v57 = vld [vmem:[%s1729_s0 + $0x1b0] ss:$8 sps:$4 sm:$0xff]   ;;  %v1109_v59 = vld [vmem:[%s1729_s0 + $0x1c4] ss:$8 sps:$4 sm:$0xff]   ;;  %v1111_v60 = vld [vmem:[%s1729_s0 + $0xc0] ss:$8 sps:$4 sm:$0xff]  }
  0x15   :  { %v1112_v61 = vld [vmem:[%s1729_s0 + $0x1c0] ss:$8 sps:$4 sm:$0xff]   ;;  %v1113_v62 = vld [vmem:[%s1729_s0 + $0xd4] ss:$8 sps:$4 sm:$0xff]   ;;  %v1118_v1 = vld [vmem:[%s1729_s0 + $0x1d0] ss:$8 sps:$4 sm:$0xff]  }
  0x16   :  { %554 = vmatpush1.bf16.msra.mxu0 %v1031_v8  ;;  %1021 = vmatpush1.bf16.msra.mxu1 %v1031_v8  ;;  %v1115_v63 = vld [vmem:[%s1729_s0 + $0x1d4] ss:$8 sps:$4 sm:$0xff]   ;;  %v1119_v2 = vld [vmem:[%s1729_s0 + $0xe4] ss:$8 sps:$4 sm:$0xff]   ;;  %v1123_v4 = vld [vmem:[%s1729_s0 + $0xe0] ss:$8 sps:$4 sm:$0xff]  }
  0x17   :  { %555 = vmatprep.subr.bf16.mxu0 %v1131_v0  ;;  %1013 = vmatprep.subr.bf16.mxu1 %v1131_v0  ;;  %v1121_v3 = vld [vmem:[%s1729_s0 + $0x1e4] ss:$8 sps:$4 sm:$0xff]   ;;  %v1124_v5 = vld [vmem:[%s1729_s0 + $0x1e0] ss:$8 sps:$4 sm:$0xff]   ;;  %v1125_v6 = vld [vmem:[%s1729_s0 + $0xf4] ss:$8 sps:$4 sm:$0xff]  }
  0x18   :  { %v1127_v7 = vld [vmem:[%s1729_s0 + $0x1f4] ss:$8 sps:$4 sm:$0xff]   ;;  %v1129_v8 = vld [vmem:[%s1729_s0 + $0xf0] ss:$8 sps:$4 sm:$0xff]  }
  0x1a   :  { %556 = vmatpush1.bf16.msra.mxu0 %v1032_v9  ;;  %1022 = vmatpush1.bf16.msra.mxu1 %v1032_v9  ;;  %v1130_v9 = vld [vmem:[%s1729_s0 + $0x1f0] ss:$8 sps:$4 sm:$0xff]  }
  0x1b   :  { %557 = vmatprep.subr.bf16.mxu0 %v1131_v0  ;;  %1014 = vmatprep.subr.bf16.mxu1 %v1131_v0 }
  0x1e   :  { %558 = vmatpush1.bf16.msra.mxu0 %v1033_v10  ;;  %1023 = vmatpush1.bf16.msra.mxu1 %v1033_v10  ;;  %v1406_v10 = vld [vmem:[%s1730_s2] ss:$0 sm:$0xff] }
  0x1f   :  { %559 = vmatprep.subr.bf16.mxu0 %v1131_v0  ;;  %1015 = vmatprep.subr.bf16.mxu1 %v1131_v0  ;;  %v1117_v0 = vld [vmem:[%s1729_s0 + $0xd0] ss:$8 sps:$4 sm:$0xff]  }
  0x22   :  { %560 = vmatpush1.bf16.msra.mxu0 %v1034_v11  ;;  %1024 = vmatpush1.bf16.msra.mxu1 %v1034_v11 }
  0x25   :  { %576 = vmatmul.mubr.bf16.vlgmr.msra.gmra.mrb[0].mxu0 %v1035_v12  ;;  %704 = vmatmul.mubr.bf16.vlgmr.msra.gmra.mrb[0].mxu1 %v1038_v13 }
  0x26   :  { %976 = vmatprep.mubr.msk.bf16.mxu0 %vm446_vm0, %v1041_v14  ;;  %992 = vmatprep.mubr.msk.bf16.mxu1 %vm446_vm0, %v1043_v15 }
  0x2d   :  { %584 = vmatmul.mubr.bf16.gmra.mrb[4].mxu0 %v1045_v16  ;;  %712 = vmatmul.mubr.bf16.gmra.mrb[4].mxu1 %v1046_v17 }
  0x2e   :  { %977 = vmatprep.mubr.msk.bf16.mxu0 %vm446_vm0, %v1047_v18  ;;  %993 = vmatprep.mubr.msk.bf16.mxu1 %vm446_vm0, %v1049_v19 }
  0x35   :  { %592 = vmatmul.mubr.bf16.gmra.mrb[8].mxu0 %v1051_v20  ;;  %720 = vmatmul.mubr.bf16.gmra.mrb[8].mxu1 %v1052_v21 }
  0x36   :  { %978 = vmatprep.mubr.msk.bf16.mxu0 %vm446_vm0, %v1053_v22  ;;  %994 = vmatprep.mubr.msk.bf16.mxu1 %vm446_vm0, %v1055_v23 }
  0x3d   :  { %600 = vmatmul.mubr.bf16.gmra.mrb[12].mxu0 %v1057_v24  ;;  %728 = vmatmul.mubr.bf16.gmra.mrb[12].mxu1 %v1058_v25 }
  0x3e   :  { %979 = vmatprep.mubr.msk.bf16.mxu0 %vm446_vm0, %v1059_v26  ;;  %995 = vmatprep.mubr.msk.bf16.mxu1 %vm446_vm0, %v1061_v27 }
  0x45   :  { %608 = vmatmul.mubr.bf16.gmra.mrb[16].mxu0 %v1063_v28  ;;  %736 = vmatmul.mubr.bf16.gmra.mrb[16].mxu1 %v1064_v29 }
  0x46   :  { %980 = vmatprep.mubr.msk.bf16.mxu0 %vm446_vm0, %v1065_v30  ;;  %996 = vmatprep.mubr.msk.bf16.mxu1 %vm446_vm0, %v1067_v31 }
  0x4d   :  { %616 = vmatmul.mubr.bf16.gmra.mrb[20].mxu0 %v1069_v32  ;;  %744 = vmatmul.mubr.bf16.gmra.mrb[20].mxu1 %v1070_v33 }
  0x4e   :  { %981 = vmatprep.mubr.msk.bf16.mxu0 %vm446_vm0, %v1071_v34  ;;  %997 = vmatprep.mubr.msk.bf16.mxu1 %vm446_vm0, %v1073_v35 }
  0x55   :  { %624 = vmatmul.mubr.bf16.gmra.mrb[24].mxu0 %v1075_v36  ;;  %752 = vmatmul.mubr.bf16.gmra.mrb[24].mxu1 %v1076_v37 }
  0x56   :  { %982 = vmatprep.mubr.msk.bf16.mxu0 %vm446_vm0, %v1077_v38  ;;  %998 = vmatprep.mubr.msk.bf16.mxu1 %vm446_vm0, %v1079_v39 }
  0x5d   :  { %632 = vmatmul.mubr.bf16.gmra.mrb[28].mxu0 %v1081_v40  ;;  %760 = vmatmul.mubr.bf16.gmra.mrb[28].mxu1 %v1082_v41 }
  0x5e   :  { %983 = vmatprep.mubr.msk.bf16.mxu0 %vm446_vm0, %v1083_v42  ;;  %999 = vmatprep.mubr.msk.bf16.mxu1 %vm446_vm0, %v1085_v43 }
  0x65   :  { %640 = vmatmul.mubr.bf16.gmra.mrb[32].mxu0 %v1087_v44  ;;  %768 = vmatmul.mubr.bf16.gmra.mrb[32].mxu1 %v1088_v45 }
  0x66   :  { %984 = vmatprep.mubr.msk.bf16.mxu0 %vm446_vm0, %v1089_v46  ;;  %1000 = vmatprep.mubr.msk.bf16.mxu1 %vm446_vm0, %v1091_v47 }
  0x6d   :  { %648 = vmatmul.mubr.bf16.gmra.mrb[36].mxu0 %v1093_v48  ;;  %776 = vmatmul.mubr.bf16.gmra.mrb[36].mxu1 %v1094_v49 }
  0x6e   :  { %985 = vmatprep.mubr.msk.bf16.mxu0 %vm446_vm0, %v1095_v50  ;;  %1001 = vmatprep.mubr.msk.bf16.mxu1 %vm446_vm0, %v1097_v51 }
  0x75   :  { %656 = vmatmul.mubr.bf16.gmra.mrb[40].mxu0 %v1099_v52  ;;  %784 = vmatmul.mubr.bf16.gmra.mrb[40].mxu1 %v1100_v53 }
  0x76   :  { %986 = vmatprep.mubr.msk.bf16.mxu0 %vm446_vm0, %v1101_v54  ;;  %1002 = vmatprep.mubr.msk.bf16.mxu1 %vm446_vm0, %v1103_v55 }
  0x7d   :  { %664 = vmatmul.mubr.bf16.gmra.mrb[44].mxu0 %v1105_v56  ;;  %792 = vmatmul.mubr.bf16.gmra.mrb[44].mxu1 %v1106_v57 }
  0x7e   :  { %987 = vmatprep.mubr.msk.bf16.mxu0 %vm446_vm0, %v1107_v58  ;;  %1003 = vmatprep.mubr.msk.bf16.mxu1 %vm446_vm0, %v1109_v59 }
  0x85   :  { %672 = vmatmul.mubr.bf16.gmra.mrb[48].mxu0 %v1111_v60  ;;  %800 = vmatmul.mubr.bf16.gmra.mrb[48].mxu1 %v1112_v61 }
  0x86   :  { %988 = vmatprep.mubr.msk.bf16.mxu0 %vm446_vm0, %v1113_v62  ;;  %1004 = vmatprep.mubr.msk.bf16.mxu1 %vm446_vm0, %v1115_v63 }
  0x8d   :  { %680 = vmatmul.mubr.bf16.gmra.mrb[52].mxu0 %v1117_v0  ;;  %808 = vmatmul.mubr.bf16.gmra.mrb[52].mxu1 %v1118_v1 }
  0x8e   :  { %989 = vmatprep.mubr.msk.bf16.mxu0 %vm446_vm0, %v1119_v2  ;;  %1005 = vmatprep.mubr.msk.bf16.mxu1 %vm446_vm0, %v1121_v3 }
  0x95   :  { %688 = vmatmul.mubr.bf16.gmra.mrb[56].mxu0 %v1123_v4  ;;  %816 = vmatmul.mubr.bf16.gmra.mrb[56].mxu1 %v1124_v5 }
  0x96   :  { %990 = vmatprep.mubr.msk.bf16.mxu0 %vm446_vm0, %v1125_v6  ;;  %1006 = vmatprep.mubr.msk.bf16.mxu1 %vm446_vm0, %v1127_v7 }
  0x9d   :  { %696 = vmatmul.mubr.bf16.gmra.mrb[60].mxu0 %v1129_v8  ;;  %824 = vmatmul.mubr.bf16.gmra.mrb[60].mxu1 %v1130_v9 }
  0xf8   :  { %v577_v11 = vpop.f32.mrb[0].mxu0  ;;  %v705_v12 = vpop.f32.mrb[0].mxu1 }
  0xf9   :  { %v578_v13 = vadd.f32 %v1406_v10, %v577_v11  ;;  %v706_v14 = vadd.f32 %v1406_v10, %v705_v12  ;;  %v579_v15 = vpop.f32.mrb[1].mxu0  ;;  %v707_v16 = vpop.f32.mrb[1].mxu1 }
  0xfa   :  { %v580_v17 = vpop.f32.mrb[2].mxu0  ;;  %v708_v18 = vpop.f32.mrb[2].mxu1 }
  0xfb   :  { %833 = vst.msk [vmem:[%s1731_s3] sm:$0xff] %vm832_vm1, %v578_v13  ;;  %865 = vst.msk [vmem:[%s1731_s3 + $0x100] sm:$0xff] %vm832_vm1, %v706_v14  ;;  %v581_v19 = vadd.f32 %v1406_v10, %v580_v17  ;;  %v709_v20 = vadd.f32 %v1406_v10, %v708_v18  ;;  %v582_v21 = vpop.f32.mrb[3].mxu0  ;;  %v710_v22 = vpop.f32.mrb[3].mxu1 }
  0xfd   :  { %834 = vst.msk [vmem:[%s1731_s3 + $0x8] sm:$0xff] %vm832_vm1, %v581_v19  ;;  %866 = vst.msk [vmem:[%s1731_s3 + $0x108] sm:$0xff] %vm832_vm1, %v709_v20 }
 0x100   :  { %v585_v23 = vpop.f32.mrb[4].mxu0  ;;  %v713_v24 = vpop.f32.mrb[4].mxu1 }
 0x101   :  { %v586_v25 = vadd.f32 %v1406_v10, %v585_v23  ;;  %v714_v26 = vadd.f32 %v1406_v10, %v713_v24  ;;  %v587_v27 = vpop.f32.mrb[5].mxu0  ;;  %v715_v28 = vpop.f32.mrb[5].mxu1 }
 0x102   :  { %v588_v29 = vpop.f32.mrb[6].mxu0  ;;  %v716_v30 = vpop.f32.mrb[6].mxu1 }
 0x103   :  { %835 = vst.msk [vmem:[%s1731_s3 + $0x10] sm:$0xff] %vm832_vm1, %v586_v25  ;;  %867 = vst.msk [vmem:[%s1731_s3 + $0x110] sm:$0xff] %vm832_vm1, %v714_v26  ;;  %v589_v31 = vadd.f32 %v1406_v10, %v588_v29  ;;  %v717_v32 = vadd.f32 %v1406_v10, %v716_v30  ;;  %v590_v33 = vpop.f32.mrb[7].mxu0  ;;  %v718_v34 = vpop.f32.mrb[7].mxu1 }
 0x105   :  { %836 = vst.msk [vmem:[%s1731_s3 + $0x18] sm:$0xff] %vm832_vm1, %v589_v31  ;;  %868 = vst.msk [vmem:[%s1731_s3 + $0x118] sm:$0xff] %vm832_vm1, %v717_v32 }
 0x108   :  { %v593_v35 = vpop.f32.mrb[8].mxu0  ;;  %v721_v36 = vpop.f32.mrb[8].mxu1 }
 0x109   :  { %v594_v37 = vadd.f32 %v1406_v10, %v593_v35  ;;  %v722_v38 = vadd.f32 %v1406_v10, %v721_v36  ;;  %v595_v39 = vpop.f32.mrb[9].mxu0  ;;  %v723_v40 = vpop.f32.mrb[9].mxu1 }
 0x10a   :  { %v596_v41 = vpop.f32.mrb[10].mxu0  ;;  %v724_v42 = vpop.f32.mrb[10].mxu1 }
 0x10b   :  { %837 = vst.msk [vmem:[%s1731_s3 + $0x20] sm:$0xff] %vm832_vm1, %v594_v37  ;;  %869 = vst.msk [vmem:[%s1731_s3 + $0x120] sm:$0xff] %vm832_vm1, %v722_v38  ;;  %v597_v43 = vadd.f32 %v1406_v10, %v596_v41  ;;  %v725_v44 = vadd.f32 %v1406_v10, %v724_v42  ;;  %v598_v45 = vpop.f32.mrb[11].mxu0  ;;  %v726_v46 = vpop.f32.mrb[11].mxu1 }
 0x10d   :  { %838 = vst.msk [vmem:[%s1731_s3 + $0x28] sm:$0xff] %vm832_vm1, %v597_v43  ;;  %870 = vst.msk [vmem:[%s1731_s3 + $0x128] sm:$0xff] %vm832_vm1, %v725_v44 }
 0x110   :  { %v601_v47 = vpop.f32.mrb[12].mxu0  ;;  %v729_v48 = vpop.f32.mrb[12].mxu1 }
 0x111   :  { %v602_v49 = vadd.f32 %v1406_v10, %v601_v47  ;;  %v730_v50 = vadd.f32 %v1406_v10, %v729_v48  ;;  %v603_v51 = vpop.f32.mrb[13].mxu0  ;;  %v731_v52 = vpop.f32.mrb[13].mxu1 }
 0x112   :  { %v604_v53 = vpop.f32.mrb[14].mxu0  ;;  %v732_v54 = vpop.f32.mrb[14].mxu1 }
 0x113   :  { %839 = vst.msk [vmem:[%s1731_s3 + $0x30] sm:$0xff] %vm832_vm1, %v602_v49  ;;  %871 = vst.msk [vmem:[%s1731_s3 + $0x130] sm:$0xff] %vm832_vm1, %v730_v50  ;;  %v605_v55 = vadd.f32 %v1406_v10, %v604_v53  ;;  %v733_v56 = vadd.f32 %v1406_v10, %v732_v54  ;;  %v606_v57 = vpop.f32.mrb[15].mxu0  ;;  %v734_v58 = vpop.f32.mrb[15].mxu1 }
 0x115   :  { %840 = vst.msk [vmem:[%s1731_s3 + $0x38] sm:$0xff] %vm832_vm1, %v605_v55  ;;  %872 = vst.msk [vmem:[%s1731_s3 + $0x138] sm:$0xff] %vm832_vm1, %v733_v56 }
 0x118   :  { %v609_v59 = vpop.f32.mrb[16].mxu0  ;;  %v737_v60 = vpop.f32.mrb[16].mxu1 }
 0x119   :  { %v610_v61 = vadd.f32 %v1406_v10, %v609_v59  ;;  %v738_v62 = vadd.f32 %v1406_v10, %v737_v60  ;;  %v611_v63 = vpop.f32.mrb[17].mxu0  ;;  %v739_v0 = vpop.f32.mrb[17].mxu1 }
 0x11a   :  { %v612_v1 = vpop.f32.mrb[18].mxu0  ;;  %v740_v2 = vpop.f32.mrb[18].mxu1 }
 0x11b   :  { %841 = vst.msk [vmem:[%s1731_s3 + $0x40] sm:$0xff] %vm832_vm1, %v610_v61  ;;  %873 = vst.msk [vmem:[%s1731_s3 + $0x140] sm:$0xff] %vm832_vm1, %v738_v62  ;;  %v613_v3 = vadd.f32 %v1406_v10, %v612_v1  ;;  %v741_v4 = vadd.f32 %v1406_v10, %v740_v2  ;;  %v614_v5 = vpop.f32.mrb[19].mxu0  ;;  %v742_v6 = vpop.f32.mrb[19].mxu1 }
 0x11d   :  { %842 = vst.msk [vmem:[%s1731_s3 + $0x48] sm:$0xff] %vm832_vm1, %v613_v3  ;;  %874 = vst.msk [vmem:[%s1731_s3 + $0x148] sm:$0xff] %vm832_vm1, %v741_v4 }
 0x120   :  { %v617_v7 = vpop.f32.mrb[20].mxu0  ;;  %v745_v8 = vpop.f32.mrb[20].mxu1 }
 0x121   :  { %v618_v9 = vadd.f32 %v1406_v10, %v617_v7  ;;  %v746_v11 = vadd.f32 %v1406_v10, %v745_v8  ;;  %v619_v12 = vpop.f32.mrb[21].mxu0  ;;  %v747_v13 = vpop.f32.mrb[21].mxu1 }
 0x122   :  { %v620_v14 = vpop.f32.mrb[22].mxu0  ;;  %v748_v15 = vpop.f32.mrb[22].mxu1 }
 0x123   :  { %843 = vst.msk [vmem:[%s1731_s3 + $0x50] sm:$0xff] %vm832_vm1, %v618_v9  ;;  %875 = vst.msk [vmem:[%s1731_s3 + $0x150] sm:$0xff] %vm832_vm1, %v746_v11  ;;  %v621_v16 = vadd.f32 %v1406_v10, %v620_v14  ;;  %v749_v17 = vadd.f32 %v1406_v10, %v748_v15  ;;  %v622_v18 = vpop.f32.mrb[23].mxu0  ;;  %v750_v19 = vpop.f32.mrb[23].mxu1 }
 0x125   :  { %844 = vst.msk [vmem:[%s1731_s3 + $0x58] sm:$0xff] %vm832_vm1, %v621_v16  ;;  %876 = vst.msk [vmem:[%s1731_s3 + $0x158] sm:$0xff] %vm832_vm1, %v749_v17 }
 0x128   :  { %v625_v20 = vpop.f32.mrb[24].mxu0  ;;  %v753_v21 = vpop.f32.mrb[24].mxu1 }
 0x129   :  { %v626_v22 = vadd.f32 %v1406_v10, %v625_v20  ;;  %v754_v23 = vadd.f32 %v1406_v10, %v753_v21  ;;  %v627_v24 = vpop.f32.mrb[25].mxu0  ;;  %v755_v25 = vpop.f32.mrb[25].mxu1 }
 0x12a   :  { %v628_v26 = vpop.f32.mrb[26].mxu0  ;;  %v756_v27 = vpop.f32.mrb[26].mxu1 }
 0x12b   :  { %845 = vst.msk [vmem:[%s1731_s3 + $0x60] sm:$0xff] %vm832_vm1, %v626_v22  ;;  %877 = vst.msk [vmem:[%s1731_s3 + $0x160] sm:$0xff] %vm832_vm1, %v754_v23  ;;  %v629_v28 = vadd.f32 %v1406_v10, %v628_v26  ;;  %v757_v29 = vadd.f32 %v1406_v10, %v756_v27  ;;  %v630_v30 = vpop.f32.mrb[27].mxu0  ;;  %v758_v31 = vpop.f32.mrb[27].mxu1 }
 0x12d   :  { %846 = vst.msk [vmem:[%s1731_s3 + $0x68] sm:$0xff] %vm832_vm1, %v629_v28  ;;  %878 = vst.msk [vmem:[%s1731_s3 + $0x168] sm:$0xff] %vm832_vm1, %v757_v29 }
 0x130   :  { %v633_v32 = vpop.f32.mrb[28].mxu0  ;;  %v761_v33 = vpop.f32.mrb[28].mxu1 }
 0x131   :  { %v634_v34 = vadd.f32 %v1406_v10, %v633_v32  ;;  %v762_v35 = vadd.f32 %v1406_v10, %v761_v33  ;;  %v635_v36 = vpop.f32.mrb[29].mxu0  ;;  %v763_v37 = vpop.f32.mrb[29].mxu1 }
 0x132   :  { %v636_v38 = vpop.f32.mrb[30].mxu0  ;;  %v764_v39 = vpop.f32.mrb[30].mxu1 }
 0x133   :  { %847 = vst.msk [vmem:[%s1731_s3 + $0x70] sm:$0xff] %vm832_vm1, %v634_v34  ;;  %879 = vst.msk [vmem:[%s1731_s3 + $0x170] sm:$0xff] %vm832_vm1, %v762_v35  ;;  %v637_v40 = vadd.f32 %v1406_v10, %v636_v38  ;;  %v765_v41 = vadd.f32 %v1406_v10, %v764_v39  ;;  %v638_v42 = vpop.f32.mrb[31].mxu0  ;;  %v766_v43 = vpop.f32.mrb[31].mxu1 }
 0x135   :  { %848 = vst.msk [vmem:[%s1731_s3 + $0x78] sm:$0xff] %vm832_vm1, %v637_v40  ;;  %880 = vst.msk [vmem:[%s1731_s3 + $0x178] sm:$0xff] %vm832_vm1, %v765_v41 }
 0x138   :  { %v641_v44 = vpop.f32.mrb[32].mxu0  ;;  %v769_v45 = vpop.f32.mrb[32].mxu1 }
 0x139   :  { %v642_v46 = vadd.f32 %v1406_v10, %v641_v44  ;;  %v770_v47 = vadd.f32 %v1406_v10, %v769_v45  ;;  %v643_v48 = vpop.f32.mrb[33].mxu0  ;;  %v771_v49 = vpop.f32.mrb[33].mxu1 }
 0x13a   :  { %v644_v50 = vpop.f32.mrb[34].mxu0  ;;  %v772_v51 = vpop.f32.mrb[34].mxu1 }
 0x13b   :  { %849 = vst.msk [vmem:[%s1731_s3 + $0x80] sm:$0xff] %vm832_vm1, %v642_v46  ;;  %881 = vst.msk [vmem:[%s1731_s3 + $0x180] sm:$0xff] %vm832_vm1, %v770_v47  ;;  %v645_v52 = vadd.f32 %v1406_v10, %v644_v50  ;;  %v773_v53 = vadd.f32 %v1406_v10, %v772_v51  ;;  %v646_v54 = vpop.f32.mrb[35].mxu0  ;;  %v774_v55 = vpop.f32.mrb[35].mxu1 }
 0x13d   :  { %850 = vst.msk [vmem:[%s1731_s3 + $0x88] sm:$0xff] %vm832_vm1, %v645_v52  ;;  %882 = vst.msk [vmem:[%s1731_s3 + $0x188] sm:$0xff] %vm832_vm1, %v773_v53 }
 0x140   :  { %v649_v56 = vpop.f32.mrb[36].mxu0  ;;  %v777_v57 = vpop.f32.mrb[36].mxu1 }
 0x141   :  { %v650_v58 = vadd.f32 %v1406_v10, %v649_v56  ;;  %v778_v59 = vadd.f32 %v1406_v10, %v777_v57  ;;  %v651_v60 = vpop.f32.mrb[37].mxu0  ;;  %v779_v61 = vpop.f32.mrb[37].mxu1 }
 0x142   :  { %v652_v62 = vpop.f32.mrb[38].mxu0  ;;  %v780_v63 = vpop.f32.mrb[38].mxu1 }
 0x143   :  { %851 = vst.msk [vmem:[%s1731_s3 + $0x90] sm:$0xff] %vm832_vm1, %v650_v58  ;;  %883 = vst.msk [vmem:[%s1731_s3 + $0x190] sm:$0xff] %vm832_vm1, %v778_v59  ;;  %v653_v0 = vadd.f32 %v1406_v10, %v652_v62  ;;  %v781_v1 = vadd.f32 %v1406_v10, %v780_v63  ;;  %v654_v2 = vpop.f32.mrb[39].mxu0  ;;  %v782_v3 = vpop.f32.mrb[39].mxu1 }
 0x145   :  { %852 = vst.msk [vmem:[%s1731_s3 + $0x98] sm:$0xff] %vm832_vm1, %v653_v0  ;;  %884 = vst.msk [vmem:[%s1731_s3 + $0x198] sm:$0xff] %vm832_vm1, %v781_v1 }
 0x148   :  { %v657_v4 = vpop.f32.mrb[40].mxu0  ;;  %v785_v5 = vpop.f32.mrb[40].mxu1 }
 0x149   :  { %v658_v6 = vadd.f32 %v1406_v10, %v657_v4  ;;  %v786_v7 = vadd.f32 %v1406_v10, %v785_v5  ;;  %v659_v8 = vpop.f32.mrb[41].mxu0  ;;  %v787_v9 = vpop.f32.mrb[41].mxu1 }
 0x14a   :  { %v660_v11 = vpop.f32.mrb[42].mxu0  ;;  %v788_v12 = vpop.f32.mrb[42].mxu1 }
 0x14b   :  { %853 = vst.msk [vmem:[%s1731_s3 + $0xa0] sm:$0xff] %vm832_vm1, %v658_v6  ;;  %885 = vst.msk [vmem:[%s1731_s3 + $0x1a0] sm:$0xff] %vm832_vm1, %v786_v7  ;;  %v661_v13 = vadd.f32 %v1406_v10, %v660_v11  ;;  %v789_v14 = vadd.f32 %v1406_v10, %v788_v12  ;;  %v662_v15 = vpop.f32.mrb[43].mxu0  ;;  %v790_v16 = vpop.f32.mrb[43].mxu1 }
 0x14d   :  { %854 = vst.msk [vmem:[%s1731_s3 + $0xa8] sm:$0xff] %vm832_vm1, %v661_v13  ;;  %886 = vst.msk [vmem:[%s1731_s3 + $0x1a8] sm:$0xff] %vm832_vm1, %v789_v14 }
 0x150   :  { %v665_v17 = vpop.f32.mrb[44].mxu0  ;;  %v793_v18 = vpop.f32.mrb[44].mxu1 }
 0x151   :  { %v666_v19 = vadd.f32 %v1406_v10, %v665_v17  ;;  %v794_v20 = vadd.f32 %v1406_v10, %v793_v18  ;;  %v667_v21 = vpop.f32.mrb[45].mxu0  ;;  %v795_v22 = vpop.f32.mrb[45].mxu1 }
 0x152   :  { %v668_v23 = vpop.f32.mrb[46].mxu0  ;;  %v796_v24 = vpop.f32.mrb[46].mxu1 }
 0x153   :  { %855 = vst.msk [vmem:[%s1731_s3 + $0xb0] sm:$0xff] %vm832_vm1, %v666_v19  ;;  %887 = vst.msk [vmem:[%s1731_s3 + $0x1b0] sm:$0xff] %vm832_vm1, %v794_v20  ;;  %v669_v25 = vadd.f32 %v1406_v10, %v668_v23  ;;  %v797_v26 = vadd.f32 %v1406_v10, %v796_v24  ;;  %v670_v27 = vpop.f32.mrb[47].mxu0  ;;  %v798_v28 = vpop.f32.mrb[47].mxu1 }
 0x155   :  { %856 = vst.msk [vmem:[%s1731_s3 + $0xb8] sm:$0xff] %vm832_vm1, %v669_v25  ;;  %888 = vst.msk [vmem:[%s1731_s3 + $0x1b8] sm:$0xff] %vm832_vm1, %v797_v26 }
 0x158   :  { %v673_v29 = vpop.f32.mrb[48].mxu0  ;;  %v801_v30 = vpop.f32.mrb[48].mxu1 }
 0x159   :  { %v674_v31 = vadd.f32 %v1406_v10, %v673_v29  ;;  %v802_v32 = vadd.f32 %v1406_v10, %v801_v30  ;;  %v675_v33 = vpop.f32.mrb[49].mxu0  ;;  %v803_v34 = vpop.f32.mrb[49].mxu1 }
 0x15a   :  { %v676_v35 = vpop.f32.mrb[50].mxu0  ;;  %v804_v36 = vpop.f32.mrb[50].mxu1 }
 0x15b   :  { %857 = vst.msk [vmem:[%s1731_s3 + $0xc0] sm:$0xff] %vm832_vm1, %v674_v31  ;;  %889 = vst.msk [vmem:[%s1731_s3 + $0x1c0] sm:$0xff] %vm832_vm1, %v802_v32  ;;  %v677_v37 = vadd.f32 %v1406_v10, %v676_v35  ;;  %v805_v38 = vadd.f32 %v1406_v10, %v804_v36  ;;  %v678_v39 = vpop.f32.mrb[51].mxu0  ;;  %v806_v40 = vpop.f32.mrb[51].mxu1 }
 0x15d   :  { %858 = vst.msk [vmem:[%s1731_s3 + $0xc8] sm:$0xff] %vm832_vm1, %v677_v37  ;;  %890 = vst.msk [vmem:[%s1731_s3 + $0x1c8] sm:$0xff] %vm832_vm1, %v805_v38 }
 0x160   :  { %v681_v41 = vpop.f32.mrb[52].mxu0  ;;  %v809_v42 = vpop.f32.mrb[52].mxu1 }
 0x161   :  { %v682_v43 = vadd.f32 %v1406_v10, %v681_v41  ;;  %v810_v44 = vadd.f32 %v1406_v10, %v809_v42  ;;  %v683_v45 = vpop.f32.mrb[53].mxu0  ;;  %v811_v46 = vpop.f32.mrb[53].mxu1 }
 0x162   :  { %v684_v47 = vpop.f32.mrb[54].mxu0  ;;  %v812_v48 = vpop.f32.mrb[54].mxu1 }
 0x163   :  { %859 = vst.msk [vmem:[%s1731_s3 + $0xd0] sm:$0xff] %vm832_vm1, %v682_v43  ;;  %891 = vst.msk [vmem:[%s1731_s3 + $0x1d0] sm:$0xff] %vm832_vm1, %v810_v44  ;;  %v685_v49 = vadd.f32 %v1406_v10, %v684_v47  ;;  %v813_v50 = vadd.f32 %v1406_v10, %v812_v48  ;;  %v686_v51 = vpop.f32.mrb[55].mxu0  ;;  %v814_v52 = vpop.f32.mrb[55].mxu1 }
 0x165   :  { %860 = vst.msk [vmem:[%s1731_s3 + $0xd8] sm:$0xff] %vm832_vm1, %v685_v49  ;;  %892 = vst.msk [vmem:[%s1731_s3 + $0x1d8] sm:$0xff] %vm832_vm1, %v813_v50 }
 0x168   :  { %v689_v53 = vpop.f32.mrb[56].mxu0  ;;  %v817_v54 = vpop.f32.mrb[56].mxu1 }
 0x169   :  { %v690_v55 = vadd.f32 %v1406_v10, %v689_v53  ;;  %v818_v56 = vadd.f32 %v1406_v10, %v817_v54  ;;  %v691_v57 = vpop.f32.mrb[57].mxu0  ;;  %v819_v58 = vpop.f32.mrb[57].mxu1 }
 0x16a   :  { %v692_v59 = vpop.f32.mrb[58].mxu0  ;;  %v820_v60 = vpop.f32.mrb[58].mxu1 }
 0x16b   :  { %861 = vst.msk [vmem:[%s1731_s3 + $0xe0] sm:$0xff] %vm832_vm1, %v690_v55  ;;  %893 = vst.msk [vmem:[%s1731_s3 + $0x1e0] sm:$0xff] %vm832_vm1, %v818_v56  ;;  %v693_v61 = vadd.f32 %v1406_v10, %v692_v59  ;;  %v821_v62 = vadd.f32 %v1406_v10, %v820_v60  ;;  %v694_v63 = vpop.f32.mrb[59].mxu0  ;;  %v822_v0 = vpop.f32.mrb[59].mxu1 }
 0x16d   :  { %862 = vst.msk [vmem:[%s1731_s3 + $0xe8] sm:$0xff] %vm832_vm1, %v693_v61  ;;  %894 = vst.msk [vmem:[%s1731_s3 + $0x1e8] sm:$0xff] %vm832_vm1, %v821_v62 }
 0x170   :  { %v697_v1 = vpop.f32.mrb[60].mxu0  ;;  %v825_v2 = vpop.f32.mrb[60].mxu1 }
 0x171   :  { %v698_v3 = vadd.f32 %v1406_v10, %v697_v1  ;;  %v826_v4 = vadd.f32 %v1406_v10, %v825_v2  ;;  %v699_v5 = vpop.f32.mrb[61].mxu0  ;;  %v827_v6 = vpop.f32.mrb[61].mxu1 }
 0x172   :  { %v700_v7 = vpop.f32.mrb[62].mxu0  ;;  %v828_v8 = vpop.f32.mrb[62].mxu1 }
 0x173   :  { %863 = vst.msk [vmem:[%s1731_s3 + $0xf0] sm:$0xff] %vm832_vm1, %v698_v3  ;;  %895 = vst.msk [vmem:[%s1731_s3 + $0x1f0] sm:$0xff] %vm832_vm1, %v826_v4  ;;  %v701_v9 = vadd.f32 %v1406_v10, %v700_v7  ;;  %v829_v11 = vadd.f32 %v1406_v10, %v828_v8  ;;  %v702_v12 = vpop.f32.mrb[63].mxu0  ;;  %v830_v13 = vpop.f32.mrb[63].mxu1 }
 0x175   :  { %864 = vst.msk [vmem:[%s1731_s3 + $0xf8] sm:$0xff] %vm832_vm1, %v701_v9  ;;  %896 = vst.msk [vmem:[%s1731_s3 + $0x1f8] sm:$0xff] %vm832_vm1, %v829_v11 }

// kernel: dpt_forward.58
= control target key start
LH: loop header
LB: loop body
LE: loop exit
PB: predicated region body
PF: predicated region fallthrough
CT: control target
= control target key end

     0   :  { %vm954_vm0 = vcmask 588800   ;;  %vm1339_vm1 = vcmask 1043456   ;;  %vm2656_vm2 = vcmask 64512   ;;  %s5557_s1 = inlined_call_operand.vmem [shape: bf16[72,8], index: 1, kind: input, shape index: {}]   ;;  %s5558_s0 = inlined_call_operand.vmem [shape: bf16[2048,72], index: 0, kind: input, shape index: {}]   ;;  %s5559_s2 = inlined_call_operand.vmem [shape: f32[1,8], index: 2, kind: input, shape index: {}]   ;;  %s5560_s3 = inlined_call_operand.vmem [shape: f32[2048,8], index: 3, kind: output, shape index: {}]  }
   0x1   :  { %v3590_v0 = vld [vmem:[%s5557_s1] sm:$0xff]   ;;  %v3591_v1 = vld [vmem:[%s5557_s1 + $0x8] sm:$0xff]   ;;  %v3592_v2 = vld [vmem:[%s5557_s1 + $0x10] sm:$0xff]  }
   0x2   :  { %3312 = vmatprep.subr.bf16.mxu0 %v3590_v0  ;;  %3578 = vmatprep.subr.bf16.mxu1 %v3590_v0  ;;  %v3595_v3 = vld [vmem:[%s5558_s0] sm:$0xff]   ;;  %v3593_v5 = vld [vmem:[%s5557_s1 + $0x18] sm:$0xff]   ;;  %v3597_v8 = vld [vmem:[%s5558_s0 + $0x8] sm:$0xff]  }
   0x3   :  { %3313 = vmatpush3.bf16.msra.mxu0 %v3590_v0  ;;  %3583 = vmatpush3.bf16.msra.mxu1 %v3590_v0  ;;  %v3596_v4 = vld [vmem:[%s5558_s0 + $0x200] sm:$0xff]   ;;  %v3598_v9 = vld [vmem:[%s5558_s0 + $0x208] sm:$0xff]   ;;  %v3599_v10 = vld [vmem:[%s5558_s0 + $0x10] sm:$0xff]  }
   0x4   :  { %3314 = vmatprep.subr.bf16.mxu0 %v3591_v1  ;;  %3579 = vmatprep.subr.bf16.mxu1 %v3591_v1  ;;  %v3594_v6 = vld [vmem:[%s5557_s1 + $0x20] ss:$0 sps:$4 sm:$0xff]   ;;  %v3600_v11 = vld [vmem:[%s5558_s0 + $0x210] sm:$0xff]   ;;  %v3601_v12 = vld [vmem:[%s5558_s0 + $0x18] sm:$0xff]  }
   0x5   :  { %3322 = vmatprep.mubr.msk.bf16.mxu0 %vm954_vm0, %v3595_v3  ;;  %3450 = vmatprep.mubr.msk.bf16.mxu1 %vm954_vm0, %v3596_v4  ;;  %v1341_v7 = vsel %vm1339_vm1, %v3594_v6, 0  ;;  %v3602_v13 = vld [vmem:[%s5558_s0 + $0x218] sm:$0xff]   ;;  %v3603_v14 = vld [vmem:[%s5558_s0 + $0x20] sm:$0xff]   ;;  %v3605_v16 = vld [vmem:[%s5558_s0 + $0x28] sm:$0xff]  }
   0x6   :  { %v3604_v15 = vld [vmem:[%s5558_s0 + $0x220] sm:$0xff]   ;;  %v3606_v17 = vld [vmem:[%s5558_s0 + $0x228] sm:$0xff]   ;;  %v3607_v18 = vld [vmem:[%s5558_s0 + $0x30] sm:$0xff]  }
   0x7   :  { %3315 = vmatpush3.bf16.msra.mxu0 %v3591_v1  ;;  %3584 = vmatpush3.bf16.msra.mxu1 %v3591_v1  ;;  %v3608_v19 = vld [vmem:[%s5558_s0 + $0x230] sm:$0xff]   ;;  %v3609_v20 = vld [vmem:[%s5558_s0 + $0x38] sm:$0xff]   ;;  %v3611_v22 = vld [vmem:[%s5558_s0 + $0x40] sm:$0xff]  }
   0x8   :  { %3316 = vmatprep.subr.bf16.mxu0 %v3592_v2  ;;  %3580 = vmatprep.subr.bf16.mxu1 %v3592_v2  ;;  %v3610_v21 = vld [vmem:[%s5558_s0 + $0x238] sm:$0xff]   ;;  %v3612_v23 = vld [vmem:[%s5558_s0 + $0x240] sm:$0xff]   ;;  %v3613_v24 = vld [vmem:[%s5558_s0 + $0x48] sm:$0xff]  }
   0x9   :  { %v3614_v25 = vld [vmem:[%s5558_s0 + $0x248] sm:$0xff]   ;;  %v3615_v26 = vld [vmem:[%s5558_s0 + $0x50] sm:$0xff]   ;;  %v3617_v28 = vld [vmem:[%s5558_s0 + $0x58] sm:$0xff]  }
   0xa   :  { %v3616_v27 = vld [vmem:[%s5558_s0 + $0x250] sm:$0xff]   ;;  %v3618_v29 = vld [vmem:[%s5558_s0 + $0x258] sm:$0xff]   ;;  %v3619_v30 = vld [vmem:[%s5558_s0 + $0x60] sm:$0xff]  }
   0xb   :  { %3317 = vmatpush3.bf16.msra.mxu0 %v3592_v2  ;;  %3585 = vmatpush3.bf16.msra.mxu1 %v3592_v2  ;;  %v3620_v31 = vld [vmem:[%s5558_s0 + $0x260] sm:$0xff]   ;;  %v3621_v32 = vld [vmem:[%s5558_s0 + $0x68] sm:$0xff]   ;;  %v3623_v34 = vld [vmem:[%s5558_s0 + $0x70] sm:$0xff]  }
   0xc   :  { %3318 = vmatprep.subr.bf16.mxu0 %v3593_v5  ;;  %3581 = vmatprep.subr.bf16.mxu1 %v3593_v5  ;;  %v3622_v33 = vld [vmem:[%s5558_s0 + $0x268] sm:$0xff]   ;;  %v3624_v35 = vld [vmem:[%s5558_s0 + $0x270] sm:$0xff]   ;;  %v3625_v36 = vld [vmem:[%s5558_s0 + $0x78] sm:$0xff]  }
   0xd   :  { %v3626_v37 = vld [vmem:[%s5558_s0 + $0x278] sm:$0xff]   ;;  %v3627_v38 = vld [vmem:[%s5558_s0 + $0x80] sm:$0xff]   ;;  %v3629_v40 = vld [vmem:[%s5558_s0 + $0x88] sm:$0xff]  }
   0xe   :  { %v3628_v39 = vld [vmem:[%s5558_s0 + $0x280] sm:$0xff]   ;;  %v3630_v41 = vld [vmem:[%s5558_s0 + $0x288] sm:$0xff]   ;;  %v3631_v42 = vld [vmem:[%s5558_s0 + $0x90] sm:$0xff]  }
   0xf   :  { %3319 = vmatpush3.bf16.msra.mxu0 %v3593_v5  ;;  %3586 = vmatpush3.bf16.msra.mxu1 %v3593_v5  ;;  %v3632_v43 = vld [vmem:[%s5558_s0 + $0x290] sm:$0xff]   ;;  %v3633_v44 = vld [vmem:[%s5558_s0 + $0x98] sm:$0xff]   ;;  %v3635_v46 = vld [vmem:[%s5558_s0 + $0xa0] sm:$0xff]  }
  0x10   :  { %3588 = vmatprep.subr.msk.bf16.mxu0 %vm1339_vm1, %v3594_v6  ;;  %3589 = vmatprep.subr.msk.bf16.mxu1 %vm1339_vm1, %v3594_v6  ;;  %v3634_v45 = vld [vmem:[%s5558_s0 + $0x298] sm:$0xff]   ;;  %v3636_v47 = vld [vmem:[%s5558_s0 + $0x2a0] sm:$0xff]   ;;  %v3637_v48 = vld [vmem:[%s5558_s0 + $0xa8] sm:$0xff]  }
  0x11   :  { %v3638_v49 = vld [vmem:[%s5558_s0 + $0x2a8] sm:$0xff]   ;;  %v3639_v50 = vld [vmem:[%s5558_s0 + $0xb0] sm:$0xff]   ;;  %v3641_v52 = vld [vmem:[%s5558_s0 + $0xb8] sm:$0xff]  }
  0x12   :  { %v3640_v51 = vld [vmem:[%s5558_s0 + $0x2b0] sm:$0xff]   ;;  %v3642_v53 = vld [vmem:[%s5558_s0 + $0x2b8] sm:$0xff]   ;;  %v3643_v54 = vld [vmem:[%s5558_s0 + $0xc0] sm:$0xff]  }
  0x13   :  { %3321 = vmatpush3.bf16.msra.mxu0 %v1341_v7  ;;  %3587 = vmatpush3.bf16.msra.mxu1 %v1341_v7  ;;  %v3644_v55 = vld [vmem:[%s5558_s0 + $0x2c0] sm:$0xff]   ;;  %v3645_v56 = vld [vmem:[%s5558_s0 + $0xc8] sm:$0xff]   ;;  %v3647_v58 = vld [vmem:[%s5558_s0 + $0xd0] sm:$0xff]  }
  0x14   :  { %v3646_v57 = vld [vmem:[%s5558_s0 + $0x2c8] sm:$0xff]   ;;  %v3648_v59 = vld [vmem:[%s5558_s0 + $0x2d0] sm:$0xff]   ;;  %v3649_v60 = vld [vmem:[%s5558_s0 + $0xd8] sm:$0xff]  }
  0x15   :  { %v3650_v61 = vld [vmem:[%s5558_s0 + $0x2d8] sm:$0xff]   ;;  %v3651_v62 = vld [vmem:[%s5558_s0 + $0xe0] sm:$0xff]   ;;  %v3653_v0 = vld [vmem:[%s5558_s0 + $0xe8] sm:$0xff]  }
  0x16   :  { %3323 = vmatmul.mubr.msk.bf16.vlgmr.msra.gmra.mrb[0].mxu0 %vm954_vm0, %v3597_v8  ;;  %3451 = vmatmul.mubr.msk.bf16.vlgmr.msra.gmra.mrb[0].mxu1 %vm954_vm0, %v3598_v9  ;;  %v3652_v63 = vld [vmem:[%s5558_s0 + $0x2e0] sm:$0xff]   ;;  %v3654_v1 = vld [vmem:[%s5558_s0 + $0x2e8] sm:$0xff]   ;;  %v3655_v2 = vld [vmem:[%s5558_s0 + $0xf0] sm:$0xff]  }
  0x17   :  { %3326 = vmatprep.mubr.msk.bf16.mxu0 %vm954_vm0, %v3599_v10  ;;  %3454 = vmatprep.mubr.msk.bf16.mxu1 %vm954_vm0, %v3600_v11  ;;  %v3656_v3 = vld [vmem:[%s5558_s0 + $0x2f0] sm:$0xff]   ;;  %v3657_v4 = vld [vmem:[%s5558_s0 + $0xf8] sm:$0xff]   ;;  %v3659_v6 = vld [vmem:[%s5558_s0 + $0x100] sm:$0xff]  }
  0x18   :  { %v3658_v5 = vld [vmem:[%s5558_s0 + $0x2f8] sm:$0xff]   ;;  %v3660_v7 = vld [vmem:[%s5558_s0 + $0x300] sm:$0xff]   ;;  %v3661_v8 = vld [vmem:[%s5558_s0 + $0x108] sm:$0xff]  }
  0x19   :  { %v3662_v9 = vld [vmem:[%s5558_s0 + $0x308] sm:$0xff]   ;;  %v3663_v10 = vld [vmem:[%s5558_s0 + $0x110] sm:$0xff]  }
  0x1a   :  { %v3664_v11 = vld [vmem:[%s5558_s0 + $0x310] sm:$0xff]  }
  0x1e   :  { %3327 = vmatmul.mubr.msk.bf16.gmra.mrb[4].mxu0 %vm954_vm0, %v3601_v12  ;;  %3455 = vmatmul.mubr.msk.bf16.gmra.mrb[4].mxu1 %vm954_vm0, %v3602_v13  ;;  %v3665_v12 = vld [vmem:[%s5558_s0 + $0x118] sm:$0xff]  }
  0x1f   :  { %3330 = vmatprep.mubr.msk.bf16.mxu0 %vm954_vm0, %v3603_v14  ;;  %3458 = vmatprep.mubr.msk.bf16.mxu1 %vm954_vm0, %v3604_v15  ;;  %v3666_v13 = vld [vmem:[%s5558_s0 + $0x318] sm:$0xff]   ;;  %v3667_v14 = vld [vmem:[%s5558_s0 + $0x120] sm:$0xff]  }
  0x20   :  { %v3668_v15 = vld [vmem:[%s5558_s0 + $0x320] sm:$0xff]  }
  0x26   :  { %3331 = vmatmul.mubr.msk.bf16.gmra.mrb[8].mxu0 %vm954_vm0, %v3605_v16  ;;  %3459 = vmatmul.mubr.msk.bf16.gmra.mrb[8].mxu1 %vm954_vm0, %v3606_v17  ;;  %v3669_v16 = vld [vmem:[%s5558_s0 + $0x128] sm:$0xff]  }
  0x27   :  { %3334 = vmatprep.mubr.msk.bf16.mxu0 %vm954_vm0, %v3607_v18  ;;  %3462 = vmatprep.mubr.msk.bf16.mxu1 %vm954_vm0, %v3608_v19  ;;  %v3670_v17 = vld [vmem:[%s5558_s0 + $0x328] sm:$0xff]   ;;  %v3671_v18 = vld [vmem:[%s5558_s0 + $0x130] sm:$0xff]  }
  0x28   :  { %v3672_v19 = vld [vmem:[%s5558_s0 + $0x330] sm:$0xff]  }
  0x2e   :  { %3335 = vmatmul.mubr.msk.bf16.gmra.mrb[12].mxu0 %vm954_vm0, %v3609_v20  ;;  %3463 = vmatmul.mubr.msk.bf16.gmra.mrb[12].mxu1 %vm954_vm0, %v3610_v21  ;;  %v3673_v20 = vld [vmem:[%s5558_s0 + $0x138] sm:$0xff]  }
  0x2f   :  { %3338 = vmatprep.mubr.msk.bf16.mxu0 %vm954_vm0, %v3611_v22  ;;  %3466 = vmatprep.mubr.msk.bf16.mxu1 %vm954_vm0, %v3612_v23  ;;  %v3674_v21 = vld [vmem:[%s5558_s0 + $0x338] sm:$0xff]   ;;  %v3675_v22 = vld [vmem:[%s5558_s0 + $0x140] sm:$0xff]  }
  0x30   :  { %v3676_v23 = vld [vmem:[%s5558_s0 + $0x340] sm:$0xff]  }
  0x36   :  { %3339 = vmatmul.mubr.msk.bf16.gmra.mrb[16].mxu0 %vm954_vm0, %v3613_v24  ;;  %3467 = vmatmul.mubr.msk.bf16.gmra.mrb[16].mxu1 %vm954_vm0, %v3614_v25  ;;  %v3677_v24 = vld [vmem:[%s5558_s0 + $0x148] sm:$0xff]  }
  0x37   :  { %3342 = vmatprep.mubr.msk.bf16.mxu0 %vm954_vm0, %v3615_v26  ;;  %3470 = vmatprep.mubr.msk.bf16.mxu1 %vm954_vm0, %v3616_v27  ;;  %v3678_v25 = vld [vmem:[%s5558_s0 + $0x348] sm:$0xff]   ;;  %v3679_v26 = vld [vmem:[%s5558_s0 + $0x150] sm:$0xff]  }
  0x38   :  { %v3680_v27 = vld [vmem:[%s5558_s0 + $0x350] sm:$0xff]  }
  0x3e   :  { %3343 = vmatmul.mubr.msk.bf16.gmra.mrb[20].mxu0 %vm954_vm0, %v3617_v28  ;;  %3471 = vmatmul.mubr.msk.bf16.gmra.mrb[20].mxu1 %vm954_vm0, %v3618_v29  ;;  %v3681_v28 = vld [vmem:[%s5558_s0 + $0x158] sm:$0xff]  }
  0x3f   :  { %3346 = vmatprep.mubr.msk.bf16.mxu0 %vm954_vm0, %v3619_v30  ;;  %3474 = vmatprep.mubr.msk.bf16.mxu1 %vm954_vm0, %v3620_v31  ;;  %v3682_v29 = vld [vmem:[%s5558_s0 + $0x358] sm:$0xff]   ;;  %v3683_v30 = vld [vmem:[%s5558_s0 + $0x160] sm:$0xff]  }
  0x40   :  { %v3684_v31 = vld [vmem:[%s5558_s0 + $0x360] sm:$0xff]  }
  0x46   :  { %3347 = vmatmul.mubr.msk.bf16.gmra.mrb[24].mxu0 %vm954_vm0, %v3621_v32  ;;  %3475 = vmatmul.mubr.msk.bf16.gmra.mrb[24].mxu1 %vm954_vm0, %v3622_v33  ;;  %v3685_v32 = vld [vmem:[%s5558_s0 + $0x168] sm:$0xff]  }
  0x47   :  { %3350 = vmatprep.mubr.msk.bf16.mxu0 %vm954_vm0, %v3623_v34  ;;  %3478 = vmatprep.mubr.msk.bf16.mxu1 %vm954_vm0, %v3624_v35  ;;  %v3686_v33 = vld [vmem:[%s5558_s0 + $0x368] sm:$0xff]   ;;  %v3687_v34 = vld [vmem:[%s5558_s0 + $0x170] sm:$0xff]  }
  0x48   :  { %v3688_v35 = vld [vmem:[%s5558_s0 + $0x370] sm:$0xff]  }
  0x4e   :  { %3351 = vmatmul.mubr.msk.bf16.gmra.mrb[28].mxu0 %vm954_vm0, %v3625_v36  ;;  %3479 = vmatmul.mubr.msk.bf16.gmra.mrb[28].mxu1 %vm954_vm0, %v3626_v37  ;;  %v3689_v36 = vld [vmem:[%s5558_s0 + $0x178] sm:$0xff]  }
  0x4f   :  { %3354 = vmatprep.mubr.msk.bf16.mxu0 %vm954_vm0, %v3627_v38  ;;  %3482 = vmatprep.mubr.msk.bf16.mxu1 %vm954_vm0, %v3628_v39  ;;  %v3690_v37 = vld [vmem:[%s5558_s0 + $0x378] sm:$0xff]   ;;  %v3691_v38 = vld [vmem:[%s5558_s0 + $0x180] sm:$0xff]  }
  0x50   :  { %v3692_v39 = vld [vmem:[%s5558_s0 + $0x380] sm:$0xff]  }
  0x56   :  { %3355 = vmatmul.mubr.msk.bf16.gmra.mrb[32].mxu0 %vm954_vm0, %v3629_v40  ;;  %3483 = vmatmul.mubr.msk.bf16.gmra.mrb[32].mxu1 %vm954_vm0, %v3630_v41  ;;  %v3693_v40 = vld [vmem:[%s5558_s0 + $0x188] sm:$0xff]  }
  0x57   :  { %3358 = vmatprep.mubr.msk.bf16.mxu0 %vm954_vm0, %v3631_v42  ;;  %3486 = vmatprep.mubr.msk.bf16.mxu1 %vm954_vm0, %v3632_v43  ;;  %v3694_v41 = vld [vmem:[%s5558_s0 + $0x388] sm:$0xff]   ;;  %v3695_v42 = vld [vmem:[%s5558_s0 + $0x190] sm:$0xff]  }
  0x58   :  { %v3696_v43 = vld [vmem:[%s5558_s0 + $0x390] sm:$0xff]  }
  0x5e   :  { %3359 = vmatmul.mubr.msk.bf16.gmra.mrb[36].mxu0 %vm954_vm0, %v3633_v44  ;;  %3487 = vmatmul.mubr.msk.bf16.gmra.mrb[36].mxu1 %vm954_vm0, %v3634_v45  ;;  %v3697_v44 = vld [vmem:[%s5558_s0 + $0x198] sm:$0xff]  }
  0x5f   :  { %3362 = vmatprep.mubr.msk.bf16.mxu0 %vm954_vm0, %v3635_v46  ;;  %3490 = vmatprep.mubr.msk.bf16.mxu1 %vm954_vm0, %v3636_v47  ;;  %v3698_v45 = vld [vmem:[%s5558_s0 + $0x398] sm:$0xff]   ;;  %v3699_v46 = vld [vmem:[%s5558_s0 + $0x1a0] sm:$0xff]  }
  0x60   :  { %v3700_v47 = vld [vmem:[%s5558_s0 + $0x3a0] sm:$0xff]  }
  0x66   :  { %3363 = vmatmul.mubr.msk.bf16.gmra.mrb[40].mxu0 %vm954_vm0, %v3637_v48  ;;  %3491 = vmatmul.mubr.msk.bf16.gmra.mrb[40].mxu1 %vm954_vm0, %v3638_v49  ;;  %v3701_v48 = vld [vmem:[%s5558_s0 + $0x1a8] sm:$0xff]  }
  0x67   :  { %3366 = vmatprep.mubr.msk.bf16.mxu0 %vm954_vm0, %v3639_v50  ;;  %3494 = vmatprep.mubr.msk.bf16.mxu1 %vm954_vm0, %v3640_v51  ;;  %v3702_v49 = vld [vmem:[%s5558_s0 + $0x3a8] sm:$0xff]   ;;  %v3703_v50 = vld [vmem:[%s5558_s0 + $0x1b0] sm:$0xff]  }
  0x68   :  { %v3704_v51 = vld [vmem:[%s5558_s0 + $0x3b0] sm:$0xff]  }
  0x6e   :  { %3367 = vmatmul.mubr.msk.bf16.gmra.mrb[44].mxu0 %vm954_vm0, %v3641_v52  ;;  %3495 = vmatmul.mubr.msk.bf16.gmra.mrb[44].mxu1 %vm954_vm0, %v3642_v53  ;;  %v4201_v52 = vld [vmem:[%s5559_s2] ss:$0 sm:$0xff] }
  0x6f   :  { %3370 = vmatprep.mubr.msk.bf16.mxu0 %vm954_vm0, %v3643_v54  ;;  %3498 = vmatprep.mubr.msk.bf16.mxu1 %vm954_vm0, %v3644_v55 }
  0x76   :  { %3371 = vmatmul.mubr.msk.bf16.gmra.mrb[48].mxu0 %vm954_vm0, %v3645_v56  ;;  %3499 = vmatmul.mubr.msk.bf16.gmra.mrb[48].mxu1 %vm954_vm0, %v3646_v57 }
  0x77   :  { %3374 = vmatprep.mubr.msk.bf16.mxu0 %vm954_vm0, %v3647_v58  ;;  %3502 = vmatprep.mubr.msk.bf16.mxu1 %vm954_vm0, %v3648_v59  ;;  %v3705_v59 = vld [vmem:[%s5558_s0 + $0x1b8] sm:$0xff]  }
  0x7e   :  { %3375 = vmatmul.mubr.msk.bf16.gmra.mrb[52].mxu0 %vm954_vm0, %v3649_v60  ;;  %3503 = vmatmul.mubr.msk.bf16.gmra.mrb[52].mxu1 %vm954_vm0, %v3650_v61  ;;  %v3706_v60 = vld [vmem:[%s5558_s0 + $0x3b8] sm:$0xff]  }
  0x7f   :  { %3378 = vmatprep.mubr.msk.bf16.mxu0 %vm954_vm0, %v3651_v62  ;;  %3506 = vmatprep.mubr.msk.bf16.mxu1 %vm954_vm0, %v3652_v63 }
  0x86   :  { %3379 = vmatmul.mubr.msk.bf16.gmra.mrb[56].mxu0 %vm954_vm0, %v3653_v0  ;;  %3507 = vmatmul.mubr.msk.bf16.gmra.mrb[56].mxu1 %vm954_vm0, %v3654_v1  ;;  %v3707_v1 = vld [vmem:[%s5558_s0 + $0x1c0] sm:$0xff]  }
  0x87   :  { %3382 = vmatprep.mubr.msk.bf16.mxu0 %vm954_vm0, %v3655_v2  ;;  %3510 = vmatprep.mubr.msk.bf16.mxu1 %vm954_vm0, %v3656_v3  ;;  %v3708_v2 = vld [vmem:[%s5558_s0 + $0x3c0] sm:$0xff]  }
  0x8e   :  { %3383 = vmatmul.mubr.msk.bf16.gmra.mrb[60].mxu0 %vm954_vm0, %v3657_v4  ;;  %3511 = vmatmul.mubr.msk.bf16.gmra.mrb[60].mxu1 %vm954_vm0, %v3658_v5 }
  0x8f   :  { %3386 = vmatprep.mubr.msk.bf16.mxu0 %vm954_vm0, %v3659_v6  ;;  %3514 = vmatprep.mubr.msk.bf16.mxu1 %vm954_vm0, %v3660_v7 }
  0x96   :  { %3387 = vmatmul.mubr.msk.bf16.gmra.mrb[64].mxu0 %vm954_vm0, %v3661_v8  ;;  %3515 = vmatmul.mubr.msk.bf16.gmra.mrb[64].mxu1 %vm954_vm0, %v3662_v9 }
  0x97   :  { %3390 = vmatprep.mubr.msk.bf16.mxu0 %vm954_vm0, %v3663_v10  ;;  %3518 = vmatprep.mubr.msk.bf16.mxu1 %vm954_vm0, %v3664_v11 }
  0x9e   :  { %3391 = vmatmul.mubr.msk.bf16.gmra.mrb[68].mxu0 %vm954_vm0, %v3665_v12  ;;  %3519 = vmatmul.mubr.msk.bf16.gmra.mrb[68].mxu1 %vm954_vm0, %v3666_v13 }
  0x9f   :  { %3394 = vmatprep.mubr.msk.bf16.mxu0 %vm954_vm0, %v3667_v14  ;;  %3522 = vmatprep.mubr.msk.bf16.mxu1 %vm954_vm0, %v3668_v15 }
  0xa6   :  { %3395 = vmatmul.mubr.msk.bf16.gmra.mrb[72].mxu0 %vm954_vm0, %v3669_v16  ;;  %3523 = vmatmul.mubr.msk.bf16.gmra.mrb[72].mxu1 %vm954_vm0, %v3670_v17 }
  0xa7   :  { %3398 = vmatprep.mubr.msk.bf16.mxu0 %vm954_vm0, %v3671_v18  ;;  %3526 = vmatprep.mubr.msk.bf16.mxu1 %vm954_vm0, %v3672_v19 }
  0xae   :  { %3399 = vmatmul.mubr.msk.bf16.gmra.mrb[76].mxu0 %vm954_vm0, %v3673_v20  ;;  %3527 = vmatmul.mubr.msk.bf16.gmra.mrb[76].mxu1 %vm954_vm0, %v3674_v21 }
  0xaf   :  { %3402 = vmatprep.mubr.msk.bf16.mxu0 %vm954_vm0, %v3675_v22  ;;  %3530 = vmatprep.mubr.msk.bf16.mxu1 %vm954_vm0, %v3676_v23  ;;  %v3709_v23 = vld [vmem:[%s5558_s0 + $0x1c8] sm:$0xff]  }
  0xb6   :  { %3403 = vmatmul.mubr.msk.bf16.gmra.mrb[80].mxu0 %vm954_vm0, %v3677_v24  ;;  %3531 = vmatmul.mubr.msk.bf16.gmra.mrb[80].mxu1 %vm954_vm0, %v3678_v25  ;;  %v3710_v24 = vld [vmem:[%s5558_s0 + $0x3c8] sm:$0xff]  }
  0xb7   :  { %3406 = vmatprep.mubr.msk.bf16.mxu0 %vm954_vm0, %v3679_v26  ;;  %3534 = vmatprep.mubr.msk.bf16.mxu1 %vm954_vm0, %v3680_v27 }
  0xbe   :  { %3407 = vmatmul.mubr.msk.bf16.gmra.mrb[84].mxu0 %vm954_vm0, %v3681_v28  ;;  %3535 = vmatmul.mubr.msk.bf16.gmra.mrb[84].mxu1 %vm954_vm0, %v3682_v29  ;;  %v3711_v29 = vld [vmem:[%s5558_s0 + $0x1d0] sm:$0xff]  }
  0xbf   :  { %3410 = vmatprep.mubr.msk.bf16.mxu0 %vm954_vm0, %v3683_v30  ;;  %3538 = vmatprep.mubr.msk.bf16.mxu1 %vm954_vm0, %v3684_v31  ;;  %v3712_v30 = vld [vmem:[%s5558_s0 + $0x3d0] sm:$0xff]  }
  0xc6   :  { %3411 = vmatmul.mubr.msk.bf16.gmra.mrb[88].mxu0 %vm954_vm0, %v3685_v32  ;;  %3539 = vmatmul.mubr.msk.bf16.gmra.mrb[88].mxu1 %vm954_vm0, %v3686_v33 }
  0xc7   :  { %3414 = vmatprep.mubr.msk.bf16.mxu0 %vm954_vm0, %v3687_v34  ;;  %3542 = vmatprep.mubr.msk.bf16.mxu1 %vm954_vm0, %v3688_v35 }
  0xce   :  { %3415 = vmatmul.mubr.msk.bf16.gmra.mrb[92].mxu0 %vm954_vm0, %v3689_v36  ;;  %3543 = vmatmul.mubr.msk.bf16.gmra.mrb[92].mxu1 %vm954_vm0, %v3690_v37 }
  0xcf   :  { %3418 = vmatprep.mubr.msk.bf16.mxu0 %vm954_vm0, %v3691_v38  ;;  %3546 = vmatprep.mubr.msk.bf16.mxu1 %vm954_vm0, %v3692_v39 }
  0xd6   :  { %3419 = vmatmul.mubr.msk.bf16.gmra.mrb[96].mxu0 %vm954_vm0, %v3693_v40  ;;  %3547 = vmatmul.mubr.msk.bf16.gmra.mrb[96].mxu1 %vm954_vm0, %v3694_v41 }
  0xd7   :  { %3422 = vmatprep.mubr.msk.bf16.mxu0 %vm954_vm0, %v3695_v42  ;;  %3550 = vmatprep.mubr.msk.bf16.mxu1 %vm954_vm0, %v3696_v43 }
  0xde   :  { %3423 = vmatmul.mubr.msk.bf16.gmra.mrb[100].mxu0 %vm954_vm0, %v3697_v44  ;;  %3551 = vmatmul.mubr.msk.bf16.gmra.mrb[100].mxu1 %vm954_vm0, %v3698_v45 }
  0xdf   :  { %3426 = vmatprep.mubr.msk.bf16.mxu0 %vm954_vm0, %v3699_v46  ;;  %3554 = vmatprep.mubr.msk.bf16.mxu1 %vm954_vm0, %v3700_v47 }
  0xe6   :  { %3427 = vmatmul.mubr.msk.bf16.gmra.mrb[104].mxu0 %vm954_vm0, %v3701_v48  ;;  %3555 = vmatmul.mubr.msk.bf16.gmra.mrb[104].mxu1 %vm954_vm0, %v3702_v49 }
  0xe7   :  { %3430 = vmatprep.mubr.msk.bf16.mxu0 %vm954_vm0, %v3703_v50  ;;  %3558 = vmatprep.mubr.msk.bf16.mxu1 %vm954_vm0, %v3704_v51  ;;  %v3713_v51 = vld [vmem:[%s5558_s0 + $0x1d8] sm:$0xff]  }
  0xe9   :  { %v3324_v53 = vpop.f32.mrb[0].mxu0  ;;  %v3452_v54 = vpop.f32.mrb[0].mxu1 }
  0xea   :  { %v1386_v55 = vadd.f32 %v3324_v53, %v4201_v52  ;;  %v1898_v56 = vadd.f32 %v3452_v54, %v4201_v52  ;;  %v1377_v57 = vpop.f32.mrb[1].mxu0  ;;  %v1889_v58 = vpop.f32.mrb[1].mxu1  ;;  %v3714_v53 = vld [vmem:[%s5558_s0 + $0x3d8] sm:$0xff]  }
  0xeb   :  { %v1378_v61 = vadd.f32 %v4201_v52, %v1377_v57  ;;  %v1890_v62 = vadd.f32 %v4201_v52, %v1889_v58  ;;  %v3325_v63 = vpop.f32.mrb[2].mxu0  ;;  %v3453_v0 = vpop.f32.mrb[2].mxu1  ;;  %v3715_v58 = vld [vmem:[%s5558_s0 + $0x1e0] sm:$0xff]  }
  0xec   :  { %v2402_v3 = vmax.f32 %v1386_v55, 0.0  ;;  %v2530_v4 = vmax.f32 %v1898_v56, 0.0  ;;  %v1389_v5 = vadd.f32 %v3325_v63, %v4201_v52  ;;  %v1901_v6 = vadd.f32 %v3453_v0, %v4201_v52  ;;  %v1380_v7 = vpop.f32.mrb[3].mxu0  ;;  %v1892_v8 = vpop.f32.mrb[3].mxu1 }
  0xed   :  { %v2400_v9 = vmax.f32 %v1378_v61, 0.0  ;;  %v2528_v10 = vmax.f32 %v1890_v62, 0.0  ;;  %v1381_v11 = vadd.f32 %v4201_v52, %v1380_v7  ;;  %v1893_v12 = vadd.f32 %v4201_v52, %v1892_v8 }
  0xee   :  { %2659 = vst.msk [vmem:[%s5560_s3 + $0x10] sm:$0xff] %vm2656_vm2, %v2402_v3  ;;  %2787 = vst.msk [vmem:[%s5560_s3 + $0x410] sm:$0xff] %vm2656_vm2, %v2530_v4  ;;  %v2403_v13 = vmax.f32 %v1389_v5, 0.0  ;;  %v2531_v14 = vmax.f32 %v1901_v6, 0.0  ;;  %3431 = vmatmul.mubr.msk.bf16.gmra.mrb[108].mxu0 %vm954_vm0, %v3705_v59  ;;  %3559 = vmatmul.mubr.msk.bf16.gmra.mrb[108].mxu1 %vm954_vm0, %v3706_v60  ;;  %v3716_v59 = vld [vmem:[%s5558_s0 + $0x3e0] sm:$0xff]  }
  0xef   :  { %2657 = vst.msk [vmem:[%s5560_s3] sm:$0xff] %vm2656_vm2, %v2400_v9  ;;  %2785 = vst.msk [vmem:[%s5560_s3 + $0x400] sm:$0xff] %vm2656_vm2, %v2528_v10  ;;  %v2401_v15 = vmax.f32 %v1381_v11, 0.0  ;;  %v2529_v16 = vmax.f32 %v1893_v12, 0.0  ;;  %3434 = vmatprep.mubr.msk.bf16.mxu0 %vm954_vm0, %v3707_v1  ;;  %3562 = vmatprep.mubr.msk.bf16.mxu1 %vm954_vm0, %v3708_v2 }
  0xf0   :  { %2660 = vst.msk [vmem:[%s5560_s3 + $0x18] sm:$0xff] %vm2656_vm2, %v2403_v13  ;;  %2788 = vst.msk [vmem:[%s5560_s3 + $0x418] sm:$0xff] %vm2656_vm2, %v2531_v14 }
  0xf1   :  { %2658 = vst.msk [vmem:[%s5560_s3 + $0x8] sm:$0xff] %vm2656_vm2, %v2401_v15  ;;  %2786 = vst.msk [vmem:[%s5560_s3 + $0x408] sm:$0xff] %vm2656_vm2, %v2529_v16  ;;  %v3328_v17 = vpop.f32.mrb[4].mxu0  ;;  %v3456_v18 = vpop.f32.mrb[4].mxu1  ;;  %v3717_v16 = vld [vmem:[%s5558_s0 + $0x1e8] sm:$0xff]  }
  0xf2   :  { %v1402_v19 = vadd.f32 %v3328_v17, %v4201_v52  ;;  %v1914_v20 = vadd.f32 %v3456_v18, %v4201_v52  ;;  %v1393_v21 = vpop.f32.mrb[5].mxu0  ;;  %v1905_v22 = vpop.f32.mrb[5].mxu1  ;;  %v3718_v17 = vld [vmem:[%s5558_s0 + $0x3e8] sm:$0xff]  }
  0xf3   :  { %v1394_v25 = vadd.f32 %v4201_v52, %v1393_v21  ;;  %v1906_v26 = vadd.f32 %v4201_v52, %v1905_v22  ;;  %v3329_v27 = vpop.f32.mrb[6].mxu0  ;;  %v3457_v28 = vpop.f32.mrb[6].mxu1  ;;  %v3719_v22 = vld [vmem:[%s5558_s0 + $0x1f0] sm:$0xff]  }
  0xf4   :  { %v2406_v31 = vmax.f32 %v1402_v19, 0.0  ;;  %v2534_v32 = vmax.f32 %v1914_v20, 0.0  ;;  %v1405_v33 = vadd.f32 %v3329_v27, %v4201_v52  ;;  %v1917_v34 = vadd.f32 %v3457_v28, %v4201_v52  ;;  %v1396_v35 = vpop.f32.mrb[7].mxu0  ;;  %v1908_v36 = vpop.f32.mrb[7].mxu1 }
  0xf5   :  { %v2404_v37 = vmax.f32 %v1394_v25, 0.0  ;;  %v2532_v38 = vmax.f32 %v1906_v26, 0.0  ;;  %v1397_v39 = vadd.f32 %v4201_v52, %v1396_v35  ;;  %v1909_v40 = vadd.f32 %v4201_v52, %v1908_v36 }
  0xf6   :  { %2663 = vst.msk [vmem:[%s5560_s3 + $0x30] sm:$0xff] %vm2656_vm2, %v2406_v31  ;;  %2791 = vst.msk [vmem:[%s5560_s3 + $0x430] sm:$0xff] %vm2656_vm2, %v2534_v32  ;;  %v2407_v41 = vmax.f32 %v1405_v33, 0.0  ;;  %v2535_v42 = vmax.f32 %v1917_v34, 0.0  ;;  %3435 = vmatmul.mubr.msk.bf16.gmra.mrb[112].mxu0 %vm954_vm0, %v3709_v23  ;;  %3563 = vmatmul.mubr.msk.bf16.gmra.mrb[112].mxu1 %vm954_vm0, %v3710_v24  ;;  %v3720_v23 = vld [vmem:[%s5558_s0 + $0x3f0] sm:$0xff]  }
  0xf7   :  { %2661 = vst.msk [vmem:[%s5560_s3 + $0x20] sm:$0xff] %vm2656_vm2, %v2404_v37  ;;  %2789 = vst.msk [vmem:[%s5560_s3 + $0x420] sm:$0xff] %vm2656_vm2, %v2532_v38  ;;  %v2405_v43 = vmax.f32 %v1397_v39, 0.0  ;;  %v2533_v44 = vmax.f32 %v1909_v40, 0.0  ;;  %3438 = vmatprep.mubr.msk.bf16.mxu0 %vm954_vm0, %v3711_v29  ;;  %3566 = vmatprep.mubr.msk.bf16.mxu1 %vm954_vm0, %v3712_v30 }
  0xf8   :  { %2664 = vst.msk [vmem:[%s5560_s3 + $0x38] sm:$0xff] %vm2656_vm2, %v2407_v41  ;;  %2792 = vst.msk [vmem:[%s5560_s3 + $0x438] sm:$0xff] %vm2656_vm2, %v2535_v42 }
  0xf9   :  { %2662 = vst.msk [vmem:[%s5560_s3 + $0x28] sm:$0xff] %vm2656_vm2, %v2405_v43  ;;  %2790 = vst.msk [vmem:[%s5560_s3 + $0x428] sm:$0xff] %vm2656_vm2, %v2533_v44  ;;  %v3332_v45 = vpop.f32.mrb[8].mxu0  ;;  %v3460_v46 = vpop.f32.mrb[8].mxu1  ;;  %v3721_v44 = vld [vmem:[%s5558_s0 + $0x1f8] sm:$0xff]  }
  0xfa   :  { %v1418_v47 = vadd.f32 %v3332_v45, %v4201_v52  ;;  %v1930_v48 = vadd.f32 %v3460_v46, %v4201_v52  ;;  %v1409_v49 = vpop.f32.mrb[9].mxu0  ;;  %v1921_v50 = vpop.f32.mrb[9].mxu1  ;;  %v3722_v45 = vld [vmem:[%s5558_s0 + $0x3f8] sm:$0xff]  }
  0xfb   :  { %v1410_v54 = vadd.f32 %v4201_v52, %v1409_v49  ;;  %v1922_v55 = vadd.f32 %v4201_v52, %v1921_v50  ;;  %v3333_v56 = vpop.f32.mrb[10].mxu0  ;;  %v3461_v57 = vpop.f32.mrb[10].mxu1 }
  0xfc   :  { %v2410_v60 = vmax.f32 %v1418_v47, 0.0  ;;  %v2538_v61 = vmax.f32 %v1930_v48, 0.0  ;;  %v1421_v62 = vadd.f32 %v3333_v56, %v4201_v52  ;;  %v1933_v63 = vadd.f32 %v3461_v57, %v4201_v52  ;;  %v1412_v0 = vpop.f32.mrb[11].mxu0  ;;  %v1924_v1 = vpop.f32.mrb[11].mxu1 }
  0xfd   :  { %v2408_v2 = vmax.f32 %v1410_v54, 0.0  ;;  %v2536_v3 = vmax.f32 %v1922_v55, 0.0  ;;  %v1413_v4 = vadd.f32 %v4201_v52, %v1412_v0  ;;  %v1925_v5 = vadd.f32 %v4201_v52, %v1924_v1 }
  0xfe   :  { %2667 = vst.msk [vmem:[%s5560_s3 + $0x50] sm:$0xff] %vm2656_vm2, %v2410_v60  ;;  %2795 = vst.msk [vmem:[%s5560_s3 + $0x450] sm:$0xff] %vm2656_vm2, %v2538_v61  ;;  %v2411_v6 = vmax.f32 %v1421_v62, 0.0  ;;  %v2539_v7 = vmax.f32 %v1933_v63, 0.0  ;;  %3439 = vmatmul.mubr.msk.bf16.gmra.mrb[116].mxu0 %vm954_vm0, %v3713_v51  ;;  %3567 = vmatmul.mubr.msk.bf16.gmra.mrb[116].mxu1 %vm954_vm0, %v3714_v53 }
  0xff   :  { %2665 = vst.msk [vmem:[%s5560_s3 + $0x40] sm:$0xff] %vm2656_vm2, %v2408_v2  ;;  %2793 = vst.msk [vmem:[%s5560_s3 + $0x440] sm:$0xff] %vm2656_vm2, %v2536_v3  ;;  %v2409_v8 = vmax.f32 %v1413_v4, 0.0  ;;  %v2537_v9 = vmax.f32 %v1925_v5, 0.0  ;;  %3442 = vmatprep.mubr.msk.bf16.mxu0 %vm954_vm0, %v3715_v58  ;;  %3570 = vmatprep.mubr.msk.bf16.mxu1 %vm954_vm0, %v3716_v59 }
 0x100   :  { %2668 = vst.msk [vmem:[%s5560_s3 + $0x58] sm:$0xff] %vm2656_vm2, %v2411_v6  ;;  %2796 = vst.msk [vmem:[%s5560_s3 + $0x458] sm:$0xff] %vm2656_vm2, %v2539_v7 }
 0x101   :  { %2666 = vst.msk [vmem:[%s5560_s3 + $0x48] sm:$0xff] %vm2656_vm2, %v2409_v8  ;;  %2794 = vst.msk [vmem:[%s5560_s3 + $0x448] sm:$0xff] %vm2656_vm2, %v2537_v9  ;;  %v3336_v10 = vpop.f32.mrb[12].mxu0  ;;  %v3464_v11 = vpop.f32.mrb[12].mxu1 }
 0x102   :  { %v1434_v12 = vadd.f32 %v3336_v10, %v4201_v52  ;;  %v1946_v13 = vadd.f32 %v3464_v11, %v4201_v52  ;;  %v1425_v14 = vpop.f32.mrb[13].mxu0  ;;  %v1937_v15 = vpop.f32.mrb[13].mxu1 }
 0x103   :  { %v1426_v18 = vadd.f32 %v4201_v52, %v1425_v14  ;;  %v1938_v19 = vadd.f32 %v4201_v52, %v1937_v15  ;;  %v3337_v20 = vpop.f32.mrb[14].mxu0  ;;  %v3465_v21 = vpop.f32.mrb[14].mxu1 }
 0x104   :  { %v2414_v24 = vmax.f32 %v1434_v12, 0.0  ;;  %v2542_v25 = vmax.f32 %v1946_v13, 0.0  ;;  %v1437_v26 = vadd.f32 %v3337_v20, %v4201_v52  ;;  %v1949_v27 = vadd.f32 %v3465_v21, %v4201_v52  ;;  %v1428_v28 = vpop.f32.mrb[15].mxu0  ;;  %v1940_v29 = vpop.f32.mrb[15].mxu1 }
 0x105   :  { %v2412_v30 = vmax.f32 %v1426_v18, 0.0  ;;  %v2540_v31 = vmax.f32 %v1938_v19, 0.0  ;;  %v1429_v32 = vadd.f32 %v4201_v52, %v1428_v28  ;;  %v1941_v33 = vadd.f32 %v4201_v52, %v1940_v29 }
 0x106   :  { %2671 = vst.msk [vmem:[%s5560_s3 + $0x70] sm:$0xff] %vm2656_vm2, %v2414_v24  ;;  %2799 = vst.msk [vmem:[%s5560_s3 + $0x470] sm:$0xff] %vm2656_vm2, %v2542_v25  ;;  %v2415_v34 = vmax.f32 %v1437_v26, 0.0  ;;  %v2543_v35 = vmax.f32 %v1949_v27, 0.0  ;;  %3443 = vmatmul.mubr.msk.bf16.gmra.mrb[120].mxu0 %vm954_vm0, %v3717_v16  ;;  %3571 = vmatmul.mubr.msk.bf16.gmra.mrb[120].mxu1 %vm954_vm0, %v3718_v17 }
 0x107   :  { %2669 = vst.msk [vmem:[%s5560_s3 + $0x60] sm:$0xff] %vm2656_vm2, %v2412_v30  ;;  %2797 = vst.msk [vmem:[%s5560_s3 + $0x460] sm:$0xff] %vm2656_vm2, %v2540_v31  ;;  %v2413_v36 = vmax.f32 %v1429_v32, 0.0  ;;  %v2541_v37 = vmax.f32 %v1941_v33, 0.0  ;;  %3446 = vmatprep.mubr.msk.bf16.mxu0 %vm954_vm0, %v3719_v22  ;;  %3574 = vmatprep.mubr.msk.bf16.mxu1 %vm954_vm0, %v3720_v23 }
 0x108   :  { %2672 = vst.msk [vmem:[%s5560_s3 + $0x78] sm:$0xff] %vm2656_vm2, %v2415_v34  ;;  %2800 = vst.msk [vmem:[%s5560_s3 + $0x478] sm:$0xff] %vm2656_vm2, %v2543_v35 }
 0x109   :  { %2670 = vst.msk [vmem:[%s5560_s3 + $0x68] sm:$0xff] %vm2656_vm2, %v2413_v36  ;;  %2798 = vst.msk [vmem:[%s5560_s3 + $0x468] sm:$0xff] %vm2656_vm2, %v2541_v37  ;;  %v3340_v38 = vpop.f32.mrb[16].mxu0  ;;  %v3468_v39 = vpop.f32.mrb[16].mxu1 }
 0x10a   :  { %v1450_v40 = vadd.f32 %v3340_v38, %v4201_v52  ;;  %v1962_v41 = vadd.f32 %v3468_v39, %v4201_v52  ;;  %v1441_v42 = vpop.f32.mrb[17].mxu0  ;;  %v1953_v43 = vpop.f32.mrb[17].mxu1 }
 0x10b   :  { %v1442_v46 = vadd.f32 %v4201_v52, %v1441_v42  ;;  %v1954_v47 = vadd.f32 %v4201_v52, %v1953_v43  ;;  %v3341_v48 = vpop.f32.mrb[18].mxu0  ;;  %v3469_v49 = vpop.f32.mrb[18].mxu1 }
 0x10c   :  { %v2418_v50 = vmax.f32 %v1450_v40, 0.0  ;;  %v2546_v51 = vmax.f32 %v1962_v41, 0.0  ;;  %v1453_v53 = vadd.f32 %v3341_v48, %v4201_v52  ;;  %v1965_v54 = vadd.f32 %v3469_v49, %v4201_v52  ;;  %v1444_v55 = vpop.f32.mrb[19].mxu0  ;;  %v1956_v56 = vpop.f32.mrb[19].mxu1 }
 0x10d   :  { %v2416_v57 = vmax.f32 %v1442_v46, 0.0  ;;  %v2544_v58 = vmax.f32 %v1954_v47, 0.0  ;;  %v1445_v59 = vadd.f32 %v4201_v52, %v1444_v55  ;;  %v1957_v60 = vadd.f32 %v4201_v52, %v1956_v56 }
 0x10e   :  { %2675 = vst.msk [vmem:[%s5560_s3 + $0x90] sm:$0xff] %vm2656_vm2, %v2418_v50  ;;  %2803 = vst.msk [vmem:[%s5560_s3 + $0x490] sm:$0xff] %vm2656_vm2, %v2546_v51  ;;  %v2419_v61 = vmax.f32 %v1453_v53, 0.0  ;;  %v2547_v62 = vmax.f32 %v1965_v54, 0.0  ;;  %3447 = vmatmul.mubr.msk.bf16.gmra.mrb[124].mxu0 %vm954_vm0, %v3721_v44  ;;  %3575 = vmatmul.mubr.msk.bf16.gmra.mrb[124].mxu1 %vm954_vm0, %v3722_v45 }
 0x10f   :  { %2673 = vst.msk [vmem:[%s5560_s3 + $0x80] sm:$0xff] %vm2656_vm2, %v2416_v57  ;;  %2801 = vst.msk [vmem:[%s5560_s3 + $0x480] sm:$0xff] %vm2656_vm2, %v2544_v58  ;;  %v2417_v63 = vmax.f32 %v1445_v59, 0.0  ;;  %v2545_v0 = vmax.f32 %v1957_v60, 0.0 }
 0x110   :  { %2676 = vst.msk [vmem:[%s5560_s3 + $0x98] sm:$0xff] %vm2656_vm2, %v2419_v61  ;;  %2804 = vst.msk [vmem:[%s5560_s3 + $0x498] sm:$0xff] %vm2656_vm2, %v2547_v62 }
 0x111   :  { %2674 = vst.msk [vmem:[%s5560_s3 + $0x88] sm:$0xff] %vm2656_vm2, %v2417_v63  ;;  %2802 = vst.msk [vmem:[%s5560_s3 + $0x488] sm:$0xff] %vm2656_vm2, %v2545_v0  ;;  %v3344_v1 = vpop.f32.mrb[20].mxu0  ;;  %v3472_v2 = vpop.f32.mrb[20].mxu1 }
 0x112   :  { %v1466_v3 = vadd.f32 %v3344_v1, %v4201_v52  ;;  %v1978_v4 = vadd.f32 %v3472_v2, %v4201_v52  ;;  %v1457_v5 = vpop.f32.mrb[21].mxu0  ;;  %v1969_v6 = vpop.f32.mrb[21].mxu1 }
 0x113   :  { %v1458_v7 = vadd.f32 %v4201_v52, %v1457_v5  ;;  %v1970_v8 = vadd.f32 %v4201_v52, %v1969_v6  ;;  %v3345_v9 = vpop.f32.mrb[22].mxu0  ;;  %v3473_v10 = vpop.f32.mrb[22].mxu1 }
 0x114   :  { %v2422_v11 = vmax.f32 %v1466_v3, 0.0  ;;  %v2550_v12 = vmax.f32 %v1978_v4, 0.0  ;;  %v1469_v13 = vadd.f32 %v3345_v9, %v4201_v52  ;;  %v1981_v14 = vadd.f32 %v3473_v10, %v4201_v52  ;;  %v1460_v15 = vpop.f32.mrb[23].mxu0  ;;  %v1972_v16 = vpop.f32.mrb[23].mxu1 }
 0x115   :  { %v2420_v17 = vmax.f32 %v1458_v7, 0.0  ;;  %v2548_v18 = vmax.f32 %v1970_v8, 0.0  ;;  %v1461_v19 = vadd.f32 %v4201_v52, %v1460_v15  ;;  %v1973_v20 = vadd.f32 %v4201_v52, %v1972_v16 }
 0x116   :  { %2679 = vst.msk [vmem:[%s5560_s3 + $0xb0] sm:$0xff] %vm2656_vm2, %v2422_v11  ;;  %2807 = vst.msk [vmem:[%s5560_s3 + $0x4b0] sm:$0xff] %vm2656_vm2, %v2550_v12  ;;  %v2423_v21 = vmax.f32 %v1469_v13, 0.0  ;;  %v2551_v22 = vmax.f32 %v1981_v14, 0.0 }
 0x117   :  { %2677 = vst.msk [vmem:[%s5560_s3 + $0xa0] sm:$0xff] %vm2656_vm2, %v2420_v17  ;;  %2805 = vst.msk [vmem:[%s5560_s3 + $0x4a0] sm:$0xff] %vm2656_vm2, %v2548_v18  ;;  %v2421_v23 = vmax.f32 %v1461_v19, 0.0  ;;  %v2549_v24 = vmax.f32 %v1973_v20, 0.0 }
 0x118   :  { %2680 = vst.msk [vmem:[%s5560_s3 + $0xb8] sm:$0xff] %vm2656_vm2, %v2423_v21  ;;  %2808 = vst.msk [vmem:[%s5560_s3 + $0x4b8] sm:$0xff] %vm2656_vm2, %v2551_v22 }
 0x119   :  { %2678 = vst.msk [vmem:[%s5560_s3 + $0xa8] sm:$0xff] %vm2656_vm2, %v2421_v23  ;;  %2806 = vst.msk [vmem:[%s5560_s3 + $0x4a8] sm:$0xff] %vm2656_vm2, %v2549_v24  ;;  %v3348_v25 = vpop.f32.mrb[24].mxu0  ;;  %v3476_v26 = vpop.f32.mrb[24].mxu1 }
 0x11a   :  { %v1482_v27 = vadd.f32 %v3348_v25, %v4201_v52  ;;  %v1994_v28 = vadd.f32 %v3476_v26, %v4201_v52  ;;  %v1473_v29 = vpop.f32.mrb[25].mxu0  ;;  %v1985_v30 = vpop.f32.mrb[25].mxu1 }
 0x11b   :  { %v1474_v31 = vadd.f32 %v4201_v52, %v1473_v29  ;;  %v1986_v32 = vadd.f32 %v4201_v52, %v1985_v30  ;;  %v3349_v33 = vpop.f32.mrb[26].mxu0  ;;  %v3477_v34 = vpop.f32.mrb[26].mxu1 }
 0x11c   :  { %v2426_v35 = vmax.f32 %v1482_v27, 0.0  ;;  %v2554_v36 = vmax.f32 %v1994_v28, 0.0  ;;  %v1485_v37 = vadd.f32 %v3349_v33, %v4201_v52  ;;  %v1997_v38 = vadd.f32 %v3477_v34, %v4201_v52  ;;  %v1476_v39 = vpop.f32.mrb[27].mxu0  ;;  %v1988_v40 = vpop.f32.mrb[27].mxu1 }
 0x11d   :  { %v2424_v41 = vmax.f32 %v1474_v31, 0.0  ;;  %v2552_v42 = vmax.f32 %v1986_v32, 0.0  ;;  %v1477_v43 = vadd.f32 %v4201_v52, %v1476_v39  ;;  %v1989_v44 = vadd.f32 %v4201_v52, %v1988_v40 }
 0x11e   :  { %2683 = vst.msk [vmem:[%s5560_s3 + $0xd0] sm:$0xff] %vm2656_vm2, %v2426_v35  ;;  %2811 = vst.msk [vmem:[%s5560_s3 + $0x4d0] sm:$0xff] %vm2656_vm2, %v2554_v36  ;;  %v2427_v45 = vmax.f32 %v1485_v37, 0.0  ;;  %v2555_v46 = vmax.f32 %v1997_v38, 0.0 }
 0x11f   :  { %2681 = vst.msk [vmem:[%s5560_s3 + $0xc0] sm:$0xff] %vm2656_vm2, %v2424_v41  ;;  %2809 = vst.msk [vmem:[%s5560_s3 + $0x4c0] sm:$0xff] %vm2656_vm2, %v2552_v42  ;;  %v2425_v47 = vmax.f32 %v1477_v43, 0.0  ;;  %v2553_v48 = vmax.f32 %v1989_v44, 0.0 }
 0x120   :  { %2684 = vst.msk [vmem:[%s5560_s3 + $0xd8] sm:$0xff] %vm2656_vm2, %v2427_v45  ;;  %2812 = vst.msk [vmem:[%s5560_s3 + $0x4d8] sm:$0xff] %vm2656_vm2, %v2555_v46 }
 0x121   :  { %2682 = vst.msk [vmem:[%s5560_s3 + $0xc8] sm:$0xff] %vm2656_vm2, %v2425_v47  ;;  %2810 = vst.msk [vmem:[%s5560_s3 + $0x4c8] sm:$0xff] %vm2656_vm2, %v2553_v48  ;;  %v3352_v49 = vpop.f32.mrb[28].mxu0  ;;  %v3480_v50 = vpop.f32.mrb[28].mxu1 }
 0x122   :  { %v1498_v51 = vadd.f32 %v3352_v49, %v4201_v52  ;;  %v2010_v53 = vadd.f32 %v3480_v50, %v4201_v52  ;;  %v1489_v54 = vpop.f32.mrb[29].mxu0  ;;  %v2001_v55 = vpop.f32.mrb[29].mxu1 }
 0x123   :  { %v1490_v56 = vadd.f32 %v4201_v52, %v1489_v54  ;;  %v2002_v57 = vadd.f32 %v4201_v52, %v2001_v55  ;;  %v3353_v58 = vpop.f32.mrb[30].mxu0  ;;  %v3481_v59 = vpop.f32.mrb[30].mxu1 }
 0x124   :  { %v2430_v60 = vmax.f32 %v1498_v51, 0.0  ;;  %v2558_v61 = vmax.f32 %v2010_v53, 0.0  ;;  %v1501_v62 = vadd.f32 %v3353_v58, %v4201_v52  ;;  %v2013_v63 = vadd.f32 %v3481_v59, %v4201_v52  ;;  %v1492_v0 = vpop.f32.mrb[31].mxu0  ;;  %v2004_v1 = vpop.f32.mrb[31].mxu1 }
 0x125   :  { %v2428_v2 = vmax.f32 %v1490_v56, 0.0  ;;  %v2556_v3 = vmax.f32 %v2002_v57, 0.0  ;;  %v1493_v4 = vadd.f32 %v4201_v52, %v1492_v0  ;;  %v2005_v5 = vadd.f32 %v4201_v52, %v2004_v1 }
 0x126   :  { %2687 = vst.msk [vmem:[%s5560_s3 + $0xf0] sm:$0xff] %vm2656_vm2, %v2430_v60  ;;  %2815 = vst.msk [vmem:[%s5560_s3 + $0x4f0] sm:$0xff] %vm2656_vm2, %v2558_v61  ;;  %v2431_v6 = vmax.f32 %v1501_v62, 0.0  ;;  %v2559_v7 = vmax.f32 %v2013_v63, 0.0 }
 0x127   :  { %2685 = vst.msk [vmem:[%s5560_s3 + $0xe0] sm:$0xff] %vm2656_vm2, %v2428_v2  ;;  %2813 = vst.msk [vmem:[%s5560_s3 + $0x4e0] sm:$0xff] %vm2656_vm2, %v2556_v3  ;;  %v2429_v8 = vmax.f32 %v1493_v4, 0.0  ;;  %v2557_v9 = vmax.f32 %v2005_v5, 0.0 }
 0x128   :  { %2688 = vst.msk [vmem:[%s5560_s3 + $0xf8] sm:$0xff] %vm2656_vm2, %v2431_v6  ;;  %2816 = vst.msk [vmem:[%s5560_s3 + $0x4f8] sm:$0xff] %vm2656_vm2, %v2559_v7 }
 0x129   :  { %2686 = vst.msk [vmem:[%s5560_s3 + $0xe8] sm:$0xff] %vm2656_vm2, %v2429_v8  ;;  %2814 = vst.msk [vmem:[%s5560_s3 + $0x4e8] sm:$0xff] %vm2656_vm2, %v2557_v9  ;;  %v3356_v10 = vpop.f32.mrb[32].mxu0  ;;  %v3484_v11 = vpop.f32.mrb[32].mxu1 }
 0x12a   :  { %v1514_v12 = vadd.f32 %v3356_v10, %v4201_v52  ;;  %v2026_v13 = vadd.f32 %v3484_v11, %v4201_v52  ;;  %v1505_v14 = vpop.f32.mrb[33].mxu0  ;;  %v2017_v15 = vpop.f32.mrb[33].mxu1 }
 0x12b   :  { %v1506_v16 = vadd.f32 %v4201_v52, %v1505_v14  ;;  %v2018_v17 = vadd.f32 %v4201_v52, %v2017_v15  ;;  %v3357_v18 = vpop.f32.mrb[34].mxu0  ;;  %v3485_v19 = vpop.f32.mrb[34].mxu1 }
 0x12c   :  { %v2434_v20 = vmax.f32 %v1514_v12, 0.0  ;;  %v2562_v21 = vmax.f32 %v2026_v13, 0.0  ;;  %v1517_v22 = vadd.f32 %v3357_v18, %v4201_v52  ;;  %v2029_v23 = vadd.f32 %v3485_v19, %v4201_v52  ;;  %v1508_v24 = vpop.f32.mrb[35].mxu0  ;;  %v2020_v25 = vpop.f32.mrb[35].mxu1 }
 0x12d   :  { %v2432_v26 = vmax.f32 %v1506_v16, 0.0  ;;  %v2560_v27 = vmax.f32 %v2018_v17, 0.0  ;;  %v1509_v28 = vadd.f32 %v4201_v52, %v1508_v24  ;;  %v2021_v29 = vadd.f32 %v4201_v52, %v2020_v25 }
 0x12e   :  { %2691 = vst.msk [vmem:[%s5560_s3 + $0x110] sm:$0xff] %vm2656_vm2, %v2434_v20  ;;  %2819 = vst.msk [vmem:[%s5560_s3 + $0x510] sm:$0xff] %vm2656_vm2, %v2562_v21  ;;  %v2435_v30 = vmax.f32 %v1517_v22, 0.0  ;;  %v2563_v31 = vmax.f32 %v2029_v23, 0.0 }
 0x12f   :  { %2689 = vst.msk [vmem:[%s5560_s3 + $0x100] sm:$0xff] %vm2656_vm2, %v2432_v26  ;;  %2817 = vst.msk [vmem:[%s5560_s3 + $0x500] sm:$0xff] %vm2656_vm2, %v2560_v27  ;;  %v2433_v32 = vmax.f32 %v1509_v28, 0.0  ;;  %v2561_v33 = vmax.f32 %v2021_v29, 0.0 }
 0x130   :  { %2692 = vst.msk [vmem:[%s5560_s3 + $0x118] sm:$0xff] %vm2656_vm2, %v2435_v30  ;;  %2820 = vst.msk [vmem:[%s5560_s3 + $0x518] sm:$0xff] %vm2656_vm2, %v2563_v31 }
 0x131   :  { %2690 = vst.msk [vmem:[%s5560_s3 + $0x108] sm:$0xff] %vm2656_vm2, %v2433_v32  ;;  %2818 = vst.msk [vmem:[%s5560_s3 + $0x508] sm:$0xff] %vm2656_vm2, %v2561_v33  ;;  %v3360_v34 = vpop.f32.mrb[36].mxu0  ;;  %v3488_v35 = vpop.f32.mrb[36].mxu1 }
 0x132   :  { %v1530_v36 = vadd.f32 %v3360_v34, %v4201_v52  ;;  %v2042_v37 = vadd.f32 %v3488_v35, %v4201_v52  ;;  %v1521_v38 = vpop.f32.mrb[37].mxu0  ;;  %v2033_v39 = vpop.f32.mrb[37].mxu1 }
 0x133   :  { %v1522_v40 = vadd.f32 %v4201_v52, %v1521_v38  ;;  %v2034_v41 = vadd.f32 %v4201_v52, %v2033_v39  ;;  %v3361_v42 = vpop.f32.mrb[38].mxu0  ;;  %v3489_v43 = vpop.f32.mrb[38].mxu1 }
 0x134   :  { %v2438_v44 = vmax.f32 %v1530_v36, 0.0  ;;  %v2566_v45 = vmax.f32 %v2042_v37, 0.0  ;;  %v1533_v46 = vadd.f32 %v3361_v42, %v4201_v52  ;;  %v2045_v47 = vadd.f32 %v3489_v43, %v4201_v52  ;;  %v1524_v48 = vpop.f32.mrb[39].mxu0  ;;  %v2036_v49 = vpop.f32.mrb[39].mxu1 }
 0x135   :  { %v2436_v50 = vmax.f32 %v1522_v40, 0.0  ;;  %v2564_v51 = vmax.f32 %v2034_v41, 0.0  ;;  %v1525_v53 = vadd.f32 %v4201_v52, %v1524_v48  ;;  %v2037_v54 = vadd.f32 %v4201_v52, %v2036_v49 }
 0x136   :  { %2695 = vst.msk [vmem:[%s5560_s3 + $0x130] sm:$0xff] %vm2656_vm2, %v2438_v44  ;;  %2823 = vst.msk [vmem:[%s5560_s3 + $0x530] sm:$0xff] %vm2656_vm2, %v2566_v45  ;;  %v2439_v55 = vmax.f32 %v1533_v46, 0.0  ;;  %v2567_v56 = vmax.f32 %v2045_v47, 0.0 }
 0x137   :  { %2693 = vst.msk [vmem:[%s5560_s3 + $0x120] sm:$0xff] %vm2656_vm2, %v2436_v50  ;;  %2821 = vst.msk [vmem:[%s5560_s3 + $0x520] sm:$0xff] %vm2656_vm2, %v2564_v51  ;;  %v2437_v57 = vmax.f32 %v1525_v53, 0.0  ;;  %v2565_v58 = vmax.f32 %v2037_v54, 0.0 }
 0x138   :  { %2696 = vst.msk [vmem:[%s5560_s3 + $0x138] sm:$0xff] %vm2656_vm2, %v2439_v55  ;;  %2824 = vst.msk [vmem:[%s5560_s3 + $0x538] sm:$0xff] %vm2656_vm2, %v2567_v56 }
 0x139   :  { %2694 = vst.msk [vmem:[%s5560_s3 + $0x128] sm:$0xff] %vm2656_vm2, %v2437_v57  ;;  %2822 = vst.msk [vmem:[%s5560_s3 + $0x528] sm:$0xff] %vm2656_vm2, %v2565_v58  ;;  %v3364_v59 = vpop.f32.mrb[40].mxu0  ;;  %v3492_v60 = vpop.f32.mrb[40].mxu1 }
 0x13a   :  { %v1546_v61 = vadd.f32 %v3364_v59, %v4201_v52  ;;  %v2058_v62 = vadd.f32 %v3492_v60, %v4201_v52  ;;  %v1537_v63 = vpop.f32.mrb[41].mxu0  ;;  %v2049_v0 = vpop.f32.mrb[41].mxu1 }
 0x13b   :  { %v1538_v1 = vadd.f32 %v4201_v52, %v1537_v63  ;;  %v2050_v2 = vadd.f32 %v4201_v52, %v2049_v0  ;;  %v3365_v3 = vpop.f32.mrb[42].mxu0  ;;  %v3493_v4 = vpop.f32.mrb[42].mxu1 }
 0x13c   :  { %v2442_v5 = vmax.f32 %v1546_v61, 0.0  ;;  %v2570_v6 = vmax.f32 %v2058_v62, 0.0  ;;  %v1549_v7 = vadd.f32 %v3365_v3, %v4201_v52  ;;  %v2061_v8 = vadd.f32 %v3493_v4, %v4201_v52  ;;  %v1540_v9 = vpop.f32.mrb[43].mxu0  ;;  %v2052_v10 = vpop.f32.mrb[43].mxu1 }
 0x13d   :  { %v2440_v11 = vmax.f32 %v1538_v1, 0.0  ;;  %v2568_v12 = vmax.f32 %v2050_v2, 0.0  ;;  %v1541_v13 = vadd.f32 %v4201_v52, %v1540_v9  ;;  %v2053_v14 = vadd.f32 %v4201_v52, %v2052_v10 }
 0x13e   :  { %2699 = vst.msk [vmem:[%s5560_s3 + $0x150] sm:$0xff] %vm2656_vm2, %v2442_v5  ;;  %2827 = vst.msk [vmem:[%s5560_s3 + $0x550] sm:$0xff] %vm2656_vm2, %v2570_v6  ;;  %v2443_v15 = vmax.f32 %v1549_v7, 0.0  ;;  %v2571_v16 = vmax.f32 %v2061_v8, 0.0 }
 0x13f   :  { %2697 = vst.msk [vmem:[%s5560_s3 + $0x140] sm:$0xff] %vm2656_vm2, %v2440_v11  ;;  %2825 = vst.msk [vmem:[%s5560_s3 + $0x540] sm:$0xff] %vm2656_vm2, %v2568_v12  ;;  %v2441_v17 = vmax.f32 %v1541_v13, 0.0  ;;  %v2569_v18 = vmax.f32 %v2053_v14, 0.0 }
 0x140   :  { %2700 = vst.msk [vmem:[%s5560_s3 + $0x158] sm:$0xff] %vm2656_vm2, %v2443_v15  ;;  %2828 = vst.msk [vmem:[%s5560_s3 + $0x558] sm:$0xff] %vm2656_vm2, %v2571_v16 }
 0x141   :  { %2698 = vst.msk [vmem:[%s5560_s3 + $0x148] sm:$0xff] %vm2656_vm2, %v2441_v17  ;;  %2826 = vst.msk [vmem:[%s5560_s3 + $0x548] sm:$0xff] %vm2656_vm2, %v2569_v18  ;;  %v3368_v19 = vpop.f32.mrb[44].mxu0  ;;  %v3496_v20 = vpop.f32.mrb[44].mxu1 }
 0x142   :  { %v1562_v21 = vadd.f32 %v3368_v19, %v4201_v52  ;;  %v2074_v22 = vadd.f32 %v3496_v20, %v4201_v52  ;;  %v1553_v23 = vpop.f32.mrb[45].mxu0  ;;  %v2065_v24 = vpop.f32.mrb[45].mxu1 }
 0x143   :  { %v1554_v25 = vadd.f32 %v4201_v52, %v1553_v23  ;;  %v2066_v26 = vadd.f32 %v4201_v52, %v2065_v24  ;;  %v3369_v27 = vpop.f32.mrb[46].mxu0  ;;  %v3497_v28 = vpop.f32.mrb[46].mxu1 }
 0x144   :  { %v2446_v29 = vmax.f32 %v1562_v21, 0.0  ;;  %v2574_v30 = vmax.f32 %v2074_v22, 0.0  ;;  %v1565_v31 = vadd.f32 %v3369_v27, %v4201_v52  ;;  %v2077_v32 = vadd.f32 %v3497_v28, %v4201_v52  ;;  %v1556_v33 = vpop.f32.mrb[47].mxu0  ;;  %v2068_v34 = vpop.f32.mrb[47].mxu1 }
 0x145   :  { %v2444_v35 = vmax.f32 %v1554_v25, 0.0  ;;  %v2572_v36 = vmax.f32 %v2066_v26, 0.0  ;;  %v1557_v37 = vadd.f32 %v4201_v52, %v1556_v33  ;;  %v2069_v38 = vadd.f32 %v4201_v52, %v2068_v34 }
 0x146   :  { %2703 = vst.msk [vmem:[%s5560_s3 + $0x170] sm:$0xff] %vm2656_vm2, %v2446_v29  ;;  %2831 = vst.msk [vmem:[%s5560_s3 + $0x570] sm:$0xff] %vm2656_vm2, %v2574_v30  ;;  %v2447_v39 = vmax.f32 %v1565_v31, 0.0  ;;  %v2575_v40 = vmax.f32 %v2077_v32, 0.0 }
 0x147   :  { %2701 = vst.msk [vmem:[%s5560_s3 + $0x160] sm:$0xff] %vm2656_vm2, %v2444_v35  ;;  %2829 = vst.msk [vmem:[%s5560_s3 + $0x560] sm:$0xff] %vm2656_vm2, %v2572_v36  ;;  %v2445_v41 = vmax.f32 %v1557_v37, 0.0  ;;  %v2573_v42 = vmax.f32 %v2069_v38, 0.0 }
 0x148   :  { %2704 = vst.msk [vmem:[%s5560_s3 + $0x178] sm:$0xff] %vm2656_vm2, %v2447_v39  ;;  %2832 = vst.msk [vmem:[%s5560_s3 + $0x578] sm:$0xff] %vm2656_vm2, %v2575_v40 }
 0x149   :  { %2702 = vst.msk [vmem:[%s5560_s3 + $0x168] sm:$0xff] %vm2656_vm2, %v2445_v41  ;;  %2830 = vst.msk [vmem:[%s5560_s3 + $0x568] sm:$0xff] %vm2656_vm2, %v2573_v42  ;;  %v3372_v43 = vpop.f32.mrb[48].mxu0  ;;  %v3500_v44 = vpop.f32.mrb[48].mxu1 }
 0x14a   :  { %v1578_v45 = vadd.f32 %v3372_v43, %v4201_v52  ;;  %v2090_v46 = vadd.f32 %v3500_v44, %v4201_v52  ;;  %v1569_v47 = vpop.f32.mrb[49].mxu0  ;;  %v2081_v48 = vpop.f32.mrb[49].mxu1 }
 0x14b   :  { %v1570_v49 = vadd.f32 %v4201_v52, %v1569_v47  ;;  %v2082_v50 = vadd.f32 %v4201_v52, %v2081_v48  ;;  %v3373_v51 = vpop.f32.mrb[50].mxu0  ;;  %v3501_v53 = vpop.f32.mrb[50].mxu1 }
 0x14c   :  { %v2450_v54 = vmax.f32 %v1578_v45, 0.0  ;;  %v2578_v55 = vmax.f32 %v2090_v46, 0.0  ;;  %v1581_v56 = vadd.f32 %v3373_v51, %v4201_v52  ;;  %v2093_v57 = vadd.f32 %v3501_v53, %v4201_v52  ;;  %v1572_v58 = vpop.f32.mrb[51].mxu0  ;;  %v2084_v59 = vpop.f32.mrb[51].mxu1 }
 0x14d   :  { %v2448_v60 = vmax.f32 %v1570_v49, 0.0  ;;  %v2576_v61 = vmax.f32 %v2082_v50, 0.0  ;;  %v1573_v62 = vadd.f32 %v4201_v52, %v1572_v58  ;;  %v2085_v63 = vadd.f32 %v4201_v52, %v2084_v59 }
 0x14e   :  { %2707 = vst.msk [vmem:[%s5560_s3 + $0x190] sm:$0xff] %vm2656_vm2, %v2450_v54  ;;  %2835 = vst.msk [vmem:[%s5560_s3 + $0x590] sm:$0xff] %vm2656_vm2, %v2578_v55  ;;  %v2451_v0 = vmax.f32 %v1581_v56, 0.0  ;;  %v2579_v1 = vmax.f32 %v2093_v57, 0.0  ;;  %v4880_v54 = vld [vmem:[%s5559_s2] ss:$0 sm:$0xff] }
 0x14f   :  { %2705 = vst.msk [vmem:[%s5560_s3 + $0x180] sm:$0xff] %vm2656_vm2, %v2448_v60  ;;  %2833 = vst.msk [vmem:[%s5560_s3 + $0x580] sm:$0xff] %vm2656_vm2, %v2576_v61  ;;  %v2449_v2 = vmax.f32 %v1573_v62, 0.0  ;;  %v2577_v3 = vmax.f32 %v2085_v63, 0.0 }
 0x150   :  { %2708 = vst.msk [vmem:[%s5560_s3 + $0x198] sm:$0xff] %vm2656_vm2, %v2451_v0  ;;  %2836 = vst.msk [vmem:[%s5560_s3 + $0x598] sm:$0xff] %vm2656_vm2, %v2579_v1 }
 0x151   :  { %2706 = vst.msk [vmem:[%s5560_s3 + $0x188] sm:$0xff] %vm2656_vm2, %v2449_v2  ;;  %2834 = vst.msk [vmem:[%s5560_s3 + $0x588] sm:$0xff] %vm2656_vm2, %v2577_v3  ;;  %v3376_v4 = vpop.f32.mrb[52].mxu0  ;;  %v3504_v5 = vpop.f32.mrb[52].mxu1 }
 0x152   :  { %v1594_v6 = vadd.f32 %v3376_v4, %v4201_v52  ;;  %v2106_v7 = vadd.f32 %v3504_v5, %v4201_v52  ;;  %v1585_v8 = vpop.f32.mrb[53].mxu0  ;;  %v2097_v9 = vpop.f32.mrb[53].mxu1 }
 0x153   :  { %v1586_v10 = vadd.f32 %v4201_v52, %v1585_v8  ;;  %v2098_v11 = vadd.f32 %v4201_v52, %v2097_v9  ;;  %v3377_v12 = vpop.f32.mrb[54].mxu0  ;;  %v3505_v13 = vpop.f32.mrb[54].mxu1 }
 0x154   :  { %v2454_v14 = vmax.f32 %v1594_v6, 0.0  ;;  %v2582_v15 = vmax.f32 %v2106_v7, 0.0  ;;  %v1597_v16 = vadd.f32 %v3377_v12, %v4201_v52  ;;  %v2109_v17 = vadd.f32 %v3505_v13, %v4201_v52  ;;  %v1588_v18 = vpop.f32.mrb[55].mxu0  ;;  %v2100_v19 = vpop.f32.mrb[55].mxu1 }
 0x155   :  { %v2452_v20 = vmax.f32 %v1586_v10, 0.0  ;;  %v2580_v21 = vmax.f32 %v2098_v11, 0.0  ;;  %v1589_v22 = vadd.f32 %v4201_v52, %v1588_v18  ;;  %v2101_v23 = vadd.f32 %v4201_v52, %v2100_v19 }
 0x156   :  { %2711 = vst.msk [vmem:[%s5560_s3 + $0x1b0] sm:$0xff] %vm2656_vm2, %v2454_v14  ;;  %2839 = vst.msk [vmem:[%s5560_s3 + $0x5b0] sm:$0xff] %vm2656_vm2, %v2582_v15  ;;  %v2455_v24 = vmax.f32 %v1597_v16, 0.0  ;;  %v2583_v25 = vmax.f32 %v2109_v17, 0.0 }
 0x157   :  { %2709 = vst.msk [vmem:[%s5560_s3 + $0x1a0] sm:$0xff] %vm2656_vm2, %v2452_v20  ;;  %2837 = vst.msk [vmem:[%s5560_s3 + $0x5a0] sm:$0xff] %vm2656_vm2, %v2580_v21  ;;  %v2453_v26 = vmax.f32 %v1589_v22, 0.0  ;;  %v2581_v27 = vmax.f32 %v2101_v23, 0.0 }
 0x158   :  { %2712 = vst.msk [vmem:[%s5560_s3 + $0x1b8] sm:$0xff] %vm2656_vm2, %v2455_v24  ;;  %2840 = vst.msk [vmem:[%s5560_s3 + $0x5b8] sm:$0xff] %vm2656_vm2, %v2583_v25 }
 0x159   :  { %2710 = vst.msk [vmem:[%s5560_s3 + $0x1a8] sm:$0xff] %vm2656_vm2, %v2453_v26  ;;  %2838 = vst.msk [vmem:[%s5560_s3 + $0x5a8] sm:$0xff] %vm2656_vm2, %v2581_v27  ;;  %v3380_v28 = vpop.f32.mrb[56].mxu0  ;;  %v3508_v29 = vpop.f32.mrb[56].mxu1 }
 0x15a   :  { %v1610_v30 = vadd.f32 %v3380_v28, %v4201_v52  ;;  %v2122_v31 = vadd.f32 %v3508_v29, %v4201_v52  ;;  %v1601_v32 = vpop.f32.mrb[57].mxu0  ;;  %v2113_v33 = vpop.f32.mrb[57].mxu1 }
 0x15b   :  { %v1602_v34 = vadd.f32 %v4201_v52, %v1601_v32  ;;  %v2114_v35 = vadd.f32 %v4201_v52, %v2113_v33  ;;  %v3381_v36 = vpop.f32.mrb[58].mxu0  ;;  %v3509_v37 = vpop.f32.mrb[58].mxu1 }
 0x15c   :  { %v2458_v38 = vmax.f32 %v1610_v30, 0.0  ;;  %v2586_v39 = vmax.f32 %v2122_v31, 0.0  ;;  %v1613_v40 = vadd.f32 %v3381_v36, %v4201_v52  ;;  %v2125_v41 = vadd.f32 %v3509_v37, %v4201_v52  ;;  %v1604_v42 = vpop.f32.mrb[59].mxu0  ;;  %v2116_v43 = vpop.f32.mrb[59].mxu1 }
 0x15d   :  { %v2456_v44 = vmax.f32 %v1602_v34, 0.0  ;;  %v2584_v45 = vmax.f32 %v2114_v35, 0.0  ;;  %v1605_v46 = vadd.f32 %v4201_v52, %v1604_v42  ;;  %v2117_v47 = vadd.f32 %v4201_v52, %v2116_v43 }
 0x15e   :  { %2715 = vst.msk [vmem:[%s5560_s3 + $0x1d0] sm:$0xff] %vm2656_vm2, %v2458_v38  ;;  %2843 = vst.msk [vmem:[%s5560_s3 + $0x5d0] sm:$0xff] %vm2656_vm2, %v2586_v39  ;;  %v2459_v48 = vmax.f32 %v1613_v40, 0.0  ;;  %v2587_v49 = vmax.f32 %v2125_v41, 0.0 }
 0x15f   :  { %2713 = vst.msk [vmem:[%s5560_s3 + $0x1c0] sm:$0xff] %vm2656_vm2, %v2456_v44  ;;  %2841 = vst.msk [vmem:[%s5560_s3 + $0x5c0] sm:$0xff] %vm2656_vm2, %v2584_v45  ;;  %v2457_v52 = vmax.f32 %v1605_v46, 0.0  ;;  %v2585_v50 = vmax.f32 %v2117_v47, 0.0 }
 0x160   :  { %2716 = vst.msk [vmem:[%s5560_s3 + $0x1d8] sm:$0xff] %vm2656_vm2, %v2459_v48  ;;  %2844 = vst.msk [vmem:[%s5560_s3 + $0x5d8] sm:$0xff] %vm2656_vm2, %v2587_v49 }
 0x161   :  { %2714 = vst.msk [vmem:[%s5560_s3 + $0x1c8] sm:$0xff] %vm2656_vm2, %v2457_v52  ;;  %2842 = vst.msk [vmem:[%s5560_s3 + $0x5c8] sm:$0xff] %vm2656_vm2, %v2585_v50  ;;  %v3384_v51 = vpop.f32.mrb[60].mxu0  ;;  %v3512_v53 = vpop.f32.mrb[60].mxu1 }
 0x162   :  { %v1626_v55 = vadd.f32 %v4880_v54, %v3384_v51  ;;  %v2138_v56 = vadd.f32 %v4880_v54, %v3512_v53  ;;  %v1617_v57 = vpop.f32.mrb[61].mxu0  ;;  %v2129_v58 = vpop.f32.mrb[61].mxu1 }
 0x163   :  { %v1618_v59 = vadd.f32 %v4880_v54, %v1617_v57  ;;  %v2130_v60 = vadd.f32 %v4880_v54, %v2129_v58  ;;  %v3385_v61 = vpop.f32.mrb[62].mxu0  ;;  %v3513_v62 = vpop.f32.mrb[62].mxu1 }
 0x164   :  { %v2462_v63 = vmax.f32 %v1626_v55, 0.0  ;;  %v2590_v0 = vmax.f32 %v2138_v56, 0.0  ;;  %v1629_v1 = vadd.f32 %v4880_v54, %v3385_v61  ;;  %v2141_v2 = vadd.f32 %v4880_v54, %v3513_v62  ;;  %v1620_v3 = vpop.f32.mrb[63].mxu0  ;;  %v2132_v4 = vpop.f32.mrb[63].mxu1 }
 0x165   :  { %v2460_v5 = vmax.f32 %v1618_v59, 0.0  ;;  %v2588_v6 = vmax.f32 %v2130_v60, 0.0  ;;  %v1621_v7 = vadd.f32 %v4880_v54, %v1620_v3  ;;  %v2133_v8 = vadd.f32 %v4880_v54, %v2132_v4 }
 0x166   :  { %2719 = vst.msk [vmem:[%s5560_s3 + $0x1f0] sm:$0xff] %vm2656_vm2, %v2462_v63  ;;  %2847 = vst.msk [vmem:[%s5560_s3 + $0x5f0] sm:$0xff] %vm2656_vm2, %v2590_v0  ;;  %v2463_v9 = vmax.f32 %v1629_v1, 0.0  ;;  %v2591_v10 = vmax.f32 %v2141_v2, 0.0 }
 0x167   :  { %2717 = vst.msk [vmem:[%s5560_s3 + $0x1e0] sm:$0xff] %vm2656_vm2, %v2460_v5  ;;  %2845 = vst.msk [vmem:[%s5560_s3 + $0x5e0] sm:$0xff] %vm2656_vm2, %v2588_v6  ;;  %v2461_v11 = vmax.f32 %v1621_v7, 0.0  ;;  %v2589_v12 = vmax.f32 %v2133_v8, 0.0 }
 0x168   :  { %2720 = vst.msk [vmem:[%s5560_s3 + $0x1f8] sm:$0xff] %vm2656_vm2, %v2463_v9  ;;  %2848 = vst.msk [vmem:[%s5560_s3 + $0x5f8] sm:$0xff] %vm2656_vm2, %v2591_v10 }
 0x169   :  { %2718 = vst.msk [vmem:[%s5560_s3 + $0x1e8] sm:$0xff] %vm2656_vm2, %v2461_v11  ;;  %2846 = vst.msk [vmem:[%s5560_s3 + $0x5e8] sm:$0xff] %vm2656_vm2, %v2589_v12  ;;  %v3388_v13 = vpop.f32.mrb[64].mxu0  ;;  %v3516_v14 = vpop.f32.mrb[64].mxu1 }
 0x16a   :  { %v1642_v15 = vadd.f32 %v4880_v54, %v3388_v13  ;;  %v2154_v16 = vadd.f32 %v4880_v54, %v3516_v14  ;;  %v1633_v17 = vpop.f32.mrb[65].mxu0  ;;  %v2145_v18 = vpop.f32.mrb[65].mxu1 }
 0x16b   :  { %v1634_v19 = vadd.f32 %v4880_v54, %v1633_v17  ;;  %v2146_v20 = vadd.f32 %v4880_v54, %v2145_v18  ;;  %v3389_v21 = vpop.f32.mrb[66].mxu0  ;;  %v3517_v22 = vpop.f32.mrb[66].mxu1 }
 0x16c   :  { %v2466_v23 = vmax.f32 %v1642_v15, 0.0  ;;  %v2594_v24 = vmax.f32 %v2154_v16, 0.0  ;;  %v1645_v25 = vadd.f32 %v4880_v54, %v3389_v21  ;;  %v2157_v26 = vadd.f32 %v4880_v54, %v3517_v22  ;;  %v1636_v27 = vpop.f32.mrb[67].mxu0  ;;  %v2148_v28 = vpop.f32.mrb[67].mxu1 }
 0x16d   :  { %v2464_v29 = vmax.f32 %v1634_v19, 0.0  ;;  %v2592_v30 = vmax.f32 %v2146_v20, 0.0  ;;  %v1637_v31 = vadd.f32 %v4880_v54, %v1636_v27  ;;  %v2149_v32 = vadd.f32 %v4880_v54, %v2148_v28 }
 0x16e   :  { %2723 = vst.msk [vmem:[%s5560_s3 + $0x210] sm:$0xff] %vm2656_vm2, %v2466_v23  ;;  %2851 = vst.msk [vmem:[%s5560_s3 + $0x610] sm:$0xff] %vm2656_vm2, %v2594_v24  ;;  %v2467_v33 = vmax.f32 %v1645_v25, 0.0  ;;  %v2595_v34 = vmax.f32 %v2157_v26, 0.0 }
 0x16f   :  { %2721 = vst.msk [vmem:[%s5560_s3 + $0x200] sm:$0xff] %vm2656_vm2, %v2464_v29  ;;  %2849 = vst.msk [vmem:[%s5560_s3 + $0x600] sm:$0xff] %vm2656_vm2, %v2592_v30  ;;  %v2465_v35 = vmax.f32 %v1637_v31, 0.0  ;;  %v2593_v36 = vmax.f32 %v2149_v32, 0.0 }
 0x170   :  { %2724 = vst.msk [vmem:[%s5560_s3 + $0x218] sm:$0xff] %vm2656_vm2, %v2467_v33  ;;  %2852 = vst.msk [vmem:[%s5560_s3 + $0x618] sm:$0xff] %vm2656_vm2, %v2595_v34 }
 0x171   :  { %2722 = vst.msk [vmem:[%s5560_s3 + $0x208] sm:$0xff] %vm2656_vm2, %v2465_v35  ;;  %2850 = vst.msk [vmem:[%s5560_s3 + $0x608] sm:$0xff] %vm2656_vm2, %v2593_v36  ;;  %v3392_v37 = vpop.f32.mrb[68].mxu0  ;;  %v3520_v38 = vpop.f32.mrb[68].mxu1 }
 0x172   :  { %v1658_v39 = vadd.f32 %v4880_v54, %v3392_v37  ;;  %v2170_v40 = vadd.f32 %v4880_v54, %v3520_v38  ;;  %v1649_v41 = vpop.f32.mrb[69].mxu0  ;;  %v2161_v42 = vpop.f32.mrb[69].mxu1 }
 0x173   :  { %v1650_v43 = vadd.f32 %v4880_v54, %v1649_v41  ;;  %v2162_v44 = vadd.f32 %v4880_v54, %v2161_v42  ;;  %v3393_v45 = vpop.f32.mrb[70].mxu0  ;;  %v3521_v46 = vpop.f32.mrb[70].mxu1 }
 0x174   :  { %v2470_v47 = vmax.f32 %v1658_v39, 0.0  ;;  %v2598_v48 = vmax.f32 %v2170_v40, 0.0  ;;  %v1661_v49 = vadd.f32 %v4880_v54, %v3393_v45  ;;  %v2173_v52 = vadd.f32 %v4880_v54, %v3521_v46  ;;  %v1652_v50 = vpop.f32.mrb[71].mxu0  ;;  %v2164_v51 = vpop.f32.mrb[71].mxu1 }
 0x175   :  { %v2468_v53 = vmax.f32 %v1650_v43, 0.0  ;;  %v2596_v55 = vmax.f32 %v2162_v44, 0.0  ;;  %v1653_v56 = vadd.f32 %v4880_v54, %v1652_v50  ;;  %v2165_v57 = vadd.f32 %v4880_v54, %v2164_v51 }
 0x176   :  { %2727 = vst.msk [vmem:[%s5560_s3 + $0x230] sm:$0xff] %vm2656_vm2, %v2470_v47  ;;  %2855 = vst.msk [vmem:[%s5560_s3 + $0x630] sm:$0xff] %vm2656_vm2, %v2598_v48  ;;  %v2471_v58 = vmax.f32 %v1661_v49, 0.0  ;;  %v2599_v59 = vmax.f32 %v2173_v52, 0.0 }
 0x177   :  { %2725 = vst.msk [vmem:[%s5560_s3 + $0x220] sm:$0xff] %vm2656_vm2, %v2468_v53  ;;  %2853 = vst.msk [vmem:[%s5560_s3 + $0x620] sm:$0xff] %vm2656_vm2, %v2596_v55  ;;  %v2469_v60 = vmax.f32 %v1653_v56, 0.0  ;;  %v2597_v61 = vmax.f32 %v2165_v57, 0.0 }
 0x178   :  { %2728 = vst.msk [vmem:[%s5560_s3 + $0x238] sm:$0xff] %vm2656_vm2, %v2471_v58  ;;  %2856 = vst.msk [vmem:[%s5560_s3 + $0x638] sm:$0xff] %vm2656_vm2, %v2599_v59 }
 0x179   :  { %2726 = vst.msk [vmem:[%s5560_s3 + $0x228] sm:$0xff] %vm2656_vm2, %v2469_v60  ;;  %2854 = vst.msk [vmem:[%s5560_s3 + $0x628] sm:$0xff] %vm2656_vm2, %v2597_v61  ;;  %v3396_v62 = vpop.f32.mrb[72].mxu0  ;;  %v3524_v63 = vpop.f32.mrb[72].mxu1 }
 0x17a   :  { %v1674_v0 = vadd.f32 %v4880_v54, %v3396_v62  ;;  %v2186_v1 = vadd.f32 %v4880_v54, %v3524_v63  ;;  %v1665_v2 = vpop.f32.mrb[73].mxu0  ;;  %v2177_v3 = vpop.f32.mrb[73].mxu1 }
 0x17b   :  { %v1666_v4 = vadd.f32 %v4880_v54, %v1665_v2  ;;  %v2178_v5 = vadd.f32 %v4880_v54, %v2177_v3  ;;  %v3397_v6 = vpop.f32.mrb[74].mxu0  ;;  %v3525_v7 = vpop.f32.mrb[74].mxu1 }
 0x17c   :  { %v2474_v8 = vmax.f32 %v1674_v0, 0.0  ;;  %v2602_v9 = vmax.f32 %v2186_v1, 0.0  ;;  %v1677_v10 = vadd.f32 %v4880_v54, %v3397_v6  ;;  %v2189_v11 = vadd.f32 %v4880_v54, %v3525_v7  ;;  %v1668_v12 = vpop.f32.mrb[75].mxu0  ;;  %v2180_v13 = vpop.f32.mrb[75].mxu1 }
 0x17d   :  { %v2472_v14 = vmax.f32 %v1666_v4, 0.0  ;;  %v2600_v15 = vmax.f32 %v2178_v5, 0.0  ;;  %v1669_v16 = vadd.f32 %v4880_v54, %v1668_v12  ;;  %v2181_v17 = vadd.f32 %v4880_v54, %v2180_v13 }
 0x17e   :  { %2731 = vst.msk [vmem:[%s5560_s3 + $0x250] sm:$0xff] %vm2656_vm2, %v2474_v8  ;;  %2859 = vst.msk [vmem:[%s5560_s3 + $0x650] sm:$0xff] %vm2656_vm2, %v2602_v9  ;;  %v2475_v18 = vmax.f32 %v1677_v10, 0.0  ;;  %v2603_v19 = vmax.f32 %v2189_v11, 0.0 }
 0x17f   :  { %2729 = vst.msk [vmem:[%s5560_s3 + $0x240] sm:$0xff] %vm2656_vm2, %v2472_v14  ;;  %2857 = vst.msk [vmem:[%s5560_s3 + $0x640] sm:$0xff] %vm2656_vm2, %v2600_v15  ;;  %v2473_v20 = vmax.f32 %v1669_v16, 0.0  ;;  %v2601_v21 = vmax.f32 %v2181_v17, 0.0 }
 0x180   :  { %2732 = vst.msk [vmem:[%s5560_s3 + $0x258] sm:$0xff] %vm2656_vm2, %v2475_v18  ;;  %2860 = vst.msk [vmem:[%s5560_s3 + $0x658] sm:$0xff] %vm2656_vm2, %v2603_v19 }
 0x181   :  { %2730 = vst.msk [vmem:[%s5560_s3 + $0x248] sm:$0xff] %vm2656_vm2, %v2473_v20  ;;  %2858 = vst.msk [vmem:[%s5560_s3 + $0x648] sm:$0xff] %vm2656_vm2, %v2601_v21  ;;  %v3400_v22 = vpop.f32.mrb[76].mxu0  ;;  %v3528_v23 = vpop.f32.mrb[76].mxu1 }
 0x182   :  { %v1690_v24 = vadd.f32 %v4880_v54, %v3400_v22  ;;  %v2202_v25 = vadd.f32 %v4880_v54, %v3528_v23  ;;  %v1681_v26 = vpop.f32.mrb[77].mxu0  ;;  %v2193_v27 = vpop.f32.mrb[77].mxu1 }
 0x183   :  { %v1682_v28 = vadd.f32 %v4880_v54, %v1681_v26  ;;  %v2194_v29 = vadd.f32 %v4880_v54, %v2193_v27  ;;  %v3401_v30 = vpop.f32.mrb[78].mxu0  ;;  %v3529_v31 = vpop.f32.mrb[78].mxu1 }
 0x184   :  { %v2478_v32 = vmax.f32 %v1690_v24, 0.0  ;;  %v2606_v33 = vmax.f32 %v2202_v25, 0.0  ;;  %v1693_v34 = vadd.f32 %v4880_v54, %v3401_v30  ;;  %v2205_v35 = vadd.f32 %v4880_v54, %v3529_v31  ;;  %v1684_v36 = vpop.f32.mrb[79].mxu0  ;;  %v2196_v37 = vpop.f32.mrb[79].mxu1 }
 0x185   :  { %v2476_v38 = vmax.f32 %v1682_v28, 0.0  ;;  %v2604_v39 = vmax.f32 %v2194_v29, 0.0  ;;  %v1685_v40 = vadd.f32 %v4880_v54, %v1684_v36  ;;  %v2197_v41 = vadd.f32 %v4880_v54, %v2196_v37 }
 0x186   :  { %2735 = vst.msk [vmem:[%s5560_s3 + $0x270] sm:$0xff] %vm2656_vm2, %v2478_v32  ;;  %2863 = vst.msk [vmem:[%s5560_s3 + $0x670] sm:$0xff] %vm2656_vm2, %v2606_v33  ;;  %v2479_v42 = vmax.f32 %v1693_v34, 0.0  ;;  %v2607_v43 = vmax.f32 %v2205_v35, 0.0 }
 0x187   :  { %2733 = vst.msk [vmem:[%s5560_s3 + $0x260] sm:$0xff] %vm2656_vm2, %v2476_v38  ;;  %2861 = vst.msk [vmem:[%s5560_s3 + $0x660] sm:$0xff] %vm2656_vm2, %v2604_v39  ;;  %v2477_v44 = vmax.f32 %v1685_v40, 0.0  ;;  %v2605_v45 = vmax.f32 %v2197_v41, 0.0 }
 0x188   :  { %2736 = vst.msk [vmem:[%s5560_s3 + $0x278] sm:$0xff] %vm2656_vm2, %v2479_v42  ;;  %2864 = vst.msk [vmem:[%s5560_s3 + $0x678] sm:$0xff] %vm2656_vm2, %v2607_v43 }
 0x189   :  { %2734 = vst.msk [vmem:[%s5560_s3 + $0x268] sm:$0xff] %vm2656_vm2, %v2477_v44  ;;  %2862 = vst.msk [vmem:[%s5560_s3 + $0x668] sm:$0xff] %vm2656_vm2, %v2605_v45  ;;  %v3404_v46 = vpop.f32.mrb[80].mxu0  ;;  %v3532_v47 = vpop.f32.mrb[80].mxu1 }
 0x18a   :  { %v1706_v48 = vadd.f32 %v4880_v54, %v3404_v46  ;;  %v2218_v49 = vadd.f32 %v4880_v54, %v3532_v47  ;;  %v1697_v52 = vpop.f32.mrb[81].mxu0  ;;  %v2209_v50 = vpop.f32.mrb[81].mxu1 }
 0x18b   :  { %v1698_v51 = vadd.f32 %v4880_v54, %v1697_v52  ;;  %v2210_v53 = vadd.f32 %v4880_v54, %v2209_v50  ;;  %v3405_v55 = vpop.f32.mrb[82].mxu0  ;;  %v3533_v56 = vpop.f32.mrb[82].mxu1 }
 0x18c   :  { %v2482_v57 = vmax.f32 %v1706_v48, 0.0  ;;  %v2610_v58 = vmax.f32 %v2218_v49, 0.0  ;;  %v1709_v59 = vadd.f32 %v4880_v54, %v3405_v55  ;;  %v2221_v60 = vadd.f32 %v4880_v54, %v3533_v56  ;;  %v1700_v61 = vpop.f32.mrb[83].mxu0  ;;  %v2212_v62 = vpop.f32.mrb[83].mxu1 }
 0x18d   :  { %v2480_v63 = vmax.f32 %v1698_v51, 0.0  ;;  %v2608_v0 = vmax.f32 %v2210_v53, 0.0  ;;  %v1701_v1 = vadd.f32 %v4880_v54, %v1700_v61  ;;  %v2213_v2 = vadd.f32 %v4880_v54, %v2212_v62 }
 0x18e   :  { %2739 = vst.msk [vmem:[%s5560_s3 + $0x290] sm:$0xff] %vm2656_vm2, %v2482_v57  ;;  %2867 = vst.msk [vmem:[%s5560_s3 + $0x690] sm:$0xff] %vm2656_vm2, %v2610_v58  ;;  %v2483_v3 = vmax.f32 %v1709_v59, 0.0  ;;  %v2611_v4 = vmax.f32 %v2221_v60, 0.0 }
 0x18f   :  { %2737 = vst.msk [vmem:[%s5560_s3 + $0x280] sm:$0xff] %vm2656_vm2, %v2480_v63  ;;  %2865 = vst.msk [vmem:[%s5560_s3 + $0x680] sm:$0xff] %vm2656_vm2, %v2608_v0  ;;  %v2481_v5 = vmax.f32 %v1701_v1, 0.0  ;;  %v2609_v6 = vmax.f32 %v2213_v2, 0.0 }
 0x190   :  { %2740 = vst.msk [vmem:[%s5560_s3 + $0x298] sm:$0xff] %vm2656_vm2, %v2483_v3  ;;  %2868 = vst.msk [vmem:[%s5560_s3 + $0x698] sm:$0xff] %vm2656_vm2, %v2611_v4 }
 0x191   :  { %2738 = vst.msk [vmem:[%s5560_s3 + $0x288] sm:$0xff] %vm2656_vm2, %v2481_v5  ;;  %2866 = vst.msk [vmem:[%s5560_s3 + $0x688] sm:$0xff] %vm2656_vm2, %v2609_v6  ;;  %v3408_v7 = vpop.f32.mrb[84].mxu0  ;;  %v3536_v8 = vpop.f32.mrb[84].mxu1 }
 0x192   :  { %v1722_v9 = vadd.f32 %v4880_v54, %v3408_v7  ;;  %v2234_v10 = vadd.f32 %v4880_v54, %v3536_v8  ;;  %v1713_v11 = vpop.f32.mrb[85].mxu0  ;;  %v2225_v12 = vpop.f32.mrb[85].mxu1 }
 0x193   :  { %v1714_v13 = vadd.f32 %v4880_v54, %v1713_v11  ;;  %v2226_v14 = vadd.f32 %v4880_v54, %v2225_v12  ;;  %v3409_v15 = vpop.f32.mrb[86].mxu0  ;;  %v3537_v16 = vpop.f32.mrb[86].mxu1 }
 0x194   :  { %v2486_v17 = vmax.f32 %v1722_v9, 0.0  ;;  %v2614_v18 = vmax.f32 %v2234_v10, 0.0  ;;  %v1725_v19 = vadd.f32 %v4880_v54, %v3409_v15  ;;  %v2237_v20 = vadd.f32 %v4880_v54, %v3537_v16  ;;  %v1716_v21 = vpop.f32.mrb[87].mxu0  ;;  %v2228_v22 = vpop.f32.mrb[87].mxu1 }
 0x195   :  { %v2484_v23 = vmax.f32 %v1714_v13, 0.0  ;;  %v2612_v24 = vmax.f32 %v2226_v14, 0.0  ;;  %v1717_v25 = vadd.f32 %v4880_v54, %v1716_v21  ;;  %v2229_v26 = vadd.f32 %v4880_v54, %v2228_v22 }
 0x196   :  { %2743 = vst.msk [vmem:[%s5560_s3 + $0x2b0] sm:$0xff] %vm2656_vm2, %v2486_v17  ;;  %2871 = vst.msk [vmem:[%s5560_s3 + $0x6b0] sm:$0xff] %vm2656_vm2, %v2614_v18  ;;  %v2487_v27 = vmax.f32 %v1725_v19, 0.0  ;;  %v2615_v28 = vmax.f32 %v2237_v20, 0.0 }
 0x197   :  { %2741 = vst.msk [vmem:[%s5560_s3 + $0x2a0] sm:$0xff] %vm2656_vm2, %v2484_v23  ;;  %2869 = vst.msk [vmem:[%s5560_s3 + $0x6a0] sm:$0xff] %vm2656_vm2, %v2612_v24  ;;  %v2485_v29 = vmax.f32 %v1717_v25, 0.0  ;;  %v2613_v30 = vmax.f32 %v2229_v26, 0.0 }
 0x198   :  { %2744 = vst.msk [vmem:[%s5560_s3 + $0x2b8] sm:$0xff] %vm2656_vm2, %v2487_v27  ;;  %2872 = vst.msk [vmem:[%s5560_s3 + $0x6b8] sm:$0xff] %vm2656_vm2, %v2615_v28 }
 0x199   :  { %2742 = vst.msk [vmem:[%s5560_s3 + $0x2a8] sm:$0xff] %vm2656_vm2, %v2485_v29  ;;  %2870 = vst.msk [vmem:[%s5560_s3 + $0x6a8] sm:$0xff] %vm2656_vm2, %v2613_v30  ;;  %v3412_v31 = vpop.f32.mrb[88].mxu0  ;;  %v3540_v32 = vpop.f32.mrb[88].mxu1 }
 0x19a   :  { %v1738_v33 = vadd.f32 %v4880_v54, %v3412_v31  ;;  %v2250_v34 = vadd.f32 %v4880_v54, %v3540_v32  ;;  %v1729_v35 = vpop.f32.mrb[89].mxu0  ;;  %v2241_v36 = vpop.f32.mrb[89].mxu1 }
 0x19b   :  { %v1730_v37 = vadd.f32 %v4880_v54, %v1729_v35  ;;  %v2242_v38 = vadd.f32 %v4880_v54, %v2241_v36  ;;  %v3413_v39 = vpop.f32.mrb[90].mxu0  ;;  %v3541_v40 = vpop.f32.mrb[90].mxu1 }
 0x19c   :  { %v2490_v41 = vmax.f32 %v1738_v33, 0.0  ;;  %v2618_v42 = vmax.f32 %v2250_v34, 0.0  ;;  %v1741_v43 = vadd.f32 %v4880_v54, %v3413_v39  ;;  %v2253_v44 = vadd.f32 %v4880_v54, %v3541_v40  ;;  %v1732_v45 = vpop.f32.mrb[91].mxu0  ;;  %v2244_v46 = vpop.f32.mrb[91].mxu1 }
 0x19d   :  { %v2488_v47 = vmax.f32 %v1730_v37, 0.0  ;;  %v2616_v48 = vmax.f32 %v2242_v38, 0.0  ;;  %v1733_v49 = vadd.f32 %v4880_v54, %v1732_v45  ;;  %v2245_v52 = vadd.f32 %v4880_v54, %v2244_v46 }
 0x19e   :  { %2747 = vst.msk [vmem:[%s5560_s3 + $0x2d0] sm:$0xff] %vm2656_vm2, %v2490_v41  ;;  %2875 = vst.msk [vmem:[%s5560_s3 + $0x6d0] sm:$0xff] %vm2656_vm2, %v2618_v42  ;;  %v2491_v50 = vmax.f32 %v1741_v43, 0.0  ;;  %v2619_v51 = vmax.f32 %v2253_v44, 0.0 }
 0x19f   :  { %2745 = vst.msk [vmem:[%s5560_s3 + $0x2c0] sm:$0xff] %vm2656_vm2, %v2488_v47  ;;  %2873 = vst.msk [vmem:[%s5560_s3 + $0x6c0] sm:$0xff] %vm2656_vm2, %v2616_v48  ;;  %v2489_v53 = vmax.f32 %v1733_v49, 0.0  ;;  %v2617_v55 = vmax.f32 %v2245_v52, 0.0 }
 0x1a0   :  { %2748 = vst.msk [vmem:[%s5560_s3 + $0x2d8] sm:$0xff] %vm2656_vm2, %v2491_v50  ;;  %2876 = vst.msk [vmem:[%s5560_s3 + $0x6d8] sm:$0xff] %vm2656_vm2, %v2619_v51 }
 0x1a1   :  { %2746 = vst.msk [vmem:[%s5560_s3 + $0x2c8] sm:$0xff] %vm2656_vm2, %v2489_v53  ;;  %2874 = vst.msk [vmem:[%s5560_s3 + $0x6c8] sm:$0xff] %vm2656_vm2, %v2617_v55  ;;  %v3416_v56 = vpop.f32.mrb[92].mxu0  ;;  %v3544_v57 = vpop.f32.mrb[92].mxu1 }
 0x1a2   :  { %v1754_v58 = vadd.f32 %v4880_v54, %v3416_v56  ;;  %v2266_v59 = vadd.f32 %v4880_v54, %v3544_v57  ;;  %v1745_v60 = vpop.f32.mrb[93].mxu0  ;;  %v2257_v61 = vpop.f32.mrb[93].mxu1 }
 0x1a3   :  { %v1746_v62 = vadd.f32 %v4880_v54, %v1745_v60  ;;  %v2258_v63 = vadd.f32 %v4880_v54, %v2257_v61  ;;  %v3417_v0 = vpop.f32.mrb[94].mxu0  ;;  %v3545_v1 = vpop.f32.mrb[94].mxu1 }
 0x1a4   :  { %v2494_v2 = vmax.f32 %v1754_v58, 0.0  ;;  %v2622_v3 = vmax.f32 %v2266_v59, 0.0  ;;  %v1757_v4 = vadd.f32 %v4880_v54, %v3417_v0  ;;  %v2269_v5 = vadd.f32 %v4880_v54, %v3545_v1  ;;  %v1748_v6 = vpop.f32.mrb[95].mxu0  ;;  %v2260_v7 = vpop.f32.mrb[95].mxu1 }
 0x1a5   :  { %v2492_v8 = vmax.f32 %v1746_v62, 0.0  ;;  %v2620_v9 = vmax.f32 %v2258_v63, 0.0  ;;  %v1749_v10 = vadd.f32 %v4880_v54, %v1748_v6  ;;  %v2261_v11 = vadd.f32 %v4880_v54, %v2260_v7 }
 0x1a6   :  { %2751 = vst.msk [vmem:[%s5560_s3 + $0x2f0] sm:$0xff] %vm2656_vm2, %v2494_v2  ;;  %2879 = vst.msk [vmem:[%s5560_s3 + $0x6f0] sm:$0xff] %vm2656_vm2, %v2622_v3  ;;  %v2495_v12 = vmax.f32 %v1757_v4, 0.0  ;;  %v2623_v13 = vmax.f32 %v2269_v5, 0.0 }
 0x1a7   :  { %2749 = vst.msk [vmem:[%s5560_s3 + $0x2e0] sm:$0xff] %vm2656_vm2, %v2492_v8  ;;  %2877 = vst.msk [vmem:[%s5560_s3 + $0x6e0] sm:$0xff] %vm2656_vm2, %v2620_v9  ;;  %v2493_v14 = vmax.f32 %v1749_v10, 0.0  ;;  %v2621_v15 = vmax.f32 %v2261_v11, 0.0 }
 0x1a8   :  { %2752 = vst.msk [vmem:[%s5560_s3 + $0x2f8] sm:$0xff] %vm2656_vm2, %v2495_v12  ;;  %2880 = vst.msk [vmem:[%s5560_s3 + $0x6f8] sm:$0xff] %vm2656_vm2, %v2623_v13 }
 0x1a9   :  { %2750 = vst.msk [vmem:[%s5560_s3 + $0x2e8] sm:$0xff] %vm2656_vm2, %v2493_v14  ;;  %2878 = vst.msk [vmem:[%s5560_s3 + $0x6e8] sm:$0xff] %vm2656_vm2, %v2621_v15  ;;  %v3420_v16 = vpop.f32.mrb[96].mxu0  ;;  %v3548_v17 = vpop.f32.mrb[96].mxu1 }
 0x1aa   :  { %v1770_v18 = vadd.f32 %v4880_v54, %v3420_v16  ;;  %v2282_v19 = vadd.f32 %v4880_v54, %v3548_v17  ;;  %v1761_v20 = vpop.f32.mrb[97].mxu0  ;;  %v2273_v21 = vpop.f32.mrb[97].mxu1 }
 0x1ab   :  { %v1762_v22 = vadd.f32 %v4880_v54, %v1761_v20  ;;  %v2274_v23 = vadd.f32 %v4880_v54, %v2273_v21  ;;  %v3421_v24 = vpop.f32.mrb[98].mxu0  ;;  %v3549_v25 = vpop.f32.mrb[98].mxu1 }
 0x1ac   :  { %v2498_v26 = vmax.f32 %v1770_v18, 0.0  ;;  %v2626_v27 = vmax.f32 %v2282_v19, 0.0  ;;  %v1773_v28 = vadd.f32 %v4880_v54, %v3421_v24  ;;  %v2285_v29 = vadd.f32 %v4880_v54, %v3549_v25  ;;  %v1764_v30 = vpop.f32.mrb[99].mxu0  ;;  %v2276_v31 = vpop.f32.mrb[99].mxu1 }
 0x1ad   :  { %v2496_v32 = vmax.f32 %v1762_v22, 0.0  ;;  %v2624_v33 = vmax.f32 %v2274_v23, 0.0  ;;  %v1765_v34 = vadd.f32 %v4880_v54, %v1764_v30  ;;  %v2277_v35 = vadd.f32 %v4880_v54, %v2276_v31 }
 0x1ae   :  { %2755 = vst.msk [vmem:[%s5560_s3 + $0x310] sm:$0xff] %vm2656_vm2, %v2498_v26  ;;  %2883 = vst.msk [vmem:[%s5560_s3 + $0x710] sm:$0xff] %vm2656_vm2, %v2626_v27  ;;  %v2499_v36 = vmax.f32 %v1773_v28, 0.0  ;;  %v2627_v37 = vmax.f32 %v2285_v29, 0.0 }
 0x1af   :  { %2753 = vst.msk [vmem:[%s5560_s3 + $0x300] sm:$0xff] %vm2656_vm2, %v2496_v32  ;;  %2881 = vst.msk [vmem:[%s5560_s3 + $0x700] sm:$0xff] %vm2656_vm2, %v2624_v33  ;;  %v2497_v38 = vmax.f32 %v1765_v34, 0.0  ;;  %v2625_v39 = vmax.f32 %v2277_v35, 0.0 }
 0x1b0   :  { %2756 = vst.msk [vmem:[%s5560_s3 + $0x318] sm:$0xff] %vm2656_vm2, %v2499_v36  ;;  %2884 = vst.msk [vmem:[%s5560_s3 + $0x718] sm:$0xff] %vm2656_vm2, %v2627_v37 }
 0x1b1   :  { %2754 = vst.msk [vmem:[%s5560_s3 + $0x308] sm:$0xff] %vm2656_vm2, %v2497_v38  ;;  %2882 = vst.msk [vmem:[%s5560_s3 + $0x708] sm:$0xff] %vm2656_vm2, %v2625_v39  ;;  %v3424_v40 = vpop.f32.mrb[100].mxu0  ;;  %v3552_v41 = vpop.f32.mrb[100].mxu1 }
 0x1b2   :  { %v1786_v42 = vadd.f32 %v4880_v54, %v3424_v40  ;;  %v2298_v43 = vadd.f32 %v4880_v54, %v3552_v41  ;;  %v1777_v44 = vpop.f32.mrb[101].mxu0  ;;  %v2289_v45 = vpop.f32.mrb[101].mxu1 }
 0x1b3   :  { %v1778_v46 = vadd.f32 %v4880_v54, %v1777_v44  ;;  %v2290_v47 = vadd.f32 %v4880_v54, %v2289_v45  ;;  %v3425_v48 = vpop.f32.mrb[102].mxu0  ;;  %v3553_v49 = vpop.f32.mrb[102].mxu1 }
 0x1b4   :  { %v2502_v52 = vmax.f32 %v1786_v42, 0.0  ;;  %v2630_v50 = vmax.f32 %v2298_v43, 0.0  ;;  %v1789_v51 = vadd.f32 %v4880_v54, %v3425_v48  ;;  %v2301_v53 = vadd.f32 %v4880_v54, %v3553_v49  ;;  %v1780_v55 = vpop.f32.mrb[103].mxu0  ;;  %v2292_v56 = vpop.f32.mrb[103].mxu1 }
 0x1b5   :  { %v2500_v57 = vmax.f32 %v1778_v46, 0.0  ;;  %v2628_v58 = vmax.f32 %v2290_v47, 0.0  ;;  %v1781_v59 = vadd.f32 %v4880_v54, %v1780_v55  ;;  %v2293_v60 = vadd.f32 %v4880_v54, %v2292_v56 }
 0x1b6   :  { %2759 = vst.msk [vmem:[%s5560_s3 + $0x330] sm:$0xff] %vm2656_vm2, %v2502_v52  ;;  %2887 = vst.msk [vmem:[%s5560_s3 + $0x730] sm:$0xff] %vm2656_vm2, %v2630_v50  ;;  %v2503_v61 = vmax.f32 %v1789_v51, 0.0  ;;  %v2631_v62 = vmax.f32 %v2301_v53, 0.0 }
 0x1b7   :  { %2757 = vst.msk [vmem:[%s5560_s3 + $0x320] sm:$0xff] %vm2656_vm2, %v2500_v57  ;;  %2885 = vst.msk [vmem:[%s5560_s3 + $0x720] sm:$0xff] %vm2656_vm2, %v2628_v58  ;;  %v2501_v63 = vmax.f32 %v1781_v59, 0.0  ;;  %v2629_v0 = vmax.f32 %v2293_v60, 0.0 }
 0x1b8   :  { %2760 = vst.msk [vmem:[%s5560_s3 + $0x338] sm:$0xff] %vm2656_vm2, %v2503_v61  ;;  %2888 = vst.msk [vmem:[%s5560_s3 + $0x738] sm:$0xff] %vm2656_vm2, %v2631_v62 }
 0x1b9   :  { %2758 = vst.msk [vmem:[%s5560_s3 + $0x328] sm:$0xff] %vm2656_vm2, %v2501_v63  ;;  %2886 = vst.msk [vmem:[%s5560_s3 + $0x728] sm:$0xff] %vm2656_vm2, %v2629_v0  ;;  %v3428_v1 = vpop.f32.mrb[104].mxu0  ;;  %v3556_v2 = vpop.f32.mrb[104].mxu1 }
 0x1ba   :  { %v1802_v3 = vadd.f32 %v4880_v54, %v3428_v1  ;;  %v2314_v4 = vadd.f32 %v4880_v54, %v3556_v2  ;;  %v1793_v5 = vpop.f32.mrb[105].mxu0  ;;  %v2305_v6 = vpop.f32.mrb[105].mxu1 }
 0x1bb   :  { %v1794_v7 = vadd.f32 %v4880_v54, %v1793_v5  ;;  %v2306_v8 = vadd.f32 %v4880_v54, %v2305_v6  ;;  %v3429_v9 = vpop.f32.mrb[106].mxu0  ;;  %v3557_v10 = vpop.f32.mrb[106].mxu1 }
 0x1bc   :  { %v2506_v11 = vmax.f32 %v1802_v3, 0.0  ;;  %v2634_v12 = vmax.f32 %v2314_v4, 0.0  ;;  %v1805_v13 = vadd.f32 %v4880_v54, %v3429_v9  ;;  %v2317_v14 = vadd.f32 %v4880_v54, %v3557_v10  ;;  %v1796_v15 = vpop.f32.mrb[107].mxu0  ;;  %v2308_v16 = vpop.f32.mrb[107].mxu1 }
 0x1bd   :  { %v2504_v17 = vmax.f32 %v1794_v7, 0.0  ;;  %v2632_v18 = vmax.f32 %v2306_v8, 0.0  ;;  %v1797_v19 = vadd.f32 %v4880_v54, %v1796_v15  ;;  %v2309_v20 = vadd.f32 %v4880_v54, %v2308_v16 }
 0x1be   :  { %2763 = vst.msk [vmem:[%s5560_s3 + $0x350] sm:$0xff] %vm2656_vm2, %v2506_v11  ;;  %2891 = vst.msk [vmem:[%s5560_s3 + $0x750] sm:$0xff] %vm2656_vm2, %v2634_v12  ;;  %v2507_v21 = vmax.f32 %v1805_v13, 0.0  ;;  %v2635_v22 = vmax.f32 %v2317_v14, 0.0 }
 0x1bf   :  { %2761 = vst.msk [vmem:[%s5560_s3 + $0x340] sm:$0xff] %vm2656_vm2, %v2504_v17  ;;  %2889 = vst.msk [vmem:[%s5560_s3 + $0x740] sm:$0xff] %vm2656_vm2, %v2632_v18  ;;  %v2505_v23 = vmax.f32 %v1797_v19, 0.0  ;;  %v2633_v24 = vmax.f32 %v2309_v20, 0.0 }
 0x1c0   :  { %2764 = vst.msk [vmem:[%s5560_s3 + $0x358] sm:$0xff] %vm2656_vm2, %v2507_v21  ;;  %2892 = vst.msk [vmem:[%s5560_s3 + $0x758] sm:$0xff] %vm2656_vm2, %v2635_v22 }
 0x1c1   :  { %2762 = vst.msk [vmem:[%s5560_s3 + $0x348] sm:$0xff] %vm2656_vm2, %v2505_v23  ;;  %2890 = vst.msk [vmem:[%s5560_s3 + $0x748] sm:$0xff] %vm2656_vm2, %v2633_v24  ;;  %v3432_v25 = vpop.f32.mrb[108].mxu0  ;;  %v3560_v26 = vpop.f32.mrb[108].mxu1 }
 0x1c2   :  { %v1818_v27 = vadd.f32 %v4880_v54, %v3432_v25  ;;  %v2330_v28 = vadd.f32 %v4880_v54, %v3560_v26  ;;  %v1809_v29 = vpop.f32.mrb[109].mxu0  ;;  %v2321_v30 = vpop.f32.mrb[109].mxu1 }
 0x1c3   :  { %v1810_v31 = vadd.f32 %v4880_v54, %v1809_v29  ;;  %v2322_v32 = vadd.f32 %v4880_v54, %v2321_v30  ;;  %v3433_v33 = vpop.f32.mrb[110].mxu0  ;;  %v3561_v34 = vpop.f32.mrb[110].mxu1 }
 0x1c4   :  { %v2510_v35 = vmax.f32 %v1818_v27, 0.0  ;;  %v2638_v36 = vmax.f32 %v2330_v28, 0.0  ;;  %v1821_v37 = vadd.f32 %v4880_v54, %v3433_v33  ;;  %v2333_v38 = vadd.f32 %v4880_v54, %v3561_v34  ;;  %v1812_v39 = vpop.f32.mrb[111].mxu0  ;;  %v2324_v40 = vpop.f32.mrb[111].mxu1 }
 0x1c5   :  { %v2508_v41 = vmax.f32 %v1810_v31, 0.0  ;;  %v2636_v42 = vmax.f32 %v2322_v32, 0.0  ;;  %v1813_v43 = vadd.f32 %v4880_v54, %v1812_v39  ;;  %v2325_v44 = vadd.f32 %v4880_v54, %v2324_v40 }
 0x1c6   :  { %2767 = vst.msk [vmem:[%s5560_s3 + $0x370] sm:$0xff] %vm2656_vm2, %v2510_v35  ;;  %2895 = vst.msk [vmem:[%s5560_s3 + $0x770] sm:$0xff] %vm2656_vm2, %v2638_v36  ;;  %v2511_v45 = vmax.f32 %v1821_v37, 0.0  ;;  %v2639_v46 = vmax.f32 %v2333_v38, 0.0 }
 0x1c7   :  { %2765 = vst.msk [vmem:[%s5560_s3 + $0x360] sm:$0xff] %vm2656_vm2, %v2508_v41  ;;  %2893 = vst.msk [vmem:[%s5560_s3 + $0x760] sm:$0xff] %vm2656_vm2, %v2636_v42  ;;  %v2509_v47 = vmax.f32 %v1813_v43, 0.0  ;;  %v2637_v48 = vmax.f32 %v2325_v44, 0.0 }
 0x1c8   :  { %2768 = vst.msk [vmem:[%s5560_s3 + $0x378] sm:$0xff] %vm2656_vm2, %v2511_v45  ;;  %2896 = vst.msk [vmem:[%s5560_s3 + $0x778] sm:$0xff] %vm2656_vm2, %v2639_v46 }
 0x1c9   :  { %2766 = vst.msk [vmem:[%s5560_s3 + $0x368] sm:$0xff] %vm2656_vm2, %v2509_v47  ;;  %2894 = vst.msk [vmem:[%s5560_s3 + $0x768] sm:$0xff] %vm2656_vm2, %v2637_v48  ;;  %v3436_v49 = vpop.f32.mrb[112].mxu0  ;;  %v3564_v52 = vpop.f32.mrb[112].mxu1 }
 0x1ca   :  { %v1834_v50 = vadd.f32 %v4880_v54, %v3436_v49  ;;  %v2346_v51 = vadd.f32 %v4880_v54, %v3564_v52  ;;  %v1825_v53 = vpop.f32.mrb[113].mxu0  ;;  %v2337_v55 = vpop.f32.mrb[113].mxu1 }
 0x1cb   :  { %v1826_v56 = vadd.f32 %v4880_v54, %v1825_v53  ;;  %v2338_v57 = vadd.f32 %v4880_v54, %v2337_v55  ;;  %v3437_v58 = vpop.f32.mrb[114].mxu0  ;;  %v3565_v59 = vpop.f32.mrb[114].mxu1 }
 0x1cc   :  { %v2514_v60 = vmax.f32 %v1834_v50, 0.0  ;;  %v2642_v61 = vmax.f32 %v2346_v51, 0.0  ;;  %v1837_v62 = vadd.f32 %v4880_v54, %v3437_v58  ;;  %v2349_v63 = vadd.f32 %v4880_v54, %v3565_v59  ;;  %v1828_v0 = vpop.f32.mrb[115].mxu0  ;;  %v2340_v1 = vpop.f32.mrb[115].mxu1 }
 0x1cd   :  { %v2512_v2 = vmax.f32 %v1826_v56, 0.0  ;;  %v2640_v3 = vmax.f32 %v2338_v57, 0.0  ;;  %v1829_v4 = vadd.f32 %v4880_v54, %v1828_v0  ;;  %v2341_v5 = vadd.f32 %v4880_v54, %v2340_v1 }
 0x1ce   :  { %2771 = vst.msk [vmem:[%s5560_s3 + $0x390] sm:$0xff] %vm2656_vm2, %v2514_v60  ;;  %2899 = vst.msk [vmem:[%s5560_s3 + $0x790] sm:$0xff] %vm2656_vm2, %v2642_v61  ;;  %v2515_v6 = vmax.f32 %v1837_v62, 0.0  ;;  %v2643_v7 = vmax.f32 %v2349_v63, 0.0  ;;  %v3724_v60 = vld [vmem:[%s5559_s2] ss:$0 sm:$0xff] }
 0x1cf   :  { %2769 = vst.msk [vmem:[%s5560_s3 + $0x380] sm:$0xff] %vm2656_vm2, %v2512_v2  ;;  %2897 = vst.msk [vmem:[%s5560_s3 + $0x780] sm:$0xff] %vm2656_vm2, %v2640_v3  ;;  %v2513_v8 = vmax.f32 %v1829_v4, 0.0  ;;  %v2641_v9 = vmax.f32 %v2341_v5, 0.0 }
 0x1d0   :  { %2772 = vst.msk [vmem:[%s5560_s3 + $0x398] sm:$0xff] %vm2656_vm2, %v2515_v6  ;;  %2900 = vst.msk [vmem:[%s5560_s3 + $0x798] sm:$0xff] %vm2656_vm2, %v2643_v7 }
 0x1d1   :  { %2770 = vst.msk [vmem:[%s5560_s3 + $0x388] sm:$0xff] %vm2656_vm2, %v2513_v8  ;;  %2898 = vst.msk [vmem:[%s5560_s3 + $0x788] sm:$0xff] %vm2656_vm2, %v2641_v9  ;;  %v3440_v10 = vpop.f32.mrb[116].mxu0  ;;  %v3568_v11 = vpop.f32.mrb[116].mxu1 }
 0x1d2   :  { %v1850_v12 = vadd.f32 %v4880_v54, %v3440_v10  ;;  %v2362_v13 = vadd.f32 %v4880_v54, %v3568_v11  ;;  %v1841_v14 = vpop.f32.mrb[117].mxu0  ;;  %v2353_v15 = vpop.f32.mrb[117].mxu1 }
 0x1d3   :  { %v1842_v16 = vadd.f32 %v4880_v54, %v1841_v14  ;;  %v2354_v17 = vadd.f32 %v4880_v54, %v2353_v15  ;;  %v3441_v18 = vpop.f32.mrb[118].mxu0  ;;  %v3569_v19 = vpop.f32.mrb[118].mxu1 }
 0x1d4   :  { %v2518_v20 = vmax.f32 %v1850_v12, 0.0  ;;  %v2646_v21 = vmax.f32 %v2362_v13, 0.0  ;;  %v1853_v22 = vadd.f32 %v4880_v54, %v3441_v18  ;;  %v2365_v23 = vadd.f32 %v4880_v54, %v3569_v19  ;;  %v1844_v24 = vpop.f32.mrb[119].mxu0  ;;  %v2356_v25 = vpop.f32.mrb[119].mxu1 }
 0x1d5   :  { %v2516_v26 = vmax.f32 %v1842_v16, 0.0  ;;  %v2644_v27 = vmax.f32 %v2354_v17, 0.0  ;;  %v1845_v28 = vadd.f32 %v4880_v54, %v1844_v24  ;;  %v2357_v29 = vadd.f32 %v4880_v54, %v2356_v25 }
 0x1d6   :  { %2775 = vst.msk [vmem:[%s5560_s3 + $0x3b0] sm:$0xff] %vm2656_vm2, %v2518_v20  ;;  %2903 = vst.msk [vmem:[%s5560_s3 + $0x7b0] sm:$0xff] %vm2656_vm2, %v2646_v21  ;;  %v2519_v30 = vmax.f32 %v1853_v22, 0.0  ;;  %v2647_v31 = vmax.f32 %v2365_v23, 0.0 }
 0x1d7   :  { %2773 = vst.msk [vmem:[%s5560_s3 + $0x3a0] sm:$0xff] %vm2656_vm2, %v2516_v26  ;;  %2901 = vst.msk [vmem:[%s5560_s3 + $0x7a0] sm:$0xff] %vm2656_vm2, %v2644_v27  ;;  %v2517_v32 = vmax.f32 %v1845_v28, 0.0  ;;  %v2645_v33 = vmax.f32 %v2357_v29, 0.0 }
 0x1d8   :  { %2776 = vst.msk [vmem:[%s5560_s3 + $0x3b8] sm:$0xff] %vm2656_vm2, %v2519_v30  ;;  %2904 = vst.msk [vmem:[%s5560_s3 + $0x7b8] sm:$0xff] %vm2656_vm2, %v2647_v31 }
 0x1d9   :  { %2774 = vst.msk [vmem:[%s5560_s3 + $0x3a8] sm:$0xff] %vm2656_vm2, %v2517_v32  ;;  %2902 = vst.msk [vmem:[%s5560_s3 + $0x7a8] sm:$0xff] %vm2656_vm2, %v2645_v33  ;;  %v3444_v34 = vpop.f32.mrb[120].mxu0  ;;  %v3572_v35 = vpop.f32.mrb[120].mxu1 }
 0x1da   :  { %v1866_v36 = vadd.f32 %v4880_v54, %v3444_v34  ;;  %v2378_v37 = vadd.f32 %v4880_v54, %v3572_v35  ;;  %v1857_v38 = vpop.f32.mrb[121].mxu0  ;;  %v2369_v39 = vpop.f32.mrb[121].mxu1 }
 0x1db   :  { %v1858_v40 = vadd.f32 %v4880_v54, %v1857_v38  ;;  %v2370_v41 = vadd.f32 %v4880_v54, %v2369_v39  ;;  %v3445_v42 = vpop.f32.mrb[122].mxu0  ;;  %v3573_v43 = vpop.f32.mrb[122].mxu1 }
 0x1dc   :  { %v2522_v44 = vmax.f32 %v1866_v36, 0.0  ;;  %v2650_v45 = vmax.f32 %v2378_v37, 0.0  ;;  %v1869_v46 = vadd.f32 %v4880_v54, %v3445_v42  ;;  %v2381_v47 = vadd.f32 %v4880_v54, %v3573_v43  ;;  %v1860_v48 = vpop.f32.mrb[123].mxu0  ;;  %v2372_v49 = vpop.f32.mrb[123].mxu1 }
 0x1dd   :  { %v2520_v52 = vmax.f32 %v1858_v40, 0.0  ;;  %v2648_v50 = vmax.f32 %v2370_v41, 0.0  ;;  %v1861_v51 = vadd.f32 %v4880_v54, %v1860_v48  ;;  %v2373_v53 = vadd.f32 %v4880_v54, %v2372_v49 }
 0x1de   :  { %2779 = vst.msk [vmem:[%s5560_s3 + $0x3d0] sm:$0xff] %vm2656_vm2, %v2522_v44  ;;  %2907 = vst.msk [vmem:[%s5560_s3 + $0x7d0] sm:$0xff] %vm2656_vm2, %v2650_v45  ;;  %v2523_v55 = vmax.f32 %v1869_v46, 0.0  ;;  %v2651_v56 = vmax.f32 %v2381_v47, 0.0 }
 0x1df   :  { %2777 = vst.msk [vmem:[%s5560_s3 + $0x3c0] sm:$0xff] %vm2656_vm2, %v2520_v52  ;;  %2905 = vst.msk [vmem:[%s5560_s3 + $0x7c0] sm:$0xff] %vm2656_vm2, %v2648_v50  ;;  %v2521_v54 = vmax.f32 %v1861_v51, 0.0  ;;  %v2649_v57 = vmax.f32 %v2373_v53, 0.0 }
 0x1e0   :  { %2780 = vst.msk [vmem:[%s5560_s3 + $0x3d8] sm:$0xff] %vm2656_vm2, %v2523_v55  ;;  %2908 = vst.msk [vmem:[%s5560_s3 + $0x7d8] sm:$0xff] %vm2656_vm2, %v2651_v56 }
 0x1e1   :  { %2778 = vst.msk [vmem:[%s5560_s3 + $0x3c8] sm:$0xff] %vm2656_vm2, %v2521_v54  ;;  %2906 = vst.msk [vmem:[%s5560_s3 + $0x7c8] sm:$0xff] %vm2656_vm2, %v2649_v57  ;;  %v3448_v58 = vpop.f32.mrb[124].mxu0  ;;  %v3576_v59 = vpop.f32.mrb[124].mxu1 }
 0x1e2   :  { %v1882_v61 = vadd.f32 %v3724_v60, %v3448_v58  ;;  %v2394_v62 = vadd.f32 %v3724_v60, %v3576_v59  ;;  %v1873_v63 = vpop.f32.mrb[125].mxu0  ;;  %v2385_v0 = vpop.f32.mrb[125].mxu1 }
 0x1e3   :  { %v1874_v1 = vadd.f32 %v3724_v60, %v1873_v63  ;;  %v2386_v2 = vadd.f32 %v3724_v60, %v2385_v0  ;;  %v3449_v3 = vpop.f32.mrb[126].mxu0  ;;  %v3577_v4 = vpop.f32.mrb[126].mxu1 }
 0x1e4   :  { %v2526_v5 = vmax.f32 %v1882_v61, 0.0  ;;  %v2654_v6 = vmax.f32 %v2394_v62, 0.0  ;;  %v1885_v7 = vadd.f32 %v3724_v60, %v3449_v3  ;;  %v2397_v8 = vadd.f32 %v3724_v60, %v3577_v4  ;;  %v1876_v9 = vpop.f32.mrb[127].mxu0  ;;  %v2388_v10 = vpop.f32.mrb[127].mxu1 }
 0x1e5   :  { %v2524_v11 = vmax.f32 %v1874_v1, 0.0  ;;  %v2652_v12 = vmax.f32 %v2386_v2, 0.0  ;;  %v1877_v13 = vadd.f32 %v3724_v60, %v1876_v9  ;;  %v2389_v14 = vadd.f32 %v3724_v60, %v2388_v10 }
 0x1e6   :  { %2783 = vst.msk [vmem:[%s5560_s3 + $0x3f0] sm:$0xff] %vm2656_vm2, %v2526_v5  ;;  %2911 = vst.msk [vmem:[%s5560_s3 + $0x7f0] sm:$0xff] %vm2656_vm2, %v2654_v6  ;;  %v2527_v15 = vmax.f32 %v1885_v7, 0.0  ;;  %v2655_v16 = vmax.f32 %v2397_v8, 0.0 }
 0x1e7   :  { %2781 = vst.msk [vmem:[%s5560_s3 + $0x3e0] sm:$0xff] %vm2656_vm2, %v2524_v11  ;;  %2909 = vst.msk [vmem:[%s5560_s3 + $0x7e0] sm:$0xff] %vm2656_vm2, %v2652_v12  ;;  %v2525_v17 = vmax.f32 %v1877_v13, 0.0  ;;  %v2653_v18 = vmax.f32 %v2389_v14, 0.0 }
 0x1e8   :  { %2784 = vst.msk [vmem:[%s5560_s3 + $0x3f8] sm:$0xff] %vm2656_vm2, %v2527_v15  ;;  %2912 = vst.msk [vmem:[%s5560_s3 + $0x7f8] sm:$0xff] %vm2656_vm2, %v2655_v16 }
 0x1e9   :  { %2782 = vst.msk [vmem:[%s5560_s3 + $0x3e8] sm:$0xff] %vm2656_vm2, %v2525_v17  ;;  %2910 = vst.msk [vmem:[%s5560_s3 + $0x7e8] sm:$0xff] %vm2656_vm2, %v2653_v18 }

// kernel: dpt_forward.59
= control target key start
LH: loop header
LB: loop body
LE: loop exit
PB: predicated region body
PF: predicated region fallthrough
CT: control target
= control target key end

     0   :  { %vm1306_vm0 = vcmask 1043456   ;;  %vm921_vm1 = vcmask 64512   ;;  %vm2623_vm2 = vcmask 7168   ;;  %s5476_s1 = inlined_call_operand.vmem [shape: bf16[8,1], index: 1, kind: input, shape index: {}]   ;;  %s5477_s0 = inlined_call_operand.vmem [shape: bf16[2048,8], index: 0, kind: input, shape index: {}]   ;;  %s5478_s2 = inlined_call_operand.<no memory space> [shape: f32[1,1], index: 2, kind: input, shape index: {}]   ;;  %s5479_s3 = inlined_call_operand.vmem [shape: f32[2048,1], index: 3, kind: output, shape index: {}]  }
   0x1   :  { %v273_v0 = vld [vmem:[%s5476_s1] sm:$0xf]  ;;  %v3534_v4 = vld [vmem:[%s5477_s0 + $0x8] sm:$0xff]   ;;  %v3536_v6 = vld [vmem:[%s5477_s0 + $0x10] sm:$0xff]   ;;  %v8_v46 = vstv %s5478_s2 }
   0x2   :  { %3530 = vmatprep.subr.msk.bf16.mxu0 %vm1306_vm0, %v273_v0  ;;  %3531 = vmatprep.subr.msk.bf16.mxu1 %vm1306_vm0, %v273_v0  ;;  %v1308_v1 = vsel %vm1306_vm0, %v273_v0, 0  ;;  %v3532_v2 = vld [vmem:[%s5477_s0] sm:$0xff]   ;;  %v3535_v5 = vld [vmem:[%s5477_s0 + $0x208] sm:$0xff]   ;;  %v3537_v7 = vld [vmem:[%s5477_s0 + $0x210] sm:$0xff]   ;;  %9 = vst [vmem:[#allocation2] sm:$0x1] %v8_v46 }
   0x3   :  { %3271 = vmatpush3.bf16.msra.mxu0 %v1308_v1  ;;  %3529 = vmatpush3.bf16.msra.mxu1 %v1308_v1  ;;  %v3533_v3 = vld [vmem:[%s5477_s0 + $0x200] sm:$0xff]   ;;  %v3538_v8 = vld [vmem:[%s5477_s0 + $0x18] sm:$0xff]   ;;  %v3542_v12 = vld [vmem:[%s5477_s0 + $0x28] sm:$0xff]  }
   0x4   :  { %3272 = vmatprep.mubr.msk.bf16.mxu0 %vm921_vm1, %v3532_v2  ;;  %3400 = vmatprep.mubr.msk.bf16.mxu1 %vm921_vm1, %v3533_v3  ;;  %v3539_v9 = vld [vmem:[%s5477_s0 + $0x218] sm:$0xff]   ;;  %v3540_v10 = vld [vmem:[%s5477_s0 + $0x20] sm:$0xff]   ;;  %v3543_v13 = vld [vmem:[%s5477_s0 + $0x228] sm:$0xff]  }
   0x5   :  { %v3541_v11 = vld [vmem:[%s5477_s0 + $0x220] sm:$0xff]   ;;  %v3544_v14 = vld [vmem:[%s5477_s0 + $0x30] sm:$0xff]   ;;  %v3546_v16 = vld [vmem:[%s5477_s0 + $0x38] sm:$0xff]  }
   0x6   :  { %3273 = vmatmul.mubr.msk.bf16.vlgmr.msra.gmra.mrb[0].mxu0 %vm921_vm1, %v3534_v4  ;;  %3401 = vmatmul.mubr.msk.bf16.vlgmr.msra.gmra.mrb[0].mxu1 %vm921_vm1, %v3535_v5  ;;  %v3545_v15 = vld [vmem:[%s5477_s0 + $0x230] sm:$0xff]   ;;  %v3547_v17 = vld [vmem:[%s5477_s0 + $0x238] sm:$0xff]   ;;  %v3548_v18 = vld [vmem:[%s5477_s0 + $0x40] sm:$0xff]  }
   0x7   :  { %3276 = vmatprep.mubr.msk.bf16.mxu0 %vm921_vm1, %v3536_v6  ;;  %3404 = vmatprep.mubr.msk.bf16.mxu1 %vm921_vm1, %v3537_v7  ;;  %v3549_v19 = vld [vmem:[%s5477_s0 + $0x240] sm:$0xff]   ;;  %v3550_v20 = vld [vmem:[%s5477_s0 + $0x48] sm:$0xff]   ;;  %v3552_v22 = vld [vmem:[%s5477_s0 + $0x50] sm:$0xff]  }
   0x8   :  { %v3551_v21 = vld [vmem:[%s5477_s0 + $0x248] sm:$0xff]   ;;  %v3553_v23 = vld [vmem:[%s5477_s0 + $0x250] sm:$0xff]   ;;  %v3554_v24 = vld [vmem:[%s5477_s0 + $0x58] sm:$0xff]  }
   0x9   :  { %v3555_v25 = vld [vmem:[%s5477_s0 + $0x258] sm:$0xff]   ;;  %v3556_v26 = vld [vmem:[%s5477_s0 + $0x60] sm:$0xff]   ;;  %v3558_v28 = vld [vmem:[%s5477_s0 + $0x68] sm:$0xff]  }
   0xa   :  { %v3557_v27 = vld [vmem:[%s5477_s0 + $0x260] sm:$0xff]   ;;  %v3559_v29 = vld [vmem:[%s5477_s0 + $0x268] sm:$0xff]   ;;  %v3560_v30 = vld [vmem:[%s5477_s0 + $0x70] sm:$0xff]  }
   0xb   :  { %v3561_v31 = vld [vmem:[%s5477_s0 + $0x270] sm:$0xff]   ;;  %v3562_v32 = vld [vmem:[%s5477_s0 + $0x78] sm:$0xff]   ;;  %v3564_v34 = vld [vmem:[%s5477_s0 + $0x80] sm:$0xff]  }
   0xc   :  { %v3563_v33 = vld [vmem:[%s5477_s0 + $0x278] sm:$0xff]   ;;  %v3565_v35 = vld [vmem:[%s5477_s0 + $0x280] sm:$0xff]   ;;  %v3566_v36 = vld [vmem:[%s5477_s0 + $0x88] sm:$0xff]  }
   0xd   :  { %v3567_v37 = vld [vmem:[%s5477_s0 + $0x288] sm:$0xff]   ;;  %v3568_v38 = vld [vmem:[%s5477_s0 + $0x90] sm:$0xff]   ;;  %v3570_v40 = vld [vmem:[%s5477_s0 + $0x98] sm:$0xff]  }
   0xe   :  { %3277 = vmatmul.mubr.msk.bf16.gmra.mrb[4].mxu0 %vm921_vm1, %v3538_v8  ;;  %3405 = vmatmul.mubr.msk.bf16.gmra.mrb[4].mxu1 %vm921_vm1, %v3539_v9  ;;  %v3569_v39 = vld [vmem:[%s5477_s0 + $0x290] sm:$0xff]   ;;  %v3571_v41 = vld [vmem:[%s5477_s0 + $0x298] sm:$0xff]   ;;  %v3572_v42 = vld [vmem:[%s5477_s0 + $0xa0] sm:$0xff]  }
   0xf   :  { %3280 = vmatprep.mubr.msk.bf16.mxu0 %vm921_vm1, %v3540_v10  ;;  %3408 = vmatprep.mubr.msk.bf16.mxu1 %vm921_vm1, %v3541_v11  ;;  %v3573_v43 = vld [vmem:[%s5477_s0 + $0x2a0] sm:$0xff]   ;;  %v3574_v44 = vld [vmem:[%s5477_s0 + $0xa8] sm:$0xff]   ;;  %v3576_v47 = vld [vmem:[%s5477_s0 + $0xb0] sm:$0xff]  }
  0x10   :  { %v3575_v45 = vld [vmem:[%s5477_s0 + $0x2a8] sm:$0xff]   ;;  %v3577_v48 = vld [vmem:[%s5477_s0 + $0x2b0] sm:$0xff]   ;;  %v3578_v49 = vld [vmem:[%s5477_s0 + $0xb8] sm:$0xff]  }
  0x11   :  { %v3579_v50 = vld [vmem:[%s5477_s0 + $0x2b8] sm:$0xff]   ;;  %v3580_v51 = vld [vmem:[%s5477_s0 + $0xc0] sm:$0xff]   ;;  %v3582_v53 = vld [vmem:[%s5477_s0 + $0xc8] sm:$0xff]  }
  0x12   :  { %v3581_v52 = vld [vmem:[%s5477_s0 + $0x2c0] sm:$0xff]   ;;  %v3583_v54 = vld [vmem:[%s5477_s0 + $0x2c8] sm:$0xff]   ;;  %v3584_v55 = vld [vmem:[%s5477_s0 + $0xd0] sm:$0xff]  }
  0x13   :  { %v3585_v56 = vld [vmem:[%s5477_s0 + $0x2d0] sm:$0xff]   ;;  %v3586_v57 = vld [vmem:[%s5477_s0 + $0xd8] sm:$0xff]   ;;  %v3588_v59 = vld [vmem:[%s5477_s0 + $0xe0] sm:$0xff]  }
  0x14   :  { %v3587_v58 = vld [vmem:[%s5477_s0 + $0x2d8] sm:$0xff]   ;;  %v3589_v60 = vld [vmem:[%s5477_s0 + $0x2e0] sm:$0xff]   ;;  %v3590_v61 = vld [vmem:[%s5477_s0 + $0xe8] sm:$0xff]  }
  0x15   :  { %v3591_v62 = vld [vmem:[%s5477_s0 + $0x2e8] sm:$0xff]   ;;  %v3592_v63 = vld [vmem:[%s5477_s0 + $0xf0] sm:$0xff]   ;;  %v3594_v1 = vld [vmem:[%s5477_s0 + $0xf8] sm:$0xff]  }
  0x16   :  { %3281 = vmatmul.mubr.msk.bf16.gmra.mrb[8].mxu0 %vm921_vm1, %v3542_v12  ;;  %3409 = vmatmul.mubr.msk.bf16.gmra.mrb[8].mxu1 %vm921_vm1, %v3543_v13  ;;  %v3593_v0 = vld [vmem:[%s5477_s0 + $0x2f0] sm:$0xff]   ;;  %v3595_v2 = vld [vmem:[%s5477_s0 + $0x2f8] sm:$0xff]   ;;  %v3596_v3 = vld [vmem:[%s5477_s0 + $0x100] sm:$0xff]  }
  0x17   :  { %3284 = vmatprep.mubr.msk.bf16.mxu0 %vm921_vm1, %v3544_v14  ;;  %3412 = vmatprep.mubr.msk.bf16.mxu1 %vm921_vm1, %v3545_v15  ;;  %v3597_v4 = vld [vmem:[%s5477_s0 + $0x300] sm:$0xff]   ;;  %v3598_v5 = vld [vmem:[%s5477_s0 + $0x108] sm:$0xff]   ;;  %v3600_v7 = vld [vmem:[%s5477_s0 + $0x110] sm:$0xff]  }
  0x18   :  { %v3599_v6 = vld [vmem:[%s5477_s0 + $0x308] sm:$0xff]   ;;  %v3601_v8 = vld [vmem:[%s5477_s0 + $0x310] sm:$0xff]   ;;  %v3602_v9 = vld [vmem:[%s5477_s0 + $0x118] sm:$0xff]  }
  0x19   :  { %v3603_v10 = vld [vmem:[%s5477_s0 + $0x318] sm:$0xff]   ;;  %v3604_v11 = vld [vmem:[%s5477_s0 + $0x120] sm:$0xff]   ;;  %v3606_v13 = vld [vmem:[%s5477_s0 + $0x128] sm:$0xff]  }
  0x1a   :  { %v3605_v12 = vld [vmem:[%s5477_s0 + $0x320] sm:$0xff]   ;;  %v3607_v14 = vld [vmem:[%s5477_s0 + $0x328] sm:$0xff]   ;;  %v3608_v15 = vld [vmem:[%s5477_s0 + $0x130] sm:$0xff]  }
  0x1b   :  { %v3639_v46 = vld [vmem:[%s5477_s0 + $0x3a8] sm:$0xff]  }
  0x1e   :  { %3285 = vmatmul.mubr.msk.bf16.gmra.mrb[12].mxu0 %vm921_vm1, %v3546_v16  ;;  %3413 = vmatmul.mubr.msk.bf16.gmra.mrb[12].mxu1 %vm921_vm1, %v3547_v17  ;;  %v3609_v16 = vld [vmem:[%s5477_s0 + $0x330] sm:$0xff]   ;;  %v3610_v17 = vld [vmem:[%s5477_s0 + $0x138] sm:$0xff]  }
  0x1f   :  { %3288 = vmatprep.mubr.msk.bf16.mxu0 %vm921_vm1, %v3548_v18  ;;  %3416 = vmatprep.mubr.msk.bf16.mxu1 %vm921_vm1, %v3549_v19  ;;  %v3611_v18 = vld [vmem:[%s5477_s0 + $0x338] sm:$0xff]   ;;  %v3612_v19 = vld [vmem:[%s5477_s0 + $0x140] sm:$0xff]  }
  0x26   :  { %3289 = vmatmul.mubr.msk.bf16.gmra.mrb[16].mxu0 %vm921_vm1, %v3550_v20  ;;  %3417 = vmatmul.mubr.msk.bf16.gmra.mrb[16].mxu1 %vm921_vm1, %v3551_v21  ;;  %v3613_v20 = vld [vmem:[%s5477_s0 + $0x340] sm:$0xff]   ;;  %v3614_v21 = vld [vmem:[%s5477_s0 + $0x148] sm:$0xff]  }
  0x27   :  { %3292 = vmatprep.mubr.msk.bf16.mxu0 %vm921_vm1, %v3552_v22  ;;  %3420 = vmatprep.mubr.msk.bf16.mxu1 %vm921_vm1, %v3553_v23  ;;  %v3615_v22 = vld [vmem:[%s5477_s0 + $0x348] sm:$0xff]   ;;  %v3616_v23 = vld [vmem:[%s5477_s0 + $0x150] sm:$0xff]  }
  0x2e   :  { %3293 = vmatmul.mubr.msk.bf16.gmra.mrb[20].mxu0 %vm921_vm1, %v3554_v24  ;;  %3421 = vmatmul.mubr.msk.bf16.gmra.mrb[20].mxu1 %vm921_vm1, %v3555_v25  ;;  %v3617_v24 = vld [vmem:[%s5477_s0 + $0x350] sm:$0xff]   ;;  %v3618_v25 = vld [vmem:[%s5477_s0 + $0x158] sm:$0xff]  }
  0x2f   :  { %3296 = vmatprep.mubr.msk.bf16.mxu0 %vm921_vm1, %v3556_v26  ;;  %3424 = vmatprep.mubr.msk.bf16.mxu1 %vm921_vm1, %v3557_v27  ;;  %v3619_v26 = vld [vmem:[%s5477_s0 + $0x358] sm:$0xff]   ;;  %v3620_v27 = vld [vmem:[%s5477_s0 + $0x160] sm:$0xff]  }
  0x36   :  { %3297 = vmatmul.mubr.msk.bf16.gmra.mrb[24].mxu0 %vm921_vm1, %v3558_v28  ;;  %3425 = vmatmul.mubr.msk.bf16.gmra.mrb[24].mxu1 %vm921_vm1, %v3559_v29  ;;  %v3621_v28 = vld [vmem:[%s5477_s0 + $0x360] sm:$0xff]   ;;  %v3622_v29 = vld [vmem:[%s5477_s0 + $0x168] sm:$0xff]  }
  0x37   :  { %3300 = vmatprep.mubr.msk.bf16.mxu0 %vm921_vm1, %v3560_v30  ;;  %3428 = vmatprep.mubr.msk.bf16.mxu1 %vm921_vm1, %v3561_v31  ;;  %v3623_v30 = vld [vmem:[%s5477_s0 + $0x368] sm:$0xff]   ;;  %v3624_v31 = vld [vmem:[%s5477_s0 + $0x170] sm:$0xff]  }
  0x3e   :  { %3301 = vmatmul.mubr.msk.bf16.gmra.mrb[28].mxu0 %vm921_vm1, %v3562_v32  ;;  %3429 = vmatmul.mubr.msk.bf16.gmra.mrb[28].mxu1 %vm921_vm1, %v3563_v33  ;;  %v3625_v32 = vld [vmem:[%s5477_s0 + $0x370] sm:$0xff]   ;;  %v3626_v33 = vld [vmem:[%s5477_s0 + $0x178] sm:$0xff]  }
  0x3f   :  { %3304 = vmatprep.mubr.msk.bf16.mxu0 %vm921_vm1, %v3564_v34  ;;  %3432 = vmatprep.mubr.msk.bf16.mxu1 %vm921_vm1, %v3565_v35  ;;  %v3627_v34 = vld [vmem:[%s5477_s0 + $0x378] sm:$0xff]   ;;  %v3628_v35 = vld [vmem:[%s5477_s0 + $0x180] sm:$0xff]  }
  0x46   :  { %3305 = vmatmul.mubr.msk.bf16.gmra.mrb[32].mxu0 %vm921_vm1, %v3566_v36  ;;  %3433 = vmatmul.mubr.msk.bf16.gmra.mrb[32].mxu1 %vm921_vm1, %v3567_v37  ;;  %v3629_v36 = vld [vmem:[%s5477_s0 + $0x380] sm:$0xff]   ;;  %v3630_v37 = vld [vmem:[%s5477_s0 + $0x188] sm:$0xff]  }
  0x47   :  { %3308 = vmatprep.mubr.msk.bf16.mxu0 %vm921_vm1, %v3568_v38  ;;  %3436 = vmatprep.mubr.msk.bf16.mxu1 %vm921_vm1, %v3569_v39  ;;  %v3631_v38 = vld [vmem:[%s5477_s0 + $0x388] sm:$0xff]   ;;  %v3632_v39 = vld [vmem:[%s5477_s0 + $0x190] sm:$0xff]  }
  0x4e   :  { %3309 = vmatmul.mubr.msk.bf16.gmra.mrb[36].mxu0 %vm921_vm1, %v3570_v40  ;;  %3437 = vmatmul.mubr.msk.bf16.gmra.mrb[36].mxu1 %vm921_vm1, %v3571_v41  ;;  %v3633_v40 = vld [vmem:[%s5477_s0 + $0x390] sm:$0xff]   ;;  %v3634_v41 = vld [vmem:[%s5477_s0 + $0x198] sm:$0xff]  }
  0x4f   :  { %3312 = vmatprep.mubr.msk.bf16.mxu0 %vm921_vm1, %v3572_v42  ;;  %3440 = vmatprep.mubr.msk.bf16.mxu1 %vm921_vm1, %v3573_v43  ;;  %v3635_v42 = vld [vmem:[%s5477_s0 + $0x398] sm:$0xff]   ;;  %v3636_v43 = vld [vmem:[%s5477_s0 + $0x1a0] sm:$0xff]  }
  0x56   :  { %3313 = vmatmul.mubr.msk.bf16.gmra.mrb[40].mxu0 %vm921_vm1, %v3574_v44  ;;  %3441 = vmatmul.mubr.msk.bf16.gmra.mrb[40].mxu1 %vm921_vm1, %v3575_v45  ;;  %v3637_v44 = vld [vmem:[%s5477_s0 + $0x3a0] sm:$0xff]   ;;  %v3638_v45 = vld [vmem:[%s5477_s0 + $0x1a8] sm:$0xff]  }
  0x57   :  { %3316 = vmatprep.mubr.msk.bf16.mxu0 %vm921_vm1, %v3576_v47  ;;  %3444 = vmatprep.mubr.msk.bf16.mxu1 %vm921_vm1, %v3577_v48  ;;  %v3640_v47 = vld [vmem:[%s5477_s0 + $0x1b0] sm:$0xff]  }
  0x58   :  { %v3641_v48 = vld [vmem:[%s5477_s0 + $0x3b0] sm:$0xff]  }
  0x5e   :  { %3317 = vmatmul.mubr.msk.bf16.gmra.mrb[44].mxu0 %vm921_vm1, %v3578_v49  ;;  %3445 = vmatmul.mubr.msk.bf16.gmra.mrb[44].mxu1 %vm921_vm1, %v3579_v50  ;;  %v4126_v49 = vld [vmem:[#allocation2] ss:$0 sm:$0xff] }
  0x5f   :  { %3320 = vmatprep.mubr.msk.bf16.mxu0 %vm921_vm1, %v3580_v51  ;;  %3448 = vmatprep.mubr.msk.bf16.mxu1 %vm921_vm1, %v3581_v52 }
  0x66   :  { %3321 = vmatmul.mubr.msk.bf16.gmra.mrb[48].mxu0 %vm921_vm1, %v3582_v53  ;;  %3449 = vmatmul.mubr.msk.bf16.gmra.mrb[48].mxu1 %vm921_vm1, %v3583_v54  ;;  %v3642_v54 = vld [vmem:[%s5477_s0 + $0x1b8] sm:$0xff]  }
  0x67   :  { %3324 = vmatprep.mubr.msk.bf16.mxu0 %vm921_vm1, %v3584_v55  ;;  %3452 = vmatprep.mubr.msk.bf16.mxu1 %vm921_vm1, %v3585_v56 }
  0x6e   :  { %3325 = vmatmul.mubr.msk.bf16.gmra.mrb[52].mxu0 %vm921_vm1, %v3586_v57  ;;  %3453 = vmatmul.mubr.msk.bf16.gmra.mrb[52].mxu1 %vm921_vm1, %v3587_v58 }
  0x6f   :  { %3328 = vmatprep.mubr.msk.bf16.mxu0 %vm921_vm1, %v3588_v59  ;;  %3456 = vmatprep.mubr.msk.bf16.mxu1 %vm921_vm1, %v3589_v60  ;;  %v3643_v59 = vld [vmem:[%s5477_s0 + $0x3b8] sm:$0xff]   ;;  %v3644_v60 = vld [vmem:[%s5477_s0 + $0x1c0] sm:$0xff]  }
  0x76   :  { %3329 = vmatmul.mubr.msk.bf16.gmra.mrb[56].mxu0 %vm921_vm1, %v3590_v61  ;;  %3457 = vmatmul.mubr.msk.bf16.gmra.mrb[56].mxu1 %vm921_vm1, %v3591_v62 }
  0x77   :  { %3332 = vmatprep.mubr.msk.bf16.mxu0 %vm921_vm1, %v3592_v63  ;;  %3460 = vmatprep.mubr.msk.bf16.mxu1 %vm921_vm1, %v3593_v0 }
  0x7e   :  { %3333 = vmatmul.mubr.msk.bf16.gmra.mrb[60].mxu0 %vm921_vm1, %v3594_v1  ;;  %3461 = vmatmul.mubr.msk.bf16.gmra.mrb[60].mxu1 %vm921_vm1, %v3595_v2  ;;  %v3645_v2 = vld [vmem:[%s5477_s0 + $0x3c0] sm:$0xff]  }
  0x7f   :  { %3336 = vmatprep.mubr.msk.bf16.mxu0 %vm921_vm1, %v3596_v3  ;;  %3464 = vmatprep.mubr.msk.bf16.mxu1 %vm921_vm1, %v3597_v4 }
  0x86   :  { %3337 = vmatmul.mubr.msk.bf16.gmra.mrb[64].mxu0 %vm921_vm1, %v3598_v5  ;;  %3465 = vmatmul.mubr.msk.bf16.gmra.mrb[64].mxu1 %vm921_vm1, %v3599_v6 }
  0x87   :  { %3340 = vmatprep.mubr.msk.bf16.mxu0 %vm921_vm1, %v3600_v7  ;;  %3468 = vmatprep.mubr.msk.bf16.mxu1 %vm921_vm1, %v3601_v8 }
  0x8e   :  { %3341 = vmatmul.mubr.msk.bf16.gmra.mrb[68].mxu0 %vm921_vm1, %v3602_v9  ;;  %3469 = vmatmul.mubr.msk.bf16.gmra.mrb[68].mxu1 %vm921_vm1, %v3603_v10 }
  0x8f   :  { %3344 = vmatprep.mubr.msk.bf16.mxu0 %vm921_vm1, %v3604_v11  ;;  %3472 = vmatprep.mubr.msk.bf16.mxu1 %vm921_vm1, %v3605_v12 }
  0x96   :  { %3345 = vmatmul.mubr.msk.bf16.gmra.mrb[72].mxu0 %vm921_vm1, %v3606_v13  ;;  %3473 = vmatmul.mubr.msk.bf16.gmra.mrb[72].mxu1 %vm921_vm1, %v3607_v14 }
  0x97   :  { %3348 = vmatprep.mubr.msk.bf16.mxu0 %vm921_vm1, %v3608_v15  ;;  %3476 = vmatprep.mubr.msk.bf16.mxu1 %vm921_vm1, %v3609_v16 }
  0x9e   :  { %3349 = vmatmul.mubr.msk.bf16.gmra.mrb[76].mxu0 %vm921_vm1, %v3610_v17  ;;  %3477 = vmatmul.mubr.msk.bf16.gmra.mrb[76].mxu1 %vm921_vm1, %v3611_v18  ;;  %v3646_v18 = vld [vmem:[%s5477_s0 + $0x1c8] sm:$0xff]  }
  0x9f   :  { %3352 = vmatprep.mubr.msk.bf16.mxu0 %vm921_vm1, %v3612_v19  ;;  %3480 = vmatprep.mubr.msk.bf16.mxu1 %vm921_vm1, %v3613_v20 }
  0xa6   :  { %3353 = vmatmul.mubr.msk.bf16.gmra.mrb[80].mxu0 %vm921_vm1, %v3614_v21  ;;  %3481 = vmatmul.mubr.msk.bf16.gmra.mrb[80].mxu1 %vm921_vm1, %v3615_v22 }
  0xa7   :  { %3356 = vmatprep.mubr.msk.bf16.mxu0 %vm921_vm1, %v3616_v23  ;;  %3484 = vmatprep.mubr.msk.bf16.mxu1 %vm921_vm1, %v3617_v24  ;;  %v3647_v23 = vld [vmem:[%s5477_s0 + $0x3c8] sm:$0xff]   ;;  %v3648_v24 = vld [vmem:[%s5477_s0 + $0x1d0] sm:$0xff]  }
  0xae   :  { %3357 = vmatmul.mubr.msk.bf16.gmra.mrb[84].mxu0 %vm921_vm1, %v3618_v25  ;;  %3485 = vmatmul.mubr.msk.bf16.gmra.mrb[84].mxu1 %vm921_vm1, %v3619_v26 }
  0xaf   :  { %3360 = vmatprep.mubr.msk.bf16.mxu0 %vm921_vm1, %v3620_v27  ;;  %3488 = vmatprep.mubr.msk.bf16.mxu1 %vm921_vm1, %v3621_v28 }
  0xb6   :  { %3361 = vmatmul.mubr.msk.bf16.gmra.mrb[88].mxu0 %vm921_vm1, %v3622_v29  ;;  %3489 = vmatmul.mubr.msk.bf16.gmra.mrb[88].mxu1 %vm921_vm1, %v3623_v30  ;;  %v3649_v30 = vld [vmem:[%s5477_s0 + $0x3d0] sm:$0xff]  }
  0xb7   :  { %3364 = vmatprep.mubr.msk.bf16.mxu0 %vm921_vm1, %v3624_v31  ;;  %3492 = vmatprep.mubr.msk.bf16.mxu1 %vm921_vm1, %v3625_v32 }
  0xbe   :  { %3365 = vmatmul.mubr.msk.bf16.gmra.mrb[92].mxu0 %vm921_vm1, %v3626_v33  ;;  %3493 = vmatmul.mubr.msk.bf16.gmra.mrb[92].mxu1 %vm921_vm1, %v3627_v34 }
  0xbf   :  { %3368 = vmatprep.mubr.msk.bf16.mxu0 %vm921_vm1, %v3628_v35  ;;  %3496 = vmatprep.mubr.msk.bf16.mxu1 %vm921_vm1, %v3629_v36 }
  0xc6   :  { %3369 = vmatmul.mubr.msk.bf16.gmra.mrb[96].mxu0 %vm921_vm1, %v3630_v37  ;;  %3497 = vmatmul.mubr.msk.bf16.gmra.mrb[96].mxu1 %vm921_vm1, %v3631_v38 }
  0xc7   :  { %3372 = vmatprep.mubr.msk.bf16.mxu0 %vm921_vm1, %v3632_v39  ;;  %3500 = vmatprep.mubr.msk.bf16.mxu1 %vm921_vm1, %v3633_v40 }
  0xce   :  { %3373 = vmatmul.mubr.msk.bf16.gmra.mrb[100].mxu0 %vm921_vm1, %v3634_v41  ;;  %3501 = vmatmul.mubr.msk.bf16.gmra.mrb[100].mxu1 %vm921_vm1, %v3635_v42 }
  0xcf   :  { %3376 = vmatprep.mubr.msk.bf16.mxu0 %vm921_vm1, %v3636_v43  ;;  %3504 = vmatprep.mubr.msk.bf16.mxu1 %vm921_vm1, %v3637_v44 }
  0xd6   :  { %3377 = vmatmul.mubr.msk.bf16.gmra.mrb[104].mxu0 %vm921_vm1, %v3638_v45  ;;  %3505 = vmatmul.mubr.msk.bf16.gmra.mrb[104].mxu1 %vm921_vm1, %v3639_v46  ;;  %v3650_v46 = vld [vmem:[%s5477_s0 + $0x1d8] sm:$0xff]  }
  0xd7   :  { %3380 = vmatprep.mubr.msk.bf16.mxu0 %vm921_vm1, %v3640_v47  ;;  %3508 = vmatprep.mubr.msk.bf16.mxu1 %vm921_vm1, %v3641_v48 }
  0xd9   :  { %v3274_v50 = vpop.f32.mrb[0].mxu0  ;;  %v3402_v52 = vpop.f32.mrb[0].mxu1 }
  0xda   :  { %v1353_v51 = vadd.f32 %v3274_v50, %v4126_v49  ;;  %v1344_v53 = vpop.f32.mrb[1].mxu0  ;;  %v1865_v55 = vadd.f32 %v3402_v52, %v4126_v49  ;;  %v1856_v57 = vpop.f32.mrb[1].mxu1  ;;  %v3651_v52 = vld [vmem:[%s5477_s0 + $0x3d8] sm:$0xff]  }
  0xdb   :  { %v1345_v56 = vadd.f32 %v4126_v49, %v1344_v53  ;;  %v3275_v58 = vpop.f32.mrb[2].mxu0  ;;  %v1857_v62 = vadd.f32 %v4126_v49, %v1856_v57  ;;  %v3403_v0 = vpop.f32.mrb[2].mxu1  ;;  %v3652_v53 = vld [vmem:[%s5477_s0 + $0x1e0] sm:$0xff]  }
  0xdc   :  { %v2369_v61 = vmax.f32 %v1353_v51, 0.0  ;;  %v1356_v63 = vadd.f32 %v3275_v58, %v4126_v49  ;;  %v1347_v1 = vpop.f32.mrb[3].mxu0  ;;  %v2497_v3 = vmax.f32 %v1865_v55, 0.0  ;;  %v1868_v5 = vadd.f32 %v3403_v0, %v4126_v49  ;;  %v1859_v7 = vpop.f32.mrb[3].mxu1 }
  0xdd   :  { %v2367_v4 = vmax.f32 %v1345_v56, 0.0  ;;  %v1348_v6 = vadd.f32 %v4126_v49, %v1347_v1  ;;  %v2495_v8 = vmax.f32 %v1857_v62, 0.0  ;;  %v1860_v10 = vadd.f32 %v4126_v49, %v1859_v7 }
  0xde   :  { %2626 = vst.msk [vmem:[%s5479_s3 + $0x10] sm:$0xff] %vm2623_vm2, %v2369_v61  ;;  %v2370_v9 = vmax.f32 %v1356_v63, 0.0  ;;  %3381 = vmatmul.mubr.msk.bf16.gmra.mrb[108].mxu0 %vm921_vm1, %v3642_v54  ;;  %2754 = vst.msk [vmem:[%s5479_s3 + $0x410] sm:$0xff] %vm2623_vm2, %v2497_v3  ;;  %v2498_v11 = vmax.f32 %v1868_v5, 0.0  ;;  %3509 = vmatmul.mubr.msk.bf16.gmra.mrb[108].mxu1 %vm921_vm1, %v3643_v59  ;;  %v3653_v59 = vld [vmem:[%s5477_s0 + $0x3e0] sm:$0xff]  }
  0xdf   :  { %2624 = vst.msk [vmem:[%s5479_s3] sm:$0xff] %vm2623_vm2, %v2367_v4  ;;  %v2368_v12 = vmax.f32 %v1348_v6, 0.0  ;;  %3384 = vmatprep.mubr.msk.bf16.mxu0 %vm921_vm1, %v3644_v60  ;;  %2752 = vst.msk [vmem:[%s5479_s3 + $0x400] sm:$0xff] %vm2623_vm2, %v2495_v8  ;;  %v2496_v13 = vmax.f32 %v1860_v10, 0.0  ;;  %3512 = vmatprep.mubr.msk.bf16.mxu1 %vm921_vm1, %v3645_v2 }
  0xe0   :  { %2627 = vst.msk [vmem:[%s5479_s3 + $0x18] sm:$0xff] %vm2623_vm2, %v2370_v9  ;;  %2755 = vst.msk [vmem:[%s5479_s3 + $0x418] sm:$0xff] %vm2623_vm2, %v2498_v11  ;;  %v3654_v11 = vld [vmem:[%s5477_s0 + $0x1e8] sm:$0xff]  }
  0xe1   :  { %2625 = vst.msk [vmem:[%s5479_s3 + $0x8] sm:$0xff] %vm2623_vm2, %v2368_v12  ;;  %v3278_v14 = vpop.f32.mrb[4].mxu0  ;;  %2753 = vst.msk [vmem:[%s5479_s3 + $0x408] sm:$0xff] %vm2623_vm2, %v2496_v13  ;;  %v3406_v16 = vpop.f32.mrb[4].mxu1 }
  0xe2   :  { %v1369_v15 = vadd.f32 %v3278_v14, %v4126_v49  ;;  %v1360_v17 = vpop.f32.mrb[5].mxu0  ;;  %v1881_v19 = vadd.f32 %v3406_v16, %v4126_v49  ;;  %v1872_v21 = vpop.f32.mrb[5].mxu1  ;;  %v3655_v16 = vld [vmem:[%s5477_s0 + $0x3e8] sm:$0xff]  }
  0xe3   :  { %v1361_v20 = vadd.f32 %v4126_v49, %v1360_v17  ;;  %v3279_v22 = vpop.f32.mrb[6].mxu0  ;;  %v1873_v26 = vadd.f32 %v4126_v49, %v1872_v21  ;;  %v3407_v28 = vpop.f32.mrb[6].mxu1  ;;  %v3656_v17 = vld [vmem:[%s5477_s0 + $0x1f0] sm:$0xff]  }
  0xe4   :  { %v2373_v25 = vmax.f32 %v1369_v15, 0.0  ;;  %v1372_v27 = vadd.f32 %v3279_v22, %v4126_v49  ;;  %v1363_v29 = vpop.f32.mrb[7].mxu0  ;;  %v2501_v31 = vmax.f32 %v1881_v19, 0.0  ;;  %v1884_v33 = vadd.f32 %v3407_v28, %v4126_v49  ;;  %v1875_v35 = vpop.f32.mrb[7].mxu1 }
  0xe5   :  { %v2371_v32 = vmax.f32 %v1361_v20, 0.0  ;;  %v1364_v34 = vadd.f32 %v4126_v49, %v1363_v29  ;;  %v2499_v36 = vmax.f32 %v1873_v26, 0.0  ;;  %v1876_v38 = vadd.f32 %v4126_v49, %v1875_v35 }
  0xe6   :  { %2630 = vst.msk [vmem:[%s5479_s3 + $0x30] sm:$0xff] %vm2623_vm2, %v2373_v25  ;;  %v2374_v37 = vmax.f32 %v1372_v27, 0.0  ;;  %3385 = vmatmul.mubr.msk.bf16.gmra.mrb[112].mxu0 %vm921_vm1, %v3646_v18  ;;  %2758 = vst.msk [vmem:[%s5479_s3 + $0x430] sm:$0xff] %vm2623_vm2, %v2501_v31  ;;  %v2502_v39 = vmax.f32 %v1884_v33, 0.0  ;;  %3513 = vmatmul.mubr.msk.bf16.gmra.mrb[112].mxu1 %vm921_vm1, %v3647_v23  ;;  %v3657_v23 = vld [vmem:[%s5477_s0 + $0x3f0] sm:$0xff]  }
  0xe7   :  { %2628 = vst.msk [vmem:[%s5479_s3 + $0x20] sm:$0xff] %vm2623_vm2, %v2371_v32  ;;  %v2372_v40 = vmax.f32 %v1364_v34, 0.0  ;;  %3388 = vmatprep.mubr.msk.bf16.mxu0 %vm921_vm1, %v3648_v24  ;;  %2756 = vst.msk [vmem:[%s5479_s3 + $0x420] sm:$0xff] %vm2623_vm2, %v2499_v36  ;;  %v2500_v41 = vmax.f32 %v1876_v38, 0.0  ;;  %3516 = vmatprep.mubr.msk.bf16.mxu1 %vm921_vm1, %v3649_v30 }
  0xe8   :  { %2631 = vst.msk [vmem:[%s5479_s3 + $0x38] sm:$0xff] %vm2623_vm2, %v2374_v37  ;;  %2759 = vst.msk [vmem:[%s5479_s3 + $0x438] sm:$0xff] %vm2623_vm2, %v2502_v39  ;;  %v3658_v39 = vld [vmem:[%s5477_s0 + $0x1f8] sm:$0xff]  }
  0xe9   :  { %2629 = vst.msk [vmem:[%s5479_s3 + $0x28] sm:$0xff] %vm2623_vm2, %v2372_v40  ;;  %v3282_v42 = vpop.f32.mrb[8].mxu0  ;;  %2757 = vst.msk [vmem:[%s5479_s3 + $0x428] sm:$0xff] %vm2623_vm2, %v2500_v41  ;;  %v3410_v44 = vpop.f32.mrb[8].mxu1 }
  0xea   :  { %v1385_v43 = vadd.f32 %v3282_v42, %v4126_v49  ;;  %v1376_v45 = vpop.f32.mrb[9].mxu0  ;;  %v1897_v47 = vadd.f32 %v3410_v44, %v4126_v49  ;;  %v1888_v50 = vpop.f32.mrb[9].mxu1  ;;  %v3659_v44 = vld [vmem:[%s5477_s0 + $0x3f8] sm:$0xff]  }
  0xeb   :  { %v1377_v48 = vadd.f32 %v4126_v49, %v1376_v45  ;;  %v3283_v51 = vpop.f32.mrb[10].mxu0  ;;  %v1889_v55 = vadd.f32 %v4126_v49, %v1888_v50  ;;  %v3411_v57 = vpop.f32.mrb[10].mxu1 }
  0xec   :  { %v2377_v54 = vmax.f32 %v1385_v43, 0.0  ;;  %v1388_v56 = vadd.f32 %v3283_v51, %v4126_v49  ;;  %v1379_v58 = vpop.f32.mrb[11].mxu0  ;;  %v2505_v60 = vmax.f32 %v1897_v47, 0.0  ;;  %v1900_v62 = vadd.f32 %v3411_v57, %v4126_v49  ;;  %v1891_v0 = vpop.f32.mrb[11].mxu1 }
  0xed   :  { %v2375_v61 = vmax.f32 %v1377_v48, 0.0  ;;  %v1380_v63 = vadd.f32 %v4126_v49, %v1379_v58  ;;  %v2503_v1 = vmax.f32 %v1889_v55, 0.0  ;;  %v1892_v3 = vadd.f32 %v4126_v49, %v1891_v0 }
  0xee   :  { %2634 = vst.msk [vmem:[%s5479_s3 + $0x50] sm:$0xff] %vm2623_vm2, %v2377_v54  ;;  %v2378_v2 = vmax.f32 %v1388_v56, 0.0  ;;  %3389 = vmatmul.mubr.msk.bf16.gmra.mrb[116].mxu0 %vm921_vm1, %v3650_v46  ;;  %2762 = vst.msk [vmem:[%s5479_s3 + $0x450] sm:$0xff] %vm2623_vm2, %v2505_v60  ;;  %v2506_v4 = vmax.f32 %v1900_v62, 0.0  ;;  %3517 = vmatmul.mubr.msk.bf16.gmra.mrb[116].mxu1 %vm921_vm1, %v3651_v52 }
  0xef   :  { %2632 = vst.msk [vmem:[%s5479_s3 + $0x40] sm:$0xff] %vm2623_vm2, %v2375_v61  ;;  %v2376_v5 = vmax.f32 %v1380_v63, 0.0  ;;  %3392 = vmatprep.mubr.msk.bf16.mxu0 %vm921_vm1, %v3652_v53  ;;  %2760 = vst.msk [vmem:[%s5479_s3 + $0x440] sm:$0xff] %vm2623_vm2, %v2503_v1  ;;  %v2504_v6 = vmax.f32 %v1892_v3, 0.0  ;;  %3520 = vmatprep.mubr.msk.bf16.mxu1 %vm921_vm1, %v3653_v59 }
  0xf0   :  { %2635 = vst.msk [vmem:[%s5479_s3 + $0x58] sm:$0xff] %vm2623_vm2, %v2378_v2  ;;  %2763 = vst.msk [vmem:[%s5479_s3 + $0x458] sm:$0xff] %vm2623_vm2, %v2506_v4 }
  0xf1   :  { %2633 = vst.msk [vmem:[%s5479_s3 + $0x48] sm:$0xff] %vm2623_vm2, %v2376_v5  ;;  %v3286_v7 = vpop.f32.mrb[12].mxu0  ;;  %2761 = vst.msk [vmem:[%s5479_s3 + $0x448] sm:$0xff] %vm2623_vm2, %v2504_v6  ;;  %v3414_v9 = vpop.f32.mrb[12].mxu1 }
  0xf2   :  { %v1401_v8 = vadd.f32 %v3286_v7, %v4126_v49  ;;  %v1392_v10 = vpop.f32.mrb[13].mxu0  ;;  %v1913_v12 = vadd.f32 %v3414_v9, %v4126_v49  ;;  %v1904_v14 = vpop.f32.mrb[13].mxu1 }
  0xf3   :  { %v1393_v13 = vadd.f32 %v4126_v49, %v1392_v10  ;;  %v3287_v15 = vpop.f32.mrb[14].mxu0  ;;  %v1905_v19 = vadd.f32 %v4126_v49, %v1904_v14  ;;  %v3415_v21 = vpop.f32.mrb[14].mxu1 }
  0xf4   :  { %v2381_v18 = vmax.f32 %v1401_v8, 0.0  ;;  %v1404_v20 = vadd.f32 %v3287_v15, %v4126_v49  ;;  %v1395_v22 = vpop.f32.mrb[15].mxu0  ;;  %v2509_v24 = vmax.f32 %v1913_v12, 0.0  ;;  %v1916_v26 = vadd.f32 %v3415_v21, %v4126_v49  ;;  %v1907_v28 = vpop.f32.mrb[15].mxu1 }
  0xf5   :  { %v2379_v25 = vmax.f32 %v1393_v13, 0.0  ;;  %v1396_v27 = vadd.f32 %v4126_v49, %v1395_v22  ;;  %v2507_v29 = vmax.f32 %v1905_v19, 0.0  ;;  %v1908_v31 = vadd.f32 %v4126_v49, %v1907_v28 }
  0xf6   :  { %2638 = vst.msk [vmem:[%s5479_s3 + $0x70] sm:$0xff] %vm2623_vm2, %v2381_v18  ;;  %v2382_v30 = vmax.f32 %v1404_v20, 0.0  ;;  %3393 = vmatmul.mubr.msk.bf16.gmra.mrb[120].mxu0 %vm921_vm1, %v3654_v11  ;;  %2766 = vst.msk [vmem:[%s5479_s3 + $0x470] sm:$0xff] %vm2623_vm2, %v2509_v24  ;;  %v2510_v32 = vmax.f32 %v1916_v26, 0.0  ;;  %3521 = vmatmul.mubr.msk.bf16.gmra.mrb[120].mxu1 %vm921_vm1, %v3655_v16 }
  0xf7   :  { %2636 = vst.msk [vmem:[%s5479_s3 + $0x60] sm:$0xff] %vm2623_vm2, %v2379_v25  ;;  %v2380_v33 = vmax.f32 %v1396_v27, 0.0  ;;  %3396 = vmatprep.mubr.msk.bf16.mxu0 %vm921_vm1, %v3656_v17  ;;  %2764 = vst.msk [vmem:[%s5479_s3 + $0x460] sm:$0xff] %vm2623_vm2, %v2507_v29  ;;  %v2508_v34 = vmax.f32 %v1908_v31, 0.0  ;;  %3524 = vmatprep.mubr.msk.bf16.mxu1 %vm921_vm1, %v3657_v23 }
  0xf8   :  { %2639 = vst.msk [vmem:[%s5479_s3 + $0x78] sm:$0xff] %vm2623_vm2, %v2382_v30  ;;  %2767 = vst.msk [vmem:[%s5479_s3 + $0x478] sm:$0xff] %vm2623_vm2, %v2510_v32 }
  0xf9   :  { %2637 = vst.msk [vmem:[%s5479_s3 + $0x68] sm:$0xff] %vm2623_vm2, %v2380_v33  ;;  %v3290_v35 = vpop.f32.mrb[16].mxu0  ;;  %2765 = vst.msk [vmem:[%s5479_s3 + $0x468] sm:$0xff] %vm2623_vm2, %v2508_v34  ;;  %v3418_v37 = vpop.f32.mrb[16].mxu1 }
  0xfa   :  { %v1417_v36 = vadd.f32 %v3290_v35, %v4126_v49  ;;  %v1408_v38 = vpop.f32.mrb[17].mxu0  ;;  %v1929_v40 = vadd.f32 %v3418_v37, %v4126_v49  ;;  %v1920_v42 = vpop.f32.mrb[17].mxu1 }
  0xfb   :  { %v1409_v41 = vadd.f32 %v4126_v49, %v1408_v38  ;;  %v3291_v43 = vpop.f32.mrb[18].mxu0  ;;  %v1921_v46 = vadd.f32 %v4126_v49, %v1920_v42  ;;  %v3419_v48 = vpop.f32.mrb[18].mxu1 }
  0xfc   :  { %v2385_v45 = vmax.f32 %v1417_v36, 0.0  ;;  %v1420_v47 = vadd.f32 %v3291_v43, %v4126_v49  ;;  %v1411_v50 = vpop.f32.mrb[19].mxu0  ;;  %v2513_v51 = vmax.f32 %v1929_v40, 0.0  ;;  %v1932_v53 = vadd.f32 %v3419_v48, %v4126_v49  ;;  %v1923_v55 = vpop.f32.mrb[19].mxu1 }
  0xfd   :  { %v2383_v52 = vmax.f32 %v1409_v41, 0.0  ;;  %v1412_v54 = vadd.f32 %v4126_v49, %v1411_v50  ;;  %v2511_v56 = vmax.f32 %v1921_v46, 0.0  ;;  %v1924_v58 = vadd.f32 %v4126_v49, %v1923_v55 }
  0xfe   :  { %2642 = vst.msk [vmem:[%s5479_s3 + $0x90] sm:$0xff] %vm2623_vm2, %v2385_v45  ;;  %v2386_v57 = vmax.f32 %v1420_v47, 0.0  ;;  %3397 = vmatmul.mubr.msk.bf16.gmra.mrb[124].mxu0 %vm921_vm1, %v3658_v39  ;;  %2770 = vst.msk [vmem:[%s5479_s3 + $0x490] sm:$0xff] %vm2623_vm2, %v2513_v51  ;;  %v2514_v59 = vmax.f32 %v1932_v53, 0.0  ;;  %3525 = vmatmul.mubr.msk.bf16.gmra.mrb[124].mxu1 %vm921_vm1, %v3659_v44 }
  0xff   :  { %2640 = vst.msk [vmem:[%s5479_s3 + $0x80] sm:$0xff] %vm2623_vm2, %v2383_v52  ;;  %v2384_v60 = vmax.f32 %v1412_v54, 0.0  ;;  %2768 = vst.msk [vmem:[%s5479_s3 + $0x480] sm:$0xff] %vm2623_vm2, %v2511_v56  ;;  %v2512_v61 = vmax.f32 %v1924_v58, 0.0 }
 0x100   :  { %2643 = vst.msk [vmem:[%s5479_s3 + $0x98] sm:$0xff] %vm2623_vm2, %v2386_v57  ;;  %2771 = vst.msk [vmem:[%s5479_s3 + $0x498] sm:$0xff] %vm2623_vm2, %v2514_v59 }
 0x101   :  { %2641 = vst.msk [vmem:[%s5479_s3 + $0x88] sm:$0xff] %vm2623_vm2, %v2384_v60  ;;  %v3294_v62 = vpop.f32.mrb[20].mxu0  ;;  %2769 = vst.msk [vmem:[%s5479_s3 + $0x488] sm:$0xff] %vm2623_vm2, %v2512_v61  ;;  %v3422_v0 = vpop.f32.mrb[20].mxu1 }
 0x102   :  { %v1433_v63 = vadd.f32 %v3294_v62, %v4126_v49  ;;  %v1424_v1 = vpop.f32.mrb[21].mxu0  ;;  %v1945_v2 = vadd.f32 %v3422_v0, %v4126_v49  ;;  %v1936_v4 = vpop.f32.mrb[21].mxu1 }
 0x103   :  { %v1425_v3 = vadd.f32 %v4126_v49, %v1424_v1  ;;  %v3295_v5 = vpop.f32.mrb[22].mxu0  ;;  %v1937_v7 = vadd.f32 %v4126_v49, %v1936_v4  ;;  %v3423_v9 = vpop.f32.mrb[22].mxu1 }
 0x104   :  { %v2389_v6 = vmax.f32 %v1433_v63, 0.0  ;;  %v1436_v8 = vadd.f32 %v3295_v5, %v4126_v49  ;;  %v1427_v10 = vpop.f32.mrb[23].mxu0  ;;  %v2517_v11 = vmax.f32 %v1945_v2, 0.0  ;;  %v1948_v13 = vadd.f32 %v3423_v9, %v4126_v49  ;;  %v1939_v15 = vpop.f32.mrb[23].mxu1 }
 0x105   :  { %v2387_v12 = vmax.f32 %v1425_v3, 0.0  ;;  %v1428_v14 = vadd.f32 %v4126_v49, %v1427_v10  ;;  %v2515_v16 = vmax.f32 %v1937_v7, 0.0  ;;  %v1940_v18 = vadd.f32 %v4126_v49, %v1939_v15 }
 0x106   :  { %2646 = vst.msk [vmem:[%s5479_s3 + $0xb0] sm:$0xff] %vm2623_vm2, %v2389_v6  ;;  %v2390_v17 = vmax.f32 %v1436_v8, 0.0  ;;  %2774 = vst.msk [vmem:[%s5479_s3 + $0x4b0] sm:$0xff] %vm2623_vm2, %v2517_v11  ;;  %v2518_v19 = vmax.f32 %v1948_v13, 0.0 }
 0x107   :  { %2644 = vst.msk [vmem:[%s5479_s3 + $0xa0] sm:$0xff] %vm2623_vm2, %v2387_v12  ;;  %v2388_v20 = vmax.f32 %v1428_v14, 0.0  ;;  %2772 = vst.msk [vmem:[%s5479_s3 + $0x4a0] sm:$0xff] %vm2623_vm2, %v2515_v16  ;;  %v2516_v21 = vmax.f32 %v1940_v18, 0.0 }
 0x108   :  { %2647 = vst.msk [vmem:[%s5479_s3 + $0xb8] sm:$0xff] %vm2623_vm2, %v2390_v17  ;;  %2775 = vst.msk [vmem:[%s5479_s3 + $0x4b8] sm:$0xff] %vm2623_vm2, %v2518_v19 }
 0x109   :  { %2645 = vst.msk [vmem:[%s5479_s3 + $0xa8] sm:$0xff] %vm2623_vm2, %v2388_v20  ;;  %v3298_v22 = vpop.f32.mrb[24].mxu0  ;;  %2773 = vst.msk [vmem:[%s5479_s3 + $0x4a8] sm:$0xff] %vm2623_vm2, %v2516_v21  ;;  %v3426_v24 = vpop.f32.mrb[24].mxu1 }
 0x10a   :  { %v1449_v23 = vadd.f32 %v3298_v22, %v4126_v49  ;;  %v1440_v25 = vpop.f32.mrb[25].mxu0  ;;  %v1961_v26 = vadd.f32 %v3426_v24, %v4126_v49  ;;  %v1952_v28 = vpop.f32.mrb[25].mxu1 }
 0x10b   :  { %v1441_v27 = vadd.f32 %v4126_v49, %v1440_v25  ;;  %v3299_v29 = vpop.f32.mrb[26].mxu0  ;;  %v1953_v31 = vadd.f32 %v4126_v49, %v1952_v28  ;;  %v3427_v33 = vpop.f32.mrb[26].mxu1 }
 0x10c   :  { %v2393_v30 = vmax.f32 %v1449_v23, 0.0  ;;  %v1452_v32 = vadd.f32 %v3299_v29, %v4126_v49  ;;  %v1443_v34 = vpop.f32.mrb[27].mxu0  ;;  %v2521_v35 = vmax.f32 %v1961_v26, 0.0  ;;  %v1964_v37 = vadd.f32 %v3427_v33, %v4126_v49  ;;  %v1955_v39 = vpop.f32.mrb[27].mxu1 }
 0x10d   :  { %v2391_v36 = vmax.f32 %v1441_v27, 0.0  ;;  %v1444_v38 = vadd.f32 %v4126_v49, %v1443_v34  ;;  %v2519_v40 = vmax.f32 %v1953_v31, 0.0  ;;  %v1956_v42 = vadd.f32 %v4126_v49, %v1955_v39 }
 0x10e   :  { %2650 = vst.msk [vmem:[%s5479_s3 + $0xd0] sm:$0xff] %vm2623_vm2, %v2393_v30  ;;  %v2394_v41 = vmax.f32 %v1452_v32, 0.0  ;;  %2778 = vst.msk [vmem:[%s5479_s3 + $0x4d0] sm:$0xff] %vm2623_vm2, %v2521_v35  ;;  %v2522_v43 = vmax.f32 %v1964_v37, 0.0 }
 0x10f   :  { %2648 = vst.msk [vmem:[%s5479_s3 + $0xc0] sm:$0xff] %vm2623_vm2, %v2391_v36  ;;  %v2392_v44 = vmax.f32 %v1444_v38, 0.0  ;;  %2776 = vst.msk [vmem:[%s5479_s3 + $0x4c0] sm:$0xff] %vm2623_vm2, %v2519_v40  ;;  %v2520_v45 = vmax.f32 %v1956_v42, 0.0 }
 0x110   :  { %2651 = vst.msk [vmem:[%s5479_s3 + $0xd8] sm:$0xff] %vm2623_vm2, %v2394_v41  ;;  %2779 = vst.msk [vmem:[%s5479_s3 + $0x4d8] sm:$0xff] %vm2623_vm2, %v2522_v43 }
 0x111   :  { %2649 = vst.msk [vmem:[%s5479_s3 + $0xc8] sm:$0xff] %vm2623_vm2, %v2392_v44  ;;  %v3302_v46 = vpop.f32.mrb[28].mxu0  ;;  %2777 = vst.msk [vmem:[%s5479_s3 + $0x4c8] sm:$0xff] %vm2623_vm2, %v2520_v45  ;;  %v3430_v48 = vpop.f32.mrb[28].mxu1 }
 0x112   :  { %v1465_v47 = vadd.f32 %v3302_v46, %v4126_v49  ;;  %v1456_v50 = vpop.f32.mrb[29].mxu0  ;;  %v1977_v51 = vadd.f32 %v3430_v48, %v4126_v49  ;;  %v1968_v53 = vpop.f32.mrb[29].mxu1 }
 0x113   :  { %v1457_v52 = vadd.f32 %v4126_v49, %v1456_v50  ;;  %v3303_v54 = vpop.f32.mrb[30].mxu0  ;;  %v1969_v56 = vadd.f32 %v4126_v49, %v1968_v53  ;;  %v3431_v58 = vpop.f32.mrb[30].mxu1 }
 0x114   :  { %v2397_v55 = vmax.f32 %v1465_v47, 0.0  ;;  %v1468_v57 = vadd.f32 %v3303_v54, %v4126_v49  ;;  %v1459_v59 = vpop.f32.mrb[31].mxu0  ;;  %v2525_v60 = vmax.f32 %v1977_v51, 0.0  ;;  %v1980_v62 = vadd.f32 %v3431_v58, %v4126_v49  ;;  %v1971_v0 = vpop.f32.mrb[31].mxu1 }
 0x115   :  { %v2395_v61 = vmax.f32 %v1457_v52, 0.0  ;;  %v1460_v63 = vadd.f32 %v4126_v49, %v1459_v59  ;;  %v2523_v1 = vmax.f32 %v1969_v56, 0.0  ;;  %v1972_v3 = vadd.f32 %v4126_v49, %v1971_v0 }
 0x116   :  { %2654 = vst.msk [vmem:[%s5479_s3 + $0xf0] sm:$0xff] %vm2623_vm2, %v2397_v55  ;;  %v2398_v2 = vmax.f32 %v1468_v57, 0.0  ;;  %2782 = vst.msk [vmem:[%s5479_s3 + $0x4f0] sm:$0xff] %vm2623_vm2, %v2525_v60  ;;  %v2526_v4 = vmax.f32 %v1980_v62, 0.0 }
 0x117   :  { %2652 = vst.msk [vmem:[%s5479_s3 + $0xe0] sm:$0xff] %vm2623_vm2, %v2395_v61  ;;  %v2396_v5 = vmax.f32 %v1460_v63, 0.0  ;;  %2780 = vst.msk [vmem:[%s5479_s3 + $0x4e0] sm:$0xff] %vm2623_vm2, %v2523_v1  ;;  %v2524_v6 = vmax.f32 %v1972_v3, 0.0 }
 0x118   :  { %2655 = vst.msk [vmem:[%s5479_s3 + $0xf8] sm:$0xff] %vm2623_vm2, %v2398_v2  ;;  %2783 = vst.msk [vmem:[%s5479_s3 + $0x4f8] sm:$0xff] %vm2623_vm2, %v2526_v4 }
 0x119   :  { %2653 = vst.msk [vmem:[%s5479_s3 + $0xe8] sm:$0xff] %vm2623_vm2, %v2396_v5  ;;  %v3306_v7 = vpop.f32.mrb[32].mxu0  ;;  %2781 = vst.msk [vmem:[%s5479_s3 + $0x4e8] sm:$0xff] %vm2623_vm2, %v2524_v6  ;;  %v3434_v9 = vpop.f32.mrb[32].mxu1 }
 0x11a   :  { %v1481_v8 = vadd.f32 %v3306_v7, %v4126_v49  ;;  %v1472_v10 = vpop.f32.mrb[33].mxu0  ;;  %v1993_v11 = vadd.f32 %v3434_v9, %v4126_v49  ;;  %v1984_v13 = vpop.f32.mrb[33].mxu1 }
 0x11b   :  { %v1473_v12 = vadd.f32 %v4126_v49, %v1472_v10  ;;  %v3307_v14 = vpop.f32.mrb[34].mxu0  ;;  %v1985_v16 = vadd.f32 %v4126_v49, %v1984_v13  ;;  %v3435_v18 = vpop.f32.mrb[34].mxu1 }
 0x11c   :  { %v2401_v15 = vmax.f32 %v1481_v8, 0.0  ;;  %v1484_v17 = vadd.f32 %v3307_v14, %v4126_v49  ;;  %v1475_v19 = vpop.f32.mrb[35].mxu0  ;;  %v2529_v20 = vmax.f32 %v1993_v11, 0.0  ;;  %v1996_v22 = vadd.f32 %v3435_v18, %v4126_v49  ;;  %v1987_v24 = vpop.f32.mrb[35].mxu1 }
 0x11d   :  { %v2399_v21 = vmax.f32 %v1473_v12, 0.0  ;;  %v1476_v23 = vadd.f32 %v4126_v49, %v1475_v19  ;;  %v2527_v25 = vmax.f32 %v1985_v16, 0.0  ;;  %v1988_v27 = vadd.f32 %v4126_v49, %v1987_v24 }
 0x11e   :  { %2658 = vst.msk [vmem:[%s5479_s3 + $0x110] sm:$0xff] %vm2623_vm2, %v2401_v15  ;;  %v2402_v26 = vmax.f32 %v1484_v17, 0.0  ;;  %2786 = vst.msk [vmem:[%s5479_s3 + $0x510] sm:$0xff] %vm2623_vm2, %v2529_v20  ;;  %v2530_v28 = vmax.f32 %v1996_v22, 0.0 }
 0x11f   :  { %2656 = vst.msk [vmem:[%s5479_s3 + $0x100] sm:$0xff] %vm2623_vm2, %v2399_v21  ;;  %v2400_v29 = vmax.f32 %v1476_v23, 0.0  ;;  %2784 = vst.msk [vmem:[%s5479_s3 + $0x500] sm:$0xff] %vm2623_vm2, %v2527_v25  ;;  %v2528_v30 = vmax.f32 %v1988_v27, 0.0 }
 0x120   :  { %2659 = vst.msk [vmem:[%s5479_s3 + $0x118] sm:$0xff] %vm2623_vm2, %v2402_v26  ;;  %2787 = vst.msk [vmem:[%s5479_s3 + $0x518] sm:$0xff] %vm2623_vm2, %v2530_v28 }
 0x121   :  { %2657 = vst.msk [vmem:[%s5479_s3 + $0x108] sm:$0xff] %vm2623_vm2, %v2400_v29  ;;  %v3310_v31 = vpop.f32.mrb[36].mxu0  ;;  %2785 = vst.msk [vmem:[%s5479_s3 + $0x508] sm:$0xff] %vm2623_vm2, %v2528_v30  ;;  %v3438_v33 = vpop.f32.mrb[36].mxu1 }
 0x122   :  { %v1497_v32 = vadd.f32 %v3310_v31, %v4126_v49  ;;  %v1488_v34 = vpop.f32.mrb[37].mxu0  ;;  %v2009_v35 = vadd.f32 %v3438_v33, %v4126_v49  ;;  %v2000_v37 = vpop.f32.mrb[37].mxu1 }
 0x123   :  { %v1489_v36 = vadd.f32 %v4126_v49, %v1488_v34  ;;  %v3311_v38 = vpop.f32.mrb[38].mxu0  ;;  %v2001_v40 = vadd.f32 %v4126_v49, %v2000_v37  ;;  %v3439_v42 = vpop.f32.mrb[38].mxu1 }
 0x124   :  { %v2405_v39 = vmax.f32 %v1497_v32, 0.0  ;;  %v1500_v41 = vadd.f32 %v3311_v38, %v4126_v49  ;;  %v1491_v43 = vpop.f32.mrb[39].mxu0  ;;  %v2533_v44 = vmax.f32 %v2009_v35, 0.0  ;;  %v2012_v46 = vadd.f32 %v3439_v42, %v4126_v49  ;;  %v2003_v48 = vpop.f32.mrb[39].mxu1 }
 0x125   :  { %v2403_v45 = vmax.f32 %v1489_v36, 0.0  ;;  %v1492_v47 = vadd.f32 %v4126_v49, %v1491_v43  ;;  %v2531_v50 = vmax.f32 %v2001_v40, 0.0  ;;  %v2004_v52 = vadd.f32 %v4126_v49, %v2003_v48 }
 0x126   :  { %2662 = vst.msk [vmem:[%s5479_s3 + $0x130] sm:$0xff] %vm2623_vm2, %v2405_v39  ;;  %v2406_v51 = vmax.f32 %v1500_v41, 0.0  ;;  %2790 = vst.msk [vmem:[%s5479_s3 + $0x530] sm:$0xff] %vm2623_vm2, %v2533_v44  ;;  %v2534_v53 = vmax.f32 %v2012_v46, 0.0 }
 0x127   :  { %2660 = vst.msk [vmem:[%s5479_s3 + $0x120] sm:$0xff] %vm2623_vm2, %v2403_v45  ;;  %v2404_v54 = vmax.f32 %v1492_v47, 0.0  ;;  %2788 = vst.msk [vmem:[%s5479_s3 + $0x520] sm:$0xff] %vm2623_vm2, %v2531_v50  ;;  %v2532_v55 = vmax.f32 %v2004_v52, 0.0 }
 0x128   :  { %2663 = vst.msk [vmem:[%s5479_s3 + $0x138] sm:$0xff] %vm2623_vm2, %v2406_v51  ;;  %2791 = vst.msk [vmem:[%s5479_s3 + $0x538] sm:$0xff] %vm2623_vm2, %v2534_v53 }
 0x129   :  { %2661 = vst.msk [vmem:[%s5479_s3 + $0x128] sm:$0xff] %vm2623_vm2, %v2404_v54  ;;  %v3314_v56 = vpop.f32.mrb[40].mxu0  ;;  %2789 = vst.msk [vmem:[%s5479_s3 + $0x528] sm:$0xff] %vm2623_vm2, %v2532_v55  ;;  %v3442_v58 = vpop.f32.mrb[40].mxu1 }
 0x12a   :  { %v1513_v57 = vadd.f32 %v3314_v56, %v4126_v49  ;;  %v1504_v59 = vpop.f32.mrb[41].mxu0  ;;  %v2025_v60 = vadd.f32 %v3442_v58, %v4126_v49  ;;  %v2016_v62 = vpop.f32.mrb[41].mxu1 }
 0x12b   :  { %v1505_v61 = vadd.f32 %v4126_v49, %v1504_v59  ;;  %v3315_v63 = vpop.f32.mrb[42].mxu0  ;;  %v2017_v1 = vadd.f32 %v4126_v49, %v2016_v62  ;;  %v3443_v3 = vpop.f32.mrb[42].mxu1 }
 0x12c   :  { %v2409_v0 = vmax.f32 %v1513_v57, 0.0  ;;  %v1516_v2 = vadd.f32 %v3315_v63, %v4126_v49  ;;  %v1507_v4 = vpop.f32.mrb[43].mxu0  ;;  %v2537_v5 = vmax.f32 %v2025_v60, 0.0  ;;  %v2028_v7 = vadd.f32 %v3443_v3, %v4126_v49  ;;  %v2019_v9 = vpop.f32.mrb[43].mxu1 }
 0x12d   :  { %v2407_v6 = vmax.f32 %v1505_v61, 0.0  ;;  %v1508_v8 = vadd.f32 %v4126_v49, %v1507_v4  ;;  %v2535_v10 = vmax.f32 %v2017_v1, 0.0  ;;  %v2020_v12 = vadd.f32 %v4126_v49, %v2019_v9 }
 0x12e   :  { %2666 = vst.msk [vmem:[%s5479_s3 + $0x150] sm:$0xff] %vm2623_vm2, %v2409_v0  ;;  %v2410_v11 = vmax.f32 %v1516_v2, 0.0  ;;  %2794 = vst.msk [vmem:[%s5479_s3 + $0x550] sm:$0xff] %vm2623_vm2, %v2537_v5  ;;  %v2538_v13 = vmax.f32 %v2028_v7, 0.0 }
 0x12f   :  { %2664 = vst.msk [vmem:[%s5479_s3 + $0x140] sm:$0xff] %vm2623_vm2, %v2407_v6  ;;  %v2408_v14 = vmax.f32 %v1508_v8, 0.0  ;;  %2792 = vst.msk [vmem:[%s5479_s3 + $0x540] sm:$0xff] %vm2623_vm2, %v2535_v10  ;;  %v2536_v15 = vmax.f32 %v2020_v12, 0.0 }
 0x130   :  { %2667 = vst.msk [vmem:[%s5479_s3 + $0x158] sm:$0xff] %vm2623_vm2, %v2410_v11  ;;  %2795 = vst.msk [vmem:[%s5479_s3 + $0x558] sm:$0xff] %vm2623_vm2, %v2538_v13 }
 0x131   :  { %2665 = vst.msk [vmem:[%s5479_s3 + $0x148] sm:$0xff] %vm2623_vm2, %v2408_v14  ;;  %v3318_v16 = vpop.f32.mrb[44].mxu0  ;;  %2793 = vst.msk [vmem:[%s5479_s3 + $0x548] sm:$0xff] %vm2623_vm2, %v2536_v15  ;;  %v3446_v18 = vpop.f32.mrb[44].mxu1 }
 0x132   :  { %v1529_v17 = vadd.f32 %v3318_v16, %v4126_v49  ;;  %v1520_v19 = vpop.f32.mrb[45].mxu0  ;;  %v2041_v20 = vadd.f32 %v3446_v18, %v4126_v49  ;;  %v2032_v22 = vpop.f32.mrb[45].mxu1 }
 0x133   :  { %v1521_v21 = vadd.f32 %v4126_v49, %v1520_v19  ;;  %v3319_v23 = vpop.f32.mrb[46].mxu0  ;;  %v2033_v25 = vadd.f32 %v4126_v49, %v2032_v22  ;;  %v3447_v27 = vpop.f32.mrb[46].mxu1 }
 0x134   :  { %v2413_v24 = vmax.f32 %v1529_v17, 0.0  ;;  %v1532_v26 = vadd.f32 %v3319_v23, %v4126_v49  ;;  %v1523_v28 = vpop.f32.mrb[47].mxu0  ;;  %v2541_v29 = vmax.f32 %v2041_v20, 0.0  ;;  %v2044_v31 = vadd.f32 %v3447_v27, %v4126_v49  ;;  %v2035_v33 = vpop.f32.mrb[47].mxu1 }
 0x135   :  { %v2411_v30 = vmax.f32 %v1521_v21, 0.0  ;;  %v1524_v32 = vadd.f32 %v4126_v49, %v1523_v28  ;;  %v2539_v34 = vmax.f32 %v2033_v25, 0.0  ;;  %v2036_v36 = vadd.f32 %v4126_v49, %v2035_v33 }
 0x136   :  { %2670 = vst.msk [vmem:[%s5479_s3 + $0x170] sm:$0xff] %vm2623_vm2, %v2413_v24  ;;  %v2414_v35 = vmax.f32 %v1532_v26, 0.0  ;;  %2798 = vst.msk [vmem:[%s5479_s3 + $0x570] sm:$0xff] %vm2623_vm2, %v2541_v29  ;;  %v2542_v37 = vmax.f32 %v2044_v31, 0.0 }
 0x137   :  { %2668 = vst.msk [vmem:[%s5479_s3 + $0x160] sm:$0xff] %vm2623_vm2, %v2411_v30  ;;  %v2412_v38 = vmax.f32 %v1524_v32, 0.0  ;;  %2796 = vst.msk [vmem:[%s5479_s3 + $0x560] sm:$0xff] %vm2623_vm2, %v2539_v34  ;;  %v2540_v39 = vmax.f32 %v2036_v36, 0.0 }
 0x138   :  { %2671 = vst.msk [vmem:[%s5479_s3 + $0x178] sm:$0xff] %vm2623_vm2, %v2414_v35  ;;  %2799 = vst.msk [vmem:[%s5479_s3 + $0x578] sm:$0xff] %vm2623_vm2, %v2542_v37 }
 0x139   :  { %2669 = vst.msk [vmem:[%s5479_s3 + $0x168] sm:$0xff] %vm2623_vm2, %v2412_v38  ;;  %v3322_v40 = vpop.f32.mrb[48].mxu0  ;;  %2797 = vst.msk [vmem:[%s5479_s3 + $0x568] sm:$0xff] %vm2623_vm2, %v2540_v39  ;;  %v3450_v42 = vpop.f32.mrb[48].mxu1 }
 0x13a   :  { %v1545_v41 = vadd.f32 %v3322_v40, %v4126_v49  ;;  %v1536_v43 = vpop.f32.mrb[49].mxu0  ;;  %v2057_v44 = vadd.f32 %v3450_v42, %v4126_v49  ;;  %v2048_v46 = vpop.f32.mrb[49].mxu1 }
 0x13b   :  { %v1537_v45 = vadd.f32 %v4126_v49, %v1536_v43  ;;  %v3323_v47 = vpop.f32.mrb[50].mxu0  ;;  %v2049_v50 = vadd.f32 %v4126_v49, %v2048_v46  ;;  %v3451_v52 = vpop.f32.mrb[50].mxu1 }
 0x13c   :  { %v2417_v48 = vmax.f32 %v1545_v41, 0.0  ;;  %v1548_v51 = vadd.f32 %v3323_v47, %v4126_v49  ;;  %v1539_v53 = vpop.f32.mrb[51].mxu0  ;;  %v2545_v54 = vmax.f32 %v2057_v44, 0.0  ;;  %v2060_v56 = vadd.f32 %v3451_v52, %v4126_v49  ;;  %v2051_v58 = vpop.f32.mrb[51].mxu1 }
 0x13d   :  { %v2415_v55 = vmax.f32 %v1537_v45, 0.0  ;;  %v1540_v57 = vadd.f32 %v4126_v49, %v1539_v53  ;;  %v2543_v59 = vmax.f32 %v2049_v50, 0.0  ;;  %v2052_v61 = vadd.f32 %v4126_v49, %v2051_v58  ;;  %v4802_v50 = vld [vmem:[#allocation2] ss:$0 sm:$0xff] }
 0x13e   :  { %2674 = vst.msk [vmem:[%s5479_s3 + $0x190] sm:$0xff] %vm2623_vm2, %v2417_v48  ;;  %v2418_v60 = vmax.f32 %v1548_v51, 0.0  ;;  %2802 = vst.msk [vmem:[%s5479_s3 + $0x590] sm:$0xff] %vm2623_vm2, %v2545_v54  ;;  %v2546_v62 = vmax.f32 %v2060_v56, 0.0 }
 0x13f   :  { %2672 = vst.msk [vmem:[%s5479_s3 + $0x180] sm:$0xff] %vm2623_vm2, %v2415_v55  ;;  %v2416_v63 = vmax.f32 %v1540_v57, 0.0  ;;  %2800 = vst.msk [vmem:[%s5479_s3 + $0x580] sm:$0xff] %vm2623_vm2, %v2543_v59  ;;  %v2544_v0 = vmax.f32 %v2052_v61, 0.0 }
 0x140   :  { %2675 = vst.msk [vmem:[%s5479_s3 + $0x198] sm:$0xff] %vm2623_vm2, %v2418_v60  ;;  %2803 = vst.msk [vmem:[%s5479_s3 + $0x598] sm:$0xff] %vm2623_vm2, %v2546_v62 }
 0x141   :  { %2673 = vst.msk [vmem:[%s5479_s3 + $0x188] sm:$0xff] %vm2623_vm2, %v2416_v63  ;;  %v3326_v1 = vpop.f32.mrb[52].mxu0  ;;  %2801 = vst.msk [vmem:[%s5479_s3 + $0x588] sm:$0xff] %vm2623_vm2, %v2544_v0  ;;  %v3454_v3 = vpop.f32.mrb[52].mxu1 }
 0x142   :  { %v1561_v2 = vadd.f32 %v3326_v1, %v4126_v49  ;;  %v1552_v4 = vpop.f32.mrb[53].mxu0  ;;  %v2073_v5 = vadd.f32 %v3454_v3, %v4126_v49  ;;  %v2064_v7 = vpop.f32.mrb[53].mxu1 }
 0x143   :  { %v1553_v6 = vadd.f32 %v4126_v49, %v1552_v4  ;;  %v3327_v8 = vpop.f32.mrb[54].mxu0  ;;  %v2065_v10 = vadd.f32 %v4126_v49, %v2064_v7  ;;  %v3455_v12 = vpop.f32.mrb[54].mxu1 }
 0x144   :  { %v2421_v9 = vmax.f32 %v1561_v2, 0.0  ;;  %v1564_v11 = vadd.f32 %v3327_v8, %v4126_v49  ;;  %v1555_v13 = vpop.f32.mrb[55].mxu0  ;;  %v2549_v14 = vmax.f32 %v2073_v5, 0.0  ;;  %v2076_v16 = vadd.f32 %v3455_v12, %v4126_v49  ;;  %v2067_v18 = vpop.f32.mrb[55].mxu1 }
 0x145   :  { %v2419_v15 = vmax.f32 %v1553_v6, 0.0  ;;  %v1556_v17 = vadd.f32 %v4126_v49, %v1555_v13  ;;  %v2547_v19 = vmax.f32 %v2065_v10, 0.0  ;;  %v2068_v21 = vadd.f32 %v4126_v49, %v2067_v18 }
 0x146   :  { %2678 = vst.msk [vmem:[%s5479_s3 + $0x1b0] sm:$0xff] %vm2623_vm2, %v2421_v9  ;;  %v2422_v20 = vmax.f32 %v1564_v11, 0.0  ;;  %2806 = vst.msk [vmem:[%s5479_s3 + $0x5b0] sm:$0xff] %vm2623_vm2, %v2549_v14  ;;  %v2550_v22 = vmax.f32 %v2076_v16, 0.0 }
 0x147   :  { %2676 = vst.msk [vmem:[%s5479_s3 + $0x1a0] sm:$0xff] %vm2623_vm2, %v2419_v15  ;;  %v2420_v23 = vmax.f32 %v1556_v17, 0.0  ;;  %2804 = vst.msk [vmem:[%s5479_s3 + $0x5a0] sm:$0xff] %vm2623_vm2, %v2547_v19  ;;  %v2548_v24 = vmax.f32 %v2068_v21, 0.0 }
 0x148   :  { %2679 = vst.msk [vmem:[%s5479_s3 + $0x1b8] sm:$0xff] %vm2623_vm2, %v2422_v20  ;;  %2807 = vst.msk [vmem:[%s5479_s3 + $0x5b8] sm:$0xff] %vm2623_vm2, %v2550_v22 }
 0x149   :  { %2677 = vst.msk [vmem:[%s5479_s3 + $0x1a8] sm:$0xff] %vm2623_vm2, %v2420_v23  ;;  %v3330_v25 = vpop.f32.mrb[56].mxu0  ;;  %2805 = vst.msk [vmem:[%s5479_s3 + $0x5a8] sm:$0xff] %vm2623_vm2, %v2548_v24  ;;  %v3458_v27 = vpop.f32.mrb[56].mxu1 }
 0x14a   :  { %v1577_v26 = vadd.f32 %v3330_v25, %v4126_v49  ;;  %v1568_v28 = vpop.f32.mrb[57].mxu0  ;;  %v2089_v29 = vadd.f32 %v3458_v27, %v4126_v49  ;;  %v2080_v31 = vpop.f32.mrb[57].mxu1 }
 0x14b   :  { %v1569_v30 = vadd.f32 %v4126_v49, %v1568_v28  ;;  %v3331_v32 = vpop.f32.mrb[58].mxu0  ;;  %v2081_v34 = vadd.f32 %v4126_v49, %v2080_v31  ;;  %v3459_v36 = vpop.f32.mrb[58].mxu1 }
 0x14c   :  { %v2425_v33 = vmax.f32 %v1577_v26, 0.0  ;;  %v1580_v35 = vadd.f32 %v3331_v32, %v4126_v49  ;;  %v1571_v37 = vpop.f32.mrb[59].mxu0  ;;  %v2553_v38 = vmax.f32 %v2089_v29, 0.0  ;;  %v2092_v40 = vadd.f32 %v3459_v36, %v4126_v49  ;;  %v2083_v42 = vpop.f32.mrb[59].mxu1 }
 0x14d   :  { %v2423_v39 = vmax.f32 %v1569_v30, 0.0  ;;  %v1572_v41 = vadd.f32 %v4126_v49, %v1571_v37  ;;  %v2551_v43 = vmax.f32 %v2081_v34, 0.0  ;;  %v2084_v45 = vadd.f32 %v4126_v49, %v2083_v42 }
 0x14e   :  { %2682 = vst.msk [vmem:[%s5479_s3 + $0x1d0] sm:$0xff] %vm2623_vm2, %v2425_v33  ;;  %v2426_v44 = vmax.f32 %v1580_v35, 0.0  ;;  %2810 = vst.msk [vmem:[%s5479_s3 + $0x5d0] sm:$0xff] %vm2623_vm2, %v2553_v38  ;;  %v2554_v46 = vmax.f32 %v2092_v40, 0.0 }
 0x14f   :  { %2680 = vst.msk [vmem:[%s5479_s3 + $0x1c0] sm:$0xff] %vm2623_vm2, %v2423_v39  ;;  %v2424_v47 = vmax.f32 %v1572_v41, 0.0  ;;  %2808 = vst.msk [vmem:[%s5479_s3 + $0x5c0] sm:$0xff] %vm2623_vm2, %v2551_v43  ;;  %v2552_v49 = vmax.f32 %v2084_v45, 0.0 }
 0x150   :  { %2683 = vst.msk [vmem:[%s5479_s3 + $0x1d8] sm:$0xff] %vm2623_vm2, %v2426_v44  ;;  %2811 = vst.msk [vmem:[%s5479_s3 + $0x5d8] sm:$0xff] %vm2623_vm2, %v2554_v46 }
 0x151   :  { %2681 = vst.msk [vmem:[%s5479_s3 + $0x1c8] sm:$0xff] %vm2623_vm2, %v2424_v47  ;;  %v3334_v48 = vpop.f32.mrb[60].mxu0  ;;  %2809 = vst.msk [vmem:[%s5479_s3 + $0x5c8] sm:$0xff] %vm2623_vm2, %v2552_v49  ;;  %v3462_v52 = vpop.f32.mrb[60].mxu1 }
 0x152   :  { %v1593_v51 = vadd.f32 %v4802_v50, %v3334_v48  ;;  %v1584_v53 = vpop.f32.mrb[61].mxu0  ;;  %v2105_v54 = vadd.f32 %v4802_v50, %v3462_v52  ;;  %v2096_v56 = vpop.f32.mrb[61].mxu1 }
 0x153   :  { %v1585_v55 = vadd.f32 %v4802_v50, %v1584_v53  ;;  %v3335_v57 = vpop.f32.mrb[62].mxu0  ;;  %v2097_v59 = vadd.f32 %v4802_v50, %v2096_v56  ;;  %v3463_v61 = vpop.f32.mrb[62].mxu1 }
 0x154   :  { %v2429_v58 = vmax.f32 %v1593_v51, 0.0  ;;  %v1596_v60 = vadd.f32 %v4802_v50, %v3335_v57  ;;  %v1587_v62 = vpop.f32.mrb[63].mxu0  ;;  %v2557_v63 = vmax.f32 %v2105_v54, 0.0  ;;  %v2108_v1 = vadd.f32 %v4802_v50, %v3463_v61  ;;  %v2099_v3 = vpop.f32.mrb[63].mxu1 }
 0x155   :  { %v2427_v0 = vmax.f32 %v1585_v55, 0.0  ;;  %v1588_v2 = vadd.f32 %v4802_v50, %v1587_v62  ;;  %v2555_v4 = vmax.f32 %v2097_v59, 0.0  ;;  %v2100_v6 = vadd.f32 %v4802_v50, %v2099_v3 }
 0x156   :  { %2686 = vst.msk [vmem:[%s5479_s3 + $0x1f0] sm:$0xff] %vm2623_vm2, %v2429_v58  ;;  %v2430_v5 = vmax.f32 %v1596_v60, 0.0  ;;  %2814 = vst.msk [vmem:[%s5479_s3 + $0x5f0] sm:$0xff] %vm2623_vm2, %v2557_v63  ;;  %v2558_v7 = vmax.f32 %v2108_v1, 0.0 }
 0x157   :  { %2684 = vst.msk [vmem:[%s5479_s3 + $0x1e0] sm:$0xff] %vm2623_vm2, %v2427_v0  ;;  %v2428_v8 = vmax.f32 %v1588_v2, 0.0  ;;  %2812 = vst.msk [vmem:[%s5479_s3 + $0x5e0] sm:$0xff] %vm2623_vm2, %v2555_v4  ;;  %v2556_v9 = vmax.f32 %v2100_v6, 0.0 }
 0x158   :  { %2687 = vst.msk [vmem:[%s5479_s3 + $0x1f8] sm:$0xff] %vm2623_vm2, %v2430_v5  ;;  %2815 = vst.msk [vmem:[%s5479_s3 + $0x5f8] sm:$0xff] %vm2623_vm2, %v2558_v7 }
 0x159   :  { %2685 = vst.msk [vmem:[%s5479_s3 + $0x1e8] sm:$0xff] %vm2623_vm2, %v2428_v8  ;;  %v3338_v10 = vpop.f32.mrb[64].mxu0  ;;  %2813 = vst.msk [vmem:[%s5479_s3 + $0x5e8] sm:$0xff] %vm2623_vm2, %v2556_v9  ;;  %v3466_v12 = vpop.f32.mrb[64].mxu1 }
 0x15a   :  { %v1609_v11 = vadd.f32 %v4802_v50, %v3338_v10  ;;  %v1600_v13 = vpop.f32.mrb[65].mxu0  ;;  %v2121_v14 = vadd.f32 %v4802_v50, %v3466_v12  ;;  %v2112_v16 = vpop.f32.mrb[65].mxu1 }
 0x15b   :  { %v1601_v15 = vadd.f32 %v4802_v50, %v1600_v13  ;;  %v3339_v17 = vpop.f32.mrb[66].mxu0  ;;  %v2113_v19 = vadd.f32 %v4802_v50, %v2112_v16  ;;  %v3467_v21 = vpop.f32.mrb[66].mxu1 }
 0x15c   :  { %v2433_v18 = vmax.f32 %v1609_v11, 0.0  ;;  %v1612_v20 = vadd.f32 %v4802_v50, %v3339_v17  ;;  %v1603_v22 = vpop.f32.mrb[67].mxu0  ;;  %v2561_v23 = vmax.f32 %v2121_v14, 0.0  ;;  %v2124_v25 = vadd.f32 %v4802_v50, %v3467_v21  ;;  %v2115_v27 = vpop.f32.mrb[67].mxu1 }
 0x15d   :  { %v2431_v24 = vmax.f32 %v1601_v15, 0.0  ;;  %v1604_v26 = vadd.f32 %v4802_v50, %v1603_v22  ;;  %v2559_v28 = vmax.f32 %v2113_v19, 0.0  ;;  %v2116_v30 = vadd.f32 %v4802_v50, %v2115_v27 }
 0x15e   :  { %2690 = vst.msk [vmem:[%s5479_s3 + $0x210] sm:$0xff] %vm2623_vm2, %v2433_v18  ;;  %v2434_v29 = vmax.f32 %v1612_v20, 0.0  ;;  %2818 = vst.msk [vmem:[%s5479_s3 + $0x610] sm:$0xff] %vm2623_vm2, %v2561_v23  ;;  %v2562_v31 = vmax.f32 %v2124_v25, 0.0 }
 0x15f   :  { %2688 = vst.msk [vmem:[%s5479_s3 + $0x200] sm:$0xff] %vm2623_vm2, %v2431_v24  ;;  %v2432_v32 = vmax.f32 %v1604_v26, 0.0  ;;  %2816 = vst.msk [vmem:[%s5479_s3 + $0x600] sm:$0xff] %vm2623_vm2, %v2559_v28  ;;  %v2560_v33 = vmax.f32 %v2116_v30, 0.0 }
 0x160   :  { %2691 = vst.msk [vmem:[%s5479_s3 + $0x218] sm:$0xff] %vm2623_vm2, %v2434_v29  ;;  %2819 = vst.msk [vmem:[%s5479_s3 + $0x618] sm:$0xff] %vm2623_vm2, %v2562_v31 }
 0x161   :  { %2689 = vst.msk [vmem:[%s5479_s3 + $0x208] sm:$0xff] %vm2623_vm2, %v2432_v32  ;;  %v3342_v34 = vpop.f32.mrb[68].mxu0  ;;  %2817 = vst.msk [vmem:[%s5479_s3 + $0x608] sm:$0xff] %vm2623_vm2, %v2560_v33  ;;  %v3470_v36 = vpop.f32.mrb[68].mxu1 }
 0x162   :  { %v1625_v35 = vadd.f32 %v4802_v50, %v3342_v34  ;;  %v1616_v37 = vpop.f32.mrb[69].mxu0  ;;  %v2137_v38 = vadd.f32 %v4802_v50, %v3470_v36  ;;  %v2128_v40 = vpop.f32.mrb[69].mxu1 }
 0x163   :  { %v1617_v39 = vadd.f32 %v4802_v50, %v1616_v37  ;;  %v3343_v41 = vpop.f32.mrb[70].mxu0  ;;  %v2129_v43 = vadd.f32 %v4802_v50, %v2128_v40  ;;  %v3471_v45 = vpop.f32.mrb[70].mxu1 }
 0x164   :  { %v2437_v42 = vmax.f32 %v1625_v35, 0.0  ;;  %v1628_v44 = vadd.f32 %v4802_v50, %v3343_v41  ;;  %v1619_v46 = vpop.f32.mrb[71].mxu0  ;;  %v2565_v47 = vmax.f32 %v2137_v38, 0.0  ;;  %v2140_v48 = vadd.f32 %v4802_v50, %v3471_v45  ;;  %v2131_v52 = vpop.f32.mrb[71].mxu1 }
 0x165   :  { %v2435_v49 = vmax.f32 %v1617_v39, 0.0  ;;  %v1620_v51 = vadd.f32 %v4802_v50, %v1619_v46  ;;  %v2563_v53 = vmax.f32 %v2129_v43, 0.0  ;;  %v2132_v55 = vadd.f32 %v4802_v50, %v2131_v52 }
 0x166   :  { %2694 = vst.msk [vmem:[%s5479_s3 + $0x230] sm:$0xff] %vm2623_vm2, %v2437_v42  ;;  %v2438_v54 = vmax.f32 %v1628_v44, 0.0  ;;  %2822 = vst.msk [vmem:[%s5479_s3 + $0x630] sm:$0xff] %vm2623_vm2, %v2565_v47  ;;  %v2566_v56 = vmax.f32 %v2140_v48, 0.0 }
 0x167   :  { %2692 = vst.msk [vmem:[%s5479_s3 + $0x220] sm:$0xff] %vm2623_vm2, %v2435_v49  ;;  %v2436_v57 = vmax.f32 %v1620_v51, 0.0  ;;  %2820 = vst.msk [vmem:[%s5479_s3 + $0x620] sm:$0xff] %vm2623_vm2, %v2563_v53  ;;  %v2564_v58 = vmax.f32 %v2132_v55, 0.0 }
 0x168   :  { %2695 = vst.msk [vmem:[%s5479_s3 + $0x238] sm:$0xff] %vm2623_vm2, %v2438_v54  ;;  %2823 = vst.msk [vmem:[%s5479_s3 + $0x638] sm:$0xff] %vm2623_vm2, %v2566_v56 }
 0x169   :  { %2693 = vst.msk [vmem:[%s5479_s3 + $0x228] sm:$0xff] %vm2623_vm2, %v2436_v57  ;;  %v3346_v59 = vpop.f32.mrb[72].mxu0  ;;  %2821 = vst.msk [vmem:[%s5479_s3 + $0x628] sm:$0xff] %vm2623_vm2, %v2564_v58  ;;  %v3474_v61 = vpop.f32.mrb[72].mxu1 }
 0x16a   :  { %v1641_v60 = vadd.f32 %v4802_v50, %v3346_v59  ;;  %v1632_v62 = vpop.f32.mrb[73].mxu0  ;;  %v2153_v63 = vadd.f32 %v4802_v50, %v3474_v61  ;;  %v2144_v1 = vpop.f32.mrb[73].mxu1 }
 0x16b   :  { %v1633_v0 = vadd.f32 %v4802_v50, %v1632_v62  ;;  %v3347_v2 = vpop.f32.mrb[74].mxu0  ;;  %v2145_v4 = vadd.f32 %v4802_v50, %v2144_v1  ;;  %v3475_v6 = vpop.f32.mrb[74].mxu1 }
 0x16c   :  { %v2441_v3 = vmax.f32 %v1641_v60, 0.0  ;;  %v1644_v5 = vadd.f32 %v4802_v50, %v3347_v2  ;;  %v1635_v7 = vpop.f32.mrb[75].mxu0  ;;  %v2569_v8 = vmax.f32 %v2153_v63, 0.0  ;;  %v2156_v10 = vadd.f32 %v4802_v50, %v3475_v6  ;;  %v2147_v12 = vpop.f32.mrb[75].mxu1 }
 0x16d   :  { %v2439_v9 = vmax.f32 %v1633_v0, 0.0  ;;  %v1636_v11 = vadd.f32 %v4802_v50, %v1635_v7  ;;  %v2567_v13 = vmax.f32 %v2145_v4, 0.0  ;;  %v2148_v15 = vadd.f32 %v4802_v50, %v2147_v12 }
 0x16e   :  { %2698 = vst.msk [vmem:[%s5479_s3 + $0x250] sm:$0xff] %vm2623_vm2, %v2441_v3  ;;  %v2442_v14 = vmax.f32 %v1644_v5, 0.0  ;;  %2826 = vst.msk [vmem:[%s5479_s3 + $0x650] sm:$0xff] %vm2623_vm2, %v2569_v8  ;;  %v2570_v16 = vmax.f32 %v2156_v10, 0.0 }
 0x16f   :  { %2696 = vst.msk [vmem:[%s5479_s3 + $0x240] sm:$0xff] %vm2623_vm2, %v2439_v9  ;;  %v2440_v17 = vmax.f32 %v1636_v11, 0.0  ;;  %2824 = vst.msk [vmem:[%s5479_s3 + $0x640] sm:$0xff] %vm2623_vm2, %v2567_v13  ;;  %v2568_v18 = vmax.f32 %v2148_v15, 0.0 }
 0x170   :  { %2699 = vst.msk [vmem:[%s5479_s3 + $0x258] sm:$0xff] %vm2623_vm2, %v2442_v14  ;;  %2827 = vst.msk [vmem:[%s5479_s3 + $0x658] sm:$0xff] %vm2623_vm2, %v2570_v16 }
 0x171   :  { %2697 = vst.msk [vmem:[%s5479_s3 + $0x248] sm:$0xff] %vm2623_vm2, %v2440_v17  ;;  %v3350_v19 = vpop.f32.mrb[76].mxu0  ;;  %2825 = vst.msk [vmem:[%s5479_s3 + $0x648] sm:$0xff] %vm2623_vm2, %v2568_v18  ;;  %v3478_v21 = vpop.f32.mrb[76].mxu1 }
 0x172   :  { %v1657_v20 = vadd.f32 %v4802_v50, %v3350_v19  ;;  %v1648_v22 = vpop.f32.mrb[77].mxu0  ;;  %v2169_v23 = vadd.f32 %v4802_v50, %v3478_v21  ;;  %v2160_v25 = vpop.f32.mrb[77].mxu1 }
 0x173   :  { %v1649_v24 = vadd.f32 %v4802_v50, %v1648_v22  ;;  %v3351_v26 = vpop.f32.mrb[78].mxu0  ;;  %v2161_v28 = vadd.f32 %v4802_v50, %v2160_v25  ;;  %v3479_v30 = vpop.f32.mrb[78].mxu1 }
 0x174   :  { %v2445_v27 = vmax.f32 %v1657_v20, 0.0  ;;  %v1660_v29 = vadd.f32 %v4802_v50, %v3351_v26  ;;  %v1651_v31 = vpop.f32.mrb[79].mxu0  ;;  %v2573_v32 = vmax.f32 %v2169_v23, 0.0  ;;  %v2172_v34 = vadd.f32 %v4802_v50, %v3479_v30  ;;  %v2163_v36 = vpop.f32.mrb[79].mxu1 }
 0x175   :  { %v2443_v33 = vmax.f32 %v1649_v24, 0.0  ;;  %v1652_v35 = vadd.f32 %v4802_v50, %v1651_v31  ;;  %v2571_v37 = vmax.f32 %v2161_v28, 0.0  ;;  %v2164_v39 = vadd.f32 %v4802_v50, %v2163_v36 }
 0x176   :  { %2702 = vst.msk [vmem:[%s5479_s3 + $0x270] sm:$0xff] %vm2623_vm2, %v2445_v27  ;;  %v2446_v38 = vmax.f32 %v1660_v29, 0.0  ;;  %2830 = vst.msk [vmem:[%s5479_s3 + $0x670] sm:$0xff] %vm2623_vm2, %v2573_v32  ;;  %v2574_v40 = vmax.f32 %v2172_v34, 0.0 }
 0x177   :  { %2700 = vst.msk [vmem:[%s5479_s3 + $0x260] sm:$0xff] %vm2623_vm2, %v2443_v33  ;;  %v2444_v41 = vmax.f32 %v1652_v35, 0.0  ;;  %2828 = vst.msk [vmem:[%s5479_s3 + $0x660] sm:$0xff] %vm2623_vm2, %v2571_v37  ;;  %v2572_v42 = vmax.f32 %v2164_v39, 0.0 }
 0x178   :  { %2703 = vst.msk [vmem:[%s5479_s3 + $0x278] sm:$0xff] %vm2623_vm2, %v2446_v38  ;;  %2831 = vst.msk [vmem:[%s5479_s3 + $0x678] sm:$0xff] %vm2623_vm2, %v2574_v40 }
 0x179   :  { %2701 = vst.msk [vmem:[%s5479_s3 + $0x268] sm:$0xff] %vm2623_vm2, %v2444_v41  ;;  %v3354_v43 = vpop.f32.mrb[80].mxu0  ;;  %2829 = vst.msk [vmem:[%s5479_s3 + $0x668] sm:$0xff] %vm2623_vm2, %v2572_v42  ;;  %v3482_v45 = vpop.f32.mrb[80].mxu1 }
 0x17a   :  { %v1673_v44 = vadd.f32 %v4802_v50, %v3354_v43  ;;  %v1664_v46 = vpop.f32.mrb[81].mxu0  ;;  %v2185_v47 = vadd.f32 %v4802_v50, %v3482_v45  ;;  %v2176_v48 = vpop.f32.mrb[81].mxu1 }
 0x17b   :  { %v1665_v49 = vadd.f32 %v4802_v50, %v1664_v46  ;;  %v3355_v51 = vpop.f32.mrb[82].mxu0  ;;  %v2177_v53 = vadd.f32 %v4802_v50, %v2176_v48  ;;  %v3483_v55 = vpop.f32.mrb[82].mxu1 }
 0x17c   :  { %v2449_v52 = vmax.f32 %v1673_v44, 0.0  ;;  %v1676_v54 = vadd.f32 %v4802_v50, %v3355_v51  ;;  %v1667_v56 = vpop.f32.mrb[83].mxu0  ;;  %v2577_v57 = vmax.f32 %v2185_v47, 0.0  ;;  %v2188_v59 = vadd.f32 %v4802_v50, %v3483_v55  ;;  %v2179_v61 = vpop.f32.mrb[83].mxu1 }
 0x17d   :  { %v2447_v58 = vmax.f32 %v1665_v49, 0.0  ;;  %v1668_v60 = vadd.f32 %v4802_v50, %v1667_v56  ;;  %v2575_v62 = vmax.f32 %v2177_v53, 0.0  ;;  %v2180_v0 = vadd.f32 %v4802_v50, %v2179_v61 }
 0x17e   :  { %2706 = vst.msk [vmem:[%s5479_s3 + $0x290] sm:$0xff] %vm2623_vm2, %v2449_v52  ;;  %v2450_v63 = vmax.f32 %v1676_v54, 0.0  ;;  %2834 = vst.msk [vmem:[%s5479_s3 + $0x690] sm:$0xff] %vm2623_vm2, %v2577_v57  ;;  %v2578_v1 = vmax.f32 %v2188_v59, 0.0 }
 0x17f   :  { %2704 = vst.msk [vmem:[%s5479_s3 + $0x280] sm:$0xff] %vm2623_vm2, %v2447_v58  ;;  %v2448_v2 = vmax.f32 %v1668_v60, 0.0  ;;  %2832 = vst.msk [vmem:[%s5479_s3 + $0x680] sm:$0xff] %vm2623_vm2, %v2575_v62  ;;  %v2576_v3 = vmax.f32 %v2180_v0, 0.0 }
 0x180   :  { %2707 = vst.msk [vmem:[%s5479_s3 + $0x298] sm:$0xff] %vm2623_vm2, %v2450_v63  ;;  %2835 = vst.msk [vmem:[%s5479_s3 + $0x698] sm:$0xff] %vm2623_vm2, %v2578_v1 }
 0x181   :  { %2705 = vst.msk [vmem:[%s5479_s3 + $0x288] sm:$0xff] %vm2623_vm2, %v2448_v2  ;;  %v3358_v4 = vpop.f32.mrb[84].mxu0  ;;  %2833 = vst.msk [vmem:[%s5479_s3 + $0x688] sm:$0xff] %vm2623_vm2, %v2576_v3  ;;  %v3486_v6 = vpop.f32.mrb[84].mxu1 }
 0x182   :  { %v1689_v5 = vadd.f32 %v4802_v50, %v3358_v4  ;;  %v1680_v7 = vpop.f32.mrb[85].mxu0  ;;  %v2201_v8 = vadd.f32 %v4802_v50, %v3486_v6  ;;  %v2192_v10 = vpop.f32.mrb[85].mxu1 }
 0x183   :  { %v1681_v9 = vadd.f32 %v4802_v50, %v1680_v7  ;;  %v3359_v11 = vpop.f32.mrb[86].mxu0  ;;  %v2193_v13 = vadd.f32 %v4802_v50, %v2192_v10  ;;  %v3487_v15 = vpop.f32.mrb[86].mxu1 }
 0x184   :  { %v2453_v12 = vmax.f32 %v1689_v5, 0.0  ;;  %v1692_v14 = vadd.f32 %v4802_v50, %v3359_v11  ;;  %v1683_v16 = vpop.f32.mrb[87].mxu0  ;;  %v2581_v17 = vmax.f32 %v2201_v8, 0.0  ;;  %v2204_v19 = vadd.f32 %v4802_v50, %v3487_v15  ;;  %v2195_v21 = vpop.f32.mrb[87].mxu1 }
 0x185   :  { %v2451_v18 = vmax.f32 %v1681_v9, 0.0  ;;  %v1684_v20 = vadd.f32 %v4802_v50, %v1683_v16  ;;  %v2579_v22 = vmax.f32 %v2193_v13, 0.0  ;;  %v2196_v24 = vadd.f32 %v4802_v50, %v2195_v21 }
 0x186   :  { %2710 = vst.msk [vmem:[%s5479_s3 + $0x2b0] sm:$0xff] %vm2623_vm2, %v2453_v12  ;;  %v2454_v23 = vmax.f32 %v1692_v14, 0.0  ;;  %2838 = vst.msk [vmem:[%s5479_s3 + $0x6b0] sm:$0xff] %vm2623_vm2, %v2581_v17  ;;  %v2582_v25 = vmax.f32 %v2204_v19, 0.0 }
 0x187   :  { %2708 = vst.msk [vmem:[%s5479_s3 + $0x2a0] sm:$0xff] %vm2623_vm2, %v2451_v18  ;;  %v2452_v26 = vmax.f32 %v1684_v20, 0.0  ;;  %2836 = vst.msk [vmem:[%s5479_s3 + $0x6a0] sm:$0xff] %vm2623_vm2, %v2579_v22  ;;  %v2580_v27 = vmax.f32 %v2196_v24, 0.0 }
 0x188   :  { %2711 = vst.msk [vmem:[%s5479_s3 + $0x2b8] sm:$0xff] %vm2623_vm2, %v2454_v23  ;;  %2839 = vst.msk [vmem:[%s5479_s3 + $0x6b8] sm:$0xff] %vm2623_vm2, %v2582_v25 }
 0x189   :  { %2709 = vst.msk [vmem:[%s5479_s3 + $0x2a8] sm:$0xff] %vm2623_vm2, %v2452_v26  ;;  %v3362_v28 = vpop.f32.mrb[88].mxu0  ;;  %2837 = vst.msk [vmem:[%s5479_s3 + $0x6a8] sm:$0xff] %vm2623_vm2, %v2580_v27  ;;  %v3490_v30 = vpop.f32.mrb[88].mxu1 }
 0x18a   :  { %v1705_v29 = vadd.f32 %v4802_v50, %v3362_v28  ;;  %v1696_v31 = vpop.f32.mrb[89].mxu0  ;;  %v2217_v32 = vadd.f32 %v4802_v50, %v3490_v30  ;;  %v2208_v34 = vpop.f32.mrb[89].mxu1 }
 0x18b   :  { %v1697_v33 = vadd.f32 %v4802_v50, %v1696_v31  ;;  %v3363_v35 = vpop.f32.mrb[90].mxu0  ;;  %v2209_v37 = vadd.f32 %v4802_v50, %v2208_v34  ;;  %v3491_v39 = vpop.f32.mrb[90].mxu1 }
 0x18c   :  { %v2457_v36 = vmax.f32 %v1705_v29, 0.0  ;;  %v1708_v38 = vadd.f32 %v4802_v50, %v3363_v35  ;;  %v1699_v40 = vpop.f32.mrb[91].mxu0  ;;  %v2585_v41 = vmax.f32 %v2217_v32, 0.0  ;;  %v2220_v43 = vadd.f32 %v4802_v50, %v3491_v39  ;;  %v2211_v45 = vpop.f32.mrb[91].mxu1 }
 0x18d   :  { %v2455_v42 = vmax.f32 %v1697_v33, 0.0  ;;  %v1700_v44 = vadd.f32 %v4802_v50, %v1699_v40  ;;  %v2583_v46 = vmax.f32 %v2209_v37, 0.0  ;;  %v2212_v49 = vadd.f32 %v4802_v50, %v2211_v45 }
 0x18e   :  { %2714 = vst.msk [vmem:[%s5479_s3 + $0x2d0] sm:$0xff] %vm2623_vm2, %v2457_v36  ;;  %v2458_v47 = vmax.f32 %v1708_v38, 0.0  ;;  %2842 = vst.msk [vmem:[%s5479_s3 + $0x6d0] sm:$0xff] %vm2623_vm2, %v2585_v41  ;;  %v2586_v48 = vmax.f32 %v2220_v43, 0.0 }
 0x18f   :  { %2712 = vst.msk [vmem:[%s5479_s3 + $0x2c0] sm:$0xff] %vm2623_vm2, %v2455_v42  ;;  %v2456_v51 = vmax.f32 %v1700_v44, 0.0  ;;  %2840 = vst.msk [vmem:[%s5479_s3 + $0x6c0] sm:$0xff] %vm2623_vm2, %v2583_v46  ;;  %v2584_v52 = vmax.f32 %v2212_v49, 0.0 }
 0x190   :  { %2715 = vst.msk [vmem:[%s5479_s3 + $0x2d8] sm:$0xff] %vm2623_vm2, %v2458_v47  ;;  %2843 = vst.msk [vmem:[%s5479_s3 + $0x6d8] sm:$0xff] %vm2623_vm2, %v2586_v48 }
 0x191   :  { %2713 = vst.msk [vmem:[%s5479_s3 + $0x2c8] sm:$0xff] %vm2623_vm2, %v2456_v51  ;;  %v3366_v53 = vpop.f32.mrb[92].mxu0  ;;  %2841 = vst.msk [vmem:[%s5479_s3 + $0x6c8] sm:$0xff] %vm2623_vm2, %v2584_v52  ;;  %v3494_v55 = vpop.f32.mrb[92].mxu1 }
 0x192   :  { %v1721_v54 = vadd.f32 %v4802_v50, %v3366_v53  ;;  %v1712_v56 = vpop.f32.mrb[93].mxu0  ;;  %v2233_v57 = vadd.f32 %v4802_v50, %v3494_v55  ;;  %v2224_v59 = vpop.f32.mrb[93].mxu1 }
 0x193   :  { %v1713_v58 = vadd.f32 %v4802_v50, %v1712_v56  ;;  %v3367_v60 = vpop.f32.mrb[94].mxu0  ;;  %v2225_v62 = vadd.f32 %v4802_v50, %v2224_v59  ;;  %v3495_v0 = vpop.f32.mrb[94].mxu1 }
 0x194   :  { %v2461_v61 = vmax.f32 %v1721_v54, 0.0  ;;  %v1724_v63 = vadd.f32 %v4802_v50, %v3367_v60  ;;  %v1715_v1 = vpop.f32.mrb[95].mxu0  ;;  %v2589_v2 = vmax.f32 %v2233_v57, 0.0  ;;  %v2236_v4 = vadd.f32 %v4802_v50, %v3495_v0  ;;  %v2227_v6 = vpop.f32.mrb[95].mxu1 }
 0x195   :  { %v2459_v3 = vmax.f32 %v1713_v58, 0.0  ;;  %v1716_v5 = vadd.f32 %v4802_v50, %v1715_v1  ;;  %v2587_v7 = vmax.f32 %v2225_v62, 0.0  ;;  %v2228_v9 = vadd.f32 %v4802_v50, %v2227_v6 }
 0x196   :  { %2718 = vst.msk [vmem:[%s5479_s3 + $0x2f0] sm:$0xff] %vm2623_vm2, %v2461_v61  ;;  %v2462_v8 = vmax.f32 %v1724_v63, 0.0  ;;  %2846 = vst.msk [vmem:[%s5479_s3 + $0x6f0] sm:$0xff] %vm2623_vm2, %v2589_v2  ;;  %v2590_v10 = vmax.f32 %v2236_v4, 0.0 }
 0x197   :  { %2716 = vst.msk [vmem:[%s5479_s3 + $0x2e0] sm:$0xff] %vm2623_vm2, %v2459_v3  ;;  %v2460_v11 = vmax.f32 %v1716_v5, 0.0  ;;  %2844 = vst.msk [vmem:[%s5479_s3 + $0x6e0] sm:$0xff] %vm2623_vm2, %v2587_v7  ;;  %v2588_v12 = vmax.f32 %v2228_v9, 0.0 }
 0x198   :  { %2719 = vst.msk [vmem:[%s5479_s3 + $0x2f8] sm:$0xff] %vm2623_vm2, %v2462_v8  ;;  %2847 = vst.msk [vmem:[%s5479_s3 + $0x6f8] sm:$0xff] %vm2623_vm2, %v2590_v10 }
 0x199   :  { %2717 = vst.msk [vmem:[%s5479_s3 + $0x2e8] sm:$0xff] %vm2623_vm2, %v2460_v11  ;;  %v3370_v13 = vpop.f32.mrb[96].mxu0  ;;  %2845 = vst.msk [vmem:[%s5479_s3 + $0x6e8] sm:$0xff] %vm2623_vm2, %v2588_v12  ;;  %v3498_v15 = vpop.f32.mrb[96].mxu1 }
 0x19a   :  { %v1737_v14 = vadd.f32 %v4802_v50, %v3370_v13  ;;  %v1728_v16 = vpop.f32.mrb[97].mxu0  ;;  %v2249_v17 = vadd.f32 %v4802_v50, %v3498_v15  ;;  %v2240_v19 = vpop.f32.mrb[97].mxu1 }
 0x19b   :  { %v1729_v18 = vadd.f32 %v4802_v50, %v1728_v16  ;;  %v3371_v20 = vpop.f32.mrb[98].mxu0  ;;  %v2241_v22 = vadd.f32 %v4802_v50, %v2240_v19  ;;  %v3499_v24 = vpop.f32.mrb[98].mxu1 }
 0x19c   :  { %v2465_v21 = vmax.f32 %v1737_v14, 0.0  ;;  %v1740_v23 = vadd.f32 %v4802_v50, %v3371_v20  ;;  %v1731_v25 = vpop.f32.mrb[99].mxu0  ;;  %v2593_v26 = vmax.f32 %v2249_v17, 0.0  ;;  %v2252_v28 = vadd.f32 %v4802_v50, %v3499_v24  ;;  %v2243_v30 = vpop.f32.mrb[99].mxu1 }
 0x19d   :  { %v2463_v27 = vmax.f32 %v1729_v18, 0.0  ;;  %v1732_v29 = vadd.f32 %v4802_v50, %v1731_v25  ;;  %v2591_v31 = vmax.f32 %v2241_v22, 0.0  ;;  %v2244_v33 = vadd.f32 %v4802_v50, %v2243_v30 }
 0x19e   :  { %2722 = vst.msk [vmem:[%s5479_s3 + $0x310] sm:$0xff] %vm2623_vm2, %v2465_v21  ;;  %v2466_v32 = vmax.f32 %v1740_v23, 0.0  ;;  %2850 = vst.msk [vmem:[%s5479_s3 + $0x710] sm:$0xff] %vm2623_vm2, %v2593_v26  ;;  %v2594_v34 = vmax.f32 %v2252_v28, 0.0 }
 0x19f   :  { %2720 = vst.msk [vmem:[%s5479_s3 + $0x300] sm:$0xff] %vm2623_vm2, %v2463_v27  ;;  %v2464_v35 = vmax.f32 %v1732_v29, 0.0  ;;  %2848 = vst.msk [vmem:[%s5479_s3 + $0x700] sm:$0xff] %vm2623_vm2, %v2591_v31  ;;  %v2592_v36 = vmax.f32 %v2244_v33, 0.0 }
 0x1a0   :  { %2723 = vst.msk [vmem:[%s5479_s3 + $0x318] sm:$0xff] %vm2623_vm2, %v2466_v32  ;;  %2851 = vst.msk [vmem:[%s5479_s3 + $0x718] sm:$0xff] %vm2623_vm2, %v2594_v34 }
 0x1a1   :  { %2721 = vst.msk [vmem:[%s5479_s3 + $0x308] sm:$0xff] %vm2623_vm2, %v2464_v35  ;;  %v3374_v37 = vpop.f32.mrb[100].mxu0  ;;  %2849 = vst.msk [vmem:[%s5479_s3 + $0x708] sm:$0xff] %vm2623_vm2, %v2592_v36  ;;  %v3502_v39 = vpop.f32.mrb[100].mxu1 }
 0x1a2   :  { %v1753_v38 = vadd.f32 %v4802_v50, %v3374_v37  ;;  %v1744_v40 = vpop.f32.mrb[101].mxu0  ;;  %v2265_v41 = vadd.f32 %v4802_v50, %v3502_v39  ;;  %v2256_v43 = vpop.f32.mrb[101].mxu1 }
 0x1a3   :  { %v1745_v42 = vadd.f32 %v4802_v50, %v1744_v40  ;;  %v3375_v44 = vpop.f32.mrb[102].mxu0  ;;  %v2257_v46 = vadd.f32 %v4802_v50, %v2256_v43  ;;  %v3503_v49 = vpop.f32.mrb[102].mxu1 }
 0x1a4   :  { %v2469_v45 = vmax.f32 %v1753_v38, 0.0  ;;  %v1756_v47 = vadd.f32 %v4802_v50, %v3375_v44  ;;  %v1747_v48 = vpop.f32.mrb[103].mxu0  ;;  %v2597_v51 = vmax.f32 %v2265_v41, 0.0  ;;  %v2268_v53 = vadd.f32 %v4802_v50, %v3503_v49  ;;  %v2259_v55 = vpop.f32.mrb[103].mxu1 }
 0x1a5   :  { %v2467_v52 = vmax.f32 %v1745_v42, 0.0  ;;  %v1748_v54 = vadd.f32 %v4802_v50, %v1747_v48  ;;  %v2595_v56 = vmax.f32 %v2257_v46, 0.0  ;;  %v2260_v58 = vadd.f32 %v4802_v50, %v2259_v55 }
 0x1a6   :  { %2726 = vst.msk [vmem:[%s5479_s3 + $0x330] sm:$0xff] %vm2623_vm2, %v2469_v45  ;;  %v2470_v57 = vmax.f32 %v1756_v47, 0.0  ;;  %2854 = vst.msk [vmem:[%s5479_s3 + $0x730] sm:$0xff] %vm2623_vm2, %v2597_v51  ;;  %v2598_v59 = vmax.f32 %v2268_v53, 0.0 }
 0x1a7   :  { %2724 = vst.msk [vmem:[%s5479_s3 + $0x320] sm:$0xff] %vm2623_vm2, %v2467_v52  ;;  %v2468_v60 = vmax.f32 %v1748_v54, 0.0  ;;  %2852 = vst.msk [vmem:[%s5479_s3 + $0x720] sm:$0xff] %vm2623_vm2, %v2595_v56  ;;  %v2596_v61 = vmax.f32 %v2260_v58, 0.0 }
 0x1a8   :  { %2727 = vst.msk [vmem:[%s5479_s3 + $0x338] sm:$0xff] %vm2623_vm2, %v2470_v57  ;;  %2855 = vst.msk [vmem:[%s5479_s3 + $0x738] sm:$0xff] %vm2623_vm2, %v2598_v59 }
 0x1a9   :  { %2725 = vst.msk [vmem:[%s5479_s3 + $0x328] sm:$0xff] %vm2623_vm2, %v2468_v60  ;;  %v3378_v62 = vpop.f32.mrb[104].mxu0  ;;  %2853 = vst.msk [vmem:[%s5479_s3 + $0x728] sm:$0xff] %vm2623_vm2, %v2596_v61  ;;  %v3506_v0 = vpop.f32.mrb[104].mxu1 }
 0x1aa   :  { %v1769_v63 = vadd.f32 %v4802_v50, %v3378_v62  ;;  %v1760_v1 = vpop.f32.mrb[105].mxu0  ;;  %v2281_v2 = vadd.f32 %v4802_v50, %v3506_v0  ;;  %v2272_v4 = vpop.f32.mrb[105].mxu1 }
 0x1ab   :  { %v1761_v3 = vadd.f32 %v4802_v50, %v1760_v1  ;;  %v3379_v5 = vpop.f32.mrb[106].mxu0  ;;  %v2273_v7 = vadd.f32 %v4802_v50, %v2272_v4  ;;  %v3507_v9 = vpop.f32.mrb[106].mxu1 }
 0x1ac   :  { %v2473_v6 = vmax.f32 %v1769_v63, 0.0  ;;  %v1772_v8 = vadd.f32 %v4802_v50, %v3379_v5  ;;  %v1763_v10 = vpop.f32.mrb[107].mxu0  ;;  %v2601_v11 = vmax.f32 %v2281_v2, 0.0  ;;  %v2284_v13 = vadd.f32 %v4802_v50, %v3507_v9  ;;  %v2275_v15 = vpop.f32.mrb[107].mxu1 }
 0x1ad   :  { %v2471_v12 = vmax.f32 %v1761_v3, 0.0  ;;  %v1764_v14 = vadd.f32 %v4802_v50, %v1763_v10  ;;  %v2599_v16 = vmax.f32 %v2273_v7, 0.0  ;;  %v2276_v18 = vadd.f32 %v4802_v50, %v2275_v15 }
 0x1ae   :  { %2730 = vst.msk [vmem:[%s5479_s3 + $0x350] sm:$0xff] %vm2623_vm2, %v2473_v6  ;;  %v2474_v17 = vmax.f32 %v1772_v8, 0.0  ;;  %2858 = vst.msk [vmem:[%s5479_s3 + $0x750] sm:$0xff] %vm2623_vm2, %v2601_v11  ;;  %v2602_v19 = vmax.f32 %v2284_v13, 0.0 }
 0x1af   :  { %2728 = vst.msk [vmem:[%s5479_s3 + $0x340] sm:$0xff] %vm2623_vm2, %v2471_v12  ;;  %v2472_v20 = vmax.f32 %v1764_v14, 0.0  ;;  %2856 = vst.msk [vmem:[%s5479_s3 + $0x740] sm:$0xff] %vm2623_vm2, %v2599_v16  ;;  %v2600_v21 = vmax.f32 %v2276_v18, 0.0 }
 0x1b0   :  { %2731 = vst.msk [vmem:[%s5479_s3 + $0x358] sm:$0xff] %vm2623_vm2, %v2474_v17  ;;  %2859 = vst.msk [vmem:[%s5479_s3 + $0x758] sm:$0xff] %vm2623_vm2, %v2602_v19 }
 0x1b1   :  { %2729 = vst.msk [vmem:[%s5479_s3 + $0x348] sm:$0xff] %vm2623_vm2, %v2472_v20  ;;  %v3382_v22 = vpop.f32.mrb[108].mxu0  ;;  %2857 = vst.msk [vmem:[%s5479_s3 + $0x748] sm:$0xff] %vm2623_vm2, %v2600_v21  ;;  %v3510_v24 = vpop.f32.mrb[108].mxu1 }
 0x1b2   :  { %v1785_v23 = vadd.f32 %v4802_v50, %v3382_v22  ;;  %v1776_v25 = vpop.f32.mrb[109].mxu0  ;;  %v2297_v26 = vadd.f32 %v4802_v50, %v3510_v24  ;;  %v2288_v28 = vpop.f32.mrb[109].mxu1 }
 0x1b3   :  { %v1777_v27 = vadd.f32 %v4802_v50, %v1776_v25  ;;  %v3383_v29 = vpop.f32.mrb[110].mxu0  ;;  %v2289_v31 = vadd.f32 %v4802_v50, %v2288_v28  ;;  %v3511_v33 = vpop.f32.mrb[110].mxu1 }
 0x1b4   :  { %v2477_v30 = vmax.f32 %v1785_v23, 0.0  ;;  %v1788_v32 = vadd.f32 %v4802_v50, %v3383_v29  ;;  %v1779_v34 = vpop.f32.mrb[111].mxu0  ;;  %v2605_v35 = vmax.f32 %v2297_v26, 0.0  ;;  %v2300_v37 = vadd.f32 %v4802_v50, %v3511_v33  ;;  %v2291_v39 = vpop.f32.mrb[111].mxu1 }
 0x1b5   :  { %v2475_v36 = vmax.f32 %v1777_v27, 0.0  ;;  %v1780_v38 = vadd.f32 %v4802_v50, %v1779_v34  ;;  %v2603_v40 = vmax.f32 %v2289_v31, 0.0  ;;  %v2292_v42 = vadd.f32 %v4802_v50, %v2291_v39 }
 0x1b6   :  { %2734 = vst.msk [vmem:[%s5479_s3 + $0x370] sm:$0xff] %vm2623_vm2, %v2477_v30  ;;  %v2478_v41 = vmax.f32 %v1788_v32, 0.0  ;;  %2862 = vst.msk [vmem:[%s5479_s3 + $0x770] sm:$0xff] %vm2623_vm2, %v2605_v35  ;;  %v2606_v43 = vmax.f32 %v2300_v37, 0.0 }
 0x1b7   :  { %2732 = vst.msk [vmem:[%s5479_s3 + $0x360] sm:$0xff] %vm2623_vm2, %v2475_v36  ;;  %v2476_v44 = vmax.f32 %v1780_v38, 0.0  ;;  %2860 = vst.msk [vmem:[%s5479_s3 + $0x760] sm:$0xff] %vm2623_vm2, %v2603_v40  ;;  %v2604_v45 = vmax.f32 %v2292_v42, 0.0 }
 0x1b8   :  { %2735 = vst.msk [vmem:[%s5479_s3 + $0x378] sm:$0xff] %vm2623_vm2, %v2478_v41  ;;  %2863 = vst.msk [vmem:[%s5479_s3 + $0x778] sm:$0xff] %vm2623_vm2, %v2606_v43 }
 0x1b9   :  { %2733 = vst.msk [vmem:[%s5479_s3 + $0x368] sm:$0xff] %vm2623_vm2, %v2476_v44  ;;  %v3386_v46 = vpop.f32.mrb[112].mxu0  ;;  %2861 = vst.msk [vmem:[%s5479_s3 + $0x768] sm:$0xff] %vm2623_vm2, %v2604_v45  ;;  %v3514_v49 = vpop.f32.mrb[112].mxu1 }
 0x1ba   :  { %v1801_v47 = vadd.f32 %v4802_v50, %v3386_v46  ;;  %v1792_v48 = vpop.f32.mrb[113].mxu0  ;;  %v2313_v51 = vadd.f32 %v4802_v50, %v3514_v49  ;;  %v2304_v53 = vpop.f32.mrb[113].mxu1 }
 0x1bb   :  { %v1793_v52 = vadd.f32 %v4802_v50, %v1792_v48  ;;  %v3387_v54 = vpop.f32.mrb[114].mxu0  ;;  %v2305_v56 = vadd.f32 %v4802_v50, %v2304_v53  ;;  %v3515_v58 = vpop.f32.mrb[114].mxu1 }
 0x1bc   :  { %v2481_v55 = vmax.f32 %v1801_v47, 0.0  ;;  %v1804_v57 = vadd.f32 %v4802_v50, %v3387_v54  ;;  %v1795_v59 = vpop.f32.mrb[115].mxu0  ;;  %v2609_v60 = vmax.f32 %v2313_v51, 0.0  ;;  %v2316_v62 = vadd.f32 %v4802_v50, %v3515_v58  ;;  %v2307_v0 = vpop.f32.mrb[115].mxu1 }
 0x1bd   :  { %v2479_v61 = vmax.f32 %v1793_v52, 0.0  ;;  %v1796_v63 = vadd.f32 %v4802_v50, %v1795_v59  ;;  %v2607_v1 = vmax.f32 %v2305_v56, 0.0  ;;  %v2308_v3 = vadd.f32 %v4802_v50, %v2307_v0  ;;  %v3661_v56 = vld [vmem:[#allocation2] ss:$0 sm:$0xff] }
 0x1be   :  { %2738 = vst.msk [vmem:[%s5479_s3 + $0x390] sm:$0xff] %vm2623_vm2, %v2481_v55  ;;  %v2482_v2 = vmax.f32 %v1804_v57, 0.0  ;;  %2866 = vst.msk [vmem:[%s5479_s3 + $0x790] sm:$0xff] %vm2623_vm2, %v2609_v60  ;;  %v2610_v4 = vmax.f32 %v2316_v62, 0.0 }
 0x1bf   :  { %2736 = vst.msk [vmem:[%s5479_s3 + $0x380] sm:$0xff] %vm2623_vm2, %v2479_v61  ;;  %v2480_v5 = vmax.f32 %v1796_v63, 0.0  ;;  %2864 = vst.msk [vmem:[%s5479_s3 + $0x780] sm:$0xff] %vm2623_vm2, %v2607_v1  ;;  %v2608_v6 = vmax.f32 %v2308_v3, 0.0 }
 0x1c0   :  { %2739 = vst.msk [vmem:[%s5479_s3 + $0x398] sm:$0xff] %vm2623_vm2, %v2482_v2  ;;  %2867 = vst.msk [vmem:[%s5479_s3 + $0x798] sm:$0xff] %vm2623_vm2, %v2610_v4 }
 0x1c1   :  { %2737 = vst.msk [vmem:[%s5479_s3 + $0x388] sm:$0xff] %vm2623_vm2, %v2480_v5  ;;  %v3390_v7 = vpop.f32.mrb[116].mxu0  ;;  %2865 = vst.msk [vmem:[%s5479_s3 + $0x788] sm:$0xff] %vm2623_vm2, %v2608_v6  ;;  %v3518_v9 = vpop.f32.mrb[116].mxu1 }
 0x1c2   :  { %v1817_v8 = vadd.f32 %v4802_v50, %v3390_v7  ;;  %v1808_v10 = vpop.f32.mrb[117].mxu0  ;;  %v2329_v11 = vadd.f32 %v4802_v50, %v3518_v9  ;;  %v2320_v13 = vpop.f32.mrb[117].mxu1 }
 0x1c3   :  { %v1809_v12 = vadd.f32 %v4802_v50, %v1808_v10  ;;  %v3391_v14 = vpop.f32.mrb[118].mxu0  ;;  %v2321_v16 = vadd.f32 %v4802_v50, %v2320_v13  ;;  %v3519_v18 = vpop.f32.mrb[118].mxu1 }
 0x1c4   :  { %v2485_v15 = vmax.f32 %v1817_v8, 0.0  ;;  %v1820_v17 = vadd.f32 %v4802_v50, %v3391_v14  ;;  %v1811_v19 = vpop.f32.mrb[119].mxu0  ;;  %v2613_v20 = vmax.f32 %v2329_v11, 0.0  ;;  %v2332_v22 = vadd.f32 %v4802_v50, %v3519_v18  ;;  %v2323_v24 = vpop.f32.mrb[119].mxu1 }
 0x1c5   :  { %v2483_v21 = vmax.f32 %v1809_v12, 0.0  ;;  %v1812_v23 = vadd.f32 %v4802_v50, %v1811_v19  ;;  %v2611_v25 = vmax.f32 %v2321_v16, 0.0  ;;  %v2324_v27 = vadd.f32 %v4802_v50, %v2323_v24 }
 0x1c6   :  { %2742 = vst.msk [vmem:[%s5479_s3 + $0x3b0] sm:$0xff] %vm2623_vm2, %v2485_v15  ;;  %v2486_v26 = vmax.f32 %v1820_v17, 0.0  ;;  %2870 = vst.msk [vmem:[%s5479_s3 + $0x7b0] sm:$0xff] %vm2623_vm2, %v2613_v20  ;;  %v2614_v28 = vmax.f32 %v2332_v22, 0.0 }
 0x1c7   :  { %2740 = vst.msk [vmem:[%s5479_s3 + $0x3a0] sm:$0xff] %vm2623_vm2, %v2483_v21  ;;  %v2484_v29 = vmax.f32 %v1812_v23, 0.0  ;;  %2868 = vst.msk [vmem:[%s5479_s3 + $0x7a0] sm:$0xff] %vm2623_vm2, %v2611_v25  ;;  %v2612_v30 = vmax.f32 %v2324_v27, 0.0 }
 0x1c8   :  { %2743 = vst.msk [vmem:[%s5479_s3 + $0x3b8] sm:$0xff] %vm2623_vm2, %v2486_v26  ;;  %2871 = vst.msk [vmem:[%s5479_s3 + $0x7b8] sm:$0xff] %vm2623_vm2, %v2614_v28 }
 0x1c9   :  { %2741 = vst.msk [vmem:[%s5479_s3 + $0x3a8] sm:$0xff] %vm2623_vm2, %v2484_v29  ;;  %v3394_v31 = vpop.f32.mrb[120].mxu0  ;;  %2869 = vst.msk [vmem:[%s5479_s3 + $0x7a8] sm:$0xff] %vm2623_vm2, %v2612_v30  ;;  %v3522_v33 = vpop.f32.mrb[120].mxu1 }
 0x1ca   :  { %v1833_v32 = vadd.f32 %v4802_v50, %v3394_v31  ;;  %v1824_v34 = vpop.f32.mrb[121].mxu0  ;;  %v2345_v35 = vadd.f32 %v4802_v50, %v3522_v33  ;;  %v2336_v37 = vpop.f32.mrb[121].mxu1 }
 0x1cb   :  { %v1825_v36 = vadd.f32 %v4802_v50, %v1824_v34  ;;  %v3395_v38 = vpop.f32.mrb[122].mxu0  ;;  %v2337_v40 = vadd.f32 %v4802_v50, %v2336_v37  ;;  %v3523_v42 = vpop.f32.mrb[122].mxu1 }
 0x1cc   :  { %v2489_v39 = vmax.f32 %v1833_v32, 0.0  ;;  %v1836_v41 = vadd.f32 %v4802_v50, %v3395_v38  ;;  %v1827_v43 = vpop.f32.mrb[123].mxu0  ;;  %v2617_v44 = vmax.f32 %v2345_v35, 0.0  ;;  %v2348_v46 = vadd.f32 %v4802_v50, %v3523_v42  ;;  %v2339_v49 = vpop.f32.mrb[123].mxu1 }
 0x1cd   :  { %v2487_v45 = vmax.f32 %v1825_v36, 0.0  ;;  %v1828_v47 = vadd.f32 %v4802_v50, %v1827_v43  ;;  %v2615_v48 = vmax.f32 %v2337_v40, 0.0  ;;  %v2340_v52 = vadd.f32 %v4802_v50, %v2339_v49 }
 0x1ce   :  { %2746 = vst.msk [vmem:[%s5479_s3 + $0x3d0] sm:$0xff] %vm2623_vm2, %v2489_v39  ;;  %v2490_v51 = vmax.f32 %v1836_v41, 0.0  ;;  %2874 = vst.msk [vmem:[%s5479_s3 + $0x7d0] sm:$0xff] %vm2623_vm2, %v2617_v44  ;;  %v2618_v53 = vmax.f32 %v2348_v46, 0.0 }
 0x1cf   :  { %2744 = vst.msk [vmem:[%s5479_s3 + $0x3c0] sm:$0xff] %vm2623_vm2, %v2487_v45  ;;  %v2488_v54 = vmax.f32 %v1828_v47, 0.0  ;;  %2872 = vst.msk [vmem:[%s5479_s3 + $0x7c0] sm:$0xff] %vm2623_vm2, %v2615_v48  ;;  %v2616_v50 = vmax.f32 %v2340_v52, 0.0 }
 0x1d0   :  { %2747 = vst.msk [vmem:[%s5479_s3 + $0x3d8] sm:$0xff] %vm2623_vm2, %v2490_v51  ;;  %2875 = vst.msk [vmem:[%s5479_s3 + $0x7d8] sm:$0xff] %vm2623_vm2, %v2618_v53 }
 0x1d1   :  { %2745 = vst.msk [vmem:[%s5479_s3 + $0x3c8] sm:$0xff] %vm2623_vm2, %v2488_v54  ;;  %v3398_v55 = vpop.f32.mrb[124].mxu0  ;;  %2873 = vst.msk [vmem:[%s5479_s3 + $0x7c8] sm:$0xff] %vm2623_vm2, %v2616_v50  ;;  %v3526_v58 = vpop.f32.mrb[124].mxu1 }
 0x1d2   :  { %v1849_v57 = vadd.f32 %v3661_v56, %v3398_v55  ;;  %v1840_v59 = vpop.f32.mrb[125].mxu0  ;;  %v2361_v60 = vadd.f32 %v3661_v56, %v3526_v58  ;;  %v2352_v62 = vpop.f32.mrb[125].mxu1 }
 0x1d3   :  { %v1841_v61 = vadd.f32 %v3661_v56, %v1840_v59  ;;  %v3399_v63 = vpop.f32.mrb[126].mxu0  ;;  %v2353_v1 = vadd.f32 %v3661_v56, %v2352_v62  ;;  %v3527_v3 = vpop.f32.mrb[126].mxu1 }
 0x1d4   :  { %v2493_v0 = vmax.f32 %v1849_v57, 0.0  ;;  %v1852_v2 = vadd.f32 %v3661_v56, %v3399_v63  ;;  %v1843_v4 = vpop.f32.mrb[127].mxu0  ;;  %v2621_v5 = vmax.f32 %v2361_v60, 0.0  ;;  %v2364_v7 = vadd.f32 %v3661_v56, %v3527_v3  ;;  %v2355_v9 = vpop.f32.mrb[127].mxu1 }
 0x1d5   :  { %v2491_v6 = vmax.f32 %v1841_v61, 0.0  ;;  %v1844_v8 = vadd.f32 %v3661_v56, %v1843_v4  ;;  %v2619_v10 = vmax.f32 %v2353_v1, 0.0  ;;  %v2356_v12 = vadd.f32 %v3661_v56, %v2355_v9 }
 0x1d6   :  { %2750 = vst.msk [vmem:[%s5479_s3 + $0x3f0] sm:$0xff] %vm2623_vm2, %v2493_v0  ;;  %v2494_v11 = vmax.f32 %v1852_v2, 0.0  ;;  %2878 = vst.msk [vmem:[%s5479_s3 + $0x7f0] sm:$0xff] %vm2623_vm2, %v2621_v5  ;;  %v2622_v13 = vmax.f32 %v2364_v7, 0.0 }
 0x1d7   :  { %2748 = vst.msk [vmem:[%s5479_s3 + $0x3e0] sm:$0xff] %vm2623_vm2, %v2491_v6  ;;  %v2492_v14 = vmax.f32 %v1844_v8, 0.0  ;;  %2876 = vst.msk [vmem:[%s5479_s3 + $0x7e0] sm:$0xff] %vm2623_vm2, %v2619_v10  ;;  %v2620_v15 = vmax.f32 %v2356_v12, 0.0 }
 0x1d8   :  { %2751 = vst.msk [vmem:[%s5479_s3 + $0x3f8] sm:$0xff] %vm2623_vm2, %v2494_v11  ;;  %2879 = vst.msk [vmem:[%s5479_s3 + $0x7f8] sm:$0xff] %vm2623_vm2, %v2622_v13 }
 0x1d9   :  { %2749 = vst.msk [vmem:[%s5479_s3 + $0x3e8] sm:$0xff] %vm2623_vm2, %v2492_v14  ;;  %2877 = vst.msk [vmem:[%s5479_s3 + $0x7e8] sm:$0xff] %vm2623_vm2, %v2620_v15 }

</bundles_post_ra>
